<compile_context>
chip_gen: v7x
topology: tpu7x:2x2x1
jax: 0.10.0
libtpu: 0.0.40
codegen_flags: <defaults>
</compile_context>

<pallas_src>
import functools

import jax
import jax.numpy as jnp
from jax.experimental import pallas as pl
from jax.experimental.pallas import tpu as pltpu

LANE = 128


def _pad128(n):
    return ((n + LANE - 1) // LANE) * LANE


# ----------------------------------------------------------------------------
# Fused Pallas kernel: entire VAE forward in one call, weights resident in VMEM
# ----------------------------------------------------------------------------
def _vae_fused_kernel(*refs, n_enc, n_dec):
    # ---- unpack refs: inputs..., outputs..., scratch... ---------------------
    it = iter(refs)
    x_ref = next(it)
    eps_ref = next(it)                                   # (B, 128), eps at lanes 0:2
    enc = [(next(it), next(it)) for _ in range(n_enc)]   # (w_bf16, b_f32) pairs
    w_st_ref, b_st_ref = next(it), next(it)              # merged mean/logvar head
    dec = [(next(it), next(it)) for _ in range(n_dec)]
    xhat_ref, mean_ref, logvar_ref = next(it), next(it), next(it)
    h_scratch = (next(it), next(it))                     # ping-pong activation bufs

    def linear(h, w_ref, b_ref):
        # bf16 x bf16 on the MXU with f32 accumulation; bias add in f32.
        y = jnp.dot(h.astype(jnp.bfloat16), w_ref[...],
                    preferred_element_type=jnp.float32)
        return y + b_ref[...]

    def leaky_relu(y):
        return jnp.where(y >= 0.0, y, 0.2 * y)

    def to_scratch(y, layer_idx):
        # Materialize into ping-pong VMEM scratch to bound live ranges across
        # the unrolled 19-layer chain. Widths are multiples of 128 (aligned).
        out_w = y.shape[1]
        buf = h_scratch[layer_idx % 2]
        buf[:, 0:out_w] = y
        return buf[:, 0:out_w]

    # ---- encoder: 8 x (Linear -> LeakyReLU(0.2)); Dropout == identity ------
    h = x_ref[...]
    for li, (w_ref, b_ref) in enumerate(enc):
        h = to_scratch(leaky_relu(linear(h, w_ref, b_ref)), li)

    # ---- merged mean / logvar heads: one (latent_pad, 256) matmul ----------
    stats = linear(h, w_st_ref, b_st_ref)        # (B, 256)
    mean_p = stats[:, 0:LANE]                    # mean at lanes 0:2, rest 0
    logvar_p = stats[:, LANE:2 * LANE]           # logvar at lanes 0:2, rest 0
    mean_ref[...] = mean_p
    logvar_ref[...] = logvar_p

    # ---- reparameterization (module semantics): z = mean + logvar * eps ----
    h = mean_p + logvar_p * eps_ref[...]         # padded lanes stay exactly 0

    # ---- decoder: 9 x Linear; LeakyReLU on all but last, Sigmoid on last ---
    for li, (w_ref, b_ref) in enumerate(dec):
        y = linear(h, w_ref, b_ref)
        if li == n_dec - 1:
            # numerically-stable sigmoid routed to the EUP (tanh form)
            xhat_ref[...] = 0.5 * (jnp.tanh(0.5 * y) + 1.0)
        else:
            h = to_scratch(leaky_relu(y), li)


# ----------------------------------------------------------------------------
# Parameter construction (PyTorch-default-style uniform init, zero-padded)
# ----------------------------------------------------------------------------
def _make_linear(key, din, dout):
    kw, kb = jax.random.split(key)
    bound = 1.0 / (float(din) ** 0.5)
    w = jax.random.uniform(kw, (din, dout), jnp.float32, -bound, bound)
    b = jax.random.uniform(kb, (dout,), jnp.float32, -bound, bound)
    din_p, dout_p = _pad128(din), _pad128(dout)
    w_p = jnp.zeros((din_p, dout_p), jnp.float32).at[:din, :dout].set(w)
    b_p = jnp.zeros((1, dout_p), jnp.float32).at[0, :dout].set(b)
    return w_p.astype(jnp.bfloat16), b_p


def build_vae_params(key, input_dim, hidden_dim, latent_dim):
    enc_dims = [input_dim] + hidden_dim + [latent_dim]           # 768 .. 50 -> 16
    dec_dims = [2, latent_dim] + hidden_dim[::-1] + [input_dim]  # 2 -> 16 .. 768
    n_layers = (len(enc_dims) - 1) + 2 + (len(dec_dims) - 1)
    keys = jax.random.split(key, n_layers)
    ki = 0

    encoder = []
    for i in range(len(enc_dims) - 1):
        encoder.append(_make_linear(keys[ki], enc_dims[i], enc_dims[i + 1]))
        ki += 1

    # Merge mean / logvar heads: mean weights occupy output lanes [0:2],
    # logvar weights occupy output lanes [128:130]; everything else is zero.
    wm, bm = _make_linear(keys[ki], latent_dim, 2); ki += 1
    wl, bl = _make_linear(keys[ki], latent_dim, 2); ki += 1
    latent_p = _pad128(latent_dim)
    w_st = jnp.zeros((latent_p, 2 * LANE), jnp.bfloat16)
    w_st = w_st.at[:, 0:LANE].set(wm).at[:, LANE:2 * LANE].set(wl)
    b_st = jnp.zeros((1, 2 * LANE), jnp.float32)
    b_st = b_st.at[:, 0:LANE].set(bm).at[:, LANE:2 * LANE].set(bl)

    decoder = []
    for i in range(len(dec_dims) - 1):
        decoder.append(_make_linear(keys[ki], dec_dims[i], dec_dims[i + 1]))
        ki += 1

    return dict(encoder=encoder, stats=(w_st, b_st), decoder=decoder)


# ----------------------------------------------------------------------------
# Wrapper: one pallas_call for the whole forward pass
# ----------------------------------------------------------------------------
def vae_forward(params, x, eps):
    B, input_dim = x.shape
    out_dim2 = eps.shape[1]  # = 2

    # eps padded to a full lane vector (values at lanes 0:2, zeros elsewhere)
    eps_p = jnp.zeros((B, LANE), jnp.float32).at[:, :out_dim2].set(eps)

    inputs = [x, eps_p]
    for w, b in params["encoder"]:
        inputs += [w, b]
    inputs += [params["stats"][0], params["stats"][1]]
    for w, b in params["decoder"]:
        inputs += [w, b]

    max_w = max(input_dim,
                *(w.shape[1] for w, _ in params["encoder"]),
                *(w.shape[1] for w, _ in params["decoder"]))

    kernel = functools.partial(_vae_fused_kernel,
                               n_enc=len(params["encoder"]),
                               n_dec=len(params["decoder"]))

    out_shape = (
        jax.ShapeDtypeStruct((B, input_dim), jnp.float32),   # x_hat
        jax.ShapeDtypeStruct((B, LANE), jnp.float32),        # mean (padded)
        jax.ShapeDtypeStruct((B, LANE), jnp.float32),        # logvar (padded)
    )

    x_hat, mean_p, logvar_p = pl.pallas_call(
        kernel,
        out_shape=out_shape,
        in_specs=[pl.BlockSpec(a.shape, lambda: (0, 0)) for a in inputs],
        out_specs=tuple(pl.BlockSpec(s.shape, lambda: (0, 0)) for s in out_shape),
        scratch_shapes=[pltpu.VMEM((B, max_w), jnp.float32),
                        pltpu.VMEM((B, max_w), jnp.float32)],
        compiler_params=pltpu.CompilerParams(
            vmem_limit_bytes=32 * 1024 * 1024),
    )(*inputs)

    return x_hat, mean_p[:, :out_dim2], logvar_p[:, :out_dim2]


if __name__ == "__main__":
    input_dim = 768
    hidden_dim = [600, 500, 400, 300, 200, 100, 50]
    latent_dim = 16
    batch = 8

    root = jax.random.PRNGKey(0)
    k_params, k_x, k_eps = jax.random.split(root, 3)

    params = build_vae_params(k_params, input_dim, hidden_dim, latent_dim)
    x = jax.random.uniform(k_x, (batch, input_dim), jnp.float32)
    eps = jax.random.normal(k_eps, (batch, 2), jnp.float32)

    x_hat, mean, logvar = jax.jit(vae_forward)(params, x, eps)
    jax.block_until_ready((x_hat, mean, logvar))

    assert x_hat.shape == (batch, input_dim)
    assert mean.shape == (batch, 2) and logvar.shape == (batch, 2)
    assert bool(jnp.all(jnp.isfinite(x_hat)))
    print("KERNEL_OK")
</pallas_src>

<mosaic_0001>
module attributes {stable_mosaic.version = 11 : i64} {
  func.func @_vae_fused_kernel(%arg0: memref<8x768xf32, #tpu.memory_space<vmem>>, %arg1: memref<8x128xf32, #tpu.memory_space<vmem>>, %arg2: memref<768x640xbf16, #tpu.memory_space<vmem>>, %arg3: memref<1x640xf32, #tpu.memory_space<vmem>>, %arg4: memref<640x512xbf16, #tpu.memory_space<vmem>>, %arg5: memref<1x512xf32, #tpu.memory_space<vmem>>, %arg6: memref<512x512xbf16, #tpu.memory_space<vmem>>, %arg7: memref<1x512xf32, #tpu.memory_space<vmem>>, %arg8: memref<512x384xbf16, #tpu.memory_space<vmem>>, %arg9: memref<1x384xf32, #tpu.memory_space<vmem>>, %arg10: memref<384x256xbf16, #tpu.memory_space<vmem>>, %arg11: memref<1x256xf32, #tpu.memory_space<vmem>>, %arg12: memref<256x128xbf16, #tpu.memory_space<vmem>>, %arg13: memref<1x128xf32, #tpu.memory_space<vmem>>, %arg14: memref<128x128xbf16, #tpu.memory_space<vmem>>, %arg15: memref<1x128xf32, #tpu.memory_space<vmem>>, %arg16: memref<128x128xbf16, #tpu.memory_space<vmem>>, %arg17: memref<1x128xf32, #tpu.memory_space<vmem>>, %arg18: memref<128x256xbf16, #tpu.memory_space<vmem>>, %arg19: memref<1x256xf32, #tpu.memory_space<vmem>>, %arg20: memref<128x128xbf16, #tpu.memory_space<vmem>>, %arg21: memref<1x128xf32, #tpu.memory_space<vmem>>, %arg22: memref<128x128xbf16, #tpu.memory_space<vmem>>, %arg23: memref<1x128xf32, #tpu.memory_space<vmem>>, %arg24: memref<128x128xbf16, #tpu.memory_space<vmem>>, %arg25: memref<1x128xf32, #tpu.memory_space<vmem>>, %arg26: memref<128x256xbf16, #tpu.memory_space<vmem>>, %arg27: memref<1x256xf32, #tpu.memory_space<vmem>>, %arg28: memref<256x384xbf16, #tpu.memory_space<vmem>>, %arg29: memref<1x384xf32, #tpu.memory_space<vmem>>, %arg30: memref<384x512xbf16, #tpu.memory_space<vmem>>, %arg31: memref<1x512xf32, #tpu.memory_space<vmem>>, %arg32: memref<512x512xbf16, #tpu.memory_space<vmem>>, %arg33: memref<1x512xf32, #tpu.memory_space<vmem>>, %arg34: memref<512x640xbf16, #tpu.memory_space<vmem>>, %arg35: memref<1x640xf32, #tpu.memory_space<vmem>>, %arg36: memref<640x768xbf16, #tpu.memory_space<vmem>>, %arg37: memref<1x768xf32, #tpu.memory_space<vmem>>, %arg38: memref<8x768xf32, #tpu.memory_space<vmem>>, %arg39: memref<8x128xf32, #tpu.memory_space<vmem>>, %arg40: memref<8x128xf32, #tpu.memory_space<vmem>>, %arg41: memref<8x768xf32, #tpu.memory_space<vmem>>, %arg42: memref<8x768xf32, #tpu.memory_space<vmem>>) attributes {dimension_semantics = [], scalar_prefetch = 0 : i64, scratch_operands = 2 : i64, tpu.core_type = #tpu.core_type<tc>} {
    %c0 = arith.constant 0 : index
    %c0_0 = arith.constant 0 : index
    %0 = vector.load %arg0[%c0, %c0_0] : memref<8x768xf32, #tpu.memory_space<vmem>>, vector<8x768xf32>
    %1 = arith.truncf %0 : vector<8x768xf32> to vector<8x768xbf16>
    %c0_1 = arith.constant 0 : index
    %c0_2 = arith.constant 0 : index
    %2 = vector.load %arg2[%c0_1, %c0_2] : memref<768x640xbf16, #tpu.memory_space<vmem>>, vector<768x640xbf16>
    %cst = arith.constant dense<0.000000e+00> : vector<8x640xf32>
    %3 = tpu.matmul %1, %2, %cst {dimension_numbers = #tpu.dot_dimension_numbers<[1], [0], [0], [1], [0, 0, 1, 1], [], []>} : vector<8x768xbf16>, vector<768x640xbf16>, vector<8x640xf32> -> vector<8x640xf32>
    %c0_3 = arith.constant 0 : index
    %c0_4 = arith.constant 0 : index
    %4 = vector.load %arg3[%c0_3, %c0_4] : memref<1x640xf32, #tpu.memory_space<vmem>>, vector<1x640xf32>
    %5 = vector.broadcast %4 : vector<1x640xf32> to vector<8x640xf32>
    %6 = arith.addf %3, %5 : vector<8x640xf32>
    %cst_5 = arith.constant 0.000000e+00 : f32
    %7 = vector.broadcast %cst_5 : f32 to vector<8x640xf32>
    %8 = arith.cmpf oge, %6, %7 : vector<8x640xf32>
    %cst_6 = arith.constant 2.000000e-01 : f32
    %9 = vector.broadcast %cst_6 : f32 to vector<8x640xf32>
    %10 = arith.mulf %9, %6 : vector<8x640xf32>
    %11 = arith.select %8, %6, %10 : vector<8x640xi1>, vector<8x640xf32>
    %c0_7 = arith.constant 0 : index
    %c0_8 = arith.constant 0 : index
    %12 = vector.load %arg41[%c0_7, %c0_8] : memref<8x768xf32, #tpu.memory_space<vmem>>, vector<8x640xf32>
    tpu.vector_store %arg41[%c0_7, %c0_8], %11 {strides = array<i32>} : memref<8x768xf32, #tpu.memory_space<vmem>>, vector<8x640xf32>,
    %c0_9 = arith.constant 0 : index
    %c0_10 = arith.constant 0 : index
    %13 = vector.load %arg41[%c0_9, %c0_10] : memref<8x768xf32, #tpu.memory_space<vmem>>, vector<8x640xf32>
    %14 = arith.truncf %13 : vector<8x640xf32> to vector<8x640xbf16>
    %c0_11 = arith.constant 0 : index
    %c0_12 = arith.constant 0 : index
    %15 = vector.load %arg4[%c0_11, %c0_12] : memref<640x512xbf16, #tpu.memory_space<vmem>>, vector<640x512xbf16>
    %cst_13 = arith.constant dense<0.000000e+00> : vector<8x512xf32>
    %16 = tpu.matmul %14, %15, %cst_13 {dimension_numbers = #tpu.dot_dimension_numbers<[1], [0], [0], [1], [0, 0, 1, 1], [], []>} : vector<8x640xbf16>, vector<640x512xbf16>, vector<8x512xf32> -> vector<8x512xf32>
    %c0_14 = arith.constant 0 : index
    %c0_15 = arith.constant 0 : index
    %17 = vector.load %arg5[%c0_14, %c0_15] : memref<1x512xf32, #tpu.memory_space<vmem>>, vector<1x512xf32>
    %18 = vector.broadcast %17 : vector<1x512xf32> to vector<8x512xf32>
    %19 = arith.addf %16, %18 : vector<8x512xf32>
    %cst_16 = arith.constant 0.000000e+00 : f32
    %20 = vector.broadcast %cst_16 : f32 to vector<8x512xf32>
    %21 = arith.cmpf oge, %19, %20 : vector<8x512xf32>
    %cst_17 = arith.constant 2.000000e-01 : f32
    %22 = vector.broadcast %cst_17 : f32 to vector<8x512xf32>
    %23 = arith.mulf %22, %19 : vector<8x512xf32>
    %24 = arith.select %21, %19, %23 : vector<8x512xi1>, vector<8x512xf32>
    %c0_18 = arith.constant 0 : index
    %c0_19 = arith.constant 0 : index
    %25 = vector.load %arg42[%c0_18, %c0_19] : memref<8x768xf32, #tpu.memory_space<vmem>>, vector<8x512xf32>
    tpu.vector_store %arg42[%c0_18, %c0_19], %24 {strides = array<i32>} : memref<8x768xf32, #tpu.memory_space<vmem>>, vector<8x512xf32>,
    %c0_20 = arith.constant 0 : index
    %c0_21 = arith.constant 0 : index
    %26 = vector.load %arg42[%c0_20, %c0_21] : memref<8x768xf32, #tpu.memory_space<vmem>>, vector<8x512xf32>
    %27 = arith.truncf %26 : vector<8x512xf32> to vector<8x512xbf16>
    %c0_22 = arith.constant 0 : index
    %c0_23 = arith.constant 0 : index
    %28 = vector.load %arg6[%c0_22, %c0_23] : memref<512x512xbf16, #tpu.memory_space<vmem>>, vector<512x512xbf16>
    %cst_24 = arith.constant dense<0.000000e+00> : vector<8x512xf32>
    %29 = tpu.matmul %27, %28, %cst_24 {dimension_numbers = #tpu.dot_dimension_numbers<[1], [0], [0], [1], [0, 0, 1, 1], [], []>} : vector<8x512xbf16>, vector<512x512xbf16>, vector<8x512xf32> -> vector<8x512xf32>
    %c0_25 = arith.constant 0 : index
    %c0_26 = arith.constant 0 : index
    %30 = vector.load %arg7[%c0_25, %c0_26] : memref<1x512xf32, #tpu.memory_space<vmem>>, vector<1x512xf32>
    %31 = vector.broadcast %30 : vector<1x512xf32> to vector<8x512xf32>
    %32 = arith.addf %29, %31 : vector<8x512xf32>
    %cst_27 = arith.constant 0.000000e+00 : f32
    %33 = vector.broadcast %cst_27 : f32 to vector<8x512xf32>
    %34 = arith.cmpf oge, %32, %33 : vector<8x512xf32>
    %cst_28 = arith.constant 2.000000e-01 : f32
    %35 = vector.broadcast %cst_28 : f32 to vector<8x512xf32>
    %36 = arith.mulf %35, %32 : vector<8x512xf32>
    %37 = arith.select %34, %32, %36 : vector<8x512xi1>, vector<8x512xf32>
    %c0_29 = arith.constant 0 : index
    %c0_30 = arith.constant 0 : index
    %38 = vector.load %arg41[%c0_29, %c0_30] : memref<8x768xf32, #tpu.memory_space<vmem>>, vector<8x512xf32>
    tpu.vector_store %arg41[%c0_29, %c0_30], %37 {strides = array<i32>} : memref<8x768xf32, #tpu.memory_space<vmem>>, vector<8x512xf32>,
    %c0_31 = arith.constant 0 : index
    %c0_32 = arith.constant 0 : index
    %39 = vector.load %arg41[%c0_31, %c0_32] : memref<8x768xf32, #tpu.memory_space<vmem>>, vector<8x512xf32>
    %40 = arith.truncf %39 : vector<8x512xf32> to vector<8x512xbf16>
    %c0_33 = arith.constant 0 : index
    %c0_34 = arith.constant 0 : index
    %41 = vector.load %arg8[%c0_33, %c0_34] : memref<512x384xbf16, #tpu.memory_space<vmem>>, vector<512x384xbf16>
    %cst_35 = arith.constant dense<0.000000e+00> : vector<8x384xf32>
    %42 = tpu.matmul %40, %41, %cst_35 {dimension_numbers = #tpu.dot_dimension_numbers<[1], [0], [0], [1], [0, 0, 1, 1], [], []>} : vector<8x512xbf16>, vector<512x384xbf16>, vector<8x384xf32> -> vector<8x384xf32>
    %c0_36 = arith.constant 0 : index
    %c0_37 = arith.constant 0 : index
    %43 = vector.load %arg9[%c0_36, %c0_37] : memref<1x384xf32, #tpu.memory_space<vmem>>, vector<1x384xf32>
    %44 = vector.broadcast %43 : vector<1x384xf32> to vector<8x384xf32>
    %45 = arith.addf %42, %44 : vector<8x384xf32>
    %cst_38 = arith.constant 0.000000e+00 : f32
    %46 = vector.broadcast %cst_38 : f32 to vector<8x384xf32>
    %47 = arith.cmpf oge, %45, %46 : vector<8x384xf32>
    %cst_39 = arith.constant 2.000000e-01 : f32
    %48 = vector.broadcast %cst_39 : f32 to vector<8x384xf32>
    %49 = arith.mulf %48, %45 : vector<8x384xf32>
    %50 = arith.select %47, %45, %49 : vector<8x384xi1>, vector<8x384xf32>
    %c0_40 = arith.constant 0 : index
    %c0_41 = arith.constant 0 : index
    %51 = vector.load %arg42[%c0_40, %c0_41] : memref<8x768xf32, #tpu.memory_space<vmem>>, vector<8x384xf32>
    tpu.vector_store %arg42[%c0_40, %c0_41], %50 {strides = array<i32>} : memref<8x768xf32, #tpu.memory_space<vmem>>, vector<8x384xf32>,
    %c0_42 = arith.constant 0 : index
    %c0_43 = arith.constant 0 : index
    %52 = vector.load %arg42[%c0_42, %c0_43] : memref<8x768xf32, #tpu.memory_space<vmem>>, vector<8x384xf32>
    %53 = arith.truncf %52 : vector<8x384xf32> to vector<8x384xbf16>
    %c0_44 = arith.constant 0 : index
    %c0_45 = arith.constant 0 : index
    %54 = vector.load %arg10[%c0_44, %c0_45] : memref<384x256xbf16, #tpu.memory_space<vmem>>, vector<384x256xbf16>
    %cst_46 = arith.constant dense<0.000000e+00> : vector<8x256xf32>
    %55 = tpu.matmul %53, %54, %cst_46 {dimension_numbers = #tpu.dot_dimension_numbers<[1], [0], [0], [1], [0, 0, 1, 1], [], []>} : vector<8x384xbf16>, vector<384x256xbf16>, vector<8x256xf32> -> vector<8x256xf32>
    %c0_47 = arith.constant 0 : index
    %c0_48 = arith.constant 0 : index
    %56 = vector.load %arg11[%c0_47, %c0_48] : memref<1x256xf32, #tpu.memory_space<vmem>>, vector<1x256xf32>
    %57 = vector.broadcast %56 : vector<1x256xf32> to vector<8x256xf32>
    %58 = arith.addf %55, %57 : vector<8x256xf32>
    %cst_49 = arith.constant 0.000000e+00 : f32
    %59 = vector.broadcast %cst_49 : f32 to vector<8x256xf32>
    %60 = arith.cmpf oge, %58, %59 : vector<8x256xf32>
    %cst_50 = arith.constant 2.000000e-01 : f32
    %61 = vector.broadcast %cst_50 : f32 to vector<8x256xf32>
    %62 = arith.mulf %61, %58 : vector<8x256xf32>
    %63 = arith.select %60, %58, %62 : vector<8x256xi1>, vector<8x256xf32>
    %c0_51 = arith.constant 0 : index
    %c0_52 = arith.constant 0 : index
    %64 = vector.load %arg41[%c0_51, %c0_52] : memref<8x768xf32, #tpu.memory_space<vmem>>, vector<8x256xf32>
    tpu.vector_store %arg41[%c0_51, %c0_52], %63 {strides = array<i32>} : memref<8x768xf32, #tpu.memory_space<vmem>>, vector<8x256xf32>,
    %c0_53 = arith.constant 0 : index
    %c0_54 = arith.constant 0 : index
    %65 = vector.load %arg41[%c0_53, %c0_54] : memref<8x768xf32, #tpu.memory_space<vmem>>, vector<8x256xf32>
    %66 = arith.truncf %65 : vector<8x256xf32> to vector<8x256xbf16>
    %c0_55 = arith.constant 0 : index
    %c0_56 = arith.constant 0 : index
    %67 = vector.load %arg12[%c0_55, %c0_56] : memref<256x128xbf16, #tpu.memory_space<vmem>>, vector<256x128xbf16>
    %cst_57 = arith.constant dense<0.000000e+00> : vector<8x128xf32>
    %68 = tpu.matmul %66, %67, %cst_57 {dimension_numbers = #tpu.dot_dimension_numbers<[1], [0], [0], [1], [0, 0, 1, 1], [], []>} : vector<8x256xbf16>, vector<256x128xbf16>, vector<8x128xf32> -> vector<8x128xf32>
    %c0_58 = arith.constant 0 : index
    %c0_59 = arith.constant 0 : index
    %69 = vector.load %arg13[%c0_58, %c0_59] : memref<1x128xf32, #tpu.memory_space<vmem>>, vector<1x128xf32>
    %70 = vector.broadcast %69 : vector<1x128xf32> to vector<8x128xf32>
    %71 = arith.addf %68, %70 : vector<8x128xf32>
    %cst_60 = arith.constant 0.000000e+00 : f32
    %72 = vector.broadcast %cst_60 : f32 to vector<8x128xf32>
    %73 = arith.cmpf oge, %71, %72 : vector<8x128xf32>
    %cst_61 = arith.constant 2.000000e-01 : f32
    %74 = vector.broadcast %cst_61 : f32 to vector<8x128xf32>
    %75 = arith.mulf %74, %71 : vector<8x128xf32>
    %76 = arith.select %73, %71, %75 : vector<8x128xi1>, vector<8x128xf32>
    %c0_62 = arith.constant 0 : index
    %c0_63 = arith.constant 0 : index
    %77 = vector.load %arg42[%c0_62, %c0_63] : memref<8x768xf32, #tpu.memory_space<vmem>>, vector<8x128xf32>
    tpu.vector_store %arg42[%c0_62, %c0_63], %76 {strides = array<i32>} : memref<8x768xf32, #tpu.memory_space<vmem>>, vector<8x128xf32>,
    %c0_64 = arith.constant 0 : index
    %c0_65 = arith.constant 0 : index
    %78 = vector.load %arg42[%c0_64, %c0_65] : memref<8x768xf32, #tpu.memory_space<vmem>>, vector<8x128xf32>
    %79 = arith.truncf %78 : vector<8x128xf32> to vector<8x128xbf16>
    %c0_66 = arith.constant 0 : index
    %c0_67 = arith.constant 0 : index
    %80 = vector.load %arg14[%c0_66, %c0_67] : memref<128x128xbf16, #tpu.memory_space<vmem>>, vector<128x128xbf16>
    %cst_68 = arith.constant dense<0.000000e+00> : vector<8x128xf32>
    %81 = tpu.matmul %79, %80, %cst_68 {dimension_numbers = #tpu.dot_dimension_numbers<[1], [0], [0], [1], [0, 0, 1, 1], [], []>} : vector<8x128xbf16>, vector<128x128xbf16>, vector<8x128xf32> -> vector<8x128xf32>
    %c0_69 = arith.constant 0 : index
    %c0_70 = arith.constant 0 : index
    %82 = vector.load %arg15[%c0_69, %c0_70] : memref<1x128xf32, #tpu.memory_space<vmem>>, vector<1x128xf32>
    %83 = vector.broadcast %82 : vector<1x128xf32> to vector<8x128xf32>
    %84 = arith.addf %81, %83 : vector<8x128xf32>
    %cst_71 = arith.constant 0.000000e+00 : f32
    %85 = vector.broadcast %cst_71 : f32 to vector<8x128xf32>
    %86 = arith.cmpf oge, %84, %85 : vector<8x128xf32>
    %cst_72 = arith.constant 2.000000e-01 : f32
    %87 = vector.broadcast %cst_72 : f32 to vector<8x128xf32>
    %88 = arith.mulf %87, %84 : vector<8x128xf32>
    %89 = arith.select %86, %84, %88 : vector<8x128xi1>, vector<8x128xf32>
    %c0_73 = arith.constant 0 : index
    %c0_74 = arith.constant 0 : index
    %90 = vector.load %arg41[%c0_73, %c0_74] : memref<8x768xf32, #tpu.memory_space<vmem>>, vector<8x128xf32>
    tpu.vector_store %arg41[%c0_73, %c0_74], %89 {strides = array<i32>} : memref<8x768xf32, #tpu.memory_space<vmem>>, vector<8x128xf32>,
    %c0_75 = arith.constant 0 : index
    %c0_76 = arith.constant 0 : index
    %91 = vector.load %arg41[%c0_75, %c0_76] : memref<8x768xf32, #tpu.memory_space<vmem>>, vector<8x128xf32>
    %92 = arith.truncf %91 : vector<8x128xf32> to vector<8x128xbf16>
    %c0_77 = arith.constant 0 : index
    %c0_78 = arith.constant 0 : index
    %93 = vector.load %arg16[%c0_77, %c0_78] : memref<128x128xbf16, #tpu.memory_space<vmem>>, vector<128x128xbf16>
    %cst_79 = arith.constant dense<0.000000e+00> : vector<8x128xf32>
    %94 = tpu.matmul %92, %93, %cst_79 {dimension_numbers = #tpu.dot_dimension_numbers<[1], [0], [0], [1], [0, 0, 1, 1], [], []>} : vector<8x128xbf16>, vector<128x128xbf16>, vector<8x128xf32> -> vector<8x128xf32>
    %c0_80 = arith.constant 0 : index
    %c0_81 = arith.constant 0 : index
    %95 = vector.load %arg17[%c0_80, %c0_81] : memref<1x128xf32, #tpu.memory_space<vmem>>, vector<1x128xf32>
    %96 = vector.broadcast %95 : vector<1x128xf32> to vector<8x128xf32>
    %97 = arith.addf %94, %96 : vector<8x128xf32>
    %cst_82 = arith.constant 0.000000e+00 : f32
    %98 = vector.broadcast %cst_82 : f32 to vector<8x128xf32>
    %99 = arith.cmpf oge, %97, %98 : vector<8x128xf32>
    %cst_83 = arith.constant 2.000000e-01 : f32
    %100 = vector.broadcast %cst_83 : f32 to vector<8x128xf32>
    %101 = arith.mulf %100, %97 : vector<8x128xf32>
    %102 = arith.select %99, %97, %101 : vector<8x128xi1>, vector<8x128xf32>
    %c0_84 = arith.constant 0 : index
    %c0_85 = arith.constant 0 : index
    %103 = vector.load %arg42[%c0_84, %c0_85] : memref<8x768xf32, #tpu.memory_space<vmem>>, vector<8x128xf32>
    tpu.vector_store %arg42[%c0_84, %c0_85], %102 {strides = array<i32>} : memref<8x768xf32, #tpu.memory_space<vmem>>, vector<8x128xf32>,
    %c0_86 = arith.constant 0 : index
    %c0_87 = arith.constant 0 : index
    %104 = vector.load %arg42[%c0_86, %c0_87] : memref<8x768xf32, #tpu.memory_space<vmem>>, vector<8x128xf32>
    %105 = arith.truncf %104 : vector<8x128xf32> to vector<8x128xbf16>
    %c0_88 = arith.constant 0 : index
    %c0_89 = arith.constant 0 : index
    %106 = vector.load %arg18[%c0_88, %c0_89] : memref<128x256xbf16, #tpu.memory_space<vmem>>, vector<128x256xbf16>
    %cst_90 = arith.constant dense<0.000000e+00> : vector<8x256xf32>
    %107 = tpu.matmul %105, %106, %cst_90 {dimension_numbers = #tpu.dot_dimension_numbers<[1], [0], [0], [1], [0, 0, 1, 1], [], []>} : vector<8x128xbf16>, vector<128x256xbf16>, vector<8x256xf32> -> vector<8x256xf32>
    %c0_91 = arith.constant 0 : index
    %c0_92 = arith.constant 0 : index
    %108 = vector.load %arg19[%c0_91, %c0_92] : memref<1x256xf32, #tpu.memory_space<vmem>>, vector<1x256xf32>
    %109 = vector.broadcast %108 : vector<1x256xf32> to vector<8x256xf32>
    %110 = arith.addf %107, %109 : vector<8x256xf32>
    %111 = vector.extract_strided_slice %110 {offsets = [0, 0], sizes = [8, 128], strides = [1, 1]} : vector<8x256xf32> to vector<8x128xf32>
    %112 = vector.extract_strided_slice %110 {offsets = [0, 128], sizes = [8, 128], strides = [1, 1]} : vector<8x256xf32> to vector<8x128xf32>
    %c0_93 = arith.constant 0 : index
    %c0_94 = arith.constant 0 : index
    %113 = vector.load %arg39[%c0_93, %c0_94] : memref<8x128xf32, #tpu.memory_space<vmem>>, vector<8x128xf32>
    tpu.vector_store %arg39[%c0_93, %c0_94], %111 {strides = array<i32>} : memref<8x128xf32, #tpu.memory_space<vmem>>, vector<8x128xf32>,
    %c0_95 = arith.constant 0 : index
    %c0_96 = arith.constant 0 : index
    %114 = vector.load %arg40[%c0_95, %c0_96] : memref<8x128xf32, #tpu.memory_space<vmem>>, vector<8x128xf32>
    tpu.vector_store %arg40[%c0_95, %c0_96], %112 {strides = array<i32>} : memref<8x128xf32, #tpu.memory_space<vmem>>, vector<8x128xf32>,
    %c0_97 = arith.constant 0 : index
    %c0_98 = arith.constant 0 : index
    %115 = vector.load %arg1[%c0_97, %c0_98] : memref<8x128xf32, #tpu.memory_space<vmem>>, vector<8x128xf32>
    %116 = arith.mulf %112, %115 : vector<8x128xf32>
    %117 = arith.addf %111, %116 : vector<8x128xf32>
    %118 = arith.truncf %117 : vector<8x128xf32> to vector<8x128xbf16>
    %c0_99 = arith.constant 0 : index
    %c0_100 = arith.constant 0 : index
    %119 = vector.load %arg20[%c0_99, %c0_100] : memref<128x128xbf16, #tpu.memory_space<vmem>>, vector<128x128xbf16>
    %cst_101 = arith.constant dense<0.000000e+00> : vector<8x128xf32>
    %120 = tpu.matmul %118, %119, %cst_101 {dimension_numbers = #tpu.dot_dimension_numbers<[1], [0], [0], [1], [0, 0, 1, 1], [], []>} : vector<8x128xbf16>, vector<128x128xbf16>, vector<8x128xf32> -> vector<8x128xf32>
    %c0_102 = arith.constant 0 : index
    %c0_103 = arith.constant 0 : index
    %121 = vector.load %arg21[%c0_102, %c0_103] : memref<1x128xf32, #tpu.memory_space<vmem>>, vector<1x128xf32>
    %122 = vector.broadcast %121 : vector<1x128xf32> to vector<8x128xf32>
    %123 = arith.addf %120, %122 : vector<8x128xf32>
    %cst_104 = arith.constant 0.000000e+00 : f32
    %124 = vector.broadcast %cst_104 : f32 to vector<8x128xf32>
    %125 = arith.cmpf oge, %123, %124 : vector<8x128xf32>
    %cst_105 = arith.constant 2.000000e-01 : f32
    %126 = vector.broadcast %cst_105 : f32 to vector<8x128xf32>
    %127 = arith.mulf %126, %123 : vector<8x128xf32>
    %128 = arith.select %125, %123, %127 : vector<8x128xi1>, vector<8x128xf32>
    %c0_106 = arith.constant 0 : index
    %c0_107 = arith.constant 0 : index
    %129 = vector.load %arg41[%c0_106, %c0_107] : memref<8x768xf32, #tpu.memory_space<vmem>>, vector<8x128xf32>
    tpu.vector_store %arg41[%c0_106, %c0_107], %128 {strides = array<i32>} : memref<8x768xf32, #tpu.memory_space<vmem>>, vector<8x128xf32>,
    %c0_108 = arith.constant 0 : index
    %c0_109 = arith.constant 0 : index
    %130 = vector.load %arg41[%c0_108, %c0_109] : memref<8x768xf32, #tpu.memory_space<vmem>>, vector<8x128xf32>
    %131 = arith.truncf %130 : vector<8x128xf32> to vector<8x128xbf16>
    %c0_110 = arith.constant 0 : index
    %c0_111 = arith.constant 0 : index
    %132 = vector.load %arg22[%c0_110, %c0_111] : memref<128x128xbf16, #tpu.memory_space<vmem>>, vector<128x128xbf16>
    %cst_112 = arith.constant dense<0.000000e+00> : vector<8x128xf32>
    %133 = tpu.matmul %131, %132, %cst_112 {dimension_numbers = #tpu.dot_dimension_numbers<[1], [0], [0], [1], [0, 0, 1, 1], [], []>} : vector<8x128xbf16>, vector<128x128xbf16>, vector<8x128xf32> -> vector<8x128xf32>
    %c0_113 = arith.constant 0 : index
    %c0_114 = arith.constant 0 : index
    %134 = vector.load %arg23[%c0_113, %c0_114] : memref<1x128xf32, #tpu.memory_space<vmem>>, vector<1x128xf32>
    %135 = vector.broadcast %134 : vector<1x128xf32> to vector<8x128xf32>
    %136 = arith.addf %133, %135 : vector<8x128xf32>
    %cst_115 = arith.constant 0.000000e+00 : f32
    %137 = vector.broadcast %cst_115 : f32 to vector<8x128xf32>
    %138 = arith.cmpf oge, %136, %137 : vector<8x128xf32>
    %cst_116 = arith.constant 2.000000e-01 : f32
    %139 = vector.broadcast %cst_116 : f32 to vector<8x128xf32>
    %140 = arith.mulf %139, %136 : vector<8x128xf32>
    %141 = arith.select %138, %136, %140 : vector<8x128xi1>, vector<8x128xf32>
    %c0_117 = arith.constant 0 : index
    %c0_118 = arith.constant 0 : index
    %142 = vector.load %arg42[%c0_117, %c0_118] : memref<8x768xf32, #tpu.memory_space<vmem>>, vector<8x128xf32>
    tpu.vector_store %arg42[%c0_117, %c0_118], %141 {strides = array<i32>} : memref<8x768xf32, #tpu.memory_space<vmem>>, vector<8x128xf32>,
    %c0_119 = arith.constant 0 : index
    %c0_120 = arith.constant 0 : index
    %143 = vector.load %arg42[%c0_119, %c0_120] : memref<8x768xf32, #tpu.memory_space<vmem>>, vector<8x128xf32>
    %144 = arith.truncf %143 : vector<8x128xf32> to vector<8x128xbf16>
    %c0_121 = arith.constant 0 : index
    %c0_122 = arith.constant 0 : index
    %145 = vector.load %arg24[%c0_121, %c0_122] : memref<128x128xbf16, #tpu.memory_space<vmem>>, vector<128x128xbf16>
    %cst_123 = arith.constant dense<0.000000e+00> : vector<8x128xf32>
    %146 = tpu.matmul %144, %145, %cst_123 {dimension_numbers = #tpu.dot_dimension_numbers<[1], [0], [0], [1], [0, 0, 1, 1], [], []>} : vector<8x128xbf16>, vector<128x128xbf16>, vector<8x128xf32> -> vector<8x128xf32>
    %c0_124 = arith.constant 0 : index
    %c0_125 = arith.constant 0 : index
    %147 = vector.load %arg25[%c0_124, %c0_125] : memref<1x128xf32, #tpu.memory_space<vmem>>, vector<1x128xf32>
    %148 = vector.broadcast %147 : vector<1x128xf32> to vector<8x128xf32>
    %149 = arith.addf %146, %148 : vector<8x128xf32>
    %cst_126 = arith.constant 0.000000e+00 : f32
    %150 = vector.broadcast %cst_126 : f32 to vector<8x128xf32>
    %151 = arith.cmpf oge, %149, %150 : vector<8x128xf32>
    %cst_127 = arith.constant 2.000000e-01 : f32
    %152 = vector.broadcast %cst_127 : f32 to vector<8x128xf32>
    %153 = arith.mulf %152, %149 : vector<8x128xf32>
    %154 = arith.select %151, %149, %153 : vector<8x128xi1>, vector<8x128xf32>
    %c0_128 = arith.constant 0 : index
    %c0_129 = arith.constant 0 : index
    %155 = vector.load %arg41[%c0_128, %c0_129] : memref<8x768xf32, #tpu.memory_space<vmem>>, vector<8x128xf32>
    tpu.vector_store %arg41[%c0_128, %c0_129], %154 {strides = array<i32>} : memref<8x768xf32, #tpu.memory_space<vmem>>, vector<8x128xf32>,
    %c0_130 = arith.constant 0 : index
    %c0_131 = arith.constant 0 : index
    %156 = vector.load %arg41[%c0_130, %c0_131] : memref<8x768xf32, #tpu.memory_space<vmem>>, vector<8x128xf32>
    %157 = arith.truncf %156 : vector<8x128xf32> to vector<8x128xbf16>
    %c0_132 = arith.constant 0 : index
    %c0_133 = arith.constant 0 : index
    %158 = vector.load %arg26[%c0_132, %c0_133] : memref<128x256xbf16, #tpu.memory_space<vmem>>, vector<128x256xbf16>
    %cst_134 = arith.constant dense<0.000000e+00> : vector<8x256xf32>
    %159 = tpu.matmul %157, %158, %cst_134 {dimension_numbers = #tpu.dot_dimension_numbers<[1], [0], [0], [1], [0, 0, 1, 1], [], []>} : vector<8x128xbf16>, vector<128x256xbf16>, vector<8x256xf32> -> vector<8x256xf32>
    %c0_135 = arith.constant 0 : index
    %c0_136 = arith.constant 0 : index
    %160 = vector.load %arg27[%c0_135, %c0_136] : memref<1x256xf32, #tpu.memory_space<vmem>>, vector<1x256xf32>
    %161 = vector.broadcast %160 : vector<1x256xf32> to vector<8x256xf32>
    %162 = arith.addf %159, %161 : vector<8x256xf32>
    %cst_137 = arith.constant 0.000000e+00 : f32
    %163 = vector.broadcast %cst_137 : f32 to vector<8x256xf32>
    %164 = arith.cmpf oge, %162, %163 : vector<8x256xf32>
    %cst_138 = arith.constant 2.000000e-01 : f32
    %165 = vector.broadcast %cst_138 : f32 to vector<8x256xf32>
    %166 = arith.mulf %165, %162 : vector<8x256xf32>
    %167 = arith.select %164, %162, %166 : vector<8x256xi1>, vector<8x256xf32>
    %c0_139 = arith.constant 0 : index
    %c0_140 = arith.constant 0 : index
    %168 = vector.load %arg42[%c0_139, %c0_140] : memref<8x768xf32, #tpu.memory_space<vmem>>, vector<8x256xf32>
    tpu.vector_store %arg42[%c0_139, %c0_140], %167 {strides = array<i32>} : memref<8x768xf32, #tpu.memory_space<vmem>>, vector<8x256xf32>,
    %c0_141 = arith.constant 0 : index
    %c0_142 = arith.constant 0 : index
    %169 = vector.load %arg42[%c0_141, %c0_142] : memref<8x768xf32, #tpu.memory_space<vmem>>, vector<8x256xf32>
    %170 = arith.truncf %169 : vector<8x256xf32> to vector<8x256xbf16>
    %c0_143 = arith.constant 0 : index
    %c0_144 = arith.constant 0 : index
    %171 = vector.load %arg28[%c0_143, %c0_144] : memref<256x384xbf16, #tpu.memory_space<vmem>>, vector<256x384xbf16>
    %cst_145 = arith.constant dense<0.000000e+00> : vector<8x384xf32>
    %172 = tpu.matmul %170, %171, %cst_145 {dimension_numbers = #tpu.dot_dimension_numbers<[1], [0], [0], [1], [0, 0, 1, 1], [], []>} : vector<8x256xbf16>, vector<256x384xbf16>, vector<8x384xf32> -> vector<8x384xf32>
    %c0_146 = arith.constant 0 : index
    %c0_147 = arith.constant 0 : index
    %173 = vector.load %arg29[%c0_146, %c0_147] : memref<1x384xf32, #tpu.memory_space<vmem>>, vector<1x384xf32>
    %174 = vector.broadcast %173 : vector<1x384xf32> to vector<8x384xf32>
    %175 = arith.addf %172, %174 : vector<8x384xf32>
    %cst_148 = arith.constant 0.000000e+00 : f32
    %176 = vector.broadcast %cst_148 : f32 to vector<8x384xf32>
    %177 = arith.cmpf oge, %175, %176 : vector<8x384xf32>
    %cst_149 = arith.constant 2.000000e-01 : f32
    %178 = vector.broadcast %cst_149 : f32 to vector<8x384xf32>
    %179 = arith.mulf %178, %175 : vector<8x384xf32>
    %180 = arith.select %177, %175, %179 : vector<8x384xi1>, vector<8x384xf32>
    %c0_150 = arith.constant 0 : index
    %c0_151 = arith.constant 0 : index
    %181 = vector.load %arg41[%c0_150, %c0_151] : memref<8x768xf32, #tpu.memory_space<vmem>>, vector<8x384xf32>
    tpu.vector_store %arg41[%c0_150, %c0_151], %180 {strides = array<i32>} : memref<8x768xf32, #tpu.memory_space<vmem>>, vector<8x384xf32>,
    %c0_152 = arith.constant 0 : index
    %c0_153 = arith.constant 0 : index
    %182 = vector.load %arg41[%c0_152, %c0_153] : memref<8x768xf32, #tpu.memory_space<vmem>>, vector<8x384xf32>
    %183 = arith.truncf %182 : vector<8x384xf32> to vector<8x384xbf16>
    %c0_154 = arith.constant 0 : index
    %c0_155 = arith.constant 0 : index
    %184 = vector.load %arg30[%c0_154, %c0_155] : memref<384x512xbf16, #tpu.memory_space<vmem>>, vector<384x512xbf16>
    %cst_156 = arith.constant dense<0.000000e+00> : vector<8x512xf32>
    %185 = tpu.matmul %183, %184, %cst_156 {dimension_numbers = #tpu.dot_dimension_numbers<[1], [0], [0], [1], [0, 0, 1, 1], [], []>} : vector<8x384xbf16>, vector<384x512xbf16>, vector<8x512xf32> -> vector<8x512xf32>
    %c0_157 = arith.constant 0 : index
    %c0_158 = arith.constant 0 : index
    %186 = vector.load %arg31[%c0_157, %c0_158] : memref<1x512xf32, #tpu.memory_space<vmem>>, vector<1x512xf32>
    %187 = vector.broadcast %186 : vector<1x512xf32> to vector<8x512xf32>
    %188 = arith.addf %185, %187 : vector<8x512xf32>
    %cst_159 = arith.constant 0.000000e+00 : f32
    %189 = vector.broadcast %cst_159 : f32 to vector<8x512xf32>
    %190 = arith.cmpf oge, %188, %189 : vector<8x512xf32>
    %cst_160 = arith.constant 2.000000e-01 : f32
    %191 = vector.broadcast %cst_160 : f32 to vector<8x512xf32>
    %192 = arith.mulf %191, %188 : vector<8x512xf32>
    %193 = arith.select %190, %188, %192 : vector<8x512xi1>, vector<8x512xf32>
    %c0_161 = arith.constant 0 : index
    %c0_162 = arith.constant 0 : index
    %194 = vector.load %arg42[%c0_161, %c0_162] : memref<8x768xf32, #tpu.memory_space<vmem>>, vector<8x512xf32>
    tpu.vector_store %arg42[%c0_161, %c0_162], %193 {strides = array<i32>} : memref<8x768xf32, #tpu.memory_space<vmem>>, vector<8x512xf32>,
    %c0_163 = arith.constant 0 : index
    %c0_164 = arith.constant 0 : index
    %195 = vector.load %arg42[%c0_163, %c0_164] : memref<8x768xf32, #tpu.memory_space<vmem>>, vector<8x512xf32>
    %196 = arith.truncf %195 : vector<8x512xf32> to vector<8x512xbf16>
    %c0_165 = arith.constant 0 : index
    %c0_166 = arith.constant 0 : index
    %197 = vector.load %arg32[%c0_165, %c0_166] : memref<512x512xbf16, #tpu.memory_space<vmem>>, vector<512x512xbf16>
    %cst_167 = arith.constant dense<0.000000e+00> : vector<8x512xf32>
    %198 = tpu.matmul %196, %197, %cst_167 {dimension_numbers = #tpu.dot_dimension_numbers<[1], [0], [0], [1], [0, 0, 1, 1], [], []>} : vector<8x512xbf16>, vector<512x512xbf16>, vector<8x512xf32> -> vector<8x512xf32>
    %c0_168 = arith.constant 0 : index
    %c0_169 = arith.constant 0 : index
    %199 = vector.load %arg33[%c0_168, %c0_169] : memref<1x512xf32, #tpu.memory_space<vmem>>, vector<1x512xf32>
    %200 = vector.broadcast %199 : vector<1x512xf32> to vector<8x512xf32>
    %201 = arith.addf %198, %200 : vector<8x512xf32>
    %cst_170 = arith.constant 0.000000e+00 : f32
    %202 = vector.broadcast %cst_170 : f32 to vector<8x512xf32>
    %203 = arith.cmpf oge, %201, %202 : vector<8x512xf32>
    %cst_171 = arith.constant 2.000000e-01 : f32
    %204 = vector.broadcast %cst_171 : f32 to vector<8x512xf32>
    %205 = arith.mulf %204, %201 : vector<8x512xf32>
    %206 = arith.select %203, %201, %205 : vector<8x512xi1>, vector<8x512xf32>
    %c0_172 = arith.constant 0 : index
    %c0_173 = arith.constant 0 : index
    %207 = vector.load %arg41[%c0_172, %c0_173] : memref<8x768xf32, #tpu.memory_space<vmem>>, vector<8x512xf32>
    tpu.vector_store %arg41[%c0_172, %c0_173], %206 {strides = array<i32>} : memref<8x768xf32, #tpu.memory_space<vmem>>, vector<8x512xf32>,
    %c0_174 = arith.constant 0 : index
    %c0_175 = arith.constant 0 : index
    %208 = vector.load %arg41[%c0_174, %c0_175] : memref<8x768xf32, #tpu.memory_space<vmem>>, vector<8x512xf32>
    %209 = arith.truncf %208 : vector<8x512xf32> to vector<8x512xbf16>
    %c0_176 = arith.constant 0 : index
    %c0_177 = arith.constant 0 : index
    %210 = vector.load %arg34[%c0_176, %c0_177] : memref<512x640xbf16, #tpu.memory_space<vmem>>, vector<512x640xbf16>
    %cst_178 = arith.constant dense<0.000000e+00> : vector<8x640xf32>
    %211 = tpu.matmul %209, %210, %cst_178 {dimension_numbers = #tpu.dot_dimension_numbers<[1], [0], [0], [1], [0, 0, 1, 1], [], []>} : vector<8x512xbf16>, vector<512x640xbf16>, vector<8x640xf32> -> vector<8x640xf32>
    %c0_179 = arith.constant 0 : index
    %c0_180 = arith.constant 0 : index
    %212 = vector.load %arg35[%c0_179, %c0_180] : memref<1x640xf32, #tpu.memory_space<vmem>>, vector<1x640xf32>
    %213 = vector.broadcast %212 : vector<1x640xf32> to vector<8x640xf32>
    %214 = arith.addf %211, %213 : vector<8x640xf32>
    %cst_181 = arith.constant 0.000000e+00 : f32
    %215 = vector.broadcast %cst_181 : f32 to vector<8x640xf32>
    %216 = arith.cmpf oge, %214, %215 : vector<8x640xf32>
    %cst_182 = arith.constant 2.000000e-01 : f32
    %217 = vector.broadcast %cst_182 : f32 to vector<8x640xf32>
    %218 = arith.mulf %217, %214 : vector<8x640xf32>
    %219 = arith.select %216, %214, %218 : vector<8x640xi1>, vector<8x640xf32>
    %c0_183 = arith.constant 0 : index
    %c0_184 = arith.constant 0 : index
    %220 = vector.load %arg42[%c0_183, %c0_184] : memref<8x768xf32, #tpu.memory_space<vmem>>, vector<8x640xf32>
    tpu.vector_store %arg42[%c0_183, %c0_184], %219 {strides = array<i32>} : memref<8x768xf32, #tpu.memory_space<vmem>>, vector<8x640xf32>,
    %c0_185 = arith.constant 0 : index
    %c0_186 = arith.constant 0 : index
    %221 = vector.load %arg42[%c0_185, %c0_186] : memref<8x768xf32, #tpu.memory_space<vmem>>, vector<8x640xf32>
    %222 = arith.truncf %221 : vector<8x640xf32> to vector<8x640xbf16>
    %c0_187 = arith.constant 0 : index
    %c0_188 = arith.constant 0 : index
    %223 = vector.load %arg36[%c0_187, %c0_188] : memref<640x768xbf16, #tpu.memory_space<vmem>>, vector<640x768xbf16>
    %cst_189 = arith.constant dense<0.000000e+00> : vector<8x768xf32>
    %224 = tpu.matmul %222, %223, %cst_189 {dimension_numbers = #tpu.dot_dimension_numbers<[1], [0], [0], [1], [0, 0, 1, 1], [], []>} : vector<8x640xbf16>, vector<640x768xbf16>, vector<8x768xf32> -> vector<8x768xf32>
    %c0_190 = arith.constant 0 : index
    %c0_191 = arith.constant 0 : index
    %225 = vector.load %arg37[%c0_190, %c0_191] : memref<1x768xf32, #tpu.memory_space<vmem>>, vector<1x768xf32>
    %226 = vector.broadcast %225 : vector<1x768xf32> to vector<8x768xf32>
    %227 = arith.addf %224, %226 : vector<8x768xf32>
    %cst_192 = arith.constant 5.000000e-01 : f32
    %228 = vector.broadcast %cst_192 : f32 to vector<8x768xf32>
    %229 = arith.mulf %228, %227 : vector<8x768xf32>
    %230 = math.tanh %229 : vector<8x768xf32>
    %cst_193 = arith.constant 1.000000e+00 : f32
    %231 = vector.broadcast %cst_193 : f32 to vector<8x768xf32>
    %232 = arith.addf %230, %231 : vector<8x768xf32>
    %cst_194 = arith.constant 5.000000e-01 : f32
    %233 = vector.broadcast %cst_194 : f32 to vector<8x768xf32>
    %234 = arith.mulf %233, %232 : vector<8x768xf32>
    %c0_195 = arith.constant 0 : index
    %c0_196 = arith.constant 0 : index
    %235 = vector.load %arg38[%c0_195, %c0_196] : memref<8x768xf32, #tpu.memory_space<vmem>>, vector<8x768xf32>
    tpu.vector_store %arg38[%c0_195, %c0_196], %234 {strides = array<i32>} : memref<8x768xf32, #tpu.memory_space<vmem>>, vector<8x768xf32>,
    return
  }
}

</mosaic_0001>

<bundles_post_ra>
// kernel: vae_forward.1
= control target key start
LH: loop header
LB: loop body
LE: loop exit
PB: predicated region body
PF: predicated region fallthrough
CT: control target
= control target key end

     0   :  { %s17456_s6 = smov 1   ;;  %s17457_s10 = smov 2   ;;  %s18283_s0 = inlined_call_operand.smem [shape: u32[41], index: -1, kind: input, shape index: {}] }
   0x1   :  { %s17554_s5 = sld [smem:[%s18283_s0]]   ;;  %s17458_s14 = smov 3  }
   0x2   :  { %s17559_s9 = sld [smem:[%s18283_s0 + %s17456_s6]]   ;;  %s17459_s18 = smov 4  }
   0x3   :  { %s17564_s13 = sld [smem:[%s18283_s0 + %s17457_s10]]   ;;  %s17460_s22 = smov 5  }
   0x4   :  { %s17569_s17 = sld [smem:[%s18283_s0 + %s17458_s14]]   ;;  %s17461_s26 = smov 6  }
   0x5   :  { %s17574_s21 = sld [smem:[%s18283_s0 + %s17459_s18]]   ;;  %s17462_s30 = smov 7  }
   0x6   :  { %s17579_s25 = sld [smem:[%s18283_s0 + %s17460_s22]]   ;;  %s17463_s4 = smov 8  }
   0x7   :  { %18305 = sst [smem:[#allocation77_spill]] %s17554_s5  ;;  %s17464_s10 = smov 9  }
   0x8   :  { %18306 = sst [smem:[#allocation78_spill]] %s17559_s9  ;;  %s17465_s15 = smov 10  }
   0x9   :  { %18307 = sst [smem:[#allocation79_spill]] %s17564_s13  ;;  %s17466_s20 = smov 11  }
   0xa   :  { %s17584_s29 = sld [smem:[%s18283_s0 + %s17461_s26]]   ;;  %s17467_s26 = smov 12  }
   0xb   :  { %18308 = sst [smem:[#allocation80_spill]] %s17574_s21  ;;  %s17468_s1 = smov 13  }
   0xc   :  { %s17589_s3 = sld [smem:[%s18283_s0 + %s17462_s30]]   ;;  %s17469_s7 = smov 14  }
   0xd   :  { %s17594_s8 = sld [smem:[%s18283_s0 + %s17463_s4]]   ;;  %s17471_s22 = smov 16  }
   0xe   :  { %s17599_s14 = sld [smem:[%s18283_s0 + %s17464_s10]]   ;;  %s17472_s28 = smov 17  }
   0xf   :  { %s17604_s19 = sld [smem:[%s18283_s0 + %s17465_s15]]   ;;  %s17470_s15 = smov 15  }
  0x10   :  { %18309 = sst [smem:[#allocation81_spill]] %s17584_s29 }
  0x11   :  { %s17609_s24 = sld [smem:[%s18283_s0 + %s17466_s20]]  }
  0x12   :  { %s17614_s30 = sld [smem:[%s18283_s0 + %s17467_s26]]  }
  0x13   :  { %18310 = sst [smem:[#allocation82_spill]] %s17594_s8 }
  0x14   :  { %s17619_s6 = sld [smem:[%s18283_s0 + %s17468_s1]]  }
  0x15   :  { %18311 = sst [smem:[#allocation83_spill]] %s17604_s19 }
  0x16   :  { %s17624_s12 = sld [smem:[%s18283_s0 + %s17469_s7]]   ;;  %s17473_s7 = smov 18  }
  0x17   :  { %s17629_s20 = sld [smem:[%s18283_s0 + %s17470_s15]]   ;;  %s17474_s15 = smov 19  }
  0x18   :  { %18312 = sst [smem:[#allocation84_spill]] %s17614_s30 }
  0x19   :  { %s17634_s27 = sld [smem:[%s18283_s0 + %s17471_s22]]   ;;  %s17475_s22 = smov 20  }
  0x1a   :  { %18313 = sst [smem:[#allocation85_spill]] %s17619_s6 }
  0x1b   :  { %s17639_s4 = sld [smem:[%s18283_s0 + %s17472_s28]]   ;;  %s17476_s28 = smov 21  }
  0x1c   :  { %s17644_s9 = sld [smem:[%s18283_s0 + %s17473_s7]]   ;;  %s17477_s7 = smov 22  }
  0x1d   :  { %18314 = sst [smem:[#allocation86_spill]] %s17629_s20 }
  0x1e   :  { %s17649_s30 = sld [smem:[%s18283_s0 + %s17474_s15]]   ;;  %s17478_s15 = smov 23  }
  0x1f   :  { %s17654_s5 = sld [smem:[%s18283_s0 + %s17475_s22]]   ;;  %s17479_s22 = smov 24  }
  0x20   :  { %s17664_s20 = sld [smem:[%s18283_s0 + %s17477_s7]]   ;;  %s17481_s7 = smov 26  }
  0x21   :  { %18315 = sst [smem:[#allocation87_spill]] %s17639_s4 }
  0x22   :  { %s17659_s4 = sld [smem:[%s18283_s0 + %s17476_s28]]   ;;  %s17480_s28 = smov 25  }
  0x23   :  { %s17679_s6 = sld [smem:[%s18283_s0 + %s17480_s28]]   ;;  %s17484_s28 = smov 29  }
  0x24   :  { %18316 = sst [smem:[#allocation88_spill]] %s17649_s30 }
  0x25   :  { %18317 = sst [smem:[#allocation89_spill]] %s17654_s5 }
  0x26   :  { %18318 = sst [smem:[#allocation90_spill]] %s17664_s20 }
  0x27   :  { %s17669_s30 = sld [smem:[%s18283_s0 + %s17478_s15]]   ;;  %s17482_s15 = smov 27  }
  0x28   :  { %s17674_s5 = sld [smem:[%s18283_s0 + %s17479_s22]]   ;;  %s17483_s22 = smov 28  }
  0x29   :  { %s17684_s20 = sld [smem:[%s18283_s0 + %s17481_s7]]   ;;  %s17485_s7 = smov 30  }
  0x2a   :  { %s17689_s19 = sld [smem:[%s18283_s0 + %s17482_s15]]   ;;  %s17486_s15 = smov 31  }
  0x2b   :  { %s17699_s8 = sld [smem:[%s18283_s0 + %s17484_s28]]   ;;  %s17488_s28 = smov 33  }
  0x2c   :  { %s17709_s29 = sld [smem:[%s18283_s0 + %s17486_s15]]   ;;  %s17490_s15 = smov 35  }
  0x2d   :  { %s17719_s21 = sld [smem:[%s18283_s0 + %s17488_s28]]   ;;  %s17492_s28 = smov 37  }
  0x2e   :  { %18319 = sst [smem:[#allocation91_spill]] %s17674_s5 }
  0x2f   :  { %18320 = sst [smem:[#allocation92_spill]] %s17684_s20 }
  0x30   :  { %s17694_s5 = sld [smem:[%s18283_s0 + %s17483_s22]]   ;;  %s17487_s22 = smov 32  }
  0x31   :  { %s17704_s20 = sld [smem:[%s18283_s0 + %s17485_s7]]   ;;  %s17489_s7 = smov 34  }
  0x32   :  { %s17729_s13 = sld [smem:[%s18283_s0 + %s17490_s15]]   ;;  %s17494_s15 = smov 39  }
  0x33   :  { %18324 = sst [smem:[#allocation96_spill]] %s17719_s21 }
  0x34   :  { %s17739_s21 = sld [smem:[%s18283_s0 + %s17492_s28]]  }
  0x36   :  { %18321 = sst [smem:[#allocation93_spill]] %s17694_s5 }
  0x37   :  { %18322 = sst [smem:[#allocation94_spill]] %s17704_s20 }
  0x38   :  { %s17714_s5 = sld [smem:[%s18283_s0 + %s17487_s22]]   ;;  %s17491_s22 = smov 36  }
  0x39   :  { %s17724_s20 = sld [smem:[%s18283_s0 + %s17489_s7]]   ;;  %s17493_s7 = smov 38  }
  0x3a   :  { %18326 = sst [smem:[#allocation98_spill]] %s17729_s13 }
  0x3b   :  { %s17749_s13 = sld [smem:[%s18283_s0 + %s17494_s15]]  }
  0x3e   :  { %18323 = sst [smem:[#allocation95_spill]] %s17714_s5 }
  0x3f   :  { %18325 = sst [smem:[#allocation97_spill]] %s17724_s20 }
  0x40   :  { %s17734_s5 = sld [smem:[%s18283_s0 + %s17491_s22]]   ;;  %s17495_s22 = smov 40  }
  0x41   :  { %s17744_s20 = sld [smem:[%s18283_s0 + %s17493_s7]]  }
  0x46   :  { %18327 = sst [smem:[#allocation99_spill]] %s17734_s5 }
  0x47   :  { %s17754_s5 = sld [smem:[%s18283_s0 + %s17495_s22]]  }
  0x48   :  { %87 = vsyncpa [#allocation5], 0 }
  0x49   :  { %88 = vsyncpa [#allocation8], 0 }
  0x4a   :  { %89 = vsyncpa [#allocation11], 0 }
  0x4b   :  { %90 = vsyncpa [#allocation14], 0 }
  0x4c   :  { %91 = vsyncpa [#allocation17], 0 }
  0x4d   :  { %92 = vsyncpa [#allocation20], 0 }
  0x4e   :  { %93 = vsyncpa [#allocation23], 0 }
  0x4f   :  { %94 = vsyncpa [#allocation26], 0 }
  0x50   :  { %95 = vsyncpa [#allocation29], 0 }
  0x51   :  { %96 = vsyncpa [#allocation32], 0 }
  0x52   :  { %97 = vsyncpa [#allocation35], 0 }
  0x53   :  { %98 = vsyncpa [#allocation38], 0 }
  0x54   :  { %99 = vsyncpa [#allocation41], 0 }
  0x55   :  { %100 = vsyncpa [#allocation44], 0 }
  0x56   :  { %101 = vsyncpa [#allocation47], 0 }
  0x57   :  { %102 = vsyncpa [#allocation50], 0 }
  0x58   :  { %103 = vsyncpa [#allocation53], 0 }
  0x59   :  { %104 = vsyncpa [#allocation56], 0 }
  0x5a   :  { %105 = vsyncpa [#allocation6], 0  ;;  %s17496_s0 = smov [#allocation7]   ;;  %s17497_s1 = smov [#allocation10]  }
  0x5b   :  { %s128_s28 = sshll.u32 %s17496_s0, 4  ;;  %s150_s2 = sshll.u32 %s17497_s1, 4  ;;  %s129_s28 = int_to_ptr.vmem [resolvable:$true] %s128_s28  ;;  %s151_s2 = int_to_ptr.vmem [resolvable:$true] %s150_s2 }
  0x5c   :  { %s16648_s7 = scalar_lea.hbm %s17569_s17, 80 }
  0x5d   :  { %p16649_p0 = scmp.ne.s32.totalorder %s17569_s17, %s16648_s7  ;;  %p16652_p1 = scmp.lt.u32.totalorder %s16648_s7, %s17569_s17 }
  0x5f   :  { %p16654_p2 = pnand %p16652_p1, %p16649_p0 }
  0x61   :  { %16657 = shalt.err (!%p16654_p2)
}
  0x62   :  { %s16658_s10 = scalar_lea.vmem %s129_s28, 80  ;;  %s16662_s11 = scalar_lea.vmem %s129_s28, 96 }
  0x63   :  { %p16659_p3 = scmp.ne.s32.totalorder %s129_s28, %s16658_s10  ;;  %p16663_p4 = scmp.lt.s32.totalorder %s129_s28, %s129_s28 }
  0x64   :  { %p16664_p5 = scmp.lt.s32.totalorder %s16662_s11, %s16658_s10 }
  0x66   :  { %p16665_p6 = por %p16664_p5, %p16663_p4 }
  0x68   :  { %p16666_p7 = pnand %p16665_p6, %p16659_p3 }
  0x6a   :  { %16669 = shalt.err (!%p16666_p7)
}
  0x6b   :  { %131 = dma.hbm_to_vmem [thread:$0]  %s17569_s17, 80, %s129_s28, [#allocation8]  }
  0x6c   :  { %s16670_s15 = scalar_lea.hbm %s17579_s25, 64 }
  0x6d   :  { %p16671_p8 = scmp.ne.s32.totalorder %s17579_s25, %s16670_s15  ;;  %p16674_p9 = scmp.lt.u32.totalorder %s16670_s15, %s17579_s25 }
  0x6f   :  { %p16676_p10 = pnand %p16674_p9, %p16671_p8 }
  0x71   :  { %16679 = shalt.err (!%p16676_p10)
}
  0x72   :  { %s16680_s16 = scalar_lea.vmem %s151_s2, 64  ;;  %p16685_p12 = scmp.lt.s32.totalorder %s151_s2, %s151_s2 }
  0x73   :  { %p16681_p11 = scmp.ne.s32.totalorder %s151_s2, %s16680_s16  ;;  %p16686_p13 = scmp.lt.s32.totalorder %s16680_s16, %s16680_s16 }
  0x75   :  { %p16687_p0 = por %p16686_p13, %p16685_p12 }
  0x77   :  { %p16688_p1 = pnand %p16687_p0, %p16681_p11 }
  0x79   :  { %16691 = shalt.err (!%p16688_p1)
}
  0x7a   :  { %153 = dma.hbm_to_vmem [thread:$0]  %s17579_s25, 64, %s151_s2, [#allocation11]  }
  0x7b   :  { %s17498_s18 = smov [#allocation13]   ;;  %s17499_s17 = smov [#allocation16]  }
  0x7c   :  { %s172_s22 = sshll.u32 %s17498_s18, 4  ;;  %s194_s23 = sshll.u32 %s17499_s17, 4  ;;  %s173_s22 = int_to_ptr.vmem [resolvable:$true] %s172_s22  ;;  %s195_s23 = int_to_ptr.vmem [resolvable:$true] %s194_s23 }
  0x7d   :  { %s16692_s26 = scalar_lea.hbm %s17589_s3, 64 }
  0x7e   :  { %p16693_p2 = scmp.ne.s32.totalorder %s17589_s3, %s16692_s26  ;;  %p16696_p3 = scmp.lt.u32.totalorder %s16692_s26, %s17589_s3 }
  0x80   :  { %p16698_p4 = pnand %p16696_p3, %p16693_p2 }
  0x82   :  { %16701 = shalt.err (!%p16698_p4)
}
  0x83   :  { %s16702_s0 = scalar_lea.vmem %s173_s22, 64  ;;  %p16707_p6 = scmp.lt.s32.totalorder %s173_s22, %s173_s22 }
  0x84   :  { %p16703_p5 = scmp.ne.s32.totalorder %s173_s22, %s16702_s0  ;;  %p16708_p7 = scmp.lt.s32.totalorder %s16702_s0, %s16702_s0 }
  0x86   :  { %p16709_p8 = por %p16708_p7, %p16707_p6 }
  0x88   :  { %p16710_p9 = pnand %p16709_p8, %p16703_p5 }
  0x8a   :  { %16713 = shalt.err (!%p16710_p9)
}
  0x8b   :  { %175 = dma.hbm_to_vmem [thread:$0]  %s17589_s3, 64, %s173_s22, [#allocation14]  }
  0x8c   :  { %s16714_s25 = scalar_lea.hbm %s17599_s14, 48 }
  0x8d   :  { %p16715_p10 = scmp.ne.s32.totalorder %s17599_s14, %s16714_s25  ;;  %p16718_p11 = scmp.lt.u32.totalorder %s16714_s25, %s17599_s14 }
  0x8f   :  { %p16720_p12 = pnand %p16718_p11, %p16715_p10 }
  0x91   :  { %16723 = shalt.err (!%p16720_p12)
}
  0x92   :  { %s16724_s28 = scalar_lea.vmem %s195_s23, 48  ;;  %s16728_s1 = scalar_lea.vmem %s195_s23, 64 }
  0x93   :  { %p16725_p13 = scmp.ne.s32.totalorder %s195_s23, %s16724_s28  ;;  %p16729_p0 = scmp.lt.s32.totalorder %s195_s23, %s195_s23 }
  0x94   :  { %p16730_p1 = scmp.lt.s32.totalorder %s16728_s1, %s16724_s28 }
  0x96   :  { %p16731_p2 = por %p16730_p1, %p16729_p0 }
  0x98   :  { %p16732_p3 = pnand %p16731_p2, %p16725_p13 }
  0x9a   :  { %16735 = shalt.err (!%p16732_p3)
}
  0x9b   :  { %197 = dma.hbm_to_vmem [thread:$0]  %s17599_s14, 48, %s195_s23, [#allocation17]  }
  0x9c   :  { %s17500_s2 = smov [#allocation19]   ;;  %s17501_s7 = smov [#allocation22]  }
  0x9d   :  { %s216_s3 = sshll.u32 %s17500_s2, 4  ;;  %s237_s10 = sshll.u32 %s17501_s7, 4  ;;  %s217_s3 = int_to_ptr.vmem [resolvable:$true] %s216_s3  ;;  %s17772_s10 = int_to_ptr.vmem [resolvable:$true] %s237_s10 }
  0x9e   :  { %s16736_s11 = scalar_lea.hbm %s17609_s24, 32 }
  0x9f   :  { %p16737_p4 = scmp.ne.s32.totalorder %s17609_s24, %s16736_s11  ;;  %p16740_p5 = scmp.lt.u32.totalorder %s16736_s11, %s17609_s24 }
  0xa1   :  { %p16742_p6 = pnand %p16740_p5, %p16737_p4 }
  0xa3   :  { %16745 = shalt.err (!%p16742_p6)
}
  0xa4   :  { %s16746_s15 = scalar_lea.vmem %s217_s3, 32  ;;  %p16751_p8 = scmp.lt.s32.totalorder %s217_s3, %s217_s3 }
  0xa5   :  { %p16747_p7 = scmp.ne.s32.totalorder %s217_s3, %s16746_s15  ;;  %p16752_p9 = scmp.lt.s32.totalorder %s16746_s15, %s16746_s15 }
  0xa7   :  { %p16753_p10 = por %p16752_p9, %p16751_p8 }
  0xa9   :  { %p16754_p11 = pnand %p16753_p10, %p16747_p7 }
  0xab   :  { %16757 = shalt.err (!%p16754_p11)
}
  0xac   :  { %219 = dma.hbm_to_vmem [thread:$0]  %s17609_s24, 32, %s217_s3, [#allocation20]  }
  0xad   :  { %s16758_s14 = scalar_lea.hbm %s17624_s12, 1024 }
  0xae   :  { %p16759_p12 = scmp.ne.s32.totalorder %s17624_s12, %s16758_s14  ;;  %p16762_p13 = scmp.lt.u32.totalorder %s16758_s14, %s17624_s12 }
  0xb0   :  { %p16764_p0 = pnand %p16762_p13, %p16759_p12 }
  0xb2   :  { %16767 = shalt.err (!%p16764_p0)
}
  0xb3   :  { %s16768_s16 = scalar_lea.vmem %s17772_s10, 1024  ;;  %p16773_p2 = scmp.lt.s32.totalorder %s17772_s10, %s17772_s10 }
  0xb4   :  { %p16769_p1 = scmp.ne.s32.totalorder %s17772_s10, %s16768_s16  ;;  %p16774_p3 = scmp.lt.s32.totalorder %s16768_s16, %s16768_s16 }
  0xb6   :  { %p16775_p4 = por %p16774_p3, %p16773_p2 }
  0xb8   :  { %p16776_p5 = pnand %p16775_p4, %p16769_p1 }
  0xba   :  { %16779 = shalt.err (!%p16776_p5)
}
  0xbb   :  { %s17502_s18 = smov 64   ;;  %s17503_s24 = smov 4  }
  0xbc   :  { %243 = dma.hbm_to_vmem [thread:$0]  %s17624_s12, 1024, %s17772_s10, [#allocation23], %s17502_s18, %s17502_s18, %s17503_s24  }
  0xbd   :  { %s17504_s22 = smov [#allocation25]   ;;  %s16780_s23 = scalar_lea.hbm %s17634_s27, 1024 }
  0xbe   :  { %s259_s17 = sshll.u32 %s17504_s22, 4  ;;  %p16781_p6 = scmp.ne.s32.totalorder %s17634_s27, %s16780_s23  ;;  %s260_s17 = int_to_ptr.vmem [resolvable:$true] %s259_s17 }
  0xbf   :  { %p16784_p7 = scmp.lt.u32.totalorder %s16780_s23, %s17634_s27 }
  0xc1   :  { %p16786_p8 = pnand %p16784_p7, %p16781_p6 }
  0xc3   :  { %16789 = shalt.err (!%p16786_p8)
}
  0xc4   :  { %s16790_s26 = scalar_lea.vmem %s260_s17, 1024  ;;  %p16795_p10 = scmp.lt.s32.totalorder %s260_s17, %s260_s17 }
  0xc5   :  { %p16791_p9 = scmp.ne.s32.totalorder %s260_s17, %s16790_s26  ;;  %p16796_p11 = scmp.lt.s32.totalorder %s16790_s26, %s16790_s26 }
  0xc7   :  { %p16797_p12 = por %p16796_p11, %p16795_p10 }
  0xc9   :  { %p16798_p13 = pnand %p16797_p12, %p16791_p9 }
  0xcb   :  { %16801 = shalt.err (!%p16798_p13)
}
  0xcc   :  { %265 = dma.hbm_to_vmem [thread:$0]  %s17634_s27, 1024, %s260_s17, [#allocation26], %s17502_s18, %s17502_s18, %s17503_s24  }
  0xcd   :  { %s17505_s12 = smov [#allocation28]   ;;  %s17506_s25 = smov [#allocation31]  }
  0xce   :  { %s281_s0 = sshll.u32 %s17505_s12, 4  ;;  %s308_s28 = sshll.u32 %s17506_s25, 4  ;;  %s282_s0 = int_to_ptr.vmem [resolvable:$true] %s281_s0  ;;  %s309_s28 = int_to_ptr.vmem [resolvable:$true] %s308_s28 }
  0xcf   :  { %s16802_s1 = scalar_lea.hbm %s17644_s9, 2048 }
  0xd0   :  { %p16803_p0 = scmp.ne.s32.totalorder %s17644_s9, %s16802_s1  ;;  %p16806_p1 = scmp.lt.u32.totalorder %s16802_s1, %s17644_s9 }
  0xd2   :  { %p16808_p2 = pnand %p16806_p1, %p16803_p0 }
  0xd4   :  { %16811 = shalt.err (!%p16808_p2)
}
  0xd5   :  { %s16812_s2 = scalar_lea.vmem %s282_s0, 2048  ;;  %p16817_p4 = scmp.lt.s32.totalorder %s282_s0, %s282_s0 }
  0xd6   :  { %p16813_p3 = scmp.ne.s32.totalorder %s282_s0, %s16812_s2  ;;  %p16818_p5 = scmp.lt.s32.totalorder %s16812_s2, %s16812_s2 }
  0xd8   :  { %p16819_p6 = por %p16818_p5, %p16817_p4 }
  0xda   :  { %p16820_p7 = pnand %p16819_p6, %p16813_p3 }
  0xdc   :  { %16823 = shalt.err (!%p16820_p7)
}
  0xdd   :  { %s17507_s3 = smov 128   ;;  %s17508_s27 = smov 8  }
  0xde   :  { %287 = dma.hbm_to_vmem [thread:$0]  %s17644_s9, 2048, %s282_s0, [#allocation29], %s17507_s3, %s17507_s3, %s17508_s27  }
  0xdf   :  { %s16824_s7 = scalar_lea.hbm %s17659_s4, 16 }
  0xe0   :  { %p16825_p8 = scmp.ne.s32.totalorder %s17659_s4, %s16824_s7  ;;  %p16828_p9 = scmp.lt.u32.totalorder %s16824_s7, %s17659_s4 }
  0xe2   :  { %p16830_p10 = pnand %p16828_p9, %p16825_p8 }
  0xe4   :  { %16833 = shalt.err (!%p16830_p10)
}
  0xe5   :  { %s16834_s10 = scalar_lea.vmem %s309_s28, 16  ;;  %s16838_s11 = scalar_lea.vmem %s309_s28, 32 }
  0xe6   :  { %p16835_p11 = scmp.ne.s32.totalorder %s309_s28, %s16834_s10  ;;  %p16839_p12 = scmp.lt.s32.totalorder %s309_s28, %s309_s28 }
  0xe7   :  { %p16840_p13 = scmp.lt.s32.totalorder %s16838_s11, %s16834_s10 }
  0xe9   :  { %p16841_p0 = por %p16840_p13, %p16839_p12 }
  0xeb   :  { %p16842_p1 = pnand %p16841_p0, %p16835_p11 }
  0xed   :  { %16845 = shalt.err (!%p16842_p1)
}
  0xee   :  { %311 = dma.hbm_to_vmem [thread:$0]  %s17659_s4, 16, %s309_s28, [#allocation32]  }
  0xef   :  { %s17509_s9 = smov [#allocation34]   ;;  %s17510_s14 = smov [#allocation37]  }
  0xf0   :  { %s330_s15 = sshll.u32 %s17509_s9, 4  ;;  %s352_s16 = sshll.u32 %s17510_s14, 4  ;;  %s331_s15 = int_to_ptr.vmem [resolvable:$true] %s330_s15  ;;  %s353_s16 = int_to_ptr.vmem [resolvable:$true] %s352_s16 }
  0xf1   :  { %s16846_s22 = scalar_lea.hbm %s17669_s30, 16 }
  0xf2   :  { %p16847_p2 = scmp.ne.s32.totalorder %s17669_s30, %s16846_s22  ;;  %p16850_p3 = scmp.lt.u32.totalorder %s16846_s22, %s17669_s30 }
  0xf4   :  { %p16852_p4 = pnand %p16850_p3, %p16847_p2 }
  0xf6   :  { %16855 = shalt.err (!%p16852_p4)
}
  0xf7   :  { %s16856_s17 = scalar_lea.vmem %s331_s15, 16  ;;  %s16860_s23 = scalar_lea.vmem %s331_s15, 32 }
  0xf8   :  { %p16857_p5 = scmp.ne.s32.totalorder %s331_s15, %s16856_s17  ;;  %p16861_p6 = scmp.lt.s32.totalorder %s331_s15, %s331_s15 }
  0xf9   :  { %p16862_p7 = scmp.lt.s32.totalorder %s16860_s23, %s16856_s17 }
  0xfb   :  { %p16863_p8 = por %p16862_p7, %p16861_p6 }
  0xfd   :  { %p16864_p9 = pnand %p16863_p8, %p16857_p5 }
  0xff   :  { %16867 = shalt.err (!%p16864_p9)
}
 0x100   :  { %333 = dma.hbm_to_vmem [thread:$0]  %s17669_s30, 16, %s331_s15, [#allocation35]  }
 0x101   :  { %s16868_s4 = scalar_lea.hbm %s17679_s6, 16 }
 0x102   :  { %p16869_p10 = scmp.ne.s32.totalorder %s17679_s6, %s16868_s4  ;;  %p16872_p11 = scmp.lt.u32.totalorder %s16868_s4, %s17679_s6 }
 0x104   :  { %p16874_p12 = pnand %p16872_p11, %p16869_p10 }
 0x106   :  { %16877 = shalt.err (!%p16874_p12)
}
 0x107   :  { %s16878_s26 = scalar_lea.vmem %s353_s16, 16  ;;  %s16882_s12 = scalar_lea.vmem %s353_s16, 32 }
 0x108   :  { %p16879_p13 = scmp.ne.s32.totalorder %s353_s16, %s16878_s26  ;;  %p16883_p0 = scmp.lt.s32.totalorder %s353_s16, %s353_s16 }
 0x109   :  { %p16884_p1 = scmp.lt.s32.totalorder %s16882_s12, %s16878_s26 }
 0x10b   :  { %p16885_p2 = por %p16884_p1, %p16883_p0 }
 0x10d   :  { %p16886_p3 = pnand %p16885_p2, %p16879_p13 }
 0x10f   :  { %16889 = shalt.err (!%p16886_p3)
}
 0x110   :  { %355 = dma.hbm_to_vmem [thread:$0]  %s17679_s6, 16, %s353_s16, [#allocation38]  }
 0x111   :  { %s17511_s30 = smov [#allocation40]   ;;  %s17512_s25 = smov [#allocation43]  }
 0x112   :  { %s374_s0 = sshll.u32 %s17511_s30, 4  ;;  %s396_s28 = sshll.u32 %s17512_s25, 4  ;;  %s375_s0 = int_to_ptr.vmem [resolvable:$true] %s374_s0  ;;  %s397_s28 = int_to_ptr.vmem [resolvable:$true] %s396_s28 }
 0x113   :  { %s16890_s1 = scalar_lea.hbm %s17689_s19, 32 }
 0x114   :  { %p16891_p4 = scmp.ne.s32.totalorder %s17689_s19, %s16890_s1  ;;  %p16894_p5 = scmp.lt.u32.totalorder %s16890_s1, %s17689_s19 }
 0x116   :  { %p16896_p6 = pnand %p16894_p5, %p16891_p4 }
 0x118   :  { %16899 = shalt.err (!%p16896_p6)
}
 0x119   :  { %s16900_s2 = scalar_lea.vmem %s375_s0, 32  ;;  %p16905_p8 = scmp.lt.s32.totalorder %s375_s0, %s375_s0 }
 0x11a   :  { %p16901_p7 = scmp.ne.s32.totalorder %s375_s0, %s16900_s2  ;;  %p16906_p9 = scmp.lt.s32.totalorder %s16900_s2, %s16900_s2 }
 0x11c   :  { %p16907_p10 = por %p16906_p9, %p16905_p8 }
 0x11e   :  { %p16908_p11 = pnand %p16907_p10, %p16901_p7 }
 0x120   :  { %16911 = shalt.err (!%p16908_p11)
}
 0x121   :  { %377 = dma.hbm_to_vmem [thread:$0]  %s17689_s19, 32, %s375_s0, [#allocation41]  }
 0x122   :  { %s16912_s6 = scalar_lea.hbm %s17699_s8, 48 }
 0x123   :  { %p16913_p12 = scmp.ne.s32.totalorder %s17699_s8, %s16912_s6  ;;  %p16916_p13 = scmp.lt.u32.totalorder %s16912_s6, %s17699_s8 }
 0x125   :  { %p16918_p0 = pnand %p16916_p13, %p16913_p12 }
 0x127   :  { %16921 = shalt.err (!%p16918_p0)
}
 0x128   :  { %s16922_s7 = scalar_lea.vmem %s397_s28, 48  ;;  %s16926_s10 = scalar_lea.vmem %s397_s28, 64 }
 0x129   :  { %p16923_p1 = scmp.ne.s32.totalorder %s397_s28, %s16922_s7  ;;  %p16927_p2 = scmp.lt.s32.totalorder %s397_s28, %s397_s28 }
 0x12a   :  { %p16928_p3 = scmp.lt.s32.totalorder %s16926_s10, %s16922_s7 }
 0x12c   :  { %p16929_p4 = por %p16928_p3, %p16927_p2 }
 0x12e   :  { %p16930_p5 = pnand %p16929_p4, %p16923_p1 }
 0x130   :  { %16933 = shalt.err (!%p16930_p5)
}
 0x131   :  { %399 = dma.hbm_to_vmem [thread:$0]  %s17699_s8, 48, %s397_s28, [#allocation44]  }
 0x132   :  { %s17513_s19 = smov [#allocation46]   ;;  %s17514_s9 = smov [#allocation49]  }
 0x133   :  { %s418_s11 = sshll.u32 %s17513_s19, 4  ;;  %s440_s15 = sshll.u32 %s17514_s9, 4  ;;  %s419_s11 = int_to_ptr.vmem [resolvable:$true] %s418_s11  ;;  %s441_s15 = int_to_ptr.vmem [resolvable:$true] %s440_s15 }
 0x134   :  { %s16934_s14 = scalar_lea.hbm %s17709_s29, 64 }
 0x135   :  { %p16935_p6 = scmp.ne.s32.totalorder %s17709_s29, %s16934_s14  ;;  %p16938_p7 = scmp.lt.u32.totalorder %s16934_s14, %s17709_s29 }
 0x137   :  { %p16940_p8 = pnand %p16938_p7, %p16935_p6 }
 0x139   :  { %16943 = shalt.err (!%p16940_p8)
}
 0x13a   :  { %s16944_s16 = scalar_lea.vmem %s419_s11, 64  ;;  %p16949_p10 = scmp.lt.s32.totalorder %s419_s11, %s419_s11 }
 0x13b   :  { %p16945_p9 = scmp.ne.s32.totalorder %s419_s11, %s16944_s16  ;;  %p16950_p11 = scmp.lt.s32.totalorder %s16944_s16, %s16944_s16 }
 0x13d   :  { %p16951_p12 = por %p16950_p11, %p16949_p10 }
 0x13f   :  { %p16952_p13 = pnand %p16951_p12, %p16945_p9 }
 0x141   :  { %16955 = shalt.err (!%p16952_p13)
}
 0x142   :  { %s18328_s22 = sld [smem:[#allocation96_spill]] }
 0x143   :  { %421 = dma.hbm_to_vmem [thread:$0]  %s17709_s29, 64, %s419_s11, [#allocation47]  }
 0x148   :  { %s16956_s8 = scalar_lea.hbm %s18328_s22, 64 }
 0x149   :  { %p16957_p0 = scmp.ne.s32.totalorder %s18328_s22, %s16956_s8  ;;  %p16960_p1 = scmp.lt.u32.totalorder %s16956_s8, %s18328_s22 }
 0x14b   :  { %p16962_p2 = pnand %p16960_p1, %p16957_p0 }
 0x14d   :  { %16965 = shalt.err (!%p16962_p2)
}
 0x14e   :  { %s16966_s17 = scalar_lea.vmem %s441_s15, 64  ;;  %p16971_p4 = scmp.lt.s32.totalorder %s441_s15, %s441_s15 }
 0x14f   :  { %p16967_p3 = scmp.ne.s32.totalorder %s441_s15, %s16966_s17  ;;  %p16972_p5 = scmp.lt.s32.totalorder %s16966_s17, %s16966_s17 }
 0x151   :  { %p16973_p6 = por %p16972_p5, %p16971_p4 }
 0x153   :  { %p16974_p7 = pnand %p16973_p6, %p16967_p3 }
 0x155   :  { %16977 = shalt.err (!%p16974_p7)
}
 0x156   :  { %s18329_s23 = sld [smem:[#allocation98_spill]]  ;;  %s17515_s4 = smov [#allocation52]  }
 0x157   :  { %443 = dma.hbm_to_vmem [thread:$0]  %s18328_s22, 64, %s441_s15, [#allocation50]  }
 0x158   :  { %s462_s29 = sshll.u32 %s17515_s4, 4  ;;  %s17516_s26 = smov [#allocation4]   ;;  %s463_s29 = int_to_ptr.vmem [resolvable:$true] %s462_s29 }
 0x159   :  { %s115_s12 = sshll.u32 %s17516_s26, 4  ;;  %s116_s12 = int_to_ptr.vmem [resolvable:$true] %s115_s12 }
 0x15c   :  { %s16978_s30 = scalar_lea.hbm %s18329_s23, 80 }
 0x15d   :  { %p16979_p8 = scmp.ne.s32.totalorder %s18329_s23, %s16978_s30  ;;  %p16982_p9 = scmp.lt.u32.totalorder %s16978_s30, %s18329_s23 }
 0x15f   :  { %p16984_p10 = pnand %p16982_p9, %p16979_p8 }
 0x161   :  { %16987 = shalt.err (!%p16984_p10)
}
 0x162   :  { %s16988_s0 = scalar_lea.vmem %s463_s29, 80  ;;  %s16992_s25 = scalar_lea.vmem %s463_s29, 96 }
 0x163   :  { %p16989_p11 = scmp.ne.s32.totalorder %s463_s29, %s16988_s0  ;;  %p16993_p12 = scmp.lt.s32.totalorder %s463_s29, %s463_s29 }
 0x164   :  { %p16994_p13 = scmp.lt.s32.totalorder %s16992_s25, %s16988_s0 }
 0x166   :  { %p16995_p0 = por %p16994_p13, %p16993_p12 }
 0x168   :  { %p16996_p1 = pnand %p16995_p0, %p16989_p11 }
 0x16a   :  { %16999 = shalt.err (!%p16996_p1)
}
 0x16b   :  { %s18330_s28 = sld [smem:[#allocation79_spill]] }
 0x16c   :  { %465 = dma.hbm_to_vmem [thread:$0]  %s18329_s23, 80, %s463_s29, [#allocation53]  }
 0x171   :  { %s17000_s1 = scalar_lea.hbm %s18330_s28, 30720 }
 0x172   :  { %p17001_p2 = scmp.ne.s32.totalorder %s18330_s28, %s17000_s1  ;;  %p17004_p3 = scmp.lt.u32.totalorder %s17000_s1, %s18330_s28 }
 0x174   :  { %p17006_p4 = pnand %p17004_p3, %p17001_p2 }
 0x176   :  { %17009 = shalt.err (!%p17006_p4)
}
 0x177   :  { %s17010_s2 = scalar_lea.vmem %s116_s12, 30720  ;;  %p17015_p6 = scmp.lt.s32.totalorder %s116_s12, %s116_s12 }
 0x178   :  { %p17011_p5 = scmp.ne.s32.totalorder %s116_s12, %s17010_s2  ;;  %p17016_p7 = scmp.lt.s32.totalorder %s17010_s2, %s17010_s2 }
 0x17a   :  { %p17017_p8 = por %p17016_p7, %p17015_p6 }
 0x17c   :  { %p17018_p9 = pnand %p17017_p8, %p17011_p5 }
 0x17e   :  { %17021 = shalt.err (!%p17018_p9)
}
 0x17f   :  { %s17517_s6 = smov 320   ;;  %s18331_s7 = sld [smem:[#allocation80_spill]] }
 0x180   :  { %s17518_s10 = smov 20   ;;  %s17519_s19 = smov [#allocation9]  }
 0x181   :  { %121 = dma.hbm_to_vmem [thread:$0]  %s18330_s28, 30720, %s116_s12, [#allocation5], %s17517_s6, %s17517_s6, %s17518_s10  }
 0x182   :  { %s137_s11 = sshll.u32 %s17519_s19, 4  ;;  %s138_s11 = int_to_ptr.vmem [resolvable:$true] %s137_s11 }
 0x185   :  { %s17022_s9 = scalar_lea.hbm %s18331_s7, 20480 }
 0x186   :  { %p17023_p10 = scmp.ne.s32.totalorder %s18331_s7, %s17022_s9  ;;  %p17026_p11 = scmp.lt.u32.totalorder %s17022_s9, %s18331_s7 }
 0x188   :  { %p17028_p12 = pnand %p17026_p11, %p17023_p10 }
 0x18a   :  { %17031 = shalt.err (!%p17028_p12)
}
 0x18b   :  { %s17032_s15 = scalar_lea.vmem %s138_s11, 20480  ;;  %p17037_p0 = scmp.lt.s32.totalorder %s138_s11, %s138_s11 }
 0x18c   :  { %p17033_p13 = scmp.ne.s32.totalorder %s138_s11, %s17032_s15  ;;  %p17038_p1 = scmp.lt.s32.totalorder %s17032_s15, %s17032_s15 }
 0x18e   :  { %p17039_p2 = por %p17038_p1, %p17037_p0 }
 0x190   :  { %p17040_p3 = pnand %p17039_p2, %p17033_p13 }
 0x192   :  { %17043 = shalt.err (!%p17040_p3)
}
 0x193   :  { %s17520_s14 = smov 256   ;;  %s18332_s16 = sld [smem:[#allocation81_spill]] }
 0x194   :  { %s17521_s22 = smov 16   ;;  %s17522_s8 = smov [#allocation12]  }
 0x195   :  { %143 = dma.hbm_to_vmem [thread:$0]  %s18331_s7, 20480, %s138_s11, [#allocation8], %s17520_s14, %s17520_s14, %s17521_s22  }
 0x196   :  { %s159_s17 = sshll.u32 %s17522_s8, 4  ;;  %s17523_s23 = smov [#allocation15]   ;;  %s160_s17 = int_to_ptr.vmem [resolvable:$true] %s159_s17 }
 0x197   :  { %s181_s4 = sshll.u32 %s17523_s23, 4  ;;  %s17850_s4 = int_to_ptr.vmem [resolvable:$true] %s181_s4 }
 0x199   :  { %s17044_s29 = scalar_lea.hbm %s18332_s16, 16384 }
 0x19a   :  { %p17045_p4 = scmp.ne.s32.totalorder %s18332_s16, %s17044_s29  ;;  %p17048_p5 = scmp.lt.u32.totalorder %s17044_s29, %s18332_s16 }
 0x19c   :  { %p17050_p6 = pnand %p17048_p5, %p17045_p4 }
 0x19e   :  { %17053 = shalt.err (!%p17050_p6)
}
 0x19f   :  { %s17054_s26 = scalar_lea.vmem %s160_s17, 16384  ;;  %p17059_p8 = scmp.lt.s32.totalorder %s160_s17, %s160_s17 }
 0x1a0   :  { %p17055_p7 = scmp.ne.s32.totalorder %s160_s17, %s17054_s26  ;;  %p17060_p9 = scmp.lt.s32.totalorder %s17054_s26, %s17054_s26 }
 0x1a2   :  { %p17061_p10 = por %p17060_p9, %p17059_p8 }
 0x1a4   :  { %p17062_p11 = pnand %p17061_p10, %p17055_p7 }
 0x1a6   :  { %17065 = shalt.err (!%p17062_p11)
}
 0x1a7   :  { %s18333_s12 = sld [smem:[#allocation82_spill]] }
 0x1a8   :  { %165 = dma.hbm_to_vmem [thread:$0]  %s18332_s16, 16384, %s160_s17, [#allocation11], %s17520_s14, %s17520_s14, %s17521_s22  }
 0x1ad   :  { %s17066_s30 = scalar_lea.hbm %s18333_s12, 12288 }
 0x1ae   :  { %p17067_p12 = scmp.ne.s32.totalorder %s18333_s12, %s17066_s30  ;;  %p17070_p13 = scmp.lt.u32.totalorder %s17066_s30, %s18333_s12 }
 0x1b0   :  { %p17072_p0 = pnand %p17070_p13, %p17067_p12 }
 0x1b2   :  { %17075 = shalt.err (!%p17072_p0)
}
 0x1b3   :  { %s17076_s0 = scalar_lea.vmem %s17850_s4, 12288  ;;  %p17081_p2 = scmp.lt.s32.totalorder %s17850_s4, %s17850_s4 }
 0x1b4   :  { %p17077_p1 = scmp.ne.s32.totalorder %s17850_s4, %s17076_s0  ;;  %p17082_p3 = scmp.lt.s32.totalorder %s17076_s0, %s17076_s0 }
 0x1b6   :  { %p17083_p4 = por %p17082_p3, %p17081_p2 }
 0x1b8   :  { %p17084_p5 = pnand %p17083_p4, %p17077_p1 }
 0x1ba   :  { %17087 = shalt.err (!%p17084_p5)
}
 0x1bb   :  { %s17524_s25 = smov 192   ;;  %s18334_s28 = sld [smem:[#allocation83_spill]] }
 0x1bc   :  { %s17525_s1 = smov 12   ;;  %s17526_s2 = smov [#allocation18]  }
 0x1bd   :  { %187 = dma.hbm_to_vmem [thread:$0]  %s18333_s12, 12288, %s17850_s4, [#allocation14], %s17524_s25, %s17524_s25, %s17525_s1  }
 0x1be   :  { %s203_s7 = sshll.u32 %s17526_s2, 4  ;;  %s17527_s19 = smov [#allocation21]   ;;  %s204_s7 = int_to_ptr.vmem [resolvable:$true] %s203_s7 }
 0x1bf   :  { %s228_s11 = sshll.u32 %s17527_s19, 4  ;;  %s229_s11 = int_to_ptr.vmem [resolvable:$true] %s228_s11 }
 0x1c1   :  { %s17088_s9 = scalar_lea.hbm %s18334_s28, 6144 }
 0x1c2   :  { %p17089_p6 = scmp.ne.s32.totalorder %s18334_s28, %s17088_s9  ;;  %p17092_p7 = scmp.lt.u32.totalorder %s17088_s9, %s18334_s28 }
 0x1c4   :  { %p17094_p8 = pnand %p17092_p7, %p17089_p6 }
 0x1c6   :  { %17097 = shalt.err (!%p17094_p8)
}
 0x1c7   :  { %s17098_s15 = scalar_lea.vmem %s204_s7, 6144  ;;  %p17103_p10 = scmp.lt.s32.totalorder %s204_s7, %s204_s7 }
 0x1c8   :  { %p17099_p9 = scmp.ne.s32.totalorder %s204_s7, %s17098_s15  ;;  %p17104_p11 = scmp.lt.s32.totalorder %s17098_s15, %s17098_s15 }
 0x1ca   :  { %p17105_p12 = por %p17104_p11, %p17103_p10 }
 0x1cc   :  { %p17106_p13 = pnand %p17105_p12, %p17099_p9 }
 0x1ce   :  { %17109 = shalt.err (!%p17106_p13)
}
 0x1cf   :  { %s18335_s16 = sld [smem:[#allocation85_spill]] }
 0x1d0   :  { %209 = dma.hbm_to_vmem [thread:$0]  %s18334_s28, 6144, %s204_s7, [#allocation17], %s17507_s3, %s17507_s3, %s17508_s27  }
 0x1d5   :  { %s17110_s8 = scalar_lea.hbm %s18335_s16, 16 }
 0x1d6   :  { %p17111_p0 = scmp.ne.s32.totalorder %s18335_s16, %s17110_s8  ;;  %p17114_p1 = scmp.lt.u32.totalorder %s17110_s8, %s18335_s16 }
 0x1d8   :  { %p17116_p2 = pnand %p17114_p1, %p17111_p0 }
 0x1da   :  { %17119 = shalt.err (!%p17116_p2)
}
 0x1db   :  { %s17120_s17 = scalar_lea.vmem %s229_s11, 16  ;;  %s17124_s23 = scalar_lea.vmem %s229_s11, 32 }
 0x1dc   :  { %p17121_p3 = scmp.ne.s32.totalorder %s229_s11, %s17120_s17  ;;  %p17125_p4 = scmp.lt.s32.totalorder %s229_s11, %s229_s11 }
 0x1dd   :  { %p17126_p5 = scmp.lt.s32.totalorder %s17124_s23, %s17120_s17 }
 0x1df   :  { %p17127_p6 = por %p17126_p5, %p17125_p4 }
 0x1e1   :  { %p17128_p7 = pnand %p17127_p6, %p17121_p3 }
 0x1e3   :  { %17131 = shalt.err (!%p17128_p7)
}
 0x1e4   :  { %s18336_s4 = sld [smem:[#allocation86_spill]]  ;;  %s17528_s29 = smov [#allocation24]  }
 0x1e5   :  { %231 = dma.hbm_to_vmem [thread:$0]  %s18335_s16, 16, %s229_s11, [#allocation20]  }
 0x1e6   :  { %s250_s26 = sshll.u32 %s17528_s29, 4  ;;  %s17529_s12 = smov [#allocation27]   ;;  %s251_s26 = int_to_ptr.vmem [resolvable:$true] %s250_s26 }
 0x1e7   :  { %s272_s30 = sshll.u32 %s17529_s12, 4  ;;  %s273_s30 = int_to_ptr.vmem [resolvable:$true] %s272_s30 }
 0x1ea   :  { %s17132_s0 = scalar_lea.hbm %s18336_s4, 16 }
 0x1eb   :  { %p17133_p8 = scmp.ne.s32.totalorder %s18336_s4, %s17132_s0  ;;  %p17136_p9 = scmp.lt.u32.totalorder %s17132_s0, %s18336_s4 }
 0x1ed   :  { %p17138_p10 = pnand %p17136_p9, %p17133_p8 }
 0x1ef   :  { %17141 = shalt.err (!%p17138_p10)
}
 0x1f0   :  { %s17142_s28 = scalar_lea.vmem %s251_s26, 16  ;;  %s17146_s2 = scalar_lea.vmem %s251_s26, 32 }
 0x1f1   :  { %p17143_p11 = scmp.ne.s32.totalorder %s251_s26, %s17142_s28  ;;  %p17147_p12 = scmp.lt.s32.totalorder %s251_s26, %s251_s26 }
 0x1f2   :  { %p17148_p13 = scmp.lt.s32.totalorder %s17146_s2, %s17142_s28 }
 0x1f4   :  { %p17149_p0 = por %p17148_p13, %p17147_p12 }
 0x1f6   :  { %p17150_p1 = pnand %p17149_p0, %p17143_p11 }
 0x1f8   :  { %17153 = shalt.err (!%p17150_p1)
}
 0x1f9   :  { %s18337_s7 = sld [smem:[#allocation87_spill]] }
 0x1fa   :  { %253 = dma.hbm_to_vmem [thread:$0]  %s18336_s4, 16, %s251_s26, [#allocation23]  }
 0x1ff   :  { %s17154_s19 = scalar_lea.hbm %s18337_s7, 16 }
 0x200   :  { %p17155_p2 = scmp.ne.s32.totalorder %s18337_s7, %s17154_s19  ;;  %p17158_p3 = scmp.lt.u32.totalorder %s17154_s19, %s18337_s7 }
 0x202   :  { %p17160_p4 = pnand %p17158_p3, %p17155_p2 }
 0x204   :  { %17163 = shalt.err (!%p17160_p4)
}
 0x205   :  { %s17164_s11 = scalar_lea.vmem %s273_s30, 16  ;;  %s17168_s9 = scalar_lea.vmem %s273_s30, 32 }
 0x206   :  { %p17165_p5 = scmp.ne.s32.totalorder %s273_s30, %s17164_s11  ;;  %p17169_p6 = scmp.lt.s32.totalorder %s273_s30, %s273_s30 }
 0x207   :  { %p17170_p7 = scmp.lt.s32.totalorder %s17168_s9, %s17164_s11 }
 0x209   :  { %p17171_p8 = por %p17170_p7, %p17169_p6 }
 0x20b   :  { %p17172_p9 = pnand %p17171_p8, %p17165_p5 }
 0x20d   :  { %17175 = shalt.err (!%p17172_p9)
}
 0x20e   :  { %s18338_s15 = sld [smem:[#allocation89_spill]]  ;;  %s17530_s16 = smov [#allocation30]  }
 0x20f   :  { %275 = dma.hbm_to_vmem [thread:$0]  %s18337_s7, 16, %s273_s30, [#allocation26]  }
 0x210   :  { %s295_s8 = sshll.u32 %s17530_s16, 4  ;;  %s17531_s17 = smov [#allocation33]   ;;  %s296_s8 = int_to_ptr.vmem [resolvable:$true] %s295_s8 }
 0x211   :  { %s317_s23 = sshll.u32 %s17531_s17, 4  ;;  %s17890_s23 = int_to_ptr.vmem [resolvable:$true] %s317_s23 }
 0x214   :  { %s17176_s4 = scalar_lea.hbm %s18338_s15, 1024 }
 0x215   :  { %p17177_p10 = scmp.ne.s32.totalorder %s18338_s15, %s17176_s4  ;;  %p17180_p11 = scmp.lt.u32.totalorder %s17176_s4, %s18338_s15 }
 0x217   :  { %p17182_p12 = pnand %p17180_p11, %p17177_p10 }
 0x219   :  { %17185 = shalt.err (!%p17182_p12)
}
 0x21a   :  { %s17186_s29 = scalar_lea.vmem %s296_s8, 1024  ;;  %p17191_p0 = scmp.lt.s32.totalorder %s296_s8, %s296_s8 }
 0x21b   :  { %p17187_p13 = scmp.ne.s32.totalorder %s296_s8, %s17186_s29  ;;  %p17192_p1 = scmp.lt.s32.totalorder %s17186_s29, %s17186_s29 }
 0x21d   :  { %p17193_p2 = por %p17192_p1, %p17191_p0 }
 0x21f   :  { %p17194_p3 = pnand %p17193_p2, %p17187_p13 }
 0x221   :  { %17197 = shalt.err (!%p17194_p3)
}
 0x222   :  { %s18339_s26 = sld [smem:[#allocation90_spill]] }
 0x223   :  { %301 = dma.hbm_to_vmem [thread:$0]  %s18338_s15, 1024, %s296_s8, [#allocation29], %s17502_s18, %s17502_s18, %s17503_s24  }
 0x228   :  { %s17198_s12 = scalar_lea.hbm %s18339_s26, 1024 }
 0x229   :  { %p17199_p4 = scmp.ne.s32.totalorder %s18339_s26, %s17198_s12  ;;  %p17202_p5 = scmp.lt.u32.totalorder %s17198_s12, %s18339_s26 }
 0x22b   :  { %p17204_p6 = pnand %p17202_p5, %p17199_p4 }
 0x22d   :  { %17207 = shalt.err (!%p17204_p6)
}
 0x22e   :  { %s17208_s30 = scalar_lea.vmem %s17890_s23, 1024  ;;  %p17213_p8 = scmp.lt.s32.totalorder %s17890_s23, %s17890_s23 }
 0x22f   :  { %p17209_p7 = scmp.ne.s32.totalorder %s17890_s23, %s17208_s30  ;;  %p17214_p9 = scmp.lt.s32.totalorder %s17208_s30, %s17208_s30 }
 0x231   :  { %p17215_p10 = por %p17214_p9, %p17213_p8 }
 0x233   :  { %p17216_p11 = pnand %p17215_p10, %p17209_p7 }
 0x235   :  { %17219 = shalt.err (!%p17216_p11)
}
 0x236   :  { %s18340_s0 = sld [smem:[#allocation91_spill]]  ;;  %s17532_s28 = smov [#allocation36]  }
 0x237   :  { %323 = dma.hbm_to_vmem [thread:$0]  %s18339_s26, 1024, %s17890_s23, [#allocation32], %s17502_s18, %s17502_s18, %s17503_s24  }
 0x238   :  { %s339_s2 = sshll.u32 %s17532_s28, 4  ;;  %s17533_s7 = smov [#allocation39]   ;;  %s340_s2 = int_to_ptr.vmem [resolvable:$true] %s339_s2 }
 0x239   :  { %s361_s19 = sshll.u32 %s17533_s7, 4  ;;  %s17911_s19 = int_to_ptr.vmem [resolvable:$true] %s361_s19 }
 0x23c   :  { %s17220_s11 = scalar_lea.hbm %s18340_s0, 1024 }
 0x23d   :  { %p17221_p12 = scmp.ne.s32.totalorder %s18340_s0, %s17220_s11  ;;  %p17224_p13 = scmp.lt.u32.totalorder %s17220_s11, %s18340_s0 }
 0x23f   :  { %p17226_p0 = pnand %p17224_p13, %p17221_p12 }
 0x241   :  { %17229 = shalt.err (!%p17226_p0)
}
 0x242   :  { %s17230_s9 = scalar_lea.vmem %s340_s2, 1024  ;;  %p17235_p2 = scmp.lt.s32.totalorder %s340_s2, %s340_s2 }
 0x243   :  { %p17231_p1 = scmp.ne.s32.totalorder %s340_s2, %s17230_s9  ;;  %p17236_p3 = scmp.lt.s32.totalorder %s17230_s9, %s17230_s9 }
 0x245   :  { %p17237_p4 = por %p17236_p3, %p17235_p2 }
 0x247   :  { %p17238_p5 = pnand %p17237_p4, %p17231_p1 }
 0x249   :  { %17241 = shalt.err (!%p17238_p5)
}
 0x24a   :  { %s18341_s15 = sld [smem:[#allocation92_spill]] }
 0x24b   :  { %345 = dma.hbm_to_vmem [thread:$0]  %s18340_s0, 1024, %s340_s2, [#allocation35], %s17502_s18, %s17502_s18, %s17503_s24  }
 0x250   :  { %s17242_s16 = scalar_lea.hbm %s18341_s15, 2048 }
 0x251   :  { %p17243_p6 = scmp.ne.s32.totalorder %s18341_s15, %s17242_s16  ;;  %p17246_p7 = scmp.lt.u32.totalorder %s17242_s16, %s18341_s15 }
 0x253   :  { %p17248_p8 = pnand %p17246_p7, %p17243_p6 }
 0x255   :  { %17251 = shalt.err (!%p17248_p8)
}
 0x256   :  { %s17252_s8 = scalar_lea.vmem %s17911_s19, 2048  ;;  %p17257_p10 = scmp.lt.s32.totalorder %s17911_s19, %s17911_s19 }
 0x257   :  { %p17253_p9 = scmp.ne.s32.totalorder %s17911_s19, %s17252_s8  ;;  %p17258_p11 = scmp.lt.s32.totalorder %s17252_s8, %s17252_s8 }
 0x259   :  { %p17259_p12 = por %p17258_p11, %p17257_p10 }
 0x25b   :  { %p17260_p13 = pnand %p17259_p12, %p17253_p9 }
 0x25d   :  { %17263 = shalt.err (!%p17260_p13)
}
 0x25e   :  { %s18342_s18 = sld [smem:[#allocation93_spill]]  ;;  %s17534_s24 = smov [#allocation42]  }
 0x25f   :  { %367 = dma.hbm_to_vmem [thread:$0]  %s18341_s15, 2048, %s17911_s19, [#allocation38], %s17507_s3, %s17507_s3, %s17508_s27  }
 0x260   :  { %s383_s17 = sshll.u32 %s17534_s24, 4  ;;  %s17535_s23 = smov [#allocation45]   ;;  %s384_s17 = int_to_ptr.vmem [resolvable:$true] %s383_s17 }
 0x261   :  { %s405_s4 = sshll.u32 %s17535_s23, 4  ;;  %s17932_s4 = int_to_ptr.vmem [resolvable:$true] %s405_s4 }
 0x264   :  { %s17264_s29 = scalar_lea.hbm %s18342_s18, 6144 }
 0x265   :  { %p17265_p0 = scmp.ne.s32.totalorder %s18342_s18, %s17264_s29  ;;  %p17268_p1 = scmp.lt.u32.totalorder %s17264_s29, %s18342_s18 }
 0x267   :  { %p17270_p2 = pnand %p17268_p1, %p17265_p0 }
 0x269   :  { %17273 = shalt.err (!%p17270_p2)
}
 0x26a   :  { %s17274_s26 = scalar_lea.vmem %s384_s17, 6144  ;;  %p17279_p4 = scmp.lt.s32.totalorder %s384_s17, %s384_s17 }
 0x26b   :  { %p17275_p3 = scmp.ne.s32.totalorder %s384_s17, %s17274_s26  ;;  %p17280_p5 = scmp.lt.s32.totalorder %s17274_s26, %s17274_s26 }
 0x26d   :  { %p17281_p6 = por %p17280_p5, %p17279_p4 }
 0x26f   :  { %p17282_p7 = pnand %p17281_p6, %p17275_p3 }
 0x271   :  { %17285 = shalt.err (!%p17282_p7)
}
 0x272   :  { %s18343_s3 = sld [smem:[#allocation94_spill]] }
 0x273   :  { %389 = dma.hbm_to_vmem [thread:$0]  %s18342_s18, 6144, %s384_s17, [#allocation41], %s17524_s25, %s17524_s25, %s17525_s1  }
 0x278   :  { %s17286_s27 = scalar_lea.hbm %s18343_s3, 12288 }
 0x279   :  { %p17287_p8 = scmp.ne.s32.totalorder %s18343_s3, %s17286_s27  ;;  %p17290_p9 = scmp.lt.u32.totalorder %s17286_s27, %s18343_s3 }
 0x27b   :  { %p17292_p10 = pnand %p17290_p9, %p17287_p8 }
 0x27d   :  { %17295 = shalt.err (!%p17292_p10)
}
 0x27e   :  { %s17296_s12 = scalar_lea.vmem %s17932_s4, 12288  ;;  %p17301_p12 = scmp.lt.s32.totalorder %s17932_s4, %s17932_s4 }
 0x27f   :  { %p17297_p11 = scmp.ne.s32.totalorder %s17932_s4, %s17296_s12  ;;  %p17302_p13 = scmp.lt.s32.totalorder %s17296_s12, %s17296_s12 }
 0x281   :  { %p17303_p0 = por %p17302_p13, %p17301_p12 }
 0x283   :  { %p17304_p1 = pnand %p17303_p0, %p17297_p11 }
 0x285   :  { %17307 = shalt.err (!%p17304_p1)
}
 0x286   :  { %s18344_s25 = sld [smem:[#allocation95_spill]]  ;;  %s17536_s1 = smov [#allocation48]  }
 0x287   :  { %411 = dma.hbm_to_vmem [thread:$0]  %s18343_s3, 12288, %s17932_s4, [#allocation44], %s17520_s14, %s17520_s14, %s17521_s22  }
 0x288   :  { %s427_s30 = sshll.u32 %s17536_s1, 4  ;;  %s17537_s0 = smov [#allocation51]   ;;  %s428_s30 = int_to_ptr.vmem [resolvable:$true] %s427_s30 }
 0x289   :  { %s449_s28 = sshll.u32 %s17537_s0, 4  ;;  %s17953_s28 = int_to_ptr.vmem [resolvable:$true] %s449_s28 }
 0x28c   :  { %s17308_s2 = scalar_lea.hbm %s18344_s25, 16384 }
 0x28d   :  { %p17309_p2 = scmp.ne.s32.totalorder %s18344_s25, %s17308_s2  ;;  %p17312_p3 = scmp.lt.u32.totalorder %s17308_s2, %s18344_s25 }
 0x28f   :  { %p17314_p4 = pnand %p17312_p3, %p17309_p2 }
 0x291   :  { %17317 = shalt.err (!%p17314_p4)
}
 0x292   :  { %s17318_s7 = scalar_lea.vmem %s428_s30, 16384  ;;  %p17323_p6 = scmp.lt.s32.totalorder %s428_s30, %s428_s30 }
 0x293   :  { %p17319_p5 = scmp.ne.s32.totalorder %s428_s30, %s17318_s7  ;;  %p17324_p7 = scmp.lt.s32.totalorder %s17318_s7, %s17318_s7 }
 0x295   :  { %p17325_p8 = por %p17324_p7, %p17323_p6 }
 0x297   :  { %p17326_p9 = pnand %p17325_p8, %p17319_p5 }
 0x299   :  { %17329 = shalt.err (!%p17326_p9)
}
 0x29a   :  { %s18345_s19 = sld [smem:[#allocation97_spill]] }
 0x29b   :  { %433 = dma.hbm_to_vmem [thread:$0]  %s18344_s25, 16384, %s428_s30, [#allocation47], %s17520_s14, %s17520_s14, %s17521_s22  }
 0x2a0   :  { %s17330_s11 = scalar_lea.hbm %s18345_s19, 20480 }
 0x2a1   :  { %p17331_p10 = scmp.ne.s32.totalorder %s18345_s19, %s17330_s11  ;;  %p17334_p11 = scmp.lt.u32.totalorder %s17330_s11, %s18345_s19 }
 0x2a3   :  { %p17336_p12 = pnand %p17334_p11, %p17331_p10 }
 0x2a5   :  { %17339 = shalt.err (!%p17336_p12)
}
 0x2a6   :  { %s17340_s9 = scalar_lea.vmem %s17953_s28, 20480  ;;  %p17345_p0 = scmp.lt.s32.totalorder %s17953_s28, %s17953_s28 }
 0x2a7   :  { %p17341_p13 = scmp.ne.s32.totalorder %s17953_s28, %s17340_s9  ;;  %p17346_p1 = scmp.lt.s32.totalorder %s17340_s9, %s17340_s9 }
 0x2a9   :  { %p17347_p2 = por %p17346_p1, %p17345_p0 }
 0x2ab   :  { %p17348_p3 = pnand %p17347_p2, %p17341_p13 }
 0x2ad   :  { %17351 = shalt.err (!%p17348_p3)
}
 0x2ae   :  { %s18346_s14 = sld [smem:[#allocation99_spill]]  ;;  %s17538_s22 = smov [#allocation54]  }
 0x2af   :  { %455 = dma.hbm_to_vmem [thread:$0]  %s18345_s19, 20480, %s17953_s28, [#allocation50], %s17517_s6, %s17517_s6, %s17518_s10  }
 0x2b0   :  { %s471_s15 = sshll.u32 %s17538_s22, 4  ;;  %s472_s15 = int_to_ptr.vmem [resolvable:$true] %s471_s15 }
 0x2b4   :  { %s17352_s16 = scalar_lea.hbm %s18346_s14, 30720 }
 0x2b5   :  { %p17353_p4 = scmp.ne.s32.totalorder %s18346_s14, %s17352_s16  ;;  %p17356_p5 = scmp.lt.u32.totalorder %s17352_s16, %s18346_s14 }
 0x2b7   :  { %p17358_p6 = pnand %p17356_p5, %p17353_p4 }
 0x2b9   :  { %17361 = shalt.err (!%p17358_p6)
}
 0x2ba   :  { %s17362_s8 = scalar_lea.vmem %s472_s15, 30720  ;;  %p17367_p8 = scmp.lt.s32.totalorder %s472_s15, %s472_s15 }
 0x2bb   :  { %p17363_p7 = scmp.ne.s32.totalorder %s472_s15, %s17362_s8  ;;  %p17368_p9 = scmp.lt.s32.totalorder %s17362_s8, %s17362_s8 }
 0x2bd   :  { %p17369_p10 = por %p17368_p9, %p17367_p8 }
 0x2bf   :  { %p17370_p11 = pnand %p17369_p10, %p17363_p7 }
 0x2c1   :  { %17373 = shalt.err (!%p17370_p11)
}
 0x2c2   :  { %s17539_s18 = smov 384   ;;  %s17540_s6 = smov 24  }
 0x2c3   :  { %477 = dma.hbm_to_vmem [thread:$0]  %s18346_s14, 30720, %s472_s15, [#allocation53], %s17539_s18, %s17539_s18, %s17540_s6  }
 0x2c4   :  { %s17541_s10 = smov [#allocation55]   ;;  %s17374_s17 = scalar_lea.hbm %s17739_s21, 96 }
 0x2c5   :  { %s484_s24 = sshll.u32 %s17541_s10, 4  ;;  %p17375_p12 = scmp.ne.s32.totalorder %s17739_s21, %s17374_s17  ;;  %s485_s24 = int_to_ptr.vmem [resolvable:$true] %s484_s24 }
 0x2c6   :  { %p17378_p13 = scmp.lt.u32.totalorder %s17374_s17, %s17739_s21 }
 0x2c8   :  { %p17380_p0 = pnand %p17378_p13, %p17375_p12 }
 0x2ca   :  { %17383 = shalt.err (!%p17380_p0)
}
 0x2cb   :  { %s17384_s23 = scalar_lea.vmem %s485_s24, 96  ;;  %p17389_p2 = scmp.lt.s32.totalorder %s485_s24, %s485_s24 }
 0x2cc   :  { %p17385_p1 = scmp.ne.s32.totalorder %s485_s24, %s17384_s23  ;;  %p17390_p3 = scmp.lt.s32.totalorder %s17384_s23, %s17384_s23 }
 0x2ce   :  { %p17391_p4 = por %p17390_p3, %p17389_p2 }
 0x2d0   :  { %p17392_p5 = pnand %p17391_p4, %p17385_p1 }
 0x2d2   :  { %17395 = shalt.err (!%p17392_p5)
}
 0x2d3   :  { %487 = dma.hbm_to_vmem [thread:$0]  %s17739_s21, 96, %s485_s24, [#allocation56]  }
 0x2d4   :  { %17418 = dma.done.wait [#allocation5], 30720  }
 0x2d5   :  { %17419 = vsyncadd [#allocation5], 4294936576 }
 0x2d6   :  { %17420 = dma.done.wait [#allocation8], 20560  }
 0x2d7   :  { %17421 = vsyncadd [#allocation8], 4294946736 }
 0x2d8   :  { %17422 = dma.done.wait [#allocation11], 16448  }
 0x2d9   :  { %17423 = vsyncadd [#allocation11], 4294950848 }
 0x2da   :  { %17424 = dma.done.wait [#allocation14], 12352  }
 0x2db   :  { %17425 = vsyncadd [#allocation14], 4294954944 }
 0x2dc   :  { %17426 = dma.done.wait [#allocation17], 6192  }
 0x2dd   :  { %17427 = vsyncadd [#allocation17], 4294961104 }
 0x2de   :  { %17428 = dma.done.wait [#allocation20], 48  }
 0x2df   :  { %17429 = vsyncadd [#allocation20], 4294967248 }
 0x2e0   :  { %17430 = dma.done.wait [#allocation23], 1040  }
 0x2e1   :  { %17431 = vsyncadd [#allocation23], 4294966256 }
 0x2e2   :  { %17432 = dma.done.wait [#allocation26], 1040  }
 0x2e3   :  { %17433 = vsyncadd [#allocation26], 4294966256 }
 0x2e4   :  { %17434 = dma.done.wait [#allocation29], 3072  }
 0x2e5   :  { %17435 = vsyncadd [#allocation29], 4294964224 }
 0x2e6   :  { %17436 = dma.done.wait [#allocation32], 1040  }
 0x2e7   :  { %17437 = vsyncadd [#allocation32], 4294966256 }
 0x2e8   :  { %17438 = dma.done.wait [#allocation35], 1040  }
 0x2e9   :  { %17439 = vsyncadd [#allocation35], 4294966256 }
 0x2ea   :  { %17440 = dma.done.wait [#allocation38], 2064  }
 0x2eb   :  { %17441 = vsyncadd [#allocation38], 4294965232 }
 0x2ec   :  { %17442 = dma.done.wait [#allocation41], 6176  }
 0x2ed   :  { %17443 = vsyncadd [#allocation41], 4294961120 }
 0x2ee   :  { %17444 = dma.done.wait [#allocation44], 12336  }
 0x2ef   :  { %17445 = vsyncadd [#allocation44], 4294954960 }
 0x2f0   :  { %17446 = dma.done.wait [#allocation47], 16448  }
 0x2f1   :  { %17447 = vsyncadd [#allocation47], 4294950848 }
 0x2f2   :  { %17448 = dma.done.wait [#allocation50], 20544  }
 0x2f3   :  { %17449 = vsyncadd [#allocation50], 4294946752 }
 0x2f4   :  { %17450 = dma.done.wait [#allocation53], 30800  }
 0x2f5   :  { %17451 = vsyncadd [#allocation53], 4294936496 }
 0x2f6   :  { %17452 = dma.done.wait [#allocation56], 96  }
 0x2f7   :  { %17453 = vsyncadd [#allocation56], 4294967200  ;;  %v14580_v0 = vld [vmem:[#allocation4 + $0x4] ss:$20 sps:$4 sm:$0xff]   ;;  %v14582_v1 = vld [vmem:[#allocation4] ss:$20 sps:$4 sm:$0xff]  }
 0x2f8   :  { %2166 = vmatprep.subr.bf16.mxu0 %v14580_v0  ;;  %v14583_v2 = vld [vmem:[#allocation4 + $0x2c] ss:$20 sps:$4 sm:$0xff]   ;;  %v14585_v3 = vld [vmem:[#allocation4 + $0x28] ss:$20 sps:$4 sm:$0xff]   ;;  %s18347_s21 = sld [smem:[#allocation77_spill]]  ;;  %s18348_s4 = sld [smem:[#allocation84_spill]] }
 0x2f9   :  { %2167 = vmatpush1.bf16.msra.mxu0 %v14582_v1  ;;  %v14586_v4 = vld [vmem:[#allocation4 + $0x54] ss:$20 sps:$4 sm:$0xff]   ;;  %v14588_v5 = vld [vmem:[#allocation4 + $0x50] ss:$20 sps:$4 sm:$0xff]   ;;  %v14591_v7 = vld [vmem:[#allocation4 + $0x78] ss:$20 sps:$4 sm:$0xff]  }
 0x2fa   :  { %2168 = vmatprep.subr.bf16.mxu0 %v14583_v2  ;;  %v14589_v6 = vld [vmem:[#allocation4 + $0x7c] ss:$20 sps:$4 sm:$0xff]   ;;  %v14592_v8 = vld [vmem:[#allocation4 + $0xa4] ss:$20 sps:$4 sm:$0xff]   ;;  %v14594_v9 = vld [vmem:[#allocation4 + $0xa0] ss:$20 sps:$4 sm:$0xff]  }
 0x2fb   :  { %v14595_v10 = vld [vmem:[#allocation4 + $0xcc] ss:$20 sps:$4 sm:$0xff]   ;;  %v14597_v11 = vld [vmem:[#allocation4 + $0xc8] ss:$20 sps:$4 sm:$0xff]   ;;  %v14600_v15 = vld [vmem:[#allocation4 + $0xf0] ss:$20 sps:$4 sm:$0xff]  }
 0x2fc   :  { %v14598_v12 = vld [vmem:[#allocation4 + $0xf4] ss:$20 sps:$4 sm:$0xff]   ;;  %v14601_v16 = vld [vmem:[#allocation4 + $0x11c] ss:$20 sps:$4 sm:$0xff]   ;;  %v14603_v17 = vld [vmem:[#allocation4 + $0x118] ss:$20 sps:$4 sm:$0xff]  }
 0x2fd   :  { %2169 = vmatpush1.bf16.msra.mxu0 %v14585_v3  ;;  %v14604_v18 = vld [vmem:[#allocation4 + $0x144] ss:$20 sps:$4 sm:$0xff]   ;;  %v14606_v19 = vld [vmem:[#allocation4 + $0x140] ss:$20 sps:$4 sm:$0xff]   ;;  %v14654_v22 = vld [vmem:[#allocation4 + $0x288] ss:$20 sps:$4 sm:$0xff]  }
 0x2fe   :  { %2170 = vmatprep.subr.bf16.mxu0 %v14586_v4  ;;  %v592_v13 = vld [vmem:[%s18347_s21 + $0x8] sm:$0xff]  ;;  %v14660_v26 = vld [vmem:[#allocation4 + $0x2b0] ss:$20 sps:$4 sm:$0xff]   ;;  %v14672_v34 = vld [vmem:[#allocation4 + $0x300] ss:$20 sps:$4 sm:$0xff]   ;;  %s18349_s29 = sld [smem:[#allocation88_spill]] }
 0x2ff   :  { %v17983_v14 = vpack.c.bf16 %v592_v13, %v592_v13  ;;  %v14607_v20 = vld [vmem:[#allocation4 + $0x16c] ss:$20 sps:$4 sm:$0xff]   ;;  %v14609_v23 = vld [vmem:[#allocation4 + $0x168] ss:$20 sps:$4 sm:$0xff]   ;;  %v14612_v28 = vld [vmem:[#allocation4 + $0x190] ss:$20 sps:$4 sm:$0xff]  }
 0x300   :  { %v14652_v21 = vld [vmem:[#allocation4 + $0x28c] ss:$20 sps:$4 sm:$0xff]   ;;  %v14610_v24 = vld [vmem:[#allocation4 + $0x194] ss:$20 sps:$4 sm:$0xff]   ;;  %v14664_v27 = vld [vmem:[#allocation4 + $0x2dc] ss:$20 sps:$4 sm:$0xff]  }
 0x301   :  { %2171 = vmatpush1.bf16.msra.mxu0 %v14588_v5  ;;  %2198 = vmatprep.mubr.bf16.mxu0 %v17983_v14  ;;  %v14658_v25 = vld [vmem:[#allocation4 + $0x2b4] ss:$20 sps:$4 sm:$0xff]   ;;  %v14613_v29 = vld [vmem:[#allocation4 + $0x1bc] ss:$20 sps:$4 sm:$0xff]   ;;  %v14666_v30 = vld [vmem:[#allocation4 + $0x2d8] ss:$20 sps:$4 sm:$0xff]  }
 0x302   :  { %2172 = vmatprep.subr.bf16.mxu0 %v14589_v6  ;;  %2330 = vmatprep.subr.bf16.mxu1 %v14652_v21  ;;  %v14670_v31 = vld [vmem:[#allocation4 + $0x304] ss:$20 sps:$4 sm:$0xff]   ;;  %v14676_v35 = vld [vmem:[#allocation4 + $0x32c] ss:$20 sps:$4 sm:$0xff]   ;;  %v14678_v38 = vld [vmem:[#allocation4 + $0x328] ss:$20 sps:$4 sm:$0xff]  }
 0x303   :  { %2331 = vmatpush1.bf16.msra.mxu1 %v14654_v22  ;;  %v14615_v32 = vld [vmem:[#allocation4 + $0x1b8] ss:$20 sps:$4 sm:$0xff]   ;;  %v14618_v36 = vld [vmem:[#allocation4 + $0x1e0] ss:$20 sps:$4 sm:$0xff]   ;;  %v14621_v40 = vld [vmem:[#allocation4 + $0x208] ss:$20 sps:$4 sm:$0xff]  }
 0x304   :  { %2332 = vmatprep.subr.bf16.mxu1 %v14658_v25  ;;  %v14616_v33 = vld [vmem:[#allocation4 + $0x1e4] ss:$20 sps:$4 sm:$0xff]   ;;  %v14619_v37 = vld [vmem:[#allocation4 + $0x20c] ss:$20 sps:$4 sm:$0xff]   ;;  %v14682_v39 = vld [vmem:[#allocation4 + $0x354] ss:$20 sps:$4 sm:$0xff]  }
 0x305   :  { %2173 = vmatpush1.bf16.msra.mxu0 %v14591_v7  ;;  %v14622_v41 = vld [vmem:[#allocation4 + $0x234] ss:$20 sps:$4 sm:$0xff]   ;;  %v14684_v42 = vld [vmem:[#allocation4 + $0x350] ss:$20 sps:$4 sm:$0xff]   ;;  %v594_v45 = vld [vmem:[%s18347_s21 + $0x18] sm:$0xff]  ;;  %s18350_s26 = sld [smem:[#allocation78_spill]] }
 0x306   :  { %2174 = vmatprep.subr.bf16.mxu0 %v14592_v8  ;;  %v14688_v43 = vld [vmem:[#allocation4 + $0x37c] ss:$20 sps:$4 sm:$0xff]   ;;  %v14690_v47 = vld [vmem:[#allocation4 + $0x378] ss:$20 sps:$4 sm:$0xff]   ;;  %v17987_v48 = vpack.c.bf16 %v594_v45, %v594_v45  ;;  %v591_v52 = vld [vmem:[%s18347_s21] sm:$0xff] }
 0x307   :  { %2333 = vmatpush1.bf16.msra.mxu1 %v14660_v26  ;;  %v14624_v44 = vld [vmem:[#allocation4 + $0x230] ss:$20 sps:$4 sm:$0xff]   ;;  %v14627_v50 = vld [vmem:[#allocation4 + $0x258] ss:$20 sps:$4 sm:$0xff]   ;;  %v14696_v53 = vld [vmem:[#allocation4 + $0x3a0] ss:$20 sps:$4 sm:$0xff]   ;;  %v17991_v55 = vpack.c.bf16 %v591_v52, %v591_v52 }
 0x308   :  { %2334 = vmatprep.subr.bf16.mxu1 %v14664_v27  ;;  %v14625_v46 = vld [vmem:[#allocation4 + $0x25c] ss:$20 sps:$4 sm:$0xff]   ;;  %v14694_v49 = vld [vmem:[#allocation4 + $0x3a4] ss:$20 sps:$4 sm:$0xff]   ;;  %2362 = vmatprep.mubr.bf16.mxu1 %v17987_v48  ;;  %v14700_v54 = vld [vmem:[#allocation4 + $0x3cc] ss:$20 sps:$4 sm:$0xff]  }
 0x309   :  { %2175 = vmatpush1.bf16.msra.mxu0 %v14594_v9  ;;  %v14630_v51 = vld [vmem:[#allocation4 + $0x284] ss:$20 sps:$4 sm:$0xff]   ;;  %v14628_v56 = vld [vmem:[#allocation4 + $0x280] ss:$20 sps:$4 sm:$0xff]   ;;  %v14702_v58 = vld [vmem:[#allocation4 + $0x3c8] ss:$20 sps:$4 sm:$0xff]  }
 0x30a   :  { %2176 = vmatprep.subr.bf16.mxu0 %v14595_v10  ;;  %v14633_v57 = vld [vmem:[#allocation4 + $0x2ac] ss:$20 sps:$4 sm:$0xff]   ;;  %v14706_v59 = vld [vmem:[#allocation4 + $0x3f4] ss:$20 sps:$4 sm:$0xff]   ;;  %v14708_v62 = vld [vmem:[#allocation4 + $0x3f0] ss:$20 sps:$4 sm:$0xff]  }
 0x30b   :  { %2335 = vmatpush1.bf16.msra.mxu1 %v14666_v30  ;;  %v14631_v60 = vld [vmem:[#allocation4 + $0x2a8] ss:$20 sps:$4 sm:$0xff]   ;;  %v14634_v0 = vld [vmem:[#allocation4 + $0x2d0] ss:$20 sps:$4 sm:$0xff]   ;;  %v14714_v2 = vld [vmem:[#allocation4 + $0x418] ss:$20 sps:$4 sm:$0xff]  }
 0x30c   :  { %2336 = vmatprep.subr.bf16.mxu1 %v14670_v31  ;;  %v14636_v61 = vld [vmem:[#allocation4 + $0x2d4] ss:$20 sps:$4 sm:$0xff]   ;;  %v14712_v63 = vld [vmem:[#allocation4 + $0x41c] ss:$20 sps:$4 sm:$0xff]   ;;  %v14718_v3 = vld [vmem:[#allocation4 + $0x444] ss:$20 sps:$4 sm:$0xff]  }
 0x30d   :  { %2177 = vmatpush1.bf16.msra.mxu0 %v14597_v11  ;;  %v14639_v1 = vld [vmem:[#allocation4 + $0x2fc] ss:$20 sps:$4 sm:$0xff]   ;;  %v14637_v4 = vld [vmem:[#allocation4 + $0x2f8] ss:$20 sps:$4 sm:$0xff]   ;;  %v14720_v6 = vld [vmem:[#allocation4 + $0x440] ss:$20 sps:$4 sm:$0xff]  }
 0x30e   :  { %2178 = vmatprep.subr.bf16.mxu0 %v14598_v12  ;;  %v14642_v5 = vld [vmem:[#allocation4 + $0x324] ss:$20 sps:$4 sm:$0xff]   ;;  %v14724_v7 = vld [vmem:[#allocation4 + $0x46c] ss:$20 sps:$4 sm:$0xff]   ;;  %v14726_v10 = vld [vmem:[#allocation4 + $0x468] ss:$20 sps:$4 sm:$0xff]  }
 0x30f   :  { %2337 = vmatpush1.bf16.msra.mxu1 %v14672_v34  ;;  %v14640_v8 = vld [vmem:[#allocation4 + $0x320] ss:$20 sps:$4 sm:$0xff]   ;;  %v14643_v12 = vld [vmem:[#allocation4 + $0x348] ss:$20 sps:$4 sm:$0xff]   ;;  %v14649_v21 = vld [vmem:[#allocation4 + $0x398] ss:$20 sps:$4 sm:$0xff]  }
 0x310   :  { %2338 = vmatprep.subr.bf16.mxu1 %v14676_v35  ;;  %v14645_v9 = vld [vmem:[#allocation4 + $0x34c] ss:$20 sps:$4 sm:$0xff]   ;;  %v14730_v11 = vld [vmem:[#allocation4 + $0x494] ss:$20 sps:$4 sm:$0xff]   ;;  %v14657_v22 = vld [vmem:[#allocation4 + $0x3c4] ss:$20 sps:$4 sm:$0xff]  }
 0x311   :  { %2179 = vmatpush1.bf16.msra.mxu0 %v14600_v15  ;;  %v14648_v13 = vld [vmem:[#allocation4 + $0x374] ss:$20 sps:$4 sm:$0xff]   ;;  %v14732_v15 = vld [vmem:[#allocation4 + $0x490] ss:$20 sps:$4 sm:$0xff]   ;;  %v14663_v27 = vld [vmem:[#allocation4 + $0x3ec] ss:$20 sps:$4 sm:$0xff]  }
 0x312   :  { %2180 = vmatprep.subr.bf16.mxu0 %v14601_v16  ;;  %v14736_v16 = vld [vmem:[#allocation4 + $0x4bc] ss:$20 sps:$4 sm:$0xff]   ;;  %v14655_v26 = vld [vmem:[#allocation4 + $0x3c0] ss:$20 sps:$4 sm:$0xff]   ;;  %v596_v31 = vld [vmem:[%s18347_s21 + $0x28] sm:$0xff] }
 0x313   :  { %2339 = vmatpush1.bf16.msra.mxu1 %v14678_v38  ;;  %v593_v25 = vld [vmem:[%s18347_s21 + $0x10] sm:$0xff] }
 0x314   :  { %2340 = vmatprep.subr.bf16.mxu1 %v14682_v39  ;;  %v14756_v30 = vld [vmem:[#allocation4 + $0x534] ss:$20 sps:$4 sm:$0xff]   ;;  %v14754_v35 = vld [vmem:[#allocation4 + $0x530] ss:$20 sps:$4 sm:$0xff]   ;;  %v14760_v39 = vld [vmem:[#allocation4 + $0x558] ss:$20 sps:$4 sm:$0xff]  }
 0x315   :  { %2181 = vmatpush1.bf16.msra.mxu0 %v14603_v17  ;;  %v14646_v17 = vld [vmem:[#allocation4 + $0x370] ss:$20 sps:$4 sm:$0xff]   ;;  %v14669_v34 = vld [vmem:[#allocation4 + $0x414] ss:$20 sps:$4 sm:$0xff]  }
 0x316   :  { %2182 = vmatprep.subr.bf16.mxu0 %v14604_v18  ;;  %v14651_v18 = vld [vmem:[#allocation4 + $0x39c] ss:$20 sps:$4 sm:$0xff]   ;;  %v14679_v45 = vld [vmem:[#allocation4 + $0x460] ss:$20 sps:$4 sm:$0xff]  }
 0x317   :  { %2341 = vmatpush1.bf16.msra.mxu1 %v14684_v42  ;;  %v14675_v38 = vld [vmem:[#allocation4 + $0x43c] ss:$20 sps:$4 sm:$0xff]   ;;  %v14681_v42 = vld [vmem:[#allocation4 + $0x464] ss:$20 sps:$4 sm:$0xff]  }
 0x318   :  { %2342 = vmatprep.subr.bf16.mxu1 %v14688_v43  ;;  %v14766_v43 = vld [vmem:[#allocation4 + $0x580] ss:$20 sps:$4 sm:$0xff]   ;;  %v14778_v52 = vld [vmem:[#allocation4 + $0x5d0] ss:$20 sps:$4 sm:$0xff]  }
 0x319   :  { %2183 = vmatpush1.bf16.msra.mxu0 %v14606_v19  ;;  %v14738_v19 = vld [vmem:[#allocation4 + $0x4b8] ss:$20 sps:$4 sm:$0xff]  }
 0x31a   :  { %2184 = vmatprep.subr.bf16.mxu0 %v14607_v20  ;;  %v14742_v20 = vld [vmem:[#allocation4 + $0x4e4] ss:$20 sps:$4 sm:$0xff]  }
 0x31b   :  { %2343 = vmatpush1.bf16.msra.mxu1 %v14690_v47  ;;  %v14772_v47 = vld [vmem:[#allocation4 + $0x5a8] ss:$20 sps:$4 sm:$0xff]  }
 0x31c   :  { %2344 = vmatprep.subr.bf16.mxu1 %v14694_v49  ;;  %v14780_v49 = vld [vmem:[#allocation4 + $0x5d4] ss:$20 sps:$4 sm:$0xff]  }
 0x31d   :  { %2185 = vmatpush1.bf16.msra.mxu0 %v14609_v23  ;;  %v14744_v23 = vld [vmem:[#allocation4 + $0x4e0] ss:$20 sps:$4 sm:$0xff]  }
 0x31e   :  { %2186 = vmatprep.subr.bf16.mxu0 %v14610_v24  ;;  %v14750_v24 = vld [vmem:[#allocation4 + $0x50c] ss:$20 sps:$4 sm:$0xff]  }
 0x31f   :  { %2345 = vmatpush1.bf16.msra.mxu1 %v14696_v53  ;;  %v14786_v53 = vld [vmem:[#allocation4 + $0x5fc] ss:$20 sps:$4 sm:$0xff]  }
 0x320   :  { %2346 = vmatprep.subr.bf16.mxu1 %v14700_v54  ;;  %v14691_v54 = vld [vmem:[#allocation4 + $0x4b0] ss:$20 sps:$4 sm:$0xff]  }
 0x321   :  { %2187 = vmatpush1.bf16.msra.mxu0 %v14612_v28  ;;  %v14748_v28 = vld [vmem:[#allocation4 + $0x508] ss:$20 sps:$4 sm:$0xff]  }
 0x322   :  { %2188 = vmatprep.subr.bf16.mxu0 %v14613_v29  ;;  %v17996_v29 = vpack.c.bf16 %v593_v25, %v593_v25  ;;  %v14747_v25 = vld [vmem:[#allocation4 + $0x61c] ss:$20 sps:$4 sm:$0xff]  }
 0x323   :  { %2347 = vmatpush1.bf16.msra.mxu1 %v14702_v58  ;;  %v14792_v58 = vld [vmem:[#allocation4 + $0x624] ss:$20 sps:$4 sm:$0xff]  }
 0x324   :  { %2348 = vmatprep.subr.bf16.mxu1 %v14706_v59  ;;  %v14697_v59 = vld [vmem:[#allocation4 + $0x4d8] ss:$20 sps:$4 sm:$0xff]  }
 0x325   :  { %2189 = vmatpush1.bf16.msra.mxu0 %v14615_v32  ;;  %v14661_v32 = vld [vmem:[#allocation4 + $0x3e8] ss:$20 sps:$4 sm:$0xff]  }
 0x326   :  { %2190 = vmatprep.subr.bf16.mxu0 %v14616_v33  ;;  %v18000_v33 = vpack.c.bf16 %v596_v31, %v596_v31  ;;  %v14838_v31 = vld [vmem:[#allocation4 + $0x760] ss:$20 sps:$4 sm:$0xff]  }
 0x327   :  { %2349 = vmatpush1.bf16.msra.mxu1 %v14708_v62  ;;  %v14798_v62 = vld [vmem:[#allocation4 + $0x64c] ss:$20 sps:$4 sm:$0xff]  }
 0x328   :  { %2350 = vmatprep.subr.bf16.mxu1 %v14712_v63  ;;  %v14703_v63 = vld [vmem:[#allocation4 + $0x500] ss:$20 sps:$4 sm:$0xff]  }
 0x329   :  { %2191 = vmatpush1.bf16.msra.mxu0 %v14618_v36  ;;  %v14762_v36 = vld [vmem:[#allocation4 + $0x55c] ss:$20 sps:$4 sm:$0xff]  }
 0x32a   :  { %2192 = vmatprep.subr.bf16.mxu0 %v14619_v37  ;;  %v14667_v37 = vld [vmem:[#allocation4 + $0x410] ss:$20 sps:$4 sm:$0xff]  }
 0x32b   :  { %2351 = vmatpush1.bf16.msra.mxu1 %v14714_v2  ;;  %v14804_v2 = vld [vmem:[#allocation4 + $0x674] ss:$20 sps:$4 sm:$0xff]  }
 0x32c   :  { %2352 = vmatprep.subr.bf16.mxu1 %v14718_v3  ;;  %v14709_v3 = vld [vmem:[#allocation4 + $0x528] ss:$20 sps:$4 sm:$0xff]  }
 0x32d   :  { %2193 = vmatpush1.bf16.msra.mxu0 %v14621_v40  ;;  %v14768_v40 = vld [vmem:[#allocation4 + $0x584] ss:$20 sps:$4 sm:$0xff]  }
 0x32e   :  { %2194 = vmatprep.subr.bf16.mxu0 %v14622_v41  ;;  %v14673_v41 = vld [vmem:[#allocation4 + $0x438] ss:$20 sps:$4 sm:$0xff]  }
 0x32f   :  { %2353 = vmatpush1.bf16.msra.mxu1 %v14720_v6  ;;  %v14810_v6 = vld [vmem:[#allocation4 + $0x69c] ss:$20 sps:$4 sm:$0xff]  }
 0x330   :  { %2354 = vmatprep.subr.bf16.mxu1 %v14724_v7  ;;  %v14715_v7 = vld [vmem:[#allocation4 + $0x550] ss:$20 sps:$4 sm:$0xff]  }
 0x331   :  { %2195 = vmatpush1.bf16.msra.mxu0 %v14624_v44  ;;  %v14774_v44 = vld [vmem:[#allocation4 + $0x5ac] ss:$20 sps:$4 sm:$0xff]  }
 0x332   :  { %2196 = vmatprep.subr.bf16.mxu0 %v14625_v46  ;;  %v14687_v46 = vld [vmem:[#allocation4 + $0x48c] ss:$20 sps:$4 sm:$0xff]  }
 0x333   :  { %2355 = vmatpush1.bf16.msra.mxu1 %v14726_v10  ;;  %v14816_v10 = vld [vmem:[#allocation4 + $0x6c4] ss:$20 sps:$4 sm:$0xff]  }
 0x334   :  { %2356 = vmatprep.subr.bf16.mxu1 %v14730_v11  ;;  %v14721_v11 = vld [vmem:[#allocation4 + $0x578] ss:$20 sps:$4 sm:$0xff]  }
 0x335   :  { %2197 = vmatpush1.bf16.msra.mxu0 %v14627_v50  ;;  %v14685_v50 = vld [vmem:[#allocation4 + $0x488] ss:$20 sps:$4 sm:$0xff]  }
 0x336   :  { %2207 = vmatprep.subr.bf16.mxu0 %v14630_v51  ;;  %v14693_v51 = vld [vmem:[#allocation4 + $0x4b4] ss:$20 sps:$4 sm:$0xff]  }
 0x337   :  { %2357 = vmatpush1.bf16.msra.mxu1 %v14732_v15  ;;  %v14822_v15 = vld [vmem:[#allocation4 + $0x6ec] ss:$20 sps:$4 sm:$0xff]  }
 0x338   :  { %2199 = vmatmul.mubr.bf16.vlgmr.msra.gmra.mrb[0].mxu0 %v17991_v55  ;;  %2358 = vmatprep.subr.bf16.mxu1 %v14736_v16  ;;  %v14727_v16 = vld [vmem:[#allocation4 + $0x5a0] ss:$20 sps:$4 sm:$0xff]  }
 0x339   :  { %2208 = vmatpush1.bf16.msra.mxu0 %v14628_v56  ;;  %2239 = vmatprep.mubr.bf16.mxu0 %v17987_v48  ;;  %v14699_v56 = vld [vmem:[#allocation4 + $0x4dc] ss:$20 sps:$4 sm:$0xff]  }
 0x33a   :  { %2209 = vmatprep.subr.bf16.mxu0 %v14633_v57  ;;  %v14784_v57 = vld [vmem:[#allocation4 + $0x5f8] ss:$20 sps:$4 sm:$0xff]  }
 0x33b   :  { %2359 = vmatpush1.bf16.msra.mxu1 %v14738_v19  ;;  %v14828_v19 = vld [vmem:[#allocation4 + $0x714] ss:$20 sps:$4 sm:$0xff]  }
 0x33c   :  { %2360 = vmatprep.subr.bf16.mxu1 %v14742_v20  ;;  %v14733_v20 = vld [vmem:[#allocation4 + $0x5c8] ss:$20 sps:$4 sm:$0xff]  }
 0x33d   :  { %2210 = vmatpush1.bf16.msra.mxu0 %v14631_v60  ;;  %v14705_v60 = vld [vmem:[#allocation4 + $0x504] ss:$20 sps:$4 sm:$0xff]  }
 0x33e   :  { %2211 = vmatprep.subr.bf16.mxu0 %v14636_v61  ;;  %v14790_v61 = vld [vmem:[#allocation4 + $0x620] ss:$20 sps:$4 sm:$0xff]  }
 0x33f   :  { %2361 = vmatpush1.bf16.msra.mxu1 %v14744_v23  ;;  %v14834_v23 = vld [vmem:[#allocation4 + $0x73c] ss:$20 sps:$4 sm:$0xff]  }
 0x340   :  { %2371 = vmatprep.subr.bf16.mxu1 %v14750_v24  ;;  %v14739_v24 = vld [vmem:[#allocation4 + $0x5f0] ss:$20 sps:$4 sm:$0xff]  }
 0x341   :  { %2212 = vmatpush1.bf16.msra.mxu0 %v14634_v0  ;;  %v14711_v0 = vld [vmem:[#allocation4 + $0x52c] ss:$20 sps:$4 sm:$0xff]  }
 0x342   :  { %2213 = vmatprep.subr.bf16.mxu0 %v14639_v1  ;;  %2363 = vmatmul.mubr.bf16.vlgmr.msra.gmra.mrb[0].mxu1 %v17996_v29  ;;  %v14796_v1 = vld [vmem:[#allocation4 + $0x648] ss:$20 sps:$4 sm:$0xff]  }
 0x343   :  { %2372 = vmatpush1.bf16.msra.mxu1 %v14748_v28  ;;  %2403 = vmatprep.mubr.bf16.mxu1 %v18000_v33  ;;  %v14745_v28 = vld [vmem:[#allocation4 + $0x618] ss:$20 sps:$4 sm:$0xff]  }
 0x344   :  { %2373 = vmatprep.subr.bf16.mxu1 %v14756_v30  ;;  %v14753_v30 = vld [vmem:[#allocation4 + $0x644] ss:$20 sps:$4 sm:$0xff]  }
 0x345   :  { %2214 = vmatpush1.bf16.msra.mxu0 %v14637_v4  ;;  %v14717_v4 = vld [vmem:[#allocation4 + $0x554] ss:$20 sps:$4 sm:$0xff]  }
 0x346   :  { %2215 = vmatprep.subr.bf16.mxu0 %v14642_v5  ;;  %v14802_v5 = vld [vmem:[#allocation4 + $0x670] ss:$20 sps:$4 sm:$0xff]  }
 0x347   :  { %2374 = vmatpush1.bf16.msra.mxu1 %v14754_v35  ;;  %v595_v35 = vld [vmem:[%s18347_s21 + $0x20] sm:$0xff] }
 0x348   :  { %2375 = vmatprep.subr.bf16.mxu1 %v14762_v36  ;;  %v14759_v36 = vld [vmem:[#allocation4 + $0x66c] ss:$20 sps:$4 sm:$0xff]  }
 0x349   :  { %2216 = vmatpush1.bf16.msra.mxu0 %v14640_v8  ;;  %v14723_v8 = vld [vmem:[#allocation4 + $0x57c] ss:$20 sps:$4 sm:$0xff]  }
 0x34a   :  { %2217 = vmatprep.subr.bf16.mxu0 %v14645_v9  ;;  %v14808_v9 = vld [vmem:[#allocation4 + $0x698] ss:$20 sps:$4 sm:$0xff]  }
 0x34b   :  { %2376 = vmatpush1.bf16.msra.mxu1 %v14760_v39  ;;  %v14874_v39 = vld [vmem:[#allocation4 + $0x3f8] ss:$20 sps:$4 sm:$0xff]  }
 0x34c   :  { %2377 = vmatprep.subr.bf16.mxu1 %v14768_v40  ;;  %v14757_v40 = vld [vmem:[#allocation4 + $0x668] ss:$20 sps:$4 sm:$0xff]  }
 0x34d   :  { %2218 = vmatpush1.bf16.msra.mxu0 %v14643_v12  ;;  %v14729_v12 = vld [vmem:[#allocation4 + $0x5a4] ss:$20 sps:$4 sm:$0xff]  }
 0x34e   :  { %2219 = vmatprep.subr.bf16.mxu0 %v14648_v13  ;;  %v14814_v13 = vld [vmem:[#allocation4 + $0x6c0] ss:$20 sps:$4 sm:$0xff]  }
 0x34f   :  { %2378 = vmatpush1.bf16.msra.mxu1 %v14766_v43  ;;  %v14763_v43 = vld [vmem:[#allocation4 + $0x690] ss:$20 sps:$4 sm:$0xff]  }
 0x350   :  { %2379 = vmatprep.subr.bf16.mxu1 %v14774_v44  ;;  %v14878_v44 = vld [vmem:[#allocation4 + $0x420] ss:$20 sps:$4 sm:$0xff]  }
 0x351   :  { %2220 = vmatpush1.bf16.msra.mxu0 %v14646_v17  ;;  %v14735_v17 = vld [vmem:[#allocation4 + $0x5cc] ss:$20 sps:$4 sm:$0xff]  }
 0x352   :  { %2221 = vmatprep.subr.bf16.mxu0 %v14651_v18  ;;  %v14820_v18 = vld [vmem:[#allocation4 + $0x6e8] ss:$20 sps:$4 sm:$0xff]  }
 0x353   :  { %2380 = vmatpush1.bf16.msra.mxu1 %v14772_v47  ;;  %v14882_v47 = vld [vmem:[#allocation4 + $0x448] ss:$20 sps:$4 sm:$0xff]  }
 0x354   :  { %2381 = vmatprep.subr.bf16.mxu1 %v14780_v49  ;;  %v14769_v49 = vld [vmem:[#allocation4 + $0x6b8] ss:$20 sps:$4 sm:$0xff]  }
 0x355   :  { %2222 = vmatpush1.bf16.msra.mxu0 %v14649_v21  ;;  %v14741_v21 = vld [vmem:[#allocation4 + $0x5f4] ss:$20 sps:$4 sm:$0xff]  }
 0x356   :  { %2223 = vmatprep.subr.bf16.mxu0 %v14657_v22  ;;  %v14826_v22 = vld [vmem:[#allocation4 + $0x710] ss:$20 sps:$4 sm:$0xff]  }
 0x357   :  { %2382 = vmatpush1.bf16.msra.mxu1 %v14778_v52  ;;  %v14886_v52 = vld [vmem:[#allocation4 + $0x470] ss:$20 sps:$4 sm:$0xff]  }
 0x358   :  { %2383 = vmatprep.subr.bf16.mxu1 %v14786_v53  ;;  %v14775_v53 = vld [vmem:[#allocation4 + $0x6e0] ss:$20 sps:$4 sm:$0xff]  }
 0x359   :  { %2224 = vmatpush1.bf16.msra.mxu0 %v14655_v26  ;;  %v14832_v26 = vld [vmem:[#allocation4 + $0x738] ss:$20 sps:$4 sm:$0xff]  }
 0x35a   :  { %2225 = vmatprep.subr.bf16.mxu0 %v14663_v27  ;;  %v14840_v27 = vld [vmem:[#allocation4 + $0x764] ss:$20 sps:$4 sm:$0xff]  }
 0x35b   :  { %2384 = vmatpush1.bf16.msra.mxu1 %v14784_v57  ;;  %v14781_v57 = vld [vmem:[#allocation4 + $0x708] ss:$20 sps:$4 sm:$0xff]  }
 0x35c   :  { %2385 = vmatprep.subr.bf16.mxu1 %v14792_v58  ;;  %v14789_v58 = vld [vmem:[#allocation4 + $0x734] ss:$20 sps:$4 sm:$0xff]  }
 0x35d   :  { %2226 = vmatpush1.bf16.msra.mxu0 %v14661_v32  ;;  %v14751_v32 = vld [vmem:[#allocation4 + $0x640] ss:$20 sps:$4 sm:$0xff]  }
 0x35e   :  { %2227 = vmatprep.subr.bf16.mxu0 %v14669_v34  ;;  %v14870_v34 = vld [vmem:[#allocation4 + $0x3d0] ss:$20 sps:$4 sm:$0xff]  }
 0x35f   :  { %2386 = vmatpush1.bf16.msra.mxu1 %v14790_v61  ;;  %v14787_v61 = vld [vmem:[#allocation4 + $0x730] ss:$20 sps:$4 sm:$0xff]  }
 0x360   :  { %2387 = vmatprep.subr.bf16.mxu1 %v14798_v62  ;;  %v14795_v62 = vld [vmem:[#allocation4 + $0x75c] ss:$20 sps:$4 sm:$0xff]  }
 0x361   :  { %2228 = vmatpush1.bf16.msra.mxu0 %v14667_v37  ;;  %v14871_v37 = vld [vmem:[#allocation4 + $0x290] ss:$20 sps:$4 sm:$0xff]  }
 0x362   :  { %2229 = vmatprep.subr.bf16.mxu0 %v14675_v38  ;;  %v18006_v38 = vpack.c.bf16 %v595_v35, %v595_v35  ;;  %v14846_v35 = vld [vmem:[#allocation4 + $0x14c] ss:$20 sps:$4 sm:$0xff]  }
 0x363   :  { %2388 = vmatpush1.bf16.msra.mxu1 %v14796_v1  ;;  %v14793_v1 = vld [vmem:[#allocation4 + $0x758] ss:$20 sps:$4 sm:$0xff]  }
 0x364   :  { %2389 = vmatprep.subr.bf16.mxu1 %v14804_v2  ;;  %v14801_v2 = vld [vmem:[#allocation4 + $0xc] ss:$20 sps:$4 sm:$0xff]  }
 0x365   :  { %2230 = vmatpush1.bf16.msra.mxu0 %v14673_v41  ;;  %v14765_v41 = vld [vmem:[#allocation4 + $0x694] ss:$20 sps:$4 sm:$0xff]  }
 0x366   :  { %2231 = vmatprep.subr.bf16.mxu0 %v14681_v42  ;;  %v14875_v42 = vld [vmem:[#allocation4 + $0x2b8] ss:$20 sps:$4 sm:$0xff]  }
 0x367   :  { %2390 = vmatpush1.bf16.msra.mxu1 %v14802_v5  ;;  %v14807_v5 = vld [vmem:[#allocation4 + $0x34] ss:$20 sps:$4 sm:$0xff]  }
 0x368   :  { %2391 = vmatprep.subr.bf16.mxu1 %v14810_v6  ;;  %v14916_v6 = vld [vmem:[#allocation9] ss:$16 sps:$4 sm:$0xff]  }
 0x369   :  { %2232 = vmatpush1.bf16.msra.mxu0 %v14679_v45  ;;  %v14771_v45 = vld [vmem:[#allocation4 + $0x6bc] ss:$20 sps:$4 sm:$0xff]  }
 0x36a   :  { %2233 = vmatprep.subr.bf16.mxu0 %v14687_v46  ;;  %v14879_v46 = vld [vmem:[#allocation4 + $0x2e0] ss:$20 sps:$4 sm:$0xff]  }
 0x36b   :  { %2392 = vmatpush1.bf16.msra.mxu1 %v14808_v9  ;;  %v14924_v9 = vld [vmem:[#allocation9 + $0x24] ss:$16 sps:$4 sm:$0xff]  }
 0x36c   :  { %2393 = vmatprep.subr.bf16.mxu1 %v14816_v10  ;;  %v14813_v10 = vld [vmem:[#allocation4 + $0x5c] ss:$20 sps:$4 sm:$0xff]  }
 0x36d   :  { %2234 = vmatpush1.bf16.msra.mxu0 %v14685_v50  ;;  %v14777_v50 = vld [vmem:[#allocation4 + $0x6e4] ss:$20 sps:$4 sm:$0xff]  }
 0x36e   :  { %2235 = vmatprep.subr.bf16.mxu0 %v14693_v51  ;;  %v14883_v51 = vld [vmem:[#allocation4 + $0x308] ss:$20 sps:$4 sm:$0xff]  }
 0x36f   :  { %2394 = vmatpush1.bf16.msra.mxu1 %v14814_v13  ;;  %v14819_v13 = vld [vmem:[#allocation4 + $0x84] ss:$20 sps:$4 sm:$0xff]  }
 0x370   :  { %2395 = vmatprep.subr.bf16.mxu1 %v14822_v15  ;;  %v14930_v15 = vld [vmem:[#allocation9 + $0x44] ss:$16 sps:$4 sm:$0xff]  }
 0x371   :  { %2236 = vmatpush1.bf16.msra.mxu0 %v14691_v54  ;;  %v14783_v54 = vld [vmem:[#allocation4 + $0x70c] ss:$20 sps:$4 sm:$0xff]  }
 0x372   :  { %2237 = vmatprep.subr.bf16.mxu0 %v14699_v56  ;;  %v14887_v56 = vld [vmem:[#allocation4 + $0x330] ss:$20 sps:$4 sm:$0xff]  }
 0x373   :  { %2396 = vmatpush1.bf16.msra.mxu1 %v14820_v18  ;;  %v14825_v18 = vld [vmem:[#allocation4 + $0xac] ss:$20 sps:$4 sm:$0xff]  }
 0x374   :  { %2397 = vmatprep.subr.bf16.mxu1 %v14828_v19  ;;  %v14936_v19 = vld [vmem:[#allocation9 + $0x64] ss:$16 sps:$4 sm:$0xff]  }
 0x375   :  { %2238 = vmatpush1.bf16.msra.mxu0 %v14697_v59  ;;  %v14891_v59 = vld [vmem:[#allocation4 + $0x358] ss:$20 sps:$4 sm:$0xff]  }
 0x376   :  { %2248 = vmatprep.subr.bf16.mxu0 %v14705_v60  ;;  %v14894_v60 = vld [vmem:[#allocation4 + $0x4c0] ss:$20 sps:$4 sm:$0xff]  }
 0x377   :  { %2398 = vmatpush1.bf16.msra.mxu1 %v14826_v22  ;;  %v14942_v22 = vld [vmem:[#allocation9 + $0x84] ss:$16 sps:$4 sm:$0xff]  }
 0x378   :  { %2240 = vmatmul.mubr.bf16.vlgmr.msra.gmra.mrb[0].mxu0 %v17996_v29  ;;  %2399 = vmatprep.subr.bf16.mxu1 %v14834_v23  ;;  %v14940_v23 = vld [vmem:[#allocation9 + $0x80] ss:$16 sps:$4 sm:$0xff]  }
 0x379   :  { %2249 = vmatpush1.bf16.msra.mxu0 %v14703_v63  ;;  %2280 = vmatprep.mubr.bf16.mxu0 %v18000_v33  ;;  %v14895_v63 = vld [vmem:[#allocation4 + $0x380] ss:$20 sps:$4 sm:$0xff]  }
 0x37a   :  { %2250 = vmatprep.subr.bf16.mxu0 %v14711_v0  ;;  %v14898_v0 = vld [vmem:[#allocation4 + $0x4e8] ss:$20 sps:$4 sm:$0xff]  }
 0x37b   :  { %2400 = vmatpush1.bf16.msra.mxu1 %v14832_v26  ;;  %v14948_v26 = vld [vmem:[#allocation9 + $0xa4] ss:$16 sps:$4 sm:$0xff]  }
 0x37c   :  { %2401 = vmatprep.subr.bf16.mxu1 %v14840_v27  ;;  %v14946_v27 = vld [vmem:[#allocation9 + $0xa0] ss:$16 sps:$4 sm:$0xff]  }
 0x37d   :  { %2251 = vmatpush1.bf16.msra.mxu0 %v14709_v3  ;;  %v14899_v3 = vld [vmem:[#allocation4 + $0x3a8] ss:$20 sps:$4 sm:$0xff]  }
 0x37e   :  { %2252 = vmatprep.subr.bf16.mxu0 %v14717_v4  ;;  %v14799_v4 = vld [vmem:[#allocation4 + $0x8] ss:$20 sps:$4 sm:$0xff]  }
 0x37f   :  { %2402 = vmatpush1.bf16.msra.mxu1 %v14838_v31  ;;  %v14954_v31 = vld [vmem:[#allocation9 + $0xc4] ss:$16 sps:$4 sm:$0xff]  }
 0x380   :  { %14041 = vmatprep.subr.bf16.mxu1 %v14870_v34  ;;  %v14841_v34 = vld [vmem:[#allocation4 + $0x120] ss:$20 sps:$4 sm:$0xff]  }
 0x381   :  { %2253 = vmatpush1.bf16.msra.mxu0 %v14715_v7  ;;  %v14918_v7 = vld [vmem:[#allocation9 + $0x4] ss:$16 sps:$4 sm:$0xff]  }
 0x382   :  { %2254 = vmatprep.subr.bf16.mxu0 %v14723_v8  ;;  %2404 = vmatmul.mubr.bf16.vlgmr.msra.gmra.mrb[0].mxu1 %v18006_v38  ;;  %v14805_v8 = vld [vmem:[#allocation4 + $0x30] ss:$20 sps:$4 sm:$0xff]  }
 0x383   :  { %14042 = vmatpush3.bf16.msra.mxu1 %v14871_v37  ;;  %2484 = vmatprep.mubr.bf16.mxu1 %v17987_v48  ;;  %v14890_v48 = vld [vmem:[#allocation4 + $0x498] ss:$20 sps:$4 sm:$0xff]  }
 0x384   :  { %14043 = vmatprep.subr.bf16.mxu1 %v14874_v39  ;;  %v14958_v37 = vld [vmem:[#allocation9 + $0xe0] ss:$16 sps:$4 sm:$0xff]  }
 0x385   :  { %2255 = vmatpush1.bf16.msra.mxu0 %v14721_v11  ;;  %v14922_v11 = vld [vmem:[#allocation9 + $0x20] ss:$16 sps:$4 sm:$0xff]  }
 0x386   :  { %2256 = vmatprep.subr.bf16.mxu0 %v14729_v12  ;;  %v14811_v12 = vld [vmem:[#allocation4 + $0x58] ss:$20 sps:$4 sm:$0xff]   ;;  %v14844_v39 = vld [vmem:[#allocation4 + $0x148] ss:$20 sps:$4 sm:$0xff]  }
 0x387   :  { %14044 = vmatpush3.bf16.msra.mxu1 %v14875_v42  ;;  %v14964_v42 = vld [vmem:[#allocation9 + $0x100] ss:$16 sps:$4 sm:$0xff]  }
 0x388   :  { %14045 = vmatprep.subr.bf16.mxu1 %v14878_v44  ;;  %v14852_v44 = vld [vmem:[#allocation4 + $0x19c] ss:$20 sps:$4 sm:$0xff]  }
 0x389   :  { %2257 = vmatpush1.bf16.msra.mxu0 %v14727_v16  ;;  %v14928_v16 = vld [vmem:[#allocation9 + $0x40] ss:$16 sps:$4 sm:$0xff]  }
 0x38a   :  { %2258 = vmatprep.subr.bf16.mxu0 %v14735_v17  ;;  %v14817_v17 = vld [vmem:[#allocation4 + $0x80] ss:$20 sps:$4 sm:$0xff]  }
 0x38b   :  { %14046 = vmatpush3.bf16.msra.mxu1 %v14879_v46  ;;  %v14970_v46 = vld [vmem:[#allocation9 + $0x120] ss:$16 sps:$4 sm:$0xff]  }
 0x38c   :  { %14047 = vmatprep.subr.bf16.mxu1 %v14882_v47  ;;  %v14850_v47 = vld [vmem:[#allocation4 + $0x198] ss:$20 sps:$4 sm:$0xff]  }
 0x38d   :  { %2259 = vmatpush1.bf16.msra.mxu0 %v14733_v20  ;;  %v14934_v20 = vld [vmem:[#allocation9 + $0x60] ss:$16 sps:$4 sm:$0xff]  }
 0x38e   :  { %2260 = vmatprep.subr.bf16.mxu0 %v14741_v21  ;;  %v14831_v21 = vld [vmem:[#allocation4 + $0xd4] ss:$20 sps:$4 sm:$0xff]  }
 0x38f   :  { %14048 = vmatpush3.bf16.msra.mxu1 %v14883_v51  ;;  %v14976_v51 = vld [vmem:[#allocation9 + $0x140] ss:$16 sps:$4 sm:$0xff]  }
 0x390   :  { %14049 = vmatprep.subr.bf16.mxu1 %v14886_v52  ;;  %v14853_v52 = vld [vmem:[#allocation4 + $0x1c0] ss:$20 sps:$4 sm:$0xff]  }
 0x391   :  { %2261 = vmatpush1.bf16.msra.mxu0 %v14739_v24  ;;  %v14829_v24 = vld [vmem:[#allocation4 + $0xd0] ss:$20 sps:$4 sm:$0xff]  }
 0x392   :  { %2262 = vmatprep.subr.bf16.mxu0 %v14747_v25  ;;  %v14837_v25 = vld [vmem:[#allocation4 + $0xfc] ss:$20 sps:$4 sm:$0xff]  }
 0x393   :  { %14050 = vmatpush3.bf16.msra.mxu1 %v14887_v56  ;;  %v14982_v56 = vld [vmem:[#allocation9 + $0x160] ss:$16 sps:$4 sm:$0xff]  }
 0x394   :  { %14051 = vmatprep.subr.bf16.mxu1 %v14890_v48  ;;  %v14856_v48 = vld [vmem:[#allocation4 + $0x1e8] ss:$20 sps:$4 sm:$0xff]  }
 0x395   :  { %2263 = vmatpush1.bf16.msra.mxu0 %v14745_v28  ;;  %v14835_v28 = vld [vmem:[#allocation4 + $0xf8] ss:$20 sps:$4 sm:$0xff]  }
 0x396   :  { %2264 = vmatprep.subr.bf16.mxu0 %v14753_v30  ;;  %v14843_v30 = vld [vmem:[#allocation4 + $0x124] ss:$20 sps:$4 sm:$0xff]  }
 0x397   :  { %14052 = vmatpush3.bf16.msra.mxu1 %v14891_v59  ;;  %v14988_v59 = vld [vmem:[#allocation9 + $0x180] ss:$16 sps:$4 sm:$0xff]  }
 0x398   :  { %14053 = vmatprep.subr.bf16.mxu1 %v14894_v60  ;;  %v14859_v60 = vld [vmem:[#allocation4 + $0x210] ss:$20 sps:$4 sm:$0xff]  }
 0x399   :  { %2265 = vmatpush1.bf16.msra.mxu0 %v14751_v32  ;;  %v14952_v32 = vld [vmem:[#allocation9 + $0xc0] ss:$16 sps:$4 sm:$0xff]  }
 0x39a   :  { %2266 = vmatprep.subr.bf16.mxu0 %v14759_v36  ;;  %v14960_v36 = vld [vmem:[#allocation9 + $0xe4] ss:$16 sps:$4 sm:$0xff]  }
 0x39b   :  { %14054 = vmatpush3.bf16.msra.mxu1 %v14895_v63  ;;  %v14994_v63 = vld [vmem:[#allocation9 + $0x1a0] ss:$16 sps:$4 sm:$0xff]  }
 0x39c   :  { %14055 = vmatprep.subr.bf16.mxu1 %v14898_v0  ;;  %v14862_v0 = vld [vmem:[#allocation4 + $0x238] ss:$20 sps:$4 sm:$0xff]  }
 0x39d   :  { %2267 = vmatpush1.bf16.msra.mxu0 %v14757_v40  ;;  %v14849_v40 = vld [vmem:[#allocation4 + $0x174] ss:$20 sps:$4 sm:$0xff]  }
 0x39e   :  { %2268 = vmatprep.subr.bf16.mxu0 %v14765_v41  ;;  %v14966_v41 = vld [vmem:[#allocation9 + $0x104] ss:$16 sps:$4 sm:$0xff]  }
 0x39f   :  { %14056 = vmatpush3.bf16.msra.mxu1 %v14899_v3  ;;  %v14868_v3 = vld [vmem:[#allocation4 + $0x150] ss:$20 sps:$4 sm:$0xff]  }
 0x3a0   :  { %3544 = vmatprep.subr.bf16.mxu1 %v14918_v7  ;;  %v14876_v7 = vld [vmem:[#allocation4 + $0x1a0] ss:$20 sps:$4 sm:$0xff]  }
 0x3a1   :  { %2269 = vmatpush1.bf16.msra.mxu0 %v14763_v43  ;;  %v14847_v43 = vld [vmem:[#allocation4 + $0x170] ss:$20 sps:$4 sm:$0xff]  }
 0x3a2   :  { %2270 = vmatprep.subr.bf16.mxu0 %v14771_v45  ;;  %2485 = vmatmul.mubr.bf16.vlgmr.msra.gmra.mrb[4].mxu1 %v17996_v29  ;;  %v14823_v29 = vld [vmem:[#allocation4 + $0xa8] ss:$20 sps:$4 sm:$0xff]  }
 0x3a3   :  { %3545 = vmatpush1.bf16.msra.mxu1 %v14916_v6  ;;  %v14972_v45 = vld [vmem:[#allocation9 + $0x124] ss:$16 sps:$4 sm:$0xff]  }
 0x3a4   :  { %3546 = vmatprep.subr.bf16.mxu1 %v14924_v9  ;;  %v14873_v6 = vld [vmem:[#allocation4 + $0x38] ss:$20 sps:$4 sm:$0xff]   ;;  %v14880_v9 = vld [vmem:[#allocation4 + $0x1c8] ss:$20 sps:$4 sm:$0xff]  }
 0x3a5   :  { %2271 = vmatpush1.bf16.msra.mxu0 %v14769_v49  ;;  %v14855_v49 = vld [vmem:[#allocation4 + $0x1c4] ss:$20 sps:$4 sm:$0xff]  }
 0x3a6   :  { %2272 = vmatprep.subr.bf16.mxu0 %v14777_v50  ;;  %v14978_v50 = vld [vmem:[#allocation9 + $0x144] ss:$16 sps:$4 sm:$0xff]  }
 0x3a7   :  { %3547 = vmatpush1.bf16.msra.mxu1 %v14922_v11  ;;  %v14884_v11 = vld [vmem:[#allocation4 + $0x1f0] ss:$20 sps:$4 sm:$0xff]  }
 0x3a8   :  { %3548 = vmatprep.subr.bf16.mxu1 %v14930_v15  ;;  %v14889_v15 = vld [vmem:[#allocation4 + $0xd8] ss:$20 sps:$4 sm:$0xff]  }
 0x3a9   :  { %2273 = vmatpush1.bf16.msra.mxu0 %v14775_v53  ;;  %v14858_v53 = vld [vmem:[#allocation4 + $0x1ec] ss:$20 sps:$4 sm:$0xff]  }
 0x3aa   :  { %2274 = vmatprep.subr.bf16.mxu0 %v14783_v54  ;;  %v14984_v54 = vld [vmem:[#allocation9 + $0x164] ss:$16 sps:$4 sm:$0xff]  }
 0x3ab   :  { %3549 = vmatpush1.bf16.msra.mxu1 %v14928_v16  ;;  %v14892_v16 = vld [vmem:[#allocation4 + $0x240] ss:$20 sps:$4 sm:$0xff]  }
 0x3ac   :  { %3550 = vmatprep.subr.bf16.mxu1 %v14936_v19  ;;  %v15000_v19 = vld [vmem:[#allocation9 + $0x1c0] ss:$16 sps:$4 sm:$0xff]  }
 0x3ad   :  { %2275 = vmatpush1.bf16.msra.mxu0 %v14781_v57  ;;  %v14861_v57 = vld [vmem:[#allocation4 + $0x214] ss:$20 sps:$4 sm:$0xff]  }
 0x3ae   :  { %2276 = vmatprep.subr.bf16.mxu0 %v14789_v58  ;;  %v14990_v58 = vld [vmem:[#allocation9 + $0x184] ss:$16 sps:$4 sm:$0xff]  }
 0x3af   :  { %3551 = vmatpush1.bf16.msra.mxu1 %v14934_v20  ;;  %v14897_v20 = vld [vmem:[#allocation4 + $0x128] ss:$20 sps:$4 sm:$0xff]  }
 0x3b0   :  { %3552 = vmatprep.subr.bf16.mxu1 %v14942_v22  ;;  %v15006_v22 = vld [vmem:[#allocation9 + $0x1e0] ss:$16 sps:$4 sm:$0xff]  }
 0x3b1   :  { %2277 = vmatpush1.bf16.msra.mxu0 %v14787_v61  ;;  %v14864_v61 = vld [vmem:[#allocation4 + $0x23c] ss:$20 sps:$4 sm:$0xff]  }
 0x3b2   :  { %2278 = vmatprep.subr.bf16.mxu0 %v14795_v62  ;;  %v14996_v62 = vld [vmem:[#allocation9 + $0x1a4] ss:$16 sps:$4 sm:$0xff]  }
 0x3b3   :  { %3553 = vmatpush1.bf16.msra.mxu1 %v14940_v23  ;;  %v14901_v23 = vld [vmem:[#allocation4 + $0x510] ss:$20 sps:$4 sm:$0xff]  }
 0x3b4   :  { %3554 = vmatprep.subr.bf16.mxu1 %v14948_v26  ;;  %v14903_v26 = vld [vmem:[#allocation4 + $0x538] ss:$20 sps:$4 sm:$0xff]  }
 0x3b5   :  { %2279 = vmatpush1.bf16.msra.mxu0 %v14793_v1  ;;  %v14867_v1 = vld [vmem:[#allocation4 + $0x264] ss:$20 sps:$4 sm:$0xff]  }
 0x3b6   :  { %2289 = vmatprep.subr.bf16.mxu0 %v14801_v2  ;;  %v14865_v2 = vld [vmem:[#allocation4 + $0x260] ss:$20 sps:$4 sm:$0xff]  }
 0x3b7   :  { %3555 = vmatpush1.bf16.msra.mxu1 %v14946_v27  ;;  %v14904_v27 = vld [vmem:[#allocation4 + $0x6a0] ss:$20 sps:$4 sm:$0xff]  }
 0x3b8   :  { %2281 = vmatmul.mubr.bf16.vlgmr.msra.gmra.mrb[0].mxu0 %v18006_v38  ;;  %3556 = vmatprep.subr.bf16.mxu1 %v14954_v31  ;;  %v14907_v31 = vld [vmem:[#allocation4 + $0x588] ss:$20 sps:$4 sm:$0xff]  }
 0x3b9   :  { %2290 = vmatpush1.bf16.msra.mxu0 %v14799_v4  ;;  %2321 = vmatprep.mubr.bf16.mxu0 %v17983_v14  ;;  %v14869_v4 = vld [vmem:[#allocation4 + $0x10] ss:$20 sps:$4 sm:$0xff]  }
 0x3ba   :  { %2291 = vmatprep.subr.bf16.mxu0 %v14807_v5  ;;  %v14872_v5 = vld [vmem:[#allocation4 + $0x178] ss:$20 sps:$4 sm:$0xff]  }
 0x3bb   :  { %3557 = vmatpush1.bf16.msra.mxu1 %v14952_v32  ;;  %v14908_v32 = vld [vmem:[#allocation4 + $0x6f0] ss:$20 sps:$4 sm:$0xff]  }
 0x3bc   :  { %3558 = vmatprep.subr.bf16.mxu1 %v14960_v36  ;;  %v14911_v36 = vld [vmem:[#allocation4 + $0x5d8] ss:$20 sps:$4 sm:$0xff]  }
 0x3bd   :  { %2292 = vmatpush1.bf16.msra.mxu0 %v14805_v8  ;;  %v14877_v8 = vld [vmem:[#allocation4 + $0x60] ss:$20 sps:$4 sm:$0xff]  }
 0x3be   :  { %2293 = vmatprep.subr.bf16.mxu0 %v14813_v10  ;;  %v14881_v10 = vld [vmem:[#allocation4 + $0x88] ss:$20 sps:$4 sm:$0xff]  }
 0x3bf   :  { %3559 = vmatpush1.bf16.msra.mxu1 %v14958_v37  ;;  %v14913_v37 = vld [vmem:[#allocation4 + $0x600] ss:$20 sps:$4 sm:$0xff]  }
 0x3c0   :  { %3560 = vmatprep.subr.bf16.mxu1 %v14966_v41  ;;  %v14919_v41 = vld [vmem:[#allocation9 + $0x8] ss:$16 sps:$4 sm:$0xff]  }
 0x3c1   :  { %2294 = vmatpush1.bf16.msra.mxu0 %v14811_v12  ;;  %v14885_v12 = vld [vmem:[#allocation4 + $0xb0] ss:$20 sps:$4 sm:$0xff]  }
 0x3c2   :  { %2295 = vmatprep.subr.bf16.mxu0 %v14819_v13  ;;  %v14888_v13 = vld [vmem:[#allocation4 + $0x218] ss:$20 sps:$4 sm:$0xff]  }
 0x3c3   :  { %3561 = vmatpush1.bf16.msra.mxu1 %v14964_v42  ;;  %v14927_v42 = vld [vmem:[#allocation9 + $0x2c] ss:$16 sps:$4 sm:$0xff]  }
 0x3c4   :  { %3562 = vmatprep.subr.bf16.mxu1 %v14972_v45  ;;  %v14931_v45 = vld [vmem:[#allocation9 + $0x48] ss:$16 sps:$4 sm:$0xff]  }
 0x3c5   :  { %2296 = vmatpush1.bf16.msra.mxu0 %v14817_v17  ;;  %v14893_v17 = vld [vmem:[#allocation4 + $0x100] ss:$20 sps:$4 sm:$0xff]  }
 0x3c6   :  { %2297 = vmatprep.subr.bf16.mxu0 %v14825_v18  ;;  %v15002_v18 = vld [vmem:[#allocation9 + $0x1c4] ss:$16 sps:$4 sm:$0xff]  }
 0x3c7   :  { %3563 = vmatpush1.bf16.msra.mxu1 %v14970_v46  ;;  %v14939_v46 = vld [vmem:[#allocation9 + $0x6c] ss:$16 sps:$4 sm:$0xff]  }
 0x3c8   :  { %3564 = vmatprep.subr.bf16.mxu1 %v14978_v50  ;;  %v14943_v50 = vld [vmem:[#allocation9 + $0x88] ss:$16 sps:$4 sm:$0xff]  }
 0x3c9   :  { %2298 = vmatpush1.bf16.msra.mxu0 %v14823_v29  ;;  %v15008_v29 = vld [vmem:[#allocation9 + $0x1e4] ss:$16 sps:$4 sm:$0xff]  }
 0x3ca   :  { %2299 = vmatprep.subr.bf16.mxu0 %v14831_v21  ;;  %v14900_v21 = vld [vmem:[#allocation4 + $0x650] ss:$20 sps:$4 sm:$0xff]  }
 0x3cb   :  { %3565 = vmatpush1.bf16.msra.mxu1 %v14976_v51  ;;  %v14951_v51 = vld [vmem:[#allocation9 + $0xac] ss:$16 sps:$4 sm:$0xff]  }
 0x3cc   :  { %3566 = vmatprep.subr.bf16.mxu1 %v14984_v54  ;;  %v14963_v54 = vld [vmem:[#allocation9 + $0xec] ss:$16 sps:$4 sm:$0xff]  }
 0x3cd   :  { %2300 = vmatpush1.bf16.msra.mxu0 %v14829_v24  ;;  %v15014_v24 = vld [vmem:[#allocation9 + $0x204] ss:$16 sps:$4 sm:$0xff]  }
 0x3ce   :  { %2301 = vmatprep.subr.bf16.mxu0 %v14837_v25  ;;  %v14902_v25 = vld [vmem:[#allocation4 + $0x678] ss:$20 sps:$4 sm:$0xff]  }
 0x3cf   :  { %3567 = vmatpush1.bf16.msra.mxu1 %v14982_v56  ;;  %v14961_v56 = vld [vmem:[#allocation9 + $0xe8] ss:$16 sps:$4 sm:$0xff]  }
 0x3d0   :  { %3568 = vmatprep.subr.bf16.mxu1 %v14990_v58  ;;  %v14975_v58 = vld [vmem:[#allocation9 + $0x12c] ss:$16 sps:$4 sm:$0xff]  }
 0x3d1   :  { %2302 = vmatpush1.bf16.msra.mxu0 %v14835_v28  ;;  %v14905_v28 = vld [vmem:[#allocation4 + $0x560] ss:$20 sps:$4 sm:$0xff]  }
 0x3d2   :  { %2303 = vmatprep.subr.bf16.mxu0 %v14843_v30  ;;  %v14906_v30 = vld [vmem:[#allocation4 + $0x6c8] ss:$20 sps:$4 sm:$0xff]  }
 0x3d3   :  { %3569 = vmatpush1.bf16.msra.mxu1 %v14988_v59  ;;  %v14973_v59 = vld [vmem:[#allocation9 + $0x128] ss:$16 sps:$4 sm:$0xff]  }
 0x3d4   :  { %3570 = vmatprep.subr.bf16.mxu1 %v14996_v62  ;;  %v14987_v62 = vld [vmem:[#allocation9 + $0x16c] ss:$16 sps:$4 sm:$0xff]  }
 0x3d5   :  { %2304 = vmatpush1.bf16.msra.mxu0 %v14841_v34  ;;  %v14909_v34 = vld [vmem:[#allocation4 + $0x5b0] ss:$20 sps:$4 sm:$0xff]  }
 0x3d6   :  { %2305 = vmatprep.subr.bf16.mxu0 %v14846_v35  ;;  %v14910_v35 = vld [vmem:[#allocation4 + $0x718] ss:$20 sps:$4 sm:$0xff]  }
 0x3d7   :  { %3571 = vmatpush1.bf16.msra.mxu1 %v14994_v63  ;;  %v14985_v63 = vld [vmem:[#allocation9 + $0x168] ss:$16 sps:$4 sm:$0xff]  }
 0x3d8   :  { %3572 = vmatprep.subr.bf16.mxu1 %v15002_v18  ;;  %v18030_v18 = vld [vmem:[#allocation7] sm:$0x1f] }
 0x3d9   :  { %2306 = vmatpush1.bf16.msra.mxu0 %v14844_v39  ;;  %v14915_v39 = vld [vmem:[#allocation4 + $0x628] ss:$20 sps:$4 sm:$0xff]  }
 0x3da   :  { %2307 = vmatprep.subr.bf16.mxu0 %v14849_v40  ;;  %v14921_v40 = vld [vmem:[#allocation9 + $0xc] ss:$16 sps:$4 sm:$0xff]  }
 0x3db   :  { %3573 = vmatpush1.bf16.msra.mxu1 %v15000_v19 }
 0x3dc   :  { %3574 = vmatprep.subr.bf16.mxu1 %v15008_v29 }
 0x3dd   :  { %2308 = vmatpush1.bf16.msra.mxu0 %v14847_v43  ;;  %v14925_v43 = vld [vmem:[#allocation9 + $0x28] ss:$16 sps:$4 sm:$0xff]  }
 0x3de   :  { %2309 = vmatprep.subr.bf16.mxu0 %v14852_v44  ;;  %v14933_v44 = vld [vmem:[#allocation9 + $0x4c] ss:$16 sps:$4 sm:$0xff]  }
 0x3df   :  { %3575 = vmatpush1.bf16.msra.mxu1 %v15006_v22 }
 0x3e0   :  { %3585 = vmatprep.subr.bf16.mxu1 %v15014_v24 }
 0x3e1   :  { %2310 = vmatpush1.bf16.msra.mxu0 %v14850_v47  ;;  %v14937_v47 = vld [vmem:[#allocation9 + $0x68] ss:$16 sps:$4 sm:$0xff]  }
 0x3e2   :  { %2311 = vmatprep.subr.bf16.mxu0 %v14855_v49  ;;  %v14945_v49 = vld [vmem:[#allocation9 + $0x8c] ss:$16 sps:$4 sm:$0xff]  }
 0x3e5   :  { %2312 = vmatpush1.bf16.msra.mxu0 %v14853_v52  ;;  %v14949_v52 = vld [vmem:[#allocation9 + $0xa8] ss:$16 sps:$4 sm:$0xff]  }
 0x3e6   :  { %2313 = vmatprep.subr.bf16.mxu0 %v14858_v53  ;;  %v14957_v53 = vld [vmem:[#allocation9 + $0xcc] ss:$16 sps:$4 sm:$0xff]  }
 0x3e9   :  { %2314 = vmatpush1.bf16.msra.mxu0 %v14856_v48  ;;  %v14969_v48 = vld [vmem:[#allocation9 + $0x10c] ss:$16 sps:$4 sm:$0xff]  }
 0x3ea   :  { %2315 = vmatprep.subr.bf16.mxu0 %v14861_v57  ;;  %v14967_v57 = vld [vmem:[#allocation9 + $0x108] ss:$16 sps:$4 sm:$0xff]  }
 0x3ed   :  { %2316 = vmatpush1.bf16.msra.mxu0 %v14859_v60  ;;  %v14981_v60 = vld [vmem:[#allocation9 + $0x14c] ss:$16 sps:$4 sm:$0xff]  }
 0x3ee   :  { %2317 = vmatprep.subr.bf16.mxu0 %v14864_v61  ;;  %v14979_v61 = vld [vmem:[#allocation9 + $0x148] ss:$16 sps:$4 sm:$0xff]  }
 0x3f1   :  { %2318 = vmatpush1.bf16.msra.mxu0 %v14862_v0  ;;  %v14993_v0 = vld [vmem:[#allocation9 + $0x18c] ss:$16 sps:$4 sm:$0xff]  }
 0x3f2   :  { %2319 = vmatprep.subr.bf16.mxu0 %v14867_v1  ;;  %v14991_v1 = vld [vmem:[#allocation9 + $0x188] ss:$16 sps:$4 sm:$0xff]  }
 0x3f5   :  { %2320 = vmatpush1.bf16.msra.mxu0 %v14865_v2  ;;  %v14999_v2 = vld [vmem:[#allocation9 + $0x1ac] ss:$16 sps:$4 sm:$0xff]  }
 0x3f6   :  { %14019 = vmatprep.subr.bf16.mxu0 %v14868_v3  ;;  %v14997_v3 = vld [vmem:[#allocation9 + $0x1a8] ss:$16 sps:$4 sm:$0xff]  }
 0x3f8   :  { %2322 = vmatmul.mubr.bf16.vlgmr.msra.gmra.mrb[4].mxu0 %v17991_v55 }
 0x3f9   :  { %14020 = vmatpush3.bf16.msra.mxu0 %v14869_v4  ;;  %2444 = vmatprep.mubr.bf16.mxu0 %v17983_v14  ;;  %v14896_v14 = vld [vmem:[#allocation4 + $0x268] ss:$20 sps:$4 sm:$0xff]   ;;  %v15005_v4 = vld [vmem:[#allocation9 + $0x1cc] ss:$16 sps:$4 sm:$0xff]  }
 0x3fa   :  { %14021 = vmatprep.subr.bf16.mxu0 %v14872_v5  ;;  %v15003_v5 = vld [vmem:[#allocation9 + $0x1c8] ss:$16 sps:$4 sm:$0xff]  }
 0x3fd   :  { %14022 = vmatpush3.bf16.msra.mxu0 %v14873_v6  ;;  %v15011_v6 = vld [vmem:[#allocation9 + $0x1ec] ss:$16 sps:$4 sm:$0xff]  }
 0x3fe   :  { %14023 = vmatprep.subr.bf16.mxu0 %v14876_v7 }
 0x401   :  { %14024 = vmatpush3.bf16.msra.mxu0 %v14877_v8 }
 0x402   :  { %14025 = vmatprep.subr.bf16.mxu0 %v14880_v9 }
 0x405   :  { %14026 = vmatpush3.bf16.msra.mxu0 %v14881_v10 }
 0x406   :  { %14027 = vmatprep.subr.bf16.mxu0 %v14884_v11  ;;  %v893_v11 = vlaneseq }
 0x409   :  { %14028 = vmatpush3.bf16.msra.mxu0 %v14885_v12  ;;  %v15009_v12 = vld [vmem:[#allocation9 + $0x1e8] ss:$16 sps:$4 sm:$0xff]  }
 0x40a   :  { %14029 = vmatprep.subr.bf16.mxu0 %v14888_v13  ;;  %v15017_v13 = vld [vmem:[#allocation9 + $0x20c] ss:$16 sps:$4 sm:$0xff]  }
 0x40d   :  { %14030 = vmatpush3.bf16.msra.mxu0 %v14889_v15  ;;  %v18022_v15 = vshrl.u32 %v893_v11, 7  ;;  %v15066_v11 = vld [vmem:[#allocation9 + $0x320] ss:$16 sps:$4 sm:$0xff]  }
 0x40e   :  { %14031 = vmatprep.subr.bf16.mxu0 %v14892_v16 }
 0x40f   :  { %v18025_v16 = vsub.s32 0, %v18022_v15 }
 0x411   :  { %14032 = vmatpush3.bf16.msra.mxu0 %v14893_v17  ;;  %v18028_v17 = vsub.s32 1, %v18022_v15 }
 0x412   :  { %14033 = vmatprep.subr.bf16.mxu0 %v14896_v14  ;;  %v896_v14 = vrot.slane %v18030_v18, %v18025_v16 }
 0x413   :  { %v900_v19 = vrot.slane %v18030_v18, %v18028_v17 }
 0x415   :  { %14034 = vmatpush3.bf16.msra.mxu0 %v14897_v20 }
 0x416   :  { %14063 = vmatprep.subr.bf16.mxu0 %v14900_v21 }
 0x418   :  { %2445 = vmatmul.mubr.bf16.vlgmr.msra.gmra.mrb[8].mxu0 %v17991_v55  ;;  %v14912_v55 = vld [vmem:[#allocation4 + $0x740] ss:$20 sps:$4 sm:$0xff]  }
 0x419   :  { %14064 = vmatpush3.bf16.msra.mxu0 %v14901_v23  ;;  %2524 = vmatprep.mubr.bf16.mxu0 %v18000_v33  ;;  %v14914_v33 = vld [vmem:[#allocation4 + $0x768] ss:$20 sps:$4 sm:$0xff]  }
 0x41a   :  { %14065 = vmatprep.subr.bf16.mxu0 %v14902_v25 }
 0x41d   :  { %14066 = vmatpush3.bf16.msra.mxu0 %v14903_v26 }
 0x41e   :  { %14067 = vmatprep.subr.bf16.mxu0 %v14904_v27 }
 0x421   :  { %14068 = vmatpush3.bf16.msra.mxu0 %v14905_v28 }
 0x422   :  { %14069 = vmatprep.subr.bf16.mxu0 %v14906_v30 }
 0x425   :  { %14070 = vmatpush3.bf16.msra.mxu0 %v14907_v31 }
 0x426   :  { %14071 = vmatprep.subr.bf16.mxu0 %v14908_v32 }
 0x429   :  { %14072 = vmatpush3.bf16.msra.mxu0 %v14909_v34  ;;  %v15012_v34 = vld [vmem:[#allocation9 + $0x200] ss:$16 sps:$4 sm:$0xff]  }
 0x42a   :  { %14073 = vmatprep.subr.bf16.mxu0 %v14910_v35  ;;  %v15015_v35 = vld [vmem:[#allocation9 + $0x208] ss:$16 sps:$4 sm:$0xff]  }
 0x42d   :  { %14074 = vmatpush3.bf16.msra.mxu0 %v14911_v36 }
 0x42e   :  { %14075 = vmatprep.subr.bf16.mxu0 %v14912_v55 }
 0x431   :  { %14076 = vmatpush3.bf16.msra.mxu0 %v14913_v37  ;;  %v15020_v37 = vld [vmem:[#allocation9 + $0x224] ss:$16 sps:$4 sm:$0xff]  }
 0x432   :  { %14077 = vmatprep.subr.bf16.mxu0 %v14914_v33  ;;  %v15023_v33 = vld [vmem:[#allocation9 + $0x22c] ss:$16 sps:$4 sm:$0xff]  }
 0x435   :  { %14078 = vmatpush3.bf16.msra.mxu0 %v14915_v39 }
 0x436   :  { %3667 = vmatprep.subr.bf16.mxu0 %v14921_v40 }
 0x438   :  { %2525 = vmatmul.mubr.bf16.vlgmr.msra.gmra.mrb[12].mxu0 %v18006_v38  ;;  %v14955_v38 = vld [vmem:[#allocation9 + $0xc8] ss:$16 sps:$4 sm:$0xff]  }
 0x439   :  { %3668 = vmatpush1.bf16.msra.mxu0 %v14919_v41  ;;  %v15018_v41 = vld [vmem:[#allocation9 + $0x220] ss:$16 sps:$4 sm:$0xff]  }
 0x43a   :  { %3669 = vmatprep.subr.bf16.mxu0 %v14927_v42  ;;  %v15021_v42 = vld [vmem:[#allocation9 + $0x228] ss:$16 sps:$4 sm:$0xff]  }
 0x43d   :  { %3670 = vmatpush1.bf16.msra.mxu0 %v14925_v43  ;;  %v15026_v43 = vld [vmem:[#allocation9 + $0x244] ss:$16 sps:$4 sm:$0xff]  }
 0x43e   :  { %3671 = vmatprep.subr.bf16.mxu0 %v14933_v44  ;;  %v15029_v44 = vld [vmem:[#allocation9 + $0x24c] ss:$16 sps:$4 sm:$0xff]  }
 0x441   :  { %3672 = vmatpush1.bf16.msra.mxu0 %v14931_v45  ;;  %v15024_v45 = vld [vmem:[#allocation9 + $0x240] ss:$16 sps:$4 sm:$0xff]  }
 0x442   :  { %3673 = vmatprep.subr.bf16.mxu0 %v14939_v46  ;;  %v15027_v46 = vld [vmem:[#allocation9 + $0x248] ss:$16 sps:$4 sm:$0xff]  }
 0x445   :  { %3674 = vmatpush1.bf16.msra.mxu0 %v14937_v47  ;;  %v15032_v47 = vld [vmem:[#allocation9 + $0x264] ss:$16 sps:$4 sm:$0xff]  }
 0x446   :  { %3675 = vmatprep.subr.bf16.mxu0 %v14945_v49  ;;  %v15035_v49 = vld [vmem:[#allocation9 + $0x26c] ss:$16 sps:$4 sm:$0xff]  }
 0x449   :  { %3676 = vmatpush1.bf16.msra.mxu0 %v14943_v50  ;;  %v15030_v50 = vld [vmem:[#allocation9 + $0x260] ss:$16 sps:$4 sm:$0xff]  }
 0x44a   :  { %3677 = vmatprep.subr.bf16.mxu0 %v14951_v51  ;;  %v15033_v51 = vld [vmem:[#allocation9 + $0x268] ss:$16 sps:$4 sm:$0xff]  }
 0x44d   :  { %3678 = vmatpush1.bf16.msra.mxu0 %v14949_v52  ;;  %v15038_v52 = vld [vmem:[#allocation9 + $0x284] ss:$16 sps:$4 sm:$0xff]  }
 0x44e   :  { %3679 = vmatprep.subr.bf16.mxu0 %v14957_v53  ;;  %v15041_v53 = vld [vmem:[#allocation9 + $0x28c] ss:$16 sps:$4 sm:$0xff]  }
 0x451   :  { %3680 = vmatpush1.bf16.msra.mxu0 %v14955_v38  ;;  %v15036_v38 = vld [vmem:[#allocation9 + $0x280] ss:$16 sps:$4 sm:$0xff]  }
 0x452   :  { %3681 = vmatprep.subr.bf16.mxu0 %v14963_v54  ;;  %v15039_v54 = vld [vmem:[#allocation9 + $0x288] ss:$16 sps:$4 sm:$0xff]  }
 0x455   :  { %3682 = vmatpush1.bf16.msra.mxu0 %v14961_v56  ;;  %v18018_v7 = vpop.f32.mrb[0].mxu1  ;;  %v15044_v56 = vld [vmem:[#allocation9 + $0x2a4] ss:$16 sps:$4 sm:$0xff]  }
 0x456   :  { %3683 = vmatprep.subr.bf16.mxu0 %v14969_v48  ;;  %v18020_v8 = vpop.f32.mrb[1].mxu1  ;;  %v15047_v48 = vld [vmem:[#allocation9 + $0x2ac] ss:$16 sps:$4 sm:$0xff]  }
 0x457   :  { %v2409_v9 = vpop.f32.mrb[2].mxu1 }
 0x458   :  { %v2410_v10 = vpop.f32.mrb[3].mxu1  ;;  %v15068_v9 = vld [vmem:[#allocation9 + $0x324] ss:$16 sps:$4 sm:$0xff]  }
 0x459   :  { %3684 = vmatpush1.bf16.msra.mxu0 %v14967_v57  ;;  %v15042_v57 = vld [vmem:[#allocation9 + $0x2a0] ss:$16 sps:$4 sm:$0xff]   ;;  %v15071_v10 = vld [vmem:[#allocation9 + $0x32c] ss:$16 sps:$4 sm:$0xff]  }
 0x45a   :  { %3685 = vmatprep.subr.bf16.mxu0 %v14975_v58  ;;  %v15045_v58 = vld [vmem:[#allocation9 + $0x2a8] ss:$16 sps:$4 sm:$0xff]  }
 0x45d   :  { %3686 = vmatpush1.bf16.msra.mxu0 %v14973_v59  ;;  %v15050_v59 = vld [vmem:[#allocation9 + $0x2c4] ss:$16 sps:$4 sm:$0xff]  }
 0x45e   :  { %3687 = vmatprep.subr.bf16.mxu0 %v14981_v60  ;;  %v15053_v60 = vld [vmem:[#allocation9 + $0x2cc] ss:$16 sps:$4 sm:$0xff]  }
 0x461   :  { %3688 = vmatpush1.bf16.msra.mxu0 %v14979_v61  ;;  %v15048_v61 = vld [vmem:[#allocation9 + $0x2c0] ss:$16 sps:$4 sm:$0xff]  }
 0x462   :  { %3689 = vmatprep.subr.bf16.mxu0 %v14987_v62  ;;  %v15051_v62 = vld [vmem:[#allocation9 + $0x2c8] ss:$16 sps:$4 sm:$0xff]  }
 0x465   :  { %3690 = vmatpush1.bf16.msra.mxu0 %v14985_v63  ;;  %v15056_v63 = vld [vmem:[#allocation9 + $0x2e4] ss:$16 sps:$4 sm:$0xff]  }
 0x466   :  { %3691 = vmatprep.subr.bf16.mxu0 %v14993_v0  ;;  %v15059_v0 = vld [vmem:[#allocation9 + $0x2ec] ss:$16 sps:$4 sm:$0xff]  }
 0x469   :  { %3692 = vmatpush1.bf16.msra.mxu0 %v14991_v1  ;;  %v15054_v1 = vld [vmem:[#allocation9 + $0x2e0] ss:$16 sps:$4 sm:$0xff]  }
 0x46a   :  { %3693 = vmatprep.subr.bf16.mxu0 %v14999_v2  ;;  %v15057_v2 = vld [vmem:[#allocation9 + $0x2e8] ss:$16 sps:$4 sm:$0xff]  }
 0x46d   :  { %3694 = vmatpush1.bf16.msra.mxu0 %v14997_v3  ;;  %v15062_v3 = vld [vmem:[#allocation9 + $0x304] ss:$16 sps:$4 sm:$0xff]  }
 0x46e   :  { %3695 = vmatprep.subr.bf16.mxu0 %v15005_v4  ;;  %v15065_v4 = vld [vmem:[#allocation9 + $0x30c] ss:$16 sps:$4 sm:$0xff]  }
 0x471   :  { %3696 = vmatpush1.bf16.msra.mxu0 %v15003_v5  ;;  %v15060_v5 = vld [vmem:[#allocation9 + $0x300] ss:$16 sps:$4 sm:$0xff]  }
 0x472   :  { %3697 = vmatprep.subr.bf16.mxu0 %v15011_v6  ;;  %v15063_v6 = vld [vmem:[#allocation9 + $0x308] ss:$16 sps:$4 sm:$0xff]  }
 0x475   :  { %3698 = vmatpush1.bf16.msra.mxu0 %v15009_v12  ;;  %v14057_v24 = vpop.f32.mrb[4].mxu1  ;;  %v15069_v12 = vld [vmem:[#allocation9 + $0x328] ss:$16 sps:$4 sm:$0xff]  }
 0x476   :  { %3708 = vmatprep.subr.bf16.mxu0 %v15017_v13  ;;  %v14058_v27 = vpop.f32.mrb[5].mxu1  ;;  %v15074_v13 = vld [vmem:[#allocation9 + $0x344] ss:$16 sps:$4 sm:$0xff]  }
 0x477   :  { %v18036_v30 = vadd.f32 %v14058_v27, %v14057_v24  ;;  %v14060_v31 = vpop.f32.mrb[6].mxu1  ;;  %v15086_v24 = vld [vmem:[#allocation9 + $0x384] ss:$16 sps:$4 sm:$0xff]   ;;  %v15087_v27 = vld [vmem:[#allocation9 + $0x388] ss:$16 sps:$4 sm:$0xff]  }
 0x478   :  { %v14061_v36 = vpop.f32.mrb[7].mxu1  ;;  %v15092_v31 = vld [vmem:[#allocation9 + $0x3a4] ss:$16 sps:$4 sm:$0xff]  }
 0x479   :  { %v18042_v36 = vsub.s32 3, %v18022_v15 }
 0x48b   :  { %v2282_v20 = vpop.f32.mrb[0].mxu0 }
 0x48c   :  { %v14362_v29 = vadd.f32 %v2282_v20, %v896_v14  ;;  %v2284_v21 = vpop.f32.mrb[1].mxu0  ;;  %v15077_v14 = vld [vmem:[#allocation9 + $0x34c] ss:$16 sps:$4 sm:$0xff]   ;;  %v15075_v20 = vld [vmem:[#allocation9 + $0x348] ss:$16 sps:$4 sm:$0xff]  }
 0x48d   :  { %v14363_v22 = vadd.f32 %v2284_v21, %v900_v19  ;;  %v2286_v23 = vpop.f32.mrb[2].mxu0  ;;  %v15072_v19 = vld [vmem:[#allocation9 + $0x340] ss:$16 sps:$4 sm:$0xff]   ;;  %v15083_v21 = vld [vmem:[#allocation9 + $0x36c] ss:$16 sps:$4 sm:$0xff]  }
 0x48e   :  { %vm2532_vm0 = vcmp.ge.f32.partialorder %v14362_v29, 0.0  ;;  %v2537_v25 = vmul.f32 0.2, %v14362_v29  ;;  %v2287_v26 = vpop.f32.mrb[3].mxu0  ;;  %v15081_v23 = vld [vmem:[#allocation9 + $0x368] ss:$16 sps:$4 sm:$0xff]  }
 0x48f   :  { %vm2533_vm1 = vcmp.ge.f32.partialorder %v14363_v22, 0.0  ;;  %v2538_v28 = vmul.f32 0.2, %v14363_v22  ;;  %v15084_v26 = vld [vmem:[#allocation9 + $0x380] ss:$16 sps:$4 sm:$0xff]  }
 0x490   :  { %v2542_v32 = vsel %vm2532_vm0, %v14362_v29, %v2537_v25  ;;  %v15080_v29 = vld [vmem:[#allocation9 + $0x364] ss:$16 sps:$4 sm:$0xff]   ;;  %v15089_v25 = vld [vmem:[#allocation9 + $0x38c] ss:$16 sps:$4 sm:$0xff]  }
 0x491   :  { %v2543_v55 = vsel %vm2533_vm1, %v14363_v22, %v2538_v28  ;;  %v2557_v40 = vpack.c.bf16 %v2542_v32, %v2542_v32  ;;  %v15078_v22 = vld [vmem:[#allocation9 + $0x360] ss:$16 sps:$4 sm:$0xff]   ;;  %v18039_v28 = vsub.s32 2, %v18022_v15  ;;  %v15095_v32 = vld [vmem:[#allocation9 + $0x3ac] ss:$16 sps:$4 sm:$0xff]  }
 0x492   :  { %v2558_v39 = vpack.c.bf16 %v2543_v55, %v2543_v55  ;;  %v15098_v55 = vld [vmem:[#allocation9 + $0x3c4] ss:$16 sps:$4 sm:$0xff]  }
 0x494   :  { %3576 = vmatprep.mubr.bf16.mxu1 %v2558_v39  ;;  %3699 = vmatprep.mubr.bf16.mxu0 %v2558_v39  ;;  %v15096_v39 = vld [vmem:[#allocation9 + $0x3c0] ss:$16 sps:$4 sm:$0xff]  }
 0x495   :  { %3577 = vmatmul.mubr.bf16.vlgmr.msra.gmra.mrb[8].mxu1 %v2557_v40  ;;  %3700 = vmatmul.mubr.bf16.vlgmr.msra.gmra.mrb[16].mxu0 %v2557_v40  ;;  %v15099_v40 = vld [vmem:[#allocation9 + $0x3c8] ss:$16 sps:$4 sm:$0xff]  }
 0x496   :  { %3586 = vmatpush1.bf16.msra.mxu1 %v15012_v34  ;;  %3709 = vmatpush1.bf16.msra.mxu0 %v15015_v35  ;;  %v15090_v34 = vld [vmem:[#allocation9 + $0x3a0] ss:$16 sps:$4 sm:$0xff]   ;;  %v15093_v35 = vld [vmem:[#allocation9 + $0x3a8] ss:$16 sps:$4 sm:$0xff]  }
 0x497   :  { %3587 = vmatprep.subr.bf16.mxu1 %v15020_v37  ;;  %3710 = vmatprep.subr.bf16.mxu0 %v15023_v33  ;;  %v15101_v37 = vld [vmem:[#allocation9 + $0x3cc] ss:$16 sps:$4 sm:$0xff]   ;;  %v904_v33 = vrot.slane %v18030_v18, %v18039_v28 }
 0x49a   :  { %3588 = vmatpush1.bf16.msra.mxu1 %v15018_v41  ;;  %3711 = vmatpush1.bf16.msra.mxu0 %v15021_v42  ;;  %v908_v41 = vrot.slane %v18030_v18, %v18042_v36  ;;  %v15104_v42 = vld [vmem:[#allocation9 + $0x3e4] ss:$16 sps:$4 sm:$0xff]  }
 0x49b   :  { %3589 = vmatprep.subr.bf16.mxu1 %v15026_v43  ;;  %3712 = vmatprep.subr.bf16.mxu0 %v15029_v44  ;;  %v15107_v44 = vld [vmem:[#allocation9 + $0x3ec] ss:$16 sps:$4 sm:$0xff]  }
 0x49e   :  { %3590 = vmatpush1.bf16.msra.mxu1 %v15024_v45  ;;  %3713 = vmatpush1.bf16.msra.mxu0 %v15027_v46 }
 0x49f   :  { %3591 = vmatprep.subr.bf16.mxu1 %v15032_v47  ;;  %3714 = vmatprep.subr.bf16.mxu0 %v15035_v49  ;;  %v15102_v47 = vld [vmem:[#allocation9 + $0x3e0] ss:$16 sps:$4 sm:$0xff]   ;;  %v15105_v49 = vld [vmem:[#allocation9 + $0x3e8] ss:$16 sps:$4 sm:$0xff]  }
 0x4a2   :  { %3592 = vmatpush1.bf16.msra.mxu1 %v15030_v50  ;;  %3715 = vmatpush1.bf16.msra.mxu0 %v15033_v51 }
 0x4a3   :  { %3593 = vmatprep.subr.bf16.mxu1 %v15038_v52  ;;  %3716 = vmatprep.subr.bf16.mxu0 %v15041_v53  ;;  %v15110_v52 = vld [vmem:[#allocation9 + $0x404] ss:$16 sps:$4 sm:$0xff]   ;;  %v15113_v53 = vld [vmem:[#allocation9 + $0x40c] ss:$16 sps:$4 sm:$0xff]  }
 0x4a6   :  { %3594 = vmatpush1.bf16.msra.mxu1 %v15036_v38  ;;  %3717 = vmatpush1.bf16.msra.mxu0 %v15039_v54 }
 0x4a7   :  { %3595 = vmatprep.subr.bf16.mxu1 %v15044_v56  ;;  %3718 = vmatprep.subr.bf16.mxu0 %v15047_v48 }
 0x4aa   :  { %3596 = vmatpush1.bf16.msra.mxu1 %v15042_v57  ;;  %3719 = vmatpush1.bf16.msra.mxu0 %v15045_v58 }
 0x4ab   :  { %3597 = vmatprep.subr.bf16.mxu1 %v15050_v59  ;;  %3720 = vmatprep.subr.bf16.mxu0 %v15053_v60  ;;  %v15108_v59 = vld [vmem:[#allocation9 + $0x400] ss:$16 sps:$4 sm:$0xff]   ;;  %v15111_v60 = vld [vmem:[#allocation9 + $0x408] ss:$16 sps:$4 sm:$0xff]  }
 0x4ae   :  { %3598 = vmatpush1.bf16.msra.mxu1 %v15048_v61  ;;  %3721 = vmatpush1.bf16.msra.mxu0 %v15051_v62  ;;  %v15119_v62 = vld [vmem:[#allocation9 + $0x42c] ss:$16 sps:$4 sm:$0xff]  }
 0x4af   :  { %3599 = vmatprep.subr.bf16.mxu1 %v15056_v63  ;;  %3722 = vmatprep.subr.bf16.mxu0 %v15059_v0 }
 0x4b2   :  { %3600 = vmatpush1.bf16.msra.mxu1 %v15054_v1  ;;  %3723 = vmatpush1.bf16.msra.mxu0 %v15057_v2  ;;  %v15117_v1 = vld [vmem:[#allocation9 + $0x428] ss:$16 sps:$4 sm:$0xff]   ;;  %v15122_v2 = vld [vmem:[#allocation9 + $0x444] ss:$16 sps:$4 sm:$0xff]  }
 0x4b3   :  { %3601 = vmatprep.subr.bf16.mxu1 %v15062_v3  ;;  %3724 = vmatprep.subr.bf16.mxu0 %v15065_v4  ;;  %v15125_v3 = vld [vmem:[#allocation9 + $0x44c] ss:$16 sps:$4 sm:$0xff]   ;;  %v15120_v4 = vld [vmem:[#allocation9 + $0x440] ss:$16 sps:$4 sm:$0xff]  }
 0x4b6   :  { %3602 = vmatpush1.bf16.msra.mxu1 %v15060_v5  ;;  %3725 = vmatpush1.bf16.msra.mxu0 %v15063_v6  ;;  %v15123_v5 = vld [vmem:[#allocation9 + $0x448] ss:$16 sps:$4 sm:$0xff]   ;;  %v17542_v6 = vmov 0  }
 0x4b7   :  { %3603 = vmatprep.subr.bf16.mxu1 %v15068_v9  ;;  %3726 = vmatprep.subr.bf16.mxu0 %v15071_v10  ;;  %v15128_v9 = vld [vmem:[#allocation9 + $0x464] ss:$16 sps:$4 sm:$0xff]   ;;  %v15131_v10 = vld [vmem:[#allocation9 + $0x46c] ss:$16 sps:$4 sm:$0xff]  }
 0x4ba   :  { %3604 = vmatpush1.bf16.msra.mxu1 %v15066_v11  ;;  %3727 = vmatpush1.bf16.msra.mxu0 %v15069_v12  ;;  %v15126_v11 = vld [vmem:[#allocation9 + $0x460] ss:$16 sps:$4 sm:$0xff]   ;;  %v15129_v12 = vld [vmem:[#allocation9 + $0x468] ss:$16 sps:$4 sm:$0xff]  }
 0x4bb   :  { %3605 = vmatprep.subr.bf16.mxu1 %v15074_v13  ;;  %3728 = vmatprep.subr.bf16.mxu0 %v15077_v14  ;;  %v15134_v13 = vld [vmem:[#allocation9 + $0x484] ss:$16 sps:$4 sm:$0xff]   ;;  %v15137_v14 = vld [vmem:[#allocation9 + $0x48c] ss:$16 sps:$4 sm:$0xff]  }
 0x4be   :  { %3606 = vmatpush1.bf16.msra.mxu1 %v15072_v19  ;;  %3729 = vmatpush1.bf16.msra.mxu0 %v15075_v20  ;;  %v15132_v19 = vld [vmem:[#allocation9 + $0x480] ss:$16 sps:$4 sm:$0xff]   ;;  %v15135_v20 = vld [vmem:[#allocation9 + $0x488] ss:$16 sps:$4 sm:$0xff]  }
 0x4bf   :  { %3607 = vmatprep.subr.bf16.mxu1 %v15080_v29  ;;  %3730 = vmatprep.subr.bf16.mxu0 %v15083_v21  ;;  %v15140_v29 = vld [vmem:[#allocation9 + $0x4a4] ss:$16 sps:$4 sm:$0xff]   ;;  %v15143_v21 = vld [vmem:[#allocation9 + $0x4ac] ss:$16 sps:$4 sm:$0xff]  }
 0x4c2   :  { %3608 = vmatpush1.bf16.msra.mxu1 %v15078_v22  ;;  %3731 = vmatpush1.bf16.msra.mxu0 %v15081_v23  ;;  %v15138_v22 = vld [vmem:[#allocation9 + $0x4a0] ss:$16 sps:$4 sm:$0xff]   ;;  %v15141_v23 = vld [vmem:[#allocation9 + $0x4a8] ss:$16 sps:$4 sm:$0xff]  }
 0x4c3   :  { %3609 = vmatprep.subr.bf16.mxu1 %v15086_v24  ;;  %3732 = vmatprep.subr.bf16.mxu0 %v15089_v25  ;;  %v18053_v24 = vsub.s32 4, %v18022_v15  ;;  %v15146_v25 = vld [vmem:[#allocation9 + $0x4c4] ss:$16 sps:$4 sm:$0xff]  }
 0x4c6   :  { %3610 = vmatpush1.bf16.msra.mxu1 %v15084_v26  ;;  %3733 = vmatpush1.bf16.msra.mxu0 %v15087_v27  ;;  %v15149_v26 = vld [vmem:[#allocation9 + $0x4cc] ss:$16 sps:$4 sm:$0xff]   ;;  %v15144_v27 = vld [vmem:[#allocation9 + $0x4c0] ss:$16 sps:$4 sm:$0xff]  }
 0x4c7   :  { %3611 = vmatprep.subr.bf16.mxu1 %v15092_v31  ;;  %3734 = vmatprep.subr.bf16.mxu0 %v15095_v32  ;;  %v15147_v31 = vld [vmem:[#allocation9 + $0x4c8] ss:$16 sps:$4 sm:$0xff]  }
 0x4ca   :  { %3612 = vmatpush1.bf16.msra.mxu1 %v15090_v34  ;;  %3735 = vmatpush1.bf16.msra.mxu0 %v15093_v35  ;;  %v912_v34 = vrot.slane %v18030_v18, %v18053_v24  ;;  %v15152_v35 = vld [vmem:[#allocation9 + $0x4e4] ss:$16 sps:$4 sm:$0xff]  }
 0x4cb   :  { %v2323_v43 = vpop.f32.mrb[4].mxu0  ;;  %3613 = vmatprep.subr.bf16.mxu1 %v15098_v55  ;;  %3736 = vmatprep.subr.bf16.mxu0 %v15101_v37  ;;  %v15155_v55 = vld [vmem:[#allocation9 + $0x4ec] ss:$16 sps:$4 sm:$0xff]  }
 0x4cc   :  { %v2324_v45 = vadd.f32 %v2323_v43, %v904_v33  ;;  %v2325_v46 = vpop.f32.mrb[5].mxu0 }
 0x4cd   :  { %v2326_v50 = vadd.f32 %v2325_v46, %v908_v41  ;;  %v2327_v51 = vpop.f32.mrb[6].mxu0  ;;  %v15150_v41 = vld [vmem:[#allocation9 + $0x4e0] ss:$16 sps:$4 sm:$0xff]  }
 0x4ce   :  { %v14365_v38 = vadd.f32 %v18018_v7, %v2324_v45  ;;  %v2328_v54 = vpop.f32.mrb[7].mxu0  ;;  %3614 = vmatpush1.bf16.msra.mxu1 %v15096_v39  ;;  %3737 = vmatpush1.bf16.msra.mxu0 %v15099_v40  ;;  %v15116_v7 = vld [vmem:[#allocation9 + $0x424] ss:$16 sps:$4 sm:$0xff]   ;;  %v15161_v45 = vld [vmem:[#allocation12 + $0xc] ss:$16 sps:$4 sm:$0xff]  }
 0x4cf   :  { %v14367_v56 = vadd.f32 %v18020_v8, %v2326_v50  ;;  %3615 = vmatprep.subr.bf16.mxu1 %v15104_v42  ;;  %3738 = vmatprep.subr.bf16.mxu0 %v15107_v44  ;;  %v15114_v8 = vld [vmem:[#allocation9 + $0x420] ss:$16 sps:$4 sm:$0xff]   ;;  %v15153_v42 = vld [vmem:[#allocation9 + $0x4e8] ss:$16 sps:$4 sm:$0xff]   ;;  %v15159_v54 = vld [vmem:[#allocation12 + $0x8] ss:$16 sps:$4 sm:$0xff]  }
 0x4d0   :  { %vm2534_vm2 = vcmp.ge.f32.partialorder %v14365_v38, 0.0  ;;  %v2539_v48 = vmul.f32 0.2, %v14365_v38  ;;  %v15158_v44 = vld [vmem:[#allocation12 + $0x4] ss:$16 sps:$4 sm:$0xff]  }
 0x4d1   :  { %v2540_v57 = vmul.f32 0.2, %v14367_v56  ;;  %vm2535_vm3 = vcmp.ge.f32.partialorder %v14367_v56, 0.0 }
 0x4d2   :  { %v2544_v58 = vsel %vm2534_vm2, %v14365_v38, %v2539_v48  ;;  %3616 = vmatpush1.bf16.msra.mxu1 %v15102_v47  ;;  %3739 = vmatpush1.bf16.msra.mxu0 %v15105_v49  ;;  %v15156_v38 = vld [vmem:[#allocation12] ss:$16 sps:$4 sm:$0xff]   ;;  %v15167_v48 = vld [vmem:[#allocation12 + $0x2c] ss:$16 sps:$4 sm:$0xff]   ;;  %vm17544_vm2 = vmmov 0  }
 0x4d3   :  { %v2545_v61 = vsel %vm2535_vm3, %v14367_v56, %v2540_v57  ;;  %3626 = vmatprep.subr.bf16.mxu1 %v15110_v52  ;;  %3749 = vmatprep.subr.bf16.mxu0 %v15113_v53  ;;  %v2559_v0 = vpack.c.bf16 %v2544_v58, %v2544_v58  ;;  %v15164_v56 = vld [vmem:[#allocation12 + $0x24] ss:$16 sps:$4 sm:$0xff]   ;;  %v15162_v58 = vld [vmem:[#allocation12 + $0x20] ss:$16 sps:$4 sm:$0xff]  }
 0x4d4   :  { %v2560_v63 = vpack.c.bf16 %v2545_v61, %v2545_v61  ;;  %v15173_v61 = vld [vmem:[#allocation12 + $0x4c] ss:$16 sps:$4 sm:$0xff]  }
 0x4d6   :  { %3617 = vmatprep.mubr.bf16.mxu1 %v2560_v63  ;;  %3740 = vmatprep.mubr.bf16.mxu0 %v2560_v63  ;;  %v15176_v63 = vld [vmem:[#allocation12 + $0x64] ss:$16 sps:$4 sm:$0xff]  }
 0x4d7   :  { %3618 = vmatmul.mubr.bf16.vlgmr.msra.gmra.mrb[8].mxu1 %v2559_v0  ;;  %3741 = vmatmul.mubr.bf16.vlgmr.msra.gmra.mrb[16].mxu0 %v2559_v0  ;;  %v15179_v0 = vld [vmem:[#allocation12 + $0x6c] ss:$16 sps:$4 sm:$0xff]  }
 0x4d8   :  { %3627 = vmatpush1.bf16.msra.mxu1 %v15108_v59  ;;  %3750 = vmatpush1.bf16.msra.mxu0 %v15111_v60  ;;  %v15165_v59 = vld [vmem:[#allocation12 + $0x28] ss:$16 sps:$4 sm:$0xff]   ;;  %v15170_v60 = vld [vmem:[#allocation12 + $0x44] ss:$16 sps:$4 sm:$0xff]  }
 0x4d9   :  { %3628 = vmatprep.subr.bf16.mxu1 %v15116_v7  ;;  %3751 = vmatprep.subr.bf16.mxu0 %v15119_v62  ;;  %v15168_v7 = vld [vmem:[#allocation12 + $0x40] ss:$16 sps:$4 sm:$0xff]   ;;  %v15171_v62 = vld [vmem:[#allocation12 + $0x48] ss:$16 sps:$4 sm:$0xff]  }
 0x4da   :  { %3658 = vmatprep.mubr.bf16.mxu1 %v17542_v6  ;;  %3781 = vmatprep.mubr.bf16.mxu0 %v17542_v6 }
 0x4dc   :  { %3629 = vmatpush1.bf16.msra.mxu1 %v15114_v8  ;;  %3752 = vmatpush1.bf16.msra.mxu0 %v15117_v1  ;;  %v15174_v8 = vld [vmem:[#allocation12 + $0x60] ss:$16 sps:$4 sm:$0xff]   ;;  %v15177_v1 = vld [vmem:[#allocation12 + $0x68] ss:$16 sps:$4 sm:$0xff]  }
 0x4dd   :  { %3630 = vmatprep.subr.bf16.mxu1 %v15122_v2  ;;  %3753 = vmatprep.subr.bf16.mxu0 %v15125_v3  ;;  %v15182_v2 = vld [vmem:[#allocation12 + $0x84] ss:$16 sps:$4 sm:$0xff]   ;;  %v15185_v3 = vld [vmem:[#allocation12 + $0x8c] ss:$16 sps:$4 sm:$0xff]  }
 0x4e0   :  { %3631 = vmatpush1.bf16.msra.mxu1 %v15120_v4  ;;  %3754 = vmatpush1.bf16.msra.mxu0 %v15123_v5  ;;  %v15180_v4 = vld [vmem:[#allocation12 + $0x80] ss:$16 sps:$4 sm:$0xff]   ;;  %v15183_v5 = vld [vmem:[#allocation12 + $0x88] ss:$16 sps:$4 sm:$0xff]  }
 0x4e1   :  { %3632 = vmatprep.subr.bf16.mxu1 %v15128_v9  ;;  %3755 = vmatprep.subr.bf16.mxu0 %v15131_v10  ;;  %v15188_v9 = vld [vmem:[#allocation12 + $0xa4] ss:$16 sps:$4 sm:$0xff]   ;;  %v15191_v10 = vld [vmem:[#allocation12 + $0xac] ss:$16 sps:$4 sm:$0xff]  }
 0x4e4   :  { %3633 = vmatpush1.bf16.msra.mxu1 %v15126_v11  ;;  %3756 = vmatpush1.bf16.msra.mxu0 %v15129_v12  ;;  %v15186_v11 = vld [vmem:[#allocation12 + $0xa0] ss:$16 sps:$4 sm:$0xff]   ;;  %v15189_v12 = vld [vmem:[#allocation12 + $0xa8] ss:$16 sps:$4 sm:$0xff]  }
 0x4e5   :  { %3634 = vmatprep.subr.bf16.mxu1 %v15134_v13  ;;  %3757 = vmatprep.subr.bf16.mxu0 %v15137_v14  ;;  %v15194_v13 = vld [vmem:[#allocation12 + $0xc4] ss:$16 sps:$4 sm:$0xff]   ;;  %v15197_v14 = vld [vmem:[#allocation12 + $0xcc] ss:$16 sps:$4 sm:$0xff]  }
 0x4e8   :  { %3635 = vmatpush1.bf16.msra.mxu1 %v15132_v19  ;;  %3758 = vmatpush1.bf16.msra.mxu0 %v15135_v20  ;;  %v15192_v19 = vld [vmem:[#allocation12 + $0xc0] ss:$16 sps:$4 sm:$0xff]   ;;  %v15195_v20 = vld [vmem:[#allocation12 + $0xc8] ss:$16 sps:$4 sm:$0xff]  }
 0x4e9   :  { %3636 = vmatprep.subr.bf16.mxu1 %v15140_v29  ;;  %3759 = vmatprep.subr.bf16.mxu0 %v15143_v21  ;;  %v15200_v29 = vld [vmem:[#allocation12 + $0xe4] ss:$16 sps:$4 sm:$0xff]   ;;  %v15203_v21 = vld [vmem:[#allocation12 + $0xec] ss:$16 sps:$4 sm:$0xff]  }
 0x4eb   :  { %v14035_v32 = vpop.f32.mrb[8].mxu0 }
 0x4ec   :  { %v14036_v37 = vpop.f32.mrb[9].mxu0  ;;  %3637 = vmatpush1.bf16.msra.mxu1 %v15138_v22  ;;  %3760 = vmatpush1.bf16.msra.mxu0 %v15141_v23  ;;  %v15198_v22 = vld [vmem:[#allocation12 + $0xe0] ss:$16 sps:$4 sm:$0xff]   ;;  %v15201_v23 = vld [vmem:[#allocation12 + $0xe8] ss:$16 sps:$4 sm:$0xff]  }
 0x4ed   :  { %v14037_v33 = vadd.f32 %v14036_v37, %v14035_v32  ;;  %v14038_v39 = vpop.f32.mrb[10].mxu0  ;;  %3638 = vmatprep.subr.bf16.mxu1 %v15146_v25  ;;  %3761 = vmatprep.subr.bf16.mxu0 %v15149_v26  ;;  %v15206_v25 = vld [vmem:[#allocation12 + $0x104] ss:$16 sps:$4 sm:$0xff]   ;;  %v15209_v26 = vld [vmem:[#allocation12 + $0x10c] ss:$16 sps:$4 sm:$0xff]  }
 0x4ee   :  { %v14039_v40 = vpop.f32.mrb[11].mxu0  ;;  %v15212_v32 = vld [vmem:[#allocation12 + $0x124] ss:$16 sps:$4 sm:$0xff]   ;;  %v15216_v39 = vld [vmem:[#allocation12 + $0x140] ss:$16 sps:$4 sm:$0xff]  }
 0x4ef   :  { %v2447_v43 = vadd.f32 %v14037_v33, %v912_v34  ;;  %v15215_v34 = vld [vmem:[#allocation12 + $0x12c] ss:$16 sps:$4 sm:$0xff]   ;;  %v15218_v37 = vld [vmem:[#allocation12 + $0x144] ss:$16 sps:$4 sm:$0xff]   ;;  %v15219_v40 = vld [vmem:[#allocation12 + $0x148] ss:$16 sps:$4 sm:$0xff]  }
 0x4f0   :  { %3639 = vmatpush1.bf16.msra.mxu1 %v15144_v27  ;;  %3762 = vmatpush1.bf16.msra.mxu0 %v15147_v31  ;;  %v15204_v27 = vld [vmem:[#allocation12 + $0x100] ss:$16 sps:$4 sm:$0xff]   ;;  %v15207_v31 = vld [vmem:[#allocation12 + $0x108] ss:$16 sps:$4 sm:$0xff]   ;;  %v15221_v33 = vld [vmem:[#allocation12 + $0x14c] ss:$16 sps:$4 sm:$0xff]  }
 0x4f1   :  { %v2487_v46 = vadd.f32 %v18036_v30, %v2447_v43  ;;  %3640 = vmatprep.subr.bf16.mxu1 %v15152_v35  ;;  %3763 = vmatprep.subr.bf16.mxu0 %v15155_v55  ;;  %v15210_v35 = vld [vmem:[#allocation12 + $0x120] ss:$16 sps:$4 sm:$0xff]   ;;  %v15213_v55 = vld [vmem:[#allocation12 + $0x128] ss:$16 sps:$4 sm:$0xff]  }
 0x4f2   :  { %v15222_v43 = vld [vmem:[#allocation12 + $0x160] ss:$16 sps:$4 sm:$0xff]  }
 0x4f4   :  { %3641 = vmatpush1.bf16.msra.mxu1 %v15150_v41  ;;  %3764 = vmatpush1.bf16.msra.mxu0 %v15153_v42  ;;  %v15224_v41 = vld [vmem:[#allocation12 + $0x164] ss:$16 sps:$4 sm:$0xff]   ;;  %v15227_v42 = vld [vmem:[#allocation12 + $0x16c] ss:$16 sps:$4 sm:$0xff]  }
 0x4f5   :  { %4604 = vmatprep.subr.bf16.mxu1 %v15158_v44  ;;  %4686 = vmatprep.subr.bf16.mxu0 %v15161_v45  ;;  %v15225_v44 = vld [vmem:[#allocation12 + $0x168] ss:$16 sps:$4 sm:$0xff]   ;;  %v15230_v45 = vld [vmem:[#allocation12 + $0x184] ss:$16 sps:$4 sm:$0xff]  }
 0x50b   :  { %v14079_v18 = vpop.f32.mrb[12].mxu0 }
 0x50c   :  { %v14080_v47 = vpop.f32.mrb[13].mxu0 }
 0x50d   :  { %v14081_v49 = vadd.f32 %v14080_v47, %v14079_v18  ;;  %v14082_v50 = vpop.f32.mrb[14].mxu0  ;;  %v15228_v18 = vld [vmem:[#allocation12 + $0x180] ss:$16 sps:$4 sm:$0xff]   ;;  %v15231_v47 = vld [vmem:[#allocation12 + $0x188] ss:$16 sps:$4 sm:$0xff]  }
 0x50e   :  { %v14083_v51 = vpop.f32.mrb[15].mxu0  ;;  %v15239_v50 = vld [vmem:[#allocation12 + $0x1ac] ss:$16 sps:$4 sm:$0xff]  }
 0x50f   :  { %v2527_v52 = vadd.f32 %v14081_v49, %v2487_v46  ;;  %v15233_v46 = vld [vmem:[#allocation12 + $0x18c] ss:$16 sps:$4 sm:$0xff]   ;;  %v15236_v49 = vld [vmem:[#allocation12 + $0x1a4] ss:$16 sps:$4 sm:$0xff]   ;;  %v15234_v51 = vld [vmem:[#allocation12 + $0x1a0] ss:$16 sps:$4 sm:$0xff]  }
 0x511   :  { %vm2536_vm4 = vcmp.ge.f32.partialorder %v2527_v52, 0.0  ;;  %v2541_v53 = vmul.f32 0.2, %v2527_v52 }
 0x513   :  { %v2546_v57 = vsel %vm2536_vm4, %v2527_v52, %v2541_v53  ;;  %v15237_v52 = vld [vmem:[#allocation12 + $0x1a8] ss:$16 sps:$4 sm:$0xff]   ;;  %v15242_v53 = vld [vmem:[#allocation12 + $0x1c4] ss:$16 sps:$4 sm:$0xff]  }
 0x514   :  { %v2561_v30 = vpack.c.bf16 %v2546_v57, %v2546_v57  ;;  %v15251_v57 = vld [vmem:[#allocation12 + $0x1ec] ss:$16 sps:$4 sm:$0xff]  }
 0x516   :  { %3659 = vmatmul.mubr.bf16.vlgmr.msra.gmra.mrb[8].mxu1 %v2561_v30  ;;  %3782 = vmatmul.mubr.bf16.vlgmr.msra.gmra.mrb[16].mxu0 %v2561_v30  ;;  %v15246_v30 = vld [vmem:[#allocation12 + $0x1e0] ss:$16 sps:$4 sm:$0xff]  }
 0x517   :  { %4605 = vmatpush1.bf16.msra.mxu1 %v15156_v38  ;;  %4687 = vmatpush1.bf16.msra.mxu0 %v15159_v54  ;;  %v15245_v38 = vld [vmem:[#allocation12 + $0x1cc] ss:$16 sps:$4 sm:$0xff]   ;;  %v15240_v54 = vld [vmem:[#allocation12 + $0x1c0] ss:$16 sps:$4 sm:$0xff]  }
 0x518   :  { %4606 = vmatprep.subr.bf16.mxu1 %v15164_v56  ;;  %4688 = vmatprep.subr.bf16.mxu0 %v15167_v48  ;;  %v15243_v56 = vld [vmem:[#allocation12 + $0x1c8] ss:$16 sps:$4 sm:$0xff]   ;;  %v15248_v48 = vld [vmem:[#allocation12 + $0x1e4] ss:$16 sps:$4 sm:$0xff]  }
 0x51b   :  { %4607 = vmatpush1.bf16.msra.mxu1 %v15162_v58  ;;  %4689 = vmatpush1.bf16.msra.mxu0 %v15165_v59  ;;  %v15249_v58 = vld [vmem:[#allocation12 + $0x1e8] ss:$16 sps:$4 sm:$0xff]   ;;  %v15254_v59 = vld [vmem:[#allocation12 + $0x204] ss:$16 sps:$4 sm:$0xff]  }
 0x51c   :  { %4608 = vmatprep.subr.bf16.mxu1 %v15170_v60  ;;  %4690 = vmatprep.subr.bf16.mxu0 %v15173_v61  ;;  %v15257_v60 = vld [vmem:[#allocation12 + $0x20c] ss:$16 sps:$4 sm:$0xff]  }
 0x51d   :  { %v18058_v61 = vld [vmem:[#allocation10] sm:$0xf] }
 0x51f   :  { %4609 = vmatpush1.bf16.msra.mxu1 %v15168_v7  ;;  %4691 = vmatpush1.bf16.msra.mxu0 %v15171_v62  ;;  %v2727_v7 = vrot.slane %v18058_v61, %v18025_v16  ;;  %v2731_v62 = vrot.slane %v18058_v61, %v18028_v17 }
 0x520   :  { %4610 = vmatprep.subr.bf16.mxu1 %v15176_v63  ;;  %4692 = vmatprep.subr.bf16.mxu0 %v15179_v0  ;;  %v2739_v63 = vrot.slane %v18058_v61, %v18042_v36 }
 0x523   :  { %4611 = vmatpush1.bf16.msra.mxu1 %v15174_v8  ;;  %4693 = vmatpush1.bf16.msra.mxu0 %v15177_v1 }
 0x524   :  { %4612 = vmatprep.subr.bf16.mxu1 %v15182_v2  ;;  %4694 = vmatprep.subr.bf16.mxu0 %v15185_v3 }
 0x527   :  { %4613 = vmatpush1.bf16.msra.mxu1 %v15180_v4  ;;  %4695 = vmatpush1.bf16.msra.mxu0 %v15183_v5 }
 0x528   :  { %4614 = vmatprep.subr.bf16.mxu1 %v15188_v9  ;;  %4696 = vmatprep.subr.bf16.mxu0 %v15191_v10 }
 0x52b   :  { %4615 = vmatpush1.bf16.msra.mxu1 %v15186_v11  ;;  %4697 = vmatpush1.bf16.msra.mxu0 %v15189_v12 }
 0x52c   :  { %4616 = vmatprep.subr.bf16.mxu1 %v15194_v13  ;;  %4698 = vmatprep.subr.bf16.mxu0 %v15197_v14 }
 0x52f   :  { %4617 = vmatpush1.bf16.msra.mxu1 %v15192_v19  ;;  %4699 = vmatpush1.bf16.msra.mxu0 %v15195_v20 }
 0x530   :  { %4618 = vmatprep.subr.bf16.mxu1 %v15200_v29  ;;  %4700 = vmatprep.subr.bf16.mxu0 %v15203_v21 }
 0x533   :  { %4619 = vmatpush1.bf16.msra.mxu1 %v15198_v22  ;;  %4701 = vmatpush1.bf16.msra.mxu0 %v15201_v23  ;;  %v15252_v22 = vld [vmem:[#allocation12 + $0x200] ss:$16 sps:$4 sm:$0xff]   ;;  %v15255_v23 = vld [vmem:[#allocation12 + $0x208] ss:$16 sps:$4 sm:$0xff]  }
 0x534   :  { %4620 = vmatprep.subr.bf16.mxu1 %v15206_v25  ;;  %4702 = vmatprep.subr.bf16.mxu0 %v15209_v26 }
 0x537   :  { %4621 = vmatpush1.bf16.msra.mxu1 %v15204_v27  ;;  %4703 = vmatpush1.bf16.msra.mxu0 %v15207_v31  ;;  %v15260_v27 = vld [vmem:[#allocation12 + $0x224] ss:$16 sps:$4 sm:$0xff]   ;;  %v15263_v31 = vld [vmem:[#allocation12 + $0x22c] ss:$16 sps:$4 sm:$0xff]  }
 0x538   :  { %4622 = vmatprep.subr.bf16.mxu1 %v15212_v32  ;;  %4704 = vmatprep.subr.bf16.mxu0 %v15215_v34  ;;  %v15258_v34 = vld [vmem:[#allocation12 + $0x220] ss:$16 sps:$4 sm:$0xff]  }
 0x53b   :  { %4623 = vmatpush1.bf16.msra.mxu1 %v15210_v35  ;;  %4705 = vmatpush1.bf16.msra.mxu0 %v15213_v55  ;;  %v15261_v35 = vld [vmem:[#allocation12 + $0x228] ss:$16 sps:$4 sm:$0xff]   ;;  %v15266_v55 = vld [vmem:[#allocation12 + $0x244] ss:$16 sps:$4 sm:$0xff]  }
 0x53c   :  { %4624 = vmatprep.subr.bf16.mxu1 %v15218_v37  ;;  %4706 = vmatprep.subr.bf16.mxu0 %v15221_v33  ;;  %v15269_v37 = vld [vmem:[#allocation12 + $0x24c] ss:$16 sps:$4 sm:$0xff]   ;;  %v15264_v33 = vld [vmem:[#allocation12 + $0x240] ss:$16 sps:$4 sm:$0xff]  }
 0x53f   :  { %4625 = vmatpush1.bf16.msra.mxu1 %v15216_v39  ;;  %4707 = vmatpush1.bf16.msra.mxu0 %v15219_v40  ;;  %v15267_v39 = vld [vmem:[#allocation12 + $0x248] ss:$16 sps:$4 sm:$0xff]   ;;  %v15272_v40 = vld [vmem:[#allocation12 + $0x264] ss:$16 sps:$4 sm:$0xff]  }
 0x540   :  { %4626 = vmatprep.subr.bf16.mxu1 %v15224_v41  ;;  %4708 = vmatprep.subr.bf16.mxu0 %v15227_v42  ;;  %v15275_v41 = vld [vmem:[#allocation12 + $0x26c] ss:$16 sps:$4 sm:$0xff]   ;;  %v15270_v42 = vld [vmem:[#allocation12 + $0x260] ss:$16 sps:$4 sm:$0xff]  }
 0x543   :  { %4627 = vmatpush1.bf16.msra.mxu1 %v15222_v43  ;;  %4709 = vmatpush1.bf16.msra.mxu0 %v15225_v44  ;;  %v15273_v43 = vld [vmem:[#allocation12 + $0x268] ss:$16 sps:$4 sm:$0xff]   ;;  %v15278_v44 = vld [vmem:[#allocation12 + $0x284] ss:$16 sps:$4 sm:$0xff]  }
 0x544   :  { %4628 = vmatprep.subr.bf16.mxu1 %v15230_v45  ;;  %4710 = vmatprep.subr.bf16.mxu0 %v15233_v46  ;;  %v15281_v45 = vld [vmem:[#allocation12 + $0x28c] ss:$16 sps:$4 sm:$0xff]   ;;  %v15276_v46 = vld [vmem:[#allocation12 + $0x280] ss:$16 sps:$4 sm:$0xff]  }
 0x547   :  { %4629 = vmatpush1.bf16.msra.mxu1 %v15228_v18  ;;  %4711 = vmatpush1.bf16.msra.mxu0 %v15231_v47  ;;  %v15279_v18 = vld [vmem:[#allocation12 + $0x288] ss:$16 sps:$4 sm:$0xff]   ;;  %v15284_v47 = vld [vmem:[#allocation12 + $0x2a4] ss:$16 sps:$4 sm:$0xff]  }
 0x548   :  { %4630 = vmatprep.subr.bf16.mxu1 %v15236_v49  ;;  %4712 = vmatprep.subr.bf16.mxu0 %v15239_v50  ;;  %v15287_v49 = vld [vmem:[#allocation12 + $0x2ac] ss:$16 sps:$4 sm:$0xff]   ;;  %v15282_v50 = vld [vmem:[#allocation12 + $0x2a0] ss:$16 sps:$4 sm:$0xff]  }
 0x54b   :  { %4631 = vmatpush1.bf16.msra.mxu1 %v15234_v51  ;;  %4713 = vmatpush1.bf16.msra.mxu0 %v15237_v52  ;;  %v15285_v51 = vld [vmem:[#allocation12 + $0x2a8] ss:$16 sps:$4 sm:$0xff]   ;;  %v15290_v52 = vld [vmem:[#allocation12 + $0x2c4] ss:$16 sps:$4 sm:$0xff]  }
 0x54c   :  { %4632 = vmatprep.subr.bf16.mxu1 %v15242_v53  ;;  %4714 = vmatprep.subr.bf16.mxu0 %v15245_v38  ;;  %v15293_v53 = vld [vmem:[#allocation12 + $0x2cc] ss:$16 sps:$4 sm:$0xff]   ;;  %v15288_v38 = vld [vmem:[#allocation12 + $0x2c0] ss:$16 sps:$4 sm:$0xff]  }
 0x54f   :  { %4633 = vmatpush1.bf16.msra.mxu1 %v15240_v54  ;;  %4715 = vmatpush1.bf16.msra.mxu0 %v15243_v56  ;;  %v15291_v54 = vld [vmem:[#allocation12 + $0x2c8] ss:$16 sps:$4 sm:$0xff]   ;;  %v15296_v56 = vld [vmem:[#allocation12 + $0x2e4] ss:$16 sps:$4 sm:$0xff]  }
 0x550   :  { %4634 = vmatprep.subr.bf16.mxu1 %v15248_v48  ;;  %4716 = vmatprep.subr.bf16.mxu0 %v15251_v57  ;;  %v15299_v48 = vld [vmem:[#allocation12 + $0x2ec] ss:$16 sps:$4 sm:$0xff]   ;;  %v15294_v57 = vld [vmem:[#allocation12 + $0x2e0] ss:$16 sps:$4 sm:$0xff]  }
 0x553   :  { %4635 = vmatpush1.bf16.msra.mxu1 %v15246_v30  ;;  %4717 = vmatpush1.bf16.msra.mxu0 %v15249_v58  ;;  %v15297_v30 = vld [vmem:[#allocation12 + $0x2e8] ss:$16 sps:$4 sm:$0xff]   ;;  %v15302_v58 = vld [vmem:[#allocation12 + $0x304] ss:$16 sps:$4 sm:$0xff]  }
 0x554   :  { %4645 = vmatprep.subr.bf16.mxu1 %v15254_v59  ;;  %4727 = vmatprep.subr.bf16.mxu0 %v15257_v60  ;;  %v15305_v59 = vld [vmem:[#allocation12 + $0x30c] ss:$16 sps:$4 sm:$0xff]   ;;  %v15300_v60 = vld [vmem:[#allocation12 + $0x300] ss:$16 sps:$4 sm:$0xff]  }
 0x5e9   :  { %v3660_v0 = vpop.f32.mrb[8].mxu1  ;;  %v18066_v8 = vpop.f32.mrb[16].mxu0 }
 0x5ea   :  { %v14368_v1 = vadd.f32 %v3660_v0, %v2727_v7  ;;  %v3662_v2 = vpop.f32.mrb[9].mxu1  ;;  %v3785_v3 = vpop.f32.mrb[17].mxu0  ;;  %v15303_v7 = vld [vmem:[#allocation12 + $0x308] ss:$16 sps:$4 sm:$0xff]   ;;  %v15306_v0 = vld [vmem:[#allocation12 + $0x320] ss:$16 sps:$4 sm:$0xff]  }
 0x5eb   :  { %v14369_v4 = vadd.f32 %v3662_v2, %v2731_v62  ;;  %v14371_v5 = vadd.f32 %v3785_v3, %v2739_v63  ;;  %v3664_v9 = vpop.f32.mrb[10].mxu1  ;;  %v3787_v10 = vpop.f32.mrb[18].mxu0  ;;  %v15308_v62 = vld [vmem:[#allocation12 + $0x324] ss:$16 sps:$4 sm:$0xff]   ;;  %v15311_v63 = vld [vmem:[#allocation12 + $0x32c] ss:$16 sps:$4 sm:$0xff]  }
 0x5ec   :  { %vm3790_vm5 = vcmp.ge.f32.partialorder %v14368_v1, 0.0  ;;  %v3794_v11 = vmul.f32 0.2, %v14368_v1  ;;  %v3665_v19 = vpop.f32.mrb[11].mxu1  ;;  %v3788_v20 = vpop.f32.mrb[19].mxu0 }
 0x5ed   :  { %vm3791_vm6 = vcmp.ge.f32.partialorder %v14369_v4, 0.0  ;;  %v3795_v12 = vmul.f32 0.2, %v14369_v4  ;;  %vm3793_vm7 = vcmp.ge.f32.partialorder %v14371_v5, 0.0  ;;  %v3797_v13 = vmul.f32 0.2, %v14371_v5 }
 0x5ee   :  { %v3798_v14 = vsel %vm3790_vm5, %v14368_v1, %v3794_v11  ;;  %v15309_v1 = vld [vmem:[#allocation12 + $0x328] ss:$16 sps:$4 sm:$0xff]   ;;  %v15314_v2 = vld [vmem:[#allocation12 + $0x344] ss:$16 sps:$4 sm:$0xff]   ;;  %v15317_v3 = vld [vmem:[#allocation12 + $0x34c] ss:$16 sps:$4 sm:$0xff]  }
 0x5ef   :  { %v3799_v29 = vsel %vm3791_vm6, %v14369_v4, %v3795_v12  ;;  %v3801_v25 = vsel %vm3793_vm7, %v14371_v5, %v3797_v13  ;;  %v3810_v26 = vpack.c.bf16 %v3798_v14, %v3798_v14  ;;  %v15312_v4 = vld [vmem:[#allocation12 + $0x340] ss:$16 sps:$4 sm:$0xff]   ;;  %v15315_v5 = vld [vmem:[#allocation12 + $0x348] ss:$16 sps:$4 sm:$0xff]   ;;  %v15320_v9 = vld [vmem:[#allocation12 + $0x364] ss:$16 sps:$4 sm:$0xff]  }
 0x5f0   :  { %v3811_v21 = vpack.c.bf16 %v3799_v29, %v3799_v29  ;;  %v3813_v32 = vpack.c.bf16 %v3801_v25, %v3801_v25  ;;  %v15323_v10 = vld [vmem:[#allocation12 + $0x36c] ss:$16 sps:$4 sm:$0xff]   ;;  %v15318_v11 = vld [vmem:[#allocation12 + $0x360] ss:$16 sps:$4 sm:$0xff]   ;;  %v15321_v12 = vld [vmem:[#allocation12 + $0x368] ss:$16 sps:$4 sm:$0xff]  }
 0x5f1   :  { %v15326_v13 = vld [vmem:[#allocation12 + $0x384] ss:$16 sps:$4 sm:$0xff]   ;;  %v15329_v14 = vld [vmem:[#allocation12 + $0x38c] ss:$16 sps:$4 sm:$0xff]   ;;  %v15324_v19 = vld [vmem:[#allocation12 + $0x380] ss:$16 sps:$4 sm:$0xff]  }
 0x5f2   :  { %4636 = vmatprep.mubr.bf16.mxu1 %v3811_v21  ;;  %4718 = vmatprep.mubr.bf16.mxu0 %v3811_v21  ;;  %v15327_v20 = vld [vmem:[#allocation12 + $0x388] ss:$16 sps:$4 sm:$0xff]   ;;  %v15332_v29 = vld [vmem:[#allocation12 + $0x3a4] ss:$16 sps:$4 sm:$0xff]   ;;  %v15335_v21 = vld [vmem:[#allocation12 + $0x3ac] ss:$16 sps:$4 sm:$0xff]  }
 0x5f3   :  { %4637 = vmatmul.mubr.bf16.vlgmr.msra.gmra.mrb[12].mxu1 %v3810_v26  ;;  %4719 = vmatmul.mubr.bf16.vlgmr.msra.gmra.mrb[20].mxu0 %v3810_v26  ;;  %v15333_v25 = vld [vmem:[#allocation12 + $0x3a8] ss:$16 sps:$4 sm:$0xff]   ;;  %v15338_v26 = vld [vmem:[#allocation12 + $0x3c4] ss:$16 sps:$4 sm:$0xff]  }
 0x5f4   :  { %4646 = vmatpush1.bf16.msra.mxu1 %v15252_v22  ;;  %4728 = vmatpush1.bf16.msra.mxu0 %v15255_v23  ;;  %v2735_v22 = vrot.slane %v18058_v61, %v18039_v28  ;;  %v15330_v23 = vld [vmem:[#allocation12 + $0x3a0] ss:$16 sps:$4 sm:$0xff]  }
 0x5f5   :  { %4677 = vmatprep.mubr.bf16.mxu1 %v3813_v32  ;;  %4759 = vmatprep.mubr.bf16.mxu0 %v3813_v32  ;;  %v15336_v32 = vld [vmem:[#allocation12 + $0x3c0] ss:$16 sps:$4 sm:$0xff]  }
 0x5f6   :  { %4647 = vmatprep.subr.bf16.mxu1 %v15260_v27  ;;  %4729 = vmatprep.subr.bf16.mxu0 %v15263_v31  ;;  %v15341_v27 = vld [vmem:[#allocation12 + $0x3cc] ss:$16 sps:$4 sm:$0xff]   ;;  %v14370_v31 = vadd.f32 %v18066_v8, %v2735_v22  ;;  %v15342_v61 = vld [vmem:[#allocation12 + $0x3e0] ss:$16 sps:$4 sm:$0xff]  }
 0x5f7   :  { %v15348_v8 = vld [vmem:[#allocation15] ss:$12 sps:$4 sm:$0xff]   ;;  %v15402_v22 = vld [vmem:[#allocation15 + $0x150] ss:$12 sps:$4 sm:$0xff]  }
 0x5f8   :  { %4648 = vmatpush1.bf16.msra.mxu1 %v15258_v34  ;;  %4730 = vmatpush1.bf16.msra.mxu0 %v15261_v35  ;;  %v15339_v34 = vld [vmem:[#allocation12 + $0x3c8] ss:$16 sps:$4 sm:$0xff]   ;;  %v15344_v35 = vld [vmem:[#allocation12 + $0x3e4] ss:$16 sps:$4 sm:$0xff]   ;;  %vm3792_vm8 = vcmp.ge.f32.partialorder %v14370_v31, 0.0 }
 0x5f9   :  { %4649 = vmatprep.subr.bf16.mxu1 %v15266_v55  ;;  %4731 = vmatprep.subr.bf16.mxu0 %v15269_v37  ;;  %v15347_v55 = vld [vmem:[#allocation12 + $0x3ec] ss:$16 sps:$4 sm:$0xff]   ;;  %v3796_v37 = vmul.f32 0.2, %v14370_v31 }
 0x5fc   :  { %4650 = vmatpush1.bf16.msra.mxu1 %v15264_v33  ;;  %4732 = vmatpush1.bf16.msra.mxu0 %v15267_v39  ;;  %v15345_v33 = vld [vmem:[#allocation12 + $0x3e8] ss:$16 sps:$4 sm:$0xff]  }
 0x5fd   :  { %4651 = vmatprep.subr.bf16.mxu1 %v15272_v40  ;;  %4733 = vmatprep.subr.bf16.mxu0 %v15275_v41  ;;  %v15350_v39 = vld [vmem:[#allocation15 + $0x4] ss:$12 sps:$4 sm:$0xff]   ;;  %v15375_v40 = vld [vmem:[#allocation15 + $0xc8] ss:$12 sps:$4 sm:$0xff]   ;;  %v3800_v41 = vsel %vm3792_vm8, %v14370_v31, %v3796_v37 }
 0x5fe   :  { %v15411_v31 = vld [vmem:[#allocation15 + $0xb0] ss:$12 sps:$4 sm:$0xff]  }
 0x600   :  { %4652 = vmatpush1.bf16.msra.mxu1 %v15270_v42  ;;  %4734 = vmatpush1.bf16.msra.mxu0 %v15273_v43  ;;  %v15376_v42 = vld [vmem:[#allocation15 + $0x8] ss:$12 sps:$4 sm:$0xff]   ;;  %v3812_v43 = vpack.c.bf16 %v3800_v41, %v3800_v41 }
 0x601   :  { %4653 = vmatprep.subr.bf16.mxu1 %v15278_v44  ;;  %4735 = vmatprep.subr.bf16.mxu0 %v15281_v45  ;;  %v15353_v44 = vld [vmem:[#allocation15 + $0x1c] ss:$12 sps:$4 sm:$0xff]   ;;  %v15380_v45 = vld [vmem:[#allocation15 + $0xe0] ss:$12 sps:$4 sm:$0xff]  }
 0x604   :  { %4654 = vmatpush1.bf16.msra.mxu1 %v15276_v46  ;;  %4736 = vmatpush1.bf16.msra.mxu0 %v15279_v18  ;;  %v15351_v46 = vld [vmem:[#allocation15 + $0x18] ss:$12 sps:$4 sm:$0xff]   ;;  %v15381_v18 = vld [vmem:[#allocation15 + $0x20] ss:$12 sps:$4 sm:$0xff]  }
 0x605   :  { %4655 = vmatprep.subr.bf16.mxu1 %v15284_v47  ;;  %4737 = vmatprep.subr.bf16.mxu0 %v15287_v49  ;;  %v15356_v47 = vld [vmem:[#allocation15 + $0x34] ss:$12 sps:$4 sm:$0xff]   ;;  %v15385_v49 = vld [vmem:[#allocation15 + $0xf8] ss:$12 sps:$4 sm:$0xff]  }
 0x608   :  { %4656 = vmatpush1.bf16.msra.mxu1 %v15282_v50  ;;  %4738 = vmatpush1.bf16.msra.mxu0 %v15285_v51  ;;  %v15354_v50 = vld [vmem:[#allocation15 + $0x30] ss:$12 sps:$4 sm:$0xff]   ;;  %v15386_v51 = vld [vmem:[#allocation15 + $0x38] ss:$12 sps:$4 sm:$0xff]  }
 0x609   :  { %4657 = vmatprep.subr.bf16.mxu1 %v15290_v52  ;;  %4739 = vmatprep.subr.bf16.mxu0 %v15293_v53  ;;  %v15359_v52 = vld [vmem:[#allocation15 + $0x4c] ss:$12 sps:$4 sm:$0xff]   ;;  %v15390_v53 = vld [vmem:[#allocation15 + $0x110] ss:$12 sps:$4 sm:$0xff]  }
 0x60c   :  { %4658 = vmatpush1.bf16.msra.mxu1 %v15288_v38  ;;  %4740 = vmatpush1.bf16.msra.mxu0 %v15291_v54  ;;  %v15357_v38 = vld [vmem:[#allocation15 + $0x48] ss:$12 sps:$4 sm:$0xff]   ;;  %v15391_v54 = vld [vmem:[#allocation15 + $0x50] ss:$12 sps:$4 sm:$0xff]  }
 0x60d   :  { %4659 = vmatprep.subr.bf16.mxu1 %v15296_v56  ;;  %4741 = vmatprep.subr.bf16.mxu0 %v15299_v48  ;;  %v15362_v56 = vld [vmem:[#allocation15 + $0x64] ss:$12 sps:$4 sm:$0xff]   ;;  %v15395_v48 = vld [vmem:[#allocation15 + $0x128] ss:$12 sps:$4 sm:$0xff]  }
 0x610   :  { %4660 = vmatpush1.bf16.msra.mxu1 %v15294_v57  ;;  %4742 = vmatpush1.bf16.msra.mxu0 %v15297_v30  ;;  %v15360_v57 = vld [vmem:[#allocation15 + $0x60] ss:$12 sps:$4 sm:$0xff]   ;;  %v15396_v30 = vld [vmem:[#allocation15 + $0x68] ss:$12 sps:$4 sm:$0xff]  }
 0x611   :  { %4661 = vmatprep.subr.bf16.mxu1 %v15302_v58  ;;  %4743 = vmatprep.subr.bf16.mxu0 %v15305_v59  ;;  %v15365_v58 = vld [vmem:[#allocation15 + $0x7c] ss:$12 sps:$4 sm:$0xff]   ;;  %v15400_v59 = vld [vmem:[#allocation15 + $0x140] ss:$12 sps:$4 sm:$0xff]  }
 0x614   :  { %4662 = vmatpush1.bf16.msra.mxu1 %v15300_v60  ;;  %4744 = vmatpush1.bf16.msra.mxu0 %v15303_v7  ;;  %v15363_v60 = vld [vmem:[#allocation15 + $0x78] ss:$12 sps:$4 sm:$0xff]   ;;  %v15401_v7 = vld [vmem:[#allocation15 + $0x80] ss:$12 sps:$4 sm:$0xff]  }
 0x615   :  { %4663 = vmatprep.subr.bf16.mxu1 %v15308_v62  ;;  %4745 = vmatprep.subr.bf16.mxu0 %v15311_v63  ;;  %v15368_v62 = vld [vmem:[#allocation15 + $0x94] ss:$12 sps:$4 sm:$0xff]   ;;  %v15366_v63 = vld [vmem:[#allocation15 + $0x90] ss:$12 sps:$4 sm:$0xff]  }
 0x618   :  { %4664 = vmatpush1.bf16.msra.mxu1 %v15306_v0  ;;  %4746 = vmatpush1.bf16.msra.mxu0 %v15309_v1  ;;  %v15371_v0 = vld [vmem:[#allocation15 + $0xac] ss:$12 sps:$4 sm:$0xff]   ;;  %v15369_v1 = vld [vmem:[#allocation15 + $0xa8] ss:$12 sps:$4 sm:$0xff]  }
 0x619   :  { %4665 = vmatprep.subr.bf16.mxu1 %v15314_v2  ;;  %4747 = vmatprep.subr.bf16.mxu0 %v15317_v3  ;;  %v15374_v2 = vld [vmem:[#allocation15 + $0xc4] ss:$12 sps:$4 sm:$0xff]   ;;  %v15372_v3 = vld [vmem:[#allocation15 + $0xc0] ss:$12 sps:$4 sm:$0xff]  }
 0x61c   :  { %4666 = vmatpush1.bf16.msra.mxu1 %v15312_v4  ;;  %4748 = vmatpush1.bf16.msra.mxu0 %v15315_v5  ;;  %v15379_v4 = vld [vmem:[#allocation15 + $0xdc] ss:$12 sps:$4 sm:$0xff]   ;;  %v15377_v5 = vld [vmem:[#allocation15 + $0xd8] ss:$12 sps:$4 sm:$0xff]  }
 0x61d   :  { %4667 = vmatprep.subr.bf16.mxu1 %v15320_v9  ;;  %4749 = vmatprep.subr.bf16.mxu0 %v15323_v10  ;;  %v15384_v9 = vld [vmem:[#allocation15 + $0xf4] ss:$12 sps:$4 sm:$0xff]   ;;  %v15382_v10 = vld [vmem:[#allocation15 + $0xf0] ss:$12 sps:$4 sm:$0xff]  }
 0x620   :  { %4668 = vmatpush1.bf16.msra.mxu1 %v15318_v11  ;;  %4750 = vmatpush1.bf16.msra.mxu0 %v15321_v12  ;;  %v15389_v11 = vld [vmem:[#allocation15 + $0x10c] ss:$12 sps:$4 sm:$0xff]   ;;  %v15387_v12 = vld [vmem:[#allocation15 + $0x108] ss:$12 sps:$4 sm:$0xff]  }
 0x621   :  { %4669 = vmatprep.subr.bf16.mxu1 %v15326_v13  ;;  %4751 = vmatprep.subr.bf16.mxu0 %v15329_v14  ;;  %v15394_v13 = vld [vmem:[#allocation15 + $0x124] ss:$12 sps:$4 sm:$0xff]   ;;  %v15392_v14 = vld [vmem:[#allocation15 + $0x120] ss:$12 sps:$4 sm:$0xff]  }
 0x624   :  { %4670 = vmatpush1.bf16.msra.mxu1 %v15324_v19  ;;  %4752 = vmatpush1.bf16.msra.mxu0 %v15327_v20  ;;  %v15399_v19 = vld [vmem:[#allocation15 + $0x13c] ss:$12 sps:$4 sm:$0xff]   ;;  %v15397_v20 = vld [vmem:[#allocation15 + $0x138] ss:$12 sps:$4 sm:$0xff]  }
 0x625   :  { %4671 = vmatprep.subr.bf16.mxu1 %v15332_v29  ;;  %4753 = vmatprep.subr.bf16.mxu0 %v15335_v21  ;;  %v15404_v29 = vld [vmem:[#allocation15 + $0x154] ss:$12 sps:$4 sm:$0xff]   ;;  %v15405_v21 = vld [vmem:[#allocation15 + $0x158] ss:$12 sps:$4 sm:$0xff]  }
 0x628   :  { %4672 = vmatpush1.bf16.msra.mxu1 %v15330_v23  ;;  %4754 = vmatpush1.bf16.msra.mxu0 %v15333_v25  ;;  %v15406_v23 = vld [vmem:[#allocation15 + $0x98] ss:$12 sps:$4 sm:$0xff]  }
 0x629   :  { %4673 = vmatprep.subr.bf16.mxu1 %v15338_v26  ;;  %4755 = vmatprep.subr.bf16.mxu0 %v15341_v27  ;;  %v15409_v25 = vld [vmem:[#allocation15 + $0x16c] ss:$12 sps:$4 sm:$0xff]   ;;  %v15410_v26 = vld [vmem:[#allocation15 + $0x170] ss:$12 sps:$4 sm:$0xff]   ;;  %v15407_v27 = vld [vmem:[#allocation15 + $0x168] ss:$12 sps:$4 sm:$0xff]  }
 0x62c   :  { %4674 = vmatpush1.bf16.msra.mxu1 %v15336_v32  ;;  %4756 = vmatpush1.bf16.msra.mxu0 %v15339_v34  ;;  %v15414_v32 = vld [vmem:[#allocation15 + $0x184] ss:$12 sps:$4 sm:$0xff]   ;;  %v15415_v34 = vld [vmem:[#allocation15 + $0x248] ss:$12 sps:$4 sm:$0xff]  }
 0x62d   :  { %4675 = vmatprep.subr.bf16.mxu1 %v15344_v35  ;;  %4757 = vmatprep.subr.bf16.mxu0 %v15347_v55  ;;  %v18071_v35 = vld [vmem:[#allocation13] sm:$0xf] }
 0x62e   :  { %v3947_v55 = vrot.slane %v18071_v35, %v18025_v16  ;;  %v3951_v37 = vrot.slane %v18071_v35, %v18028_v17 }
 0x630   :  { %4676 = vmatpush1.bf16.msra.mxu1 %v15342_v61  ;;  %4758 = vmatpush1.bf16.msra.mxu0 %v15345_v33  ;;  %v3959_v61 = vrot.slane %v18071_v35, %v18042_v36 }
 0x631   :  { %5449 = vmatprep.subr.bf16.mxu1 %v15350_v39  ;;  %14085 = vmatprep.subr.bf16.mxu0 %v15375_v40 }
 0x633   :  { %4678 = vmatmul.mubr.bf16.vlgmr.msra.gmra.mrb[12].mxu1 %v3812_v43  ;;  %4760 = vmatmul.mubr.bf16.vlgmr.msra.gmra.mrb[20].mxu0 %v3812_v43 }
 0x634   :  { %5450 = vmatpush1.bf16.msra.mxu1 %v15348_v8  ;;  %14086 = vmatpush3.bf16.msra.mxu0 %v15376_v42 }
 0x635   :  { %5451 = vmatprep.subr.bf16.mxu1 %v15353_v44  ;;  %14087 = vmatprep.subr.bf16.mxu0 %v15380_v45 }
 0x638   :  { %5452 = vmatpush1.bf16.msra.mxu1 %v15351_v46  ;;  %14088 = vmatpush3.bf16.msra.mxu0 %v15381_v18 }
 0x639   :  { %5453 = vmatprep.subr.bf16.mxu1 %v15356_v47  ;;  %14089 = vmatprep.subr.bf16.mxu0 %v15385_v49 }
 0x63c   :  { %5454 = vmatpush1.bf16.msra.mxu1 %v15354_v50  ;;  %14090 = vmatpush3.bf16.msra.mxu0 %v15386_v51 }
 0x63d   :  { %5455 = vmatprep.subr.bf16.mxu1 %v15359_v52  ;;  %14091 = vmatprep.subr.bf16.mxu0 %v15390_v53 }
 0x640   :  { %5456 = vmatpush1.bf16.msra.mxu1 %v15357_v38  ;;  %14092 = vmatpush3.bf16.msra.mxu0 %v15391_v54  ;;  %v15412_v38 = vld [vmem:[#allocation15 + $0x180] ss:$12 sps:$4 sm:$0xff]   ;;  %v15416_v54 = vld [vmem:[#allocation15 + $0x188] ss:$12 sps:$4 sm:$0xff]  }
 0x641   :  { %5457 = vmatprep.subr.bf16.mxu1 %v15362_v56  ;;  %14093 = vmatprep.subr.bf16.mxu0 %v15395_v48 }
 0x644   :  { %5458 = vmatpush1.bf16.msra.mxu1 %v15360_v57  ;;  %14094 = vmatpush3.bf16.msra.mxu0 %v15396_v30  ;;  %v15419_v57 = vld [vmem:[#allocation15 + $0x19c] ss:$12 sps:$4 sm:$0xff]   ;;  %v15420_v30 = vld [vmem:[#allocation15 + $0x260] ss:$12 sps:$4 sm:$0xff]  }
 0x645   :  { %5459 = vmatprep.subr.bf16.mxu1 %v15365_v58  ;;  %14095 = vmatprep.subr.bf16.mxu0 %v15400_v59  ;;  %v15417_v59 = vld [vmem:[#allocation15 + $0x198] ss:$12 sps:$4 sm:$0xff]  }
 0x648   :  { %5460 = vmatpush1.bf16.msra.mxu1 %v15363_v60  ;;  %14096 = vmatpush3.bf16.msra.mxu0 %v15401_v7  ;;  %v15421_v60 = vld [vmem:[#allocation15 + $0x1a0] ss:$12 sps:$4 sm:$0xff]  }
 0x649   :  { %5461 = vmatprep.subr.bf16.mxu1 %v15368_v62  ;;  %14097 = vmatprep.subr.bf16.mxu0 %v15405_v21  ;;  %v15424_v7 = vld [vmem:[#allocation15 + $0x1b4] ss:$12 sps:$4 sm:$0xff]   ;;  %v15425_v62 = vld [vmem:[#allocation15 + $0x278] ss:$12 sps:$4 sm:$0xff]  }
 0x64a   :  { %v15445_v21 = vld [vmem:[#allocation15 + $0x2d8] ss:$12 sps:$4 sm:$0xff]  }
 0x64c   :  { %5462 = vmatpush1.bf16.msra.mxu1 %v15366_v63  ;;  %14098 = vmatpush3.bf16.msra.mxu0 %v15406_v23  ;;  %v15422_v63 = vld [vmem:[#allocation15 + $0x1b0] ss:$12 sps:$4 sm:$0xff]  }
 0x64d   :  { %5463 = vmatprep.subr.bf16.mxu1 %v15371_v0  ;;  %14099 = vmatprep.subr.bf16.mxu0 %v15410_v26  ;;  %v15426_v0 = vld [vmem:[#allocation15 + $0x1b8] ss:$12 sps:$4 sm:$0xff]   ;;  %v15442_v23 = vld [vmem:[#allocation15 + $0x210] ss:$12 sps:$4 sm:$0xff]  }
 0x64e   :  { %v15449_v26 = vld [vmem:[#allocation15 + $0x22c] ss:$12 sps:$4 sm:$0xff]  }
 0x650   :  { %5464 = vmatpush1.bf16.msra.mxu1 %v15369_v1  ;;  %14100 = vmatpush3.bf16.msra.mxu0 %v15411_v31  ;;  %v15429_v1 = vld [vmem:[#allocation15 + $0x1cc] ss:$12 sps:$4 sm:$0xff]  }
 0x651   :  { %5465 = vmatprep.subr.bf16.mxu1 %v15374_v2  ;;  %14107 = vmatprep.subr.bf16.mxu0 %v15415_v34  ;;  %v15430_v2 = vld [vmem:[#allocation15 + $0x290] ss:$12 sps:$4 sm:$0xff]  }
 0x652   :  { %v15451_v34 = vld [vmem:[#allocation15 + $0x230] ss:$12 sps:$4 sm:$0xff]  }
 0x654   :  { %5466 = vmatpush1.bf16.msra.mxu1 %v15372_v3  ;;  %v15427_v3 = vld [vmem:[#allocation15 + $0x1c8] ss:$12 sps:$4 sm:$0xff]  }
 0x655   :  { %5467 = vmatprep.subr.bf16.mxu1 %v15379_v4  ;;  %v15431_v4 = vld [vmem:[#allocation15 + $0x1d0] ss:$12 sps:$4 sm:$0xff]  }
 0x658   :  { %5468 = vmatpush1.bf16.msra.mxu1 %v15377_v5  ;;  %v15434_v5 = vld [vmem:[#allocation15 + $0x1e4] ss:$12 sps:$4 sm:$0xff]  }
 0x659   :  { %5469 = vmatprep.subr.bf16.mxu1 %v15384_v9  ;;  %v15435_v9 = vld [vmem:[#allocation15 + $0x2a8] ss:$12 sps:$4 sm:$0xff]  }
 0x65c   :  { %5470 = vmatpush1.bf16.msra.mxu1 %v15382_v10  ;;  %v15432_v10 = vld [vmem:[#allocation15 + $0x1e0] ss:$12 sps:$4 sm:$0xff]  }
 0x65d   :  { %5471 = vmatprep.subr.bf16.mxu1 %v15389_v11  ;;  %v15436_v11 = vld [vmem:[#allocation15 + $0x1e8] ss:$12 sps:$4 sm:$0xff]  }
 0x660   :  { %5472 = vmatpush1.bf16.msra.mxu1 %v15387_v12  ;;  %v15439_v12 = vld [vmem:[#allocation15 + $0x1fc] ss:$12 sps:$4 sm:$0xff]  }
 0x661   :  { %5473 = vmatprep.subr.bf16.mxu1 %v15394_v13  ;;  %v15440_v13 = vld [vmem:[#allocation15 + $0x2c0] ss:$12 sps:$4 sm:$0xff]  }
 0x664   :  { %5474 = vmatpush1.bf16.msra.mxu1 %v15392_v14  ;;  %v3955_v14 = vrot.slane %v18071_v35, %v18039_v28  ;;  %v15454_v35 = vld [vmem:[#allocation15 + $0x244] ss:$12 sps:$4 sm:$0xff]  }
 0x665   :  { %5475 = vmatprep.subr.bf16.mxu1 %v15399_v19  ;;  %v15437_v19 = vld [vmem:[#allocation15 + $0x1f8] ss:$12 sps:$4 sm:$0xff]  }
 0x668   :  { %5476 = vmatpush1.bf16.msra.mxu1 %v15397_v20  ;;  %v15441_v20 = vld [vmem:[#allocation15 + $0x200] ss:$12 sps:$4 sm:$0xff]  }
 0x669   :  { %5477 = vmatprep.subr.bf16.mxu1 %v15404_v29  ;;  %v15444_v29 = vld [vmem:[#allocation15 + $0x214] ss:$12 sps:$4 sm:$0xff]  }
 0x66c   :  { %5478 = vmatpush1.bf16.msra.mxu1 %v15402_v22 }
 0x66d   :  { %5479 = vmatprep.subr.bf16.mxu1 %v15409_v25  ;;  %v15446_v25 = vld [vmem:[#allocation15 + $0x218] ss:$12 sps:$4 sm:$0xff]  }
 0x670   :  { %5480 = vmatpush1.bf16.msra.mxu1 %v15407_v27  ;;  %v15450_v27 = vld [vmem:[#allocation15 + $0x2f0] ss:$12 sps:$4 sm:$0xff]  }
 0x671   :  { %5490 = vmatprep.subr.bf16.mxu1 %v15414_v32  ;;  %v15447_v32 = vld [vmem:[#allocation15 + $0x228] ss:$12 sps:$4 sm:$0xff]  }
 0x706   :  { %v4679_v33 = vpop.f32.mrb[12].mxu1  ;;  %v18079_v39 = vpop.f32.mrb[20].mxu0 }
 0x707   :  { %v14372_v40 = vadd.f32 %v4679_v33, %v3947_v55  ;;  %v4681_v41 = vpop.f32.mrb[13].mxu1  ;;  %v4763_v8 = vpop.f32.mrb[21].mxu0  ;;  %v14374_v22 = vadd.f32 %v18079_v39, %v3955_v14  ;;  %v15457_v33 = vld [vmem:[#allocation15 + $0x25c] ss:$12 sps:$4 sm:$0xff]   ;;  %v15455_v39 = vld [vmem:[#allocation15 + $0x258] ss:$12 sps:$4 sm:$0xff]  }
 0x708   :  { %v14373_v42 = vadd.f32 %v4681_v41, %v3951_v37  ;;  %v14375_v43 = vadd.f32 %v4763_v8, %v3959_v61  ;;  %v4683_v44 = vpop.f32.mrb[14].mxu1  ;;  %v4765_v45 = vpop.f32.mrb[22].mxu0  ;;  %v15452_v37 = vld [vmem:[#allocation15 + $0x240] ss:$12 sps:$4 sm:$0xff]   ;;  %v15458_v41 = vld [vmem:[#allocation15 + $0x270] ss:$12 sps:$4 sm:$0xff]  }
 0x709   :  { %vm4768_vm9 = vcmp.ge.f32.partialorder %v14372_v40, 0.0  ;;  %v4772_v46 = vmul.f32 0.2, %v14372_v40  ;;  %v4684_v50 = vpop.f32.mrb[15].mxu1  ;;  %v4766_v51 = vpop.f32.mrb[23].mxu0  ;;  %vm4770_vm12 = vcmp.ge.f32.partialorder %v14374_v22, 0.0 }
 0x70a   :  { %vm4769_vm10 = vcmp.ge.f32.partialorder %v14373_v42, 0.0  ;;  %v4773_v18 = vmul.f32 0.2, %v14373_v42  ;;  %vm4771_vm11 = vcmp.ge.f32.partialorder %v14375_v43, 0.0  ;;  %v4775_v47 = vmul.f32 0.2, %v14375_v43 }
 0x70b   :  { %v4776_v49 = vsel %vm4768_vm9, %v14372_v40, %v4772_v46  ;;  %v4774_v31 = vmul.f32 0.2, %v14374_v22  ;;  %v15460_v40 = vld [vmem:[#allocation15 + $0x274] ss:$12 sps:$4 sm:$0xff]   ;;  %v15463_v8 = vld [vmem:[#allocation15 + $0x28c] ss:$12 sps:$4 sm:$0xff]  }
 0x70c   :  { %v4777_v52 = vsel %vm4769_vm10, %v14373_v42, %v4773_v18  ;;  %v4779_v56 = vsel %vm4771_vm11, %v14375_v43, %v4775_v47  ;;  %v4788_v48 = vpack.c.bf16 %v4776_v49, %v4776_v49  ;;  %v15461_v42 = vld [vmem:[#allocation15 + $0x288] ss:$12 sps:$4 sm:$0xff]   ;;  %v15466_v43 = vld [vmem:[#allocation15 + $0x2a4] ss:$12 sps:$4 sm:$0xff]   ;;  %v15464_v44 = vld [vmem:[#allocation15 + $0x2a0] ss:$12 sps:$4 sm:$0xff]  }
 0x70d   :  { %v4789_v53 = vpack.c.bf16 %v4777_v52, %v4777_v52  ;;  %v4791_v58 = vpack.c.bf16 %v4779_v56, %v4779_v56  ;;  %v4778_v55 = vsel %vm4770_vm12, %v14374_v22, %v4774_v31  ;;  %v15469_v45 = vld [vmem:[#allocation15 + $0x2bc] ss:$12 sps:$4 sm:$0xff]   ;;  %v15467_v46 = vld [vmem:[#allocation15 + $0x2b8] ss:$12 sps:$4 sm:$0xff]   ;;  %v15472_v18 = vld [vmem:[#allocation15 + $0x2d4] ss:$12 sps:$4 sm:$0xff]  }
 0x70e   :  { %v4790_v61 = vpack.c.bf16 %v4778_v55, %v4778_v55  ;;  %v15470_v47 = vld [vmem:[#allocation15 + $0x2d0] ss:$12 sps:$4 sm:$0xff]   ;;  %v15475_v49 = vld [vmem:[#allocation15 + $0x2ec] ss:$12 sps:$4 sm:$0xff]   ;;  %v15473_v50 = vld [vmem:[#allocation15 + $0x2e8] ss:$12 sps:$4 sm:$0xff]  }
 0x70f   :  { %5481 = vmatprep.mubr.bf16.mxu1 %v4789_v53  ;;  %5563 = vmatprep.mubr.bf16.mxu0 %v4789_v53  ;;  %v15476_v51 = vld [vmem:[#allocation18] ss:$8 sps:$4 sm:$0xff]   ;;  %v15478_v52 = vld [vmem:[#allocation18 + $0x4] ss:$8 sps:$4 sm:$0xff]   ;;  %v15481_v53 = vld [vmem:[#allocation18 + $0x14] ss:$8 sps:$4 sm:$0xff]  }
 0x710   :  { %5482 = vmatmul.mubr.bf16.vlgmr.msra.gmra.mrb[16].mxu1 %v4788_v48  ;;  %5564 = vmatmul.mubr.bf16.vlgmr.msra.gmra.mrb[24].mxu0 %v4788_v48  ;;  %v15482_v56 = vld [vmem:[#allocation18 + $0x20] ss:$8 sps:$4 sm:$0xff]   ;;  %v15487_v48 = vld [vmem:[#allocation18 + $0x34] ss:$8 sps:$4 sm:$0xff]   ;;  %v15521_v22 = vld [vmem:[#allocation18 + $0xf0] ss:$8 sps:$4 sm:$0xff]  }
 0x711   :  { %5491 = vmatpush1.bf16.msra.mxu1 %v15412_v38  ;;  %14108 = vmatpush3.bf16.msra.mxu0 %v15416_v54  ;;  %v15479_v38 = vld [vmem:[#allocation18 + $0x10] ss:$8 sps:$4 sm:$0xff]   ;;  %v15484_v54 = vld [vmem:[#allocation18 + $0x24] ss:$8 sps:$4 sm:$0xff]   ;;  %v15517_v14 = vld [vmem:[#allocation18 + $0xd4] ss:$8 sps:$4 sm:$0xff]  }
 0x712   :  { %5522 = vmatprep.mubr.bf16.mxu1 %v4791_v58  ;;  %5603 = vmatprep.mubr.bf16.mxu0 %v4791_v58  ;;  %v15488_v58 = vld [vmem:[#allocation18 + $0x40] ss:$8 sps:$4 sm:$0xff]   ;;  %v15551_v31 = vld [vmem:[%s18348_s4 + $0x8] sm:$0xff]  }
 0x713   :  { %5492 = vmatprep.subr.bf16.mxu1 %v15419_v57  ;;  %14109 = vmatprep.subr.bf16.mxu0 %v15420_v30  ;;  %v15485_v57 = vld [vmem:[#allocation18 + $0x30] ss:$8 sps:$4 sm:$0xff]   ;;  %v15490_v30 = vld [vmem:[#allocation18 + $0x44] ss:$8 sps:$4 sm:$0xff]  }
 0x714   :  { %v15555_v55 = vld [vmem:[%s18348_s4 + $0x18] sm:$0xff]  }
 0x715   :  { %5493 = vmatpush1.bf16.msra.mxu1 %v15417_v59  ;;  %14110 = vmatpush3.bf16.msra.mxu0 %v15421_v60  ;;  %v15493_v59 = vld [vmem:[#allocation18 + $0x54] ss:$8 sps:$4 sm:$0xff]   ;;  %v15491_v60 = vld [vmem:[#allocation18 + $0x50] ss:$8 sps:$4 sm:$0xff]  }
 0x716   :  { %5494 = vmatprep.subr.bf16.mxu1 %v15424_v7  ;;  %14111 = vmatprep.subr.bf16.mxu0 %v15425_v62  ;;  %v15496_v7 = vld [vmem:[#allocation18 + $0x64] ss:$8 sps:$4 sm:$0xff]   ;;  %v15494_v62 = vld [vmem:[#allocation18 + $0x60] ss:$8 sps:$4 sm:$0xff]  }
 0x719   :  { %5495 = vmatpush1.bf16.msra.mxu1 %v15422_v63  ;;  %14112 = vmatpush3.bf16.msra.mxu0 %v15426_v0  ;;  %v15499_v63 = vld [vmem:[#allocation18 + $0x74] ss:$8 sps:$4 sm:$0xff]   ;;  %v15497_v0 = vld [vmem:[#allocation18 + $0x70] ss:$8 sps:$4 sm:$0xff]  }
 0x71a   :  { %5496 = vmatprep.subr.bf16.mxu1 %v15429_v1  ;;  %14113 = vmatprep.subr.bf16.mxu0 %v15430_v2  ;;  %v15502_v1 = vld [vmem:[#allocation18 + $0x84] ss:$8 sps:$4 sm:$0xff]   ;;  %v15500_v2 = vld [vmem:[#allocation18 + $0x80] ss:$8 sps:$4 sm:$0xff]  }
 0x71d   :  { %5497 = vmatpush1.bf16.msra.mxu1 %v15427_v3  ;;  %14114 = vmatpush3.bf16.msra.mxu0 %v15431_v4  ;;  %v15505_v3 = vld [vmem:[#allocation18 + $0x94] ss:$8 sps:$4 sm:$0xff]   ;;  %v15503_v4 = vld [vmem:[#allocation18 + $0x90] ss:$8 sps:$4 sm:$0xff]  }
 0x71e   :  { %5498 = vmatprep.subr.bf16.mxu1 %v15434_v5  ;;  %14115 = vmatprep.subr.bf16.mxu0 %v15435_v9  ;;  %v15508_v5 = vld [vmem:[#allocation18 + $0xa4] ss:$8 sps:$4 sm:$0xff]   ;;  %v15506_v9 = vld [vmem:[#allocation18 + $0xa0] ss:$8 sps:$4 sm:$0xff]  }
 0x721   :  { %5499 = vmatpush1.bf16.msra.mxu1 %v15432_v10  ;;  %14116 = vmatpush3.bf16.msra.mxu0 %v15436_v11  ;;  %v15511_v10 = vld [vmem:[#allocation18 + $0xb4] ss:$8 sps:$4 sm:$0xff]   ;;  %v15509_v11 = vld [vmem:[#allocation18 + $0xb0] ss:$8 sps:$4 sm:$0xff]  }
 0x722   :  { %5500 = vmatprep.subr.bf16.mxu1 %v15439_v12  ;;  %14117 = vmatprep.subr.bf16.mxu0 %v15440_v13  ;;  %v15514_v12 = vld [vmem:[#allocation18 + $0xc4] ss:$8 sps:$4 sm:$0xff]   ;;  %v15512_v13 = vld [vmem:[#allocation18 + $0xc0] ss:$8 sps:$4 sm:$0xff]  }
 0x725   :  { %5501 = vmatpush1.bf16.msra.mxu1 %v15437_v19  ;;  %14118 = vmatpush3.bf16.msra.mxu0 %v15441_v20  ;;  %v15515_v19 = vld [vmem:[#allocation18 + $0xd0] ss:$8 sps:$4 sm:$0xff]   ;;  %v15520_v20 = vld [vmem:[#allocation18 + $0xe4] ss:$8 sps:$4 sm:$0xff]  }
 0x726   :  { %5502 = vmatprep.subr.bf16.mxu1 %v15444_v29  ;;  %14119 = vmatprep.subr.bf16.mxu0 %v15445_v21  ;;  %v15518_v29 = vld [vmem:[#allocation18 + $0xe0] ss:$8 sps:$4 sm:$0xff]   ;;  %v15523_v21 = vld [vmem:[#allocation18 + $0xf4] ss:$8 sps:$4 sm:$0xff]  }
 0x729   :  { %5503 = vmatpush1.bf16.msra.mxu1 %v15442_v23  ;;  %14120 = vmatpush3.bf16.msra.mxu0 %v15446_v25  ;;  %v15526_v23 = vld [vmem:[#allocation18 + $0x104] ss:$8 sps:$4 sm:$0xff]  }
 0x72a   :  { %5504 = vmatprep.subr.bf16.mxu1 %v15449_v26  ;;  %14121 = vmatprep.subr.bf16.mxu0 %v15450_v27  ;;  %v15548_v25 = vld [vmem:[%s18348_s4 + $0x40] sm:$0xff]   ;;  %v15550_v27 = vld [vmem:[%s18348_s4 + $0x48] sm:$0xff]  }
 0x72b   :  { %v15549_v26 = vld [vmem:[%s18348_s4] sm:$0xff]  }
 0x72d   :  { %5505 = vmatpush1.bf16.msra.mxu1 %v15447_v32  ;;  %14122 = vmatpush3.bf16.msra.mxu0 %v15451_v34  ;;  %v15552_v32 = vld [vmem:[%s18348_s4 + $0x50] sm:$0xff]  }
 0x72e   :  { %5506 = vmatprep.subr.bf16.mxu1 %v15454_v35  ;;  %5929 = vmatprep.subr.bf16.mxu0 %v15478_v52  ;;  %v15553_v34 = vld [vmem:[%s18348_s4 + $0x10] sm:$0xff]   ;;  %v15554_v35 = vld [vmem:[%s18348_s4 + $0x58] sm:$0xff]  }
 0x730   :  { %5604 = vmatmul.mubr.bf16.vlgmr.msra.gmra.mrb[28].mxu0 %v4790_v61 }
 0x731   :  { %5507 = vmatpush1.bf16.msra.mxu1 %v15452_v37  ;;  %5930 = vmatpush1.bf16.msra.mxu0 %v15476_v51  ;;  %v15556_v37 = vld [vmem:[%s18348_s4 + $0x60] sm:$0xff]  }
 0x732   :  { %5508 = vmatprep.subr.bf16.mxu1 %v15457_v33  ;;  %5931 = vmatprep.subr.bf16.mxu0 %v15481_v53  ;;  %v15558_v33 = vld [vmem:[%s18348_s4 + $0x68] sm:$0xff]  }
 0x735   :  { %5509 = vmatpush1.bf16.msra.mxu1 %v15455_v39  ;;  %5932 = vmatpush1.bf16.msra.mxu0 %v15479_v38  ;;  %v15559_v39 = vld [vmem:[%s18348_s4 + $0x28] sm:$0xff]  }
 0x736   :  { %5510 = vmatprep.subr.bf16.mxu1 %v15460_v40  ;;  %5933 = vmatprep.subr.bf16.mxu0 %v15484_v54 }
 0x739   :  { %5511 = vmatpush1.bf16.msra.mxu1 %v15458_v41  ;;  %5934 = vmatpush1.bf16.msra.mxu0 %v15482_v56 }
 0x73a   :  { %5512 = vmatprep.subr.bf16.mxu1 %v15463_v8  ;;  %5935 = vmatprep.subr.bf16.mxu0 %v15487_v48 }
 0x73d   :  { %5513 = vmatpush1.bf16.msra.mxu1 %v15461_v42  ;;  %5936 = vmatpush1.bf16.msra.mxu0 %v15485_v57 }
 0x73e   :  { %5514 = vmatprep.subr.bf16.mxu1 %v15466_v43  ;;  %5937 = vmatprep.subr.bf16.mxu0 %v15490_v30 }
 0x741   :  { %5515 = vmatpush1.bf16.msra.mxu1 %v15464_v44  ;;  %5938 = vmatpush1.bf16.msra.mxu0 %v15488_v58  ;;  %v4920_v44 = vld [vmem:[#allocation16] sm:$0x7] }
 0x742   :  { %5516 = vmatprep.subr.bf16.mxu1 %v15469_v45  ;;  %5939 = vmatprep.subr.bf16.mxu0 %v15493_v59  ;;  %v4933_v45 = vrot.slane %v4920_v44, %v18039_v28  ;;  %v4925_v53 = vrot.slane %v4920_v44, %v18025_v16  ;;  %v4929_v38 = vrot.slane %v4920_v44, %v18028_v17 }
 0x745   :  { %5517 = vmatpush1.bf16.msra.mxu1 %v15467_v46  ;;  %5940 = vmatpush1.bf16.msra.mxu0 %v15491_v60 }
 0x746   :  { %5518 = vmatprep.subr.bf16.mxu1 %v15472_v18  ;;  %5941 = vmatprep.subr.bf16.mxu0 %v15496_v7 }
 0x749   :  { %5519 = vmatpush1.bf16.msra.mxu1 %v15470_v47  ;;  %5942 = vmatpush1.bf16.msra.mxu0 %v15494_v62 }
 0x74a   :  { %5520 = vmatprep.subr.bf16.mxu1 %v15475_v49  ;;  %5943 = vmatprep.subr.bf16.mxu0 %v15499_v63 }
 0x74d   :  { %5521 = vmatpush1.bf16.msra.mxu1 %v15473_v50  ;;  %5944 = vmatpush1.bf16.msra.mxu0 %v15497_v0  ;;  %v15524_v0 = vld [vmem:[#allocation18 + $0x100] ss:$8 sps:$4 sm:$0xff]  }
 0x74e   :  { %5945 = vmatprep.subr.bf16.mxu0 %v15502_v1  ;;  %14129 = vmatprep.subr.bf16.mxu1 %v15548_v25 }
 0x750   :  { %5523 = vmatmul.mubr.bf16.vlgmr.msra.gmra.mrb[16].mxu1 %v4790_v61  ;;  %v15557_v61 = vld [vmem:[%s18348_s4 + $0x20] sm:$0xff]  }
 0x751   :  { %5946 = vmatpush1.bf16.msra.mxu0 %v15500_v2  ;;  %14130 = vmatpush3.bf16.msra.mxu1 %v15549_v26  ;;  %v15529_v2 = vld [vmem:[#allocation18 + $0x114] ss:$8 sps:$4 sm:$0xff]  }
 0x752   :  { %5947 = vmatprep.subr.bf16.mxu0 %v15505_v3  ;;  %14131 = vmatprep.subr.bf16.mxu1 %v15550_v27  ;;  %v15527_v3 = vld [vmem:[#allocation18 + $0x110] ss:$8 sps:$4 sm:$0xff]   ;;  %v15560_v26 = vld [vmem:[%s18348_s4 + $0x70] sm:$0xff]  }
 0x753   :  { %v15561_v27 = vld [vmem:[%s18348_s4 + $0x30] sm:$0xff]  }
 0x755   :  { %5948 = vmatpush1.bf16.msra.mxu0 %v15503_v4  ;;  %14132 = vmatpush3.bf16.msra.mxu1 %v15551_v31  ;;  %v15532_v4 = vld [vmem:[#allocation18 + $0x124] ss:$8 sps:$4 sm:$0xff]  }
 0x756   :  { %5949 = vmatprep.subr.bf16.mxu0 %v15508_v5  ;;  %14133 = vmatprep.subr.bf16.mxu1 %v15552_v32  ;;  %v15530_v5 = vld [vmem:[#allocation18 + $0x120] ss:$8 sps:$4 sm:$0xff]  }
 0x757   :  { %v15562_v31 = vld [vmem:[%s18348_s4 + $0x78] sm:$0xff]  }
 0x758   :  { %v15563_v32 = vld [vmem:[%s18348_s4 + $0x38] sm:$0xff]  }
 0x759   :  { %5950 = vmatpush1.bf16.msra.mxu0 %v15506_v9  ;;  %14134 = vmatpush3.bf16.msra.mxu1 %v15553_v34  ;;  %v15535_v9 = vld [vmem:[#allocation18 + $0x134] ss:$8 sps:$4 sm:$0xff]   ;;  %v17543_v34 = vmov 0.0  }
 0x75a   :  { %5951 = vmatprep.subr.bf16.mxu0 %v15511_v10  ;;  %14135 = vmatprep.subr.bf16.mxu1 %v15554_v35  ;;  %v15533_v10 = vld [vmem:[#allocation18 + $0x130] ss:$8 sps:$4 sm:$0xff]   ;;  %v5677_v35 = vld [vmem:[#allocation19] sm:$0x3] }
 0x75d   :  { %5952 = vmatpush1.bf16.msra.mxu0 %v15509_v11  ;;  %14136 = vmatpush3.bf16.msra.mxu1 %v15555_v55  ;;  %v15538_v11 = vld [vmem:[#allocation18 + $0x144] ss:$8 sps:$4 sm:$0xff]   ;;  %v5682_v55 = vrot.slane %v5677_v35, %v18025_v16 }
 0x75e   :  { %5953 = vmatprep.subr.bf16.mxu0 %v15514_v12  ;;  %14137 = vmatprep.subr.bf16.mxu1 %v15556_v37  ;;  %v15536_v12 = vld [vmem:[#allocation18 + $0x140] ss:$8 sps:$4 sm:$0xff]   ;;  %v5686_v37 = vrot.slane %v5677_v35, %v18028_v17 }
 0x761   :  { %5954 = vmatpush1.bf16.msra.mxu0 %v15512_v13  ;;  %14138 = vmatpush3.bf16.msra.mxu1 %v15557_v61  ;;  %v15541_v13 = vld [vmem:[#allocation18 + $0x154] ss:$8 sps:$4 sm:$0xff]  }
 0x762   :  { %5955 = vmatprep.subr.bf16.mxu0 %v15517_v14  ;;  %14139 = vmatprep.subr.bf16.mxu1 %v15558_v33  ;;  %v15539_v14 = vld [vmem:[#allocation18 + $0x150] ss:$8 sps:$4 sm:$0xff]  }
 0x765   :  { %5956 = vmatpush1.bf16.msra.mxu0 %v15515_v19  ;;  %14140 = vmatpush3.bf16.msra.mxu1 %v15559_v39  ;;  %v15544_v19 = vld [vmem:[#allocation18 + $0x164] ss:$8 sps:$4 sm:$0xff]  }
 0x766   :  { %5957 = vmatprep.subr.bf16.mxu0 %v15520_v20  ;;  %v15542_v20 = vld [vmem:[#allocation18 + $0x160] ss:$8 sps:$4 sm:$0xff]   ;;  %14141 = vmatprep.subr.bf16.mxu1 %v15560_v26 }
 0x767   :  { %v15595_v26 = vld [vmem:[#allocation28 + $0x50] ss:$8 sps:$4 sm:$0xff]  }
 0x769   :  { %5958 = vmatpush1.bf16.msra.mxu0 %v15518_v29  ;;  %v15547_v29 = vld [vmem:[#allocation18 + $0x174] ss:$8 sps:$4 sm:$0xff]   ;;  %14142 = vmatpush3.bf16.msra.mxu1 %v15561_v27  ;;  %v13270_v27 = vld [vmem:[#allocation24] ss:$0 sm:$0xff] }
 0x76a   :  { %5959 = vmatprep.subr.bf16.mxu0 %v15523_v21  ;;  %14143 = vmatprep.subr.bf16.mxu1 %v15562_v31 }
 0x76d   :  { %5960 = vmatpush1.bf16.msra.mxu0 %v15521_v22  ;;  %v15545_v22 = vld [vmem:[#allocation18 + $0x170] ss:$8 sps:$4 sm:$0xff]   ;;  %14144 = vmatpush3.bf16.msra.mxu1 %v15563_v32 }
 0x76e   :  { %5970 = vmatprep.subr.bf16.mxu0 %v15526_v23  ;;  %14262 = vmatprep.subr.bf16.mxu1 %v17543_v34 }
 0x7e3   :  { %v14101_v40 = vpop.f32.mrb[24].mxu0 }
 0x7e4   :  { %v14102_v41 = vpop.f32.mrb[25].mxu0 }
 0x7e5   :  { %v14103_v8 = vadd.f32 %v14102_v41, %v14101_v40  ;;  %v14104_v42 = vpop.f32.mrb[26].mxu0 }
 0x7e6   :  { %v14105_v43 = vpop.f32.mrb[27].mxu0 }
 0x7e7   :  { %v5566_v47 = vadd.f32 %v14103_v8, %v4933_v45 }
 0x803   :  { %v14123_v46 = vpop.f32.mrb[28].mxu0 }
 0x804   :  { %v14124_v18 = vpop.f32.mrb[29].mxu0 }
 0x805   :  { %v14125_v49 = vadd.f32 %v14124_v18, %v14123_v46  ;;  %v14126_v50 = vpop.f32.mrb[30].mxu0  ;;  %v15564_v18 = vld [vmem:[#allocation22] sm:$0xff]  }
 0x806   :  { %v14127_v51 = vpop.f32.mrb[31].mxu0  ;;  %v15566_v50 = vld [vmem:[#allocation22 + $0x10] sm:$0xff]  }
 0x807   :  { %v5606_v52 = vadd.f32 %v14125_v49, %v5566_v47  ;;  %v15565_v49 = vld [vmem:[#allocation22 + $0x8] sm:$0xff]   ;;  %v15567_v51 = vld [vmem:[#allocation22 + $0x18] sm:$0xff]  }
 0x809   :  { %v5616_v21 = vmul.f32 0.2, %v5606_v52  ;;  %vm5613_vm15 = vcmp.ge.f32.partialorder %v5606_v52, 0.0 }
 0x80b   :  { %v5619_v23 = vsel %vm5613_vm15, %v5606_v52, %v5616_v21  ;;  %v15568_v52 = vld [vmem:[#allocation22 + $0x20] sm:$0xff]   ;;  %v15589_v21 = vld [vmem:[#allocation28 + $0x30] ss:$8 sps:$4 sm:$0xff]  }
 0x80c   :  { %v5628_v25 = vpack.c.bf16 %v5619_v23, %v5619_v23  ;;  %v15592_v23 = vld [vmem:[#allocation28 + $0x40] ss:$8 sps:$4 sm:$0xff]  }
 0x823   :  { %v5524_v54 = vpop.f32.mrb[16].mxu1 }
 0x824   :  { %v14376_v56 = vadd.f32 %v5524_v54, %v4925_v53  ;;  %v5526_v48 = vpop.f32.mrb[17].mxu1  ;;  %v15569_v53 = vld [vmem:[#allocation22 + $0x28] sm:$0xff]   ;;  %v15571_v54 = vld [vmem:[#allocation22 + $0x38] sm:$0xff]  }
 0x825   :  { %v14377_v57 = vadd.f32 %v5526_v48, %v4929_v38  ;;  %v5528_v30 = vpop.f32.mrb[18].mxu1  ;;  %v15570_v38 = vld [vmem:[#allocation22 + $0x30] sm:$0xff]  }
 0x826   :  { %vm5611_vm13 = vcmp.ge.f32.partialorder %v14376_v56, 0.0  ;;  %v5614_v58 = vmul.f32 0.2, %v14376_v56  ;;  %v5529_v59 = vpop.f32.mrb[19].mxu1  ;;  %v15573_v48 = vld [vmem:[#allocation25 + $0x8] sm:$0xff]   ;;  %v15575_v30 = vld [vmem:[#allocation25 + $0x18] sm:$0xff]  }
 0x827   :  { %vm5612_vm14 = vcmp.ge.f32.partialorder %v14377_v57, 0.0  ;;  %v5615_v60 = vmul.f32 0.2, %v14377_v57  ;;  %v15577_v59 = vld [vmem:[#allocation25 + $0x28] sm:$0xff]  }
 0x828   :  { %v5617_v7 = vsel %vm5611_vm13, %v14376_v56, %v5614_v58  ;;  %v15572_v56 = vld [vmem:[#allocation25] sm:$0xff]  }
 0x829   :  { %v5618_v62 = vsel %vm5612_vm14, %v14377_v57, %v5615_v60  ;;  %v5626_v1 = vpack.c.bf16 %v5617_v7, %v5617_v7  ;;  %v15574_v57 = vld [vmem:[#allocation25 + $0x10] sm:$0xff]   ;;  %v15576_v58 = vld [vmem:[#allocation25 + $0x20] sm:$0xff]   ;;  %v13253_v7 = vld [vmem:[#allocation21] ss:$0 sm:$0xff] }
 0x82a   :  { %v5627_v63 = vpack.c.bf16 %v5618_v62, %v5618_v62 }
 0x82c   :  { %5961 = vmatprep.mubr.bf16.mxu0 %v5627_v63 }
 0x82d   :  { %5962 = vmatmul.mubr.bf16.vlgmr.msra.gmra.mrb[32].mxu0 %v5626_v1 }
 0x82e   :  { %5971 = vmatpush1.bf16.msra.mxu0 %v15524_v0  ;;  %6002 = vmatprep.mubr.bf16.mxu0 %v17542_v6 }
 0x82f   :  { %5972 = vmatprep.subr.bf16.mxu0 %v15529_v2 }
 0x832   :  { %5973 = vmatpush1.bf16.msra.mxu0 %v15527_v3 }
 0x833   :  { %5974 = vmatprep.subr.bf16.mxu0 %v15532_v4 }
 0x836   :  { %5975 = vmatpush1.bf16.msra.mxu0 %v15530_v5 }
 0x837   :  { %5976 = vmatprep.subr.bf16.mxu0 %v15535_v9  ;;  %v15578_v9 = vld [vmem:[#allocation25 + $0x30] sm:$0xff]  }
 0x83a   :  { %5977 = vmatpush1.bf16.msra.mxu0 %v15533_v10  ;;  %v15579_v10 = vld [vmem:[#allocation25 + $0x38] sm:$0xff]  }
 0x83b   :  { %5978 = vmatprep.subr.bf16.mxu0 %v15538_v11  ;;  %v15580_v11 = vld [vmem:[#allocation28] ss:$8 sps:$4 sm:$0xff]  }
 0x83e   :  { %5979 = vmatpush1.bf16.msra.mxu0 %v15536_v12  ;;  %v15582_v12 = vld [vmem:[#allocation28 + $0x4] ss:$8 sps:$4 sm:$0xff]  }
 0x83f   :  { %5980 = vmatprep.subr.bf16.mxu0 %v15541_v13  ;;  %v15585_v13 = vld [vmem:[#allocation28 + $0x14] ss:$8 sps:$4 sm:$0xff]  }
 0x842   :  { %5981 = vmatpush1.bf16.msra.mxu0 %v15539_v14  ;;  %v15583_v14 = vld [vmem:[#allocation28 + $0x10] ss:$8 sps:$4 sm:$0xff]  }
 0x843   :  { %5982 = vmatprep.subr.bf16.mxu0 %v15544_v19  ;;  %v15588_v19 = vld [vmem:[#allocation28 + $0x24] ss:$8 sps:$4 sm:$0xff]  }
 0x846   :  { %5983 = vmatpush1.bf16.msra.mxu0 %v15542_v20  ;;  %v15586_v20 = vld [vmem:[#allocation28 + $0x20] ss:$8 sps:$4 sm:$0xff]  }
 0x847   :  { %5984 = vmatprep.subr.bf16.mxu0 %v15547_v29  ;;  %v15591_v29 = vld [vmem:[#allocation28 + $0x34] ss:$8 sps:$4 sm:$0xff]  }
 0x84a   :  { %5985 = vmatpush1.bf16.msra.mxu0 %v15545_v22  ;;  %v15594_v22 = vld [vmem:[#allocation28 + $0x44] ss:$8 sps:$4 sm:$0xff]  }
 0x84b   :  { %14282 = vmatprep.subr.bf16.mxu0 %v17543_v34 }
 0x84d   :  { %6003 = vmatmul.mubr.bf16.vlgmr.msra.gmra.mrb[32].mxu0 %v5628_v25  ;;  %v15597_v25 = vld [vmem:[#allocation28 + $0x54] ss:$8 sps:$4 sm:$0xff]  }
 0x84e   :  { %14298 = vmatprep.mubr.msk.bf16.mxu0 %vm17544_vm2, %v17543_v34  ;;  %14283 = vmatpush3.bf16.msra.mxu0 %v15572_v56 }
 0x84f   :  { %14284 = vmatprep.subr.bf16.mxu0 %v17543_v34 }
 0x852   :  { %14285 = vmatpush3.bf16.msra.mxu0 %v15573_v48 }
 0x853   :  { %14286 = vmatprep.subr.bf16.mxu0 %v17543_v34 }
 0x856   :  { %14287 = vmatpush3.bf16.msra.mxu0 %v15574_v57  ;;  %v15610_v57 = vld [vmem:[#allocation30 + $0x30] sm:$0xff]  }
 0x857   :  { %14288 = vmatprep.subr.bf16.mxu0 %v17543_v34 }
 0x85a   :  { %14289 = vmatpush3.bf16.msra.mxu0 %v15575_v30  ;;  %v15611_v30 = vld [vmem:[#allocation30 + $0x38] sm:$0xff]  }
 0x85b   :  { %14290 = vmatprep.subr.bf16.mxu0 %v17543_v34 }
 0x85e   :  { %14291 = vmatpush3.bf16.msra.mxu0 %v15576_v58  ;;  %v15612_v58 = vld [vmem:[#allocation33] sm:$0xff]  }
 0x85f   :  { %14292 = vmatprep.subr.bf16.mxu0 %v17543_v34 }
 0x862   :  { %14293 = vmatpush3.bf16.msra.mxu0 %v15577_v59  ;;  %v15613_v59 = vld [vmem:[#allocation33 + $0x8] sm:$0xff]  }
 0x863   :  { %14294 = vmatprep.subr.bf16.mxu0 %v17543_v34 }
 0x866   :  { %14295 = vmatpush3.bf16.msra.mxu0 %v15578_v9  ;;  %v6589_v9 = vld [vmem:[%s18350_s26] sm:$0xff] }
 0x867   :  { %14296 = vmatprep.subr.bf16.mxu0 %v17543_v34 }
 0x86a   :  { %14297 = vmatpush3.bf16.msra.mxu0 %v15579_v10 }
 0x86b   :  { %14302 = vmatprep.subr.bf16.mxu0 %v17543_v34 }
 0x920   :  { %v6004_v61 = vpop.f32.mrb[32].mxu0 }
 0x921   :  { %v14378_v33 = vadd.f32 %v6004_v61, %v5682_v55  ;;  %v6006_v39 = vpop.f32.mrb[33].mxu0 }
 0x922   :  { %v14379_v40 = vadd.f32 %v6006_v39, %v5686_v37  ;;  %v6008_v41 = vpop.f32.mrb[34].mxu0 }
 0x923   :  { %vm6011_vm0 = vcmp.ge.f32.partialorder %v14378_v33, 0.0  ;;  %v6013_v8 = vmul.f32 0.2, %v14378_v33  ;;  %v6009_v42 = vpop.f32.mrb[35].mxu0  ;;  %v15598_v41 = vld [vmem:[#allocation28 + $0x60] ss:$8 sps:$4 sm:$0xff]  }
 0x924   :  { %vm6012_vm1 = vcmp.ge.f32.partialorder %v14379_v40, 0.0  ;;  %v6014_v43 = vmul.f32 0.2, %v14379_v40  ;;  %v15601_v42 = vld [vmem:[#allocation28 + $0x70] ss:$8 sps:$4 sm:$0xff]  }
 0x925   :  { %v6015_v44 = vsel %vm6011_vm0, %v14378_v33, %v6013_v8  ;;  %v15603_v8 = vld [vmem:[#allocation28 + $0x74] ss:$8 sps:$4 sm:$0xff]  }
 0x926   :  { %v6016_v45 = vsel %vm6012_vm1, %v14379_v40, %v6014_v43  ;;  %v6021_v47 = vpack.c.bf16 %v6015_v44, %v6015_v44  ;;  %v15600_v40 = vld [vmem:[#allocation28 + $0x64] ss:$8 sps:$4 sm:$0xff]  }
 0x927   :  { %v6022_v46 = vpack.c.bf16 %v6016_v45, %v6016_v45  ;;  %v15604_v43 = vld [vmem:[#allocation30] sm:$0xff]   ;;  %v15605_v44 = vld [vmem:[#allocation30 + $0x8] sm:$0xff]   ;;  %v15606_v45 = vld [vmem:[#allocation30 + $0x10] sm:$0xff]  }
 0x929   :  { %6190 = vmatprep.mubr.bf16.mxu1 %v6022_v46  ;;  %v15607_v46 = vld [vmem:[#allocation30 + $0x18] sm:$0xff]  }
 0x92a   :  { %6191 = vmatmul.mubr.bf16.vlgmr.msra.gmra.mrb[20].mxu1 %v6021_v47  ;;  %v15609_v47 = vld [vmem:[#allocation30 + $0x28] sm:$0xff]  }
 0x92b   :  { %14263 = vmatpush3.bf16.msra.mxu1 %v15564_v18  ;;  %14278 = vmatprep.mubr.msk.bf16.mxu1 %vm17544_vm2, %v17543_v34  ;;  %v15608_v18 = vld [vmem:[#allocation30 + $0x20] sm:$0xff]  }
 0x92c   :  { %14264 = vmatprep.subr.bf16.mxu1 %v17543_v34 }
 0x92f   :  { %14265 = vmatpush3.bf16.msra.mxu1 %v15565_v49  ;;  %v13279_v49 = vld [vmem:[#allocation27] ss:$0 sm:$0xff] }
 0x930   :  { %14266 = vmatprep.subr.bf16.mxu1 %v17543_v34 }
 0x933   :  { %14267 = vmatpush3.bf16.msra.mxu1 %v15566_v50 }
 0x934   :  { %14268 = vmatprep.subr.bf16.mxu1 %v17543_v34 }
 0x937   :  { %14269 = vmatpush3.bf16.msra.mxu1 %v15567_v51 }
 0x938   :  { %14270 = vmatprep.subr.bf16.mxu1 %v17543_v34 }
 0x93b   :  { %14271 = vmatpush3.bf16.msra.mxu1 %v15568_v52 }
 0x93c   :  { %14272 = vmatprep.subr.bf16.mxu1 %v17543_v34 }
 0x93f   :  { %14273 = vmatpush3.bf16.msra.mxu1 %v15569_v53 }
 0x940   :  { %14274 = vmatprep.subr.bf16.mxu1 %v17543_v34 }
 0x943   :  { %14275 = vmatpush3.bf16.msra.mxu1 %v15570_v38 }
 0x944   :  { %14276 = vmatprep.subr.bf16.mxu1 %v17543_v34 }
 0x947   :  { %14277 = vmatpush3.bf16.msra.mxu1 %v15571_v54 }
 0x948   :  { %6546 = vmatprep.subr.bf16.mxu1 %v15582_v12 }
 0x9fd   :  { %v14145_v60 = vpop.f32.mrb[20].mxu1 }
 0x9fe   :  { %v14146_v62 = vpop.f32.mrb[21].mxu1 }
 0x9ff   :  { %v14147_v63 = vadd.f32 %v14146_v62, %v14145_v60  ;;  %v14148_v0 = vpop.f32.mrb[22].mxu1  ;;  %v15614_v60 = vld [vmem:[#allocation33 + $0x10] sm:$0xff]   ;;  %v15616_v62 = vld [vmem:[#allocation33 + $0x20] sm:$0xff]  }
 0xa00   :  { %v14149_v1 = vpop.f32.mrb[23].mxu1  ;;  %v6454_v0 = vld [vmem:[%s18349_s29] sm:$0x3] }
 0xa01   :  { %v6193_v2 = vadd.f32 %v14147_v63, %v13253_v7  ;;  %v15615_v7 = vld [vmem:[#allocation33 + $0x18] sm:$0xff]   ;;  %v15617_v63 = vld [vmem:[#allocation33 + $0x28] sm:$0xff]   ;;  %v6459_v1 = vrot.slane %v6454_v0, %v18025_v16 }
 0xa03   :  { %vm6198_vm3 = vcmp.ge.f32.partialorder %v6193_v2, 0.0  ;;  %v6199_v3 = vmul.f32 0.2, %v6193_v2 }
 0xa05   :  { %v6200_v4 = vsel %vm6198_vm3, %v6193_v2, %v6199_v3  ;;  %v6463_v2 = vrot.slane %v6454_v0, %v18028_v17  ;;  %v15652_v0 = vld [vmem:[#allocation42] ss:$12 sps:$4 sm:$0xff]  }
 0xa06   :  { %v6203_v5 = vpack.c.bf16 %v6200_v4, %v6200_v4 }
 0xa08   :  { %14279 = vmatmul.mubr.bf16.vlgmr.msra.gmra.mrb[24].mxu1 %v6203_v5 }
 0xa09   :  { %6578 = vmatprep.mubr.bf16.mxu1 %v17542_v6  ;;  %6547 = vmatpush1.bf16.msra.mxu1 %v15580_v11 }
 0xa0a   :  { %6548 = vmatprep.subr.bf16.mxu1 %v15585_v13 }
 0xa0d   :  { %6549 = vmatpush1.bf16.msra.mxu1 %v15583_v14 }
 0xa0e   :  { %6550 = vmatprep.subr.bf16.mxu1 %v15588_v19 }
 0xa11   :  { %6551 = vmatpush1.bf16.msra.mxu1 %v15586_v20  ;;  %v15618_v20 = vld [vmem:[#allocation33 + $0x30] sm:$0xff]  }
 0xa12   :  { %6552 = vmatprep.subr.bf16.mxu1 %v15591_v29  ;;  %v15619_v29 = vld [vmem:[#allocation33 + $0x38] sm:$0xff]  }
 0xa15   :  { %6553 = vmatpush1.bf16.msra.mxu1 %v15589_v21  ;;  %v15620_v21 = vld [vmem:[#allocation36] sm:$0xff]  }
 0xa16   :  { %6554 = vmatprep.subr.bf16.mxu1 %v15594_v22  ;;  %v15621_v22 = vld [vmem:[#allocation36 + $0x8] sm:$0xff]  }
 0xa19   :  { %6555 = vmatpush1.bf16.msra.mxu1 %v15592_v23  ;;  %v15622_v23 = vld [vmem:[#allocation36 + $0x10] sm:$0xff]  }
 0xa1a   :  { %6556 = vmatprep.subr.bf16.mxu1 %v15597_v25  ;;  %v15623_v25 = vld [vmem:[#allocation36 + $0x18] sm:$0xff]  }
 0xa1d   :  { %6557 = vmatpush1.bf16.msra.mxu1 %v15595_v26  ;;  %v15624_v26 = vld [vmem:[#allocation36 + $0x20] sm:$0xff]  }
 0xa1e   :  { %6558 = vmatprep.subr.bf16.mxu1 %v15600_v40 }
 0xa21   :  { %6559 = vmatpush1.bf16.msra.mxu1 %v15598_v41  ;;  %v15626_v41 = vld [vmem:[#allocation36 + $0x30] sm:$0xff]  }
 0xa22   :  { %6560 = vmatprep.subr.bf16.mxu1 %v15603_v8  ;;  %v15627_v8 = vld [vmem:[#allocation36 + $0x38] sm:$0xff]  }
 0xa25   :  { %6561 = vmatpush1.bf16.msra.mxu1 %v15601_v42  ;;  %v15628_v42 = vld [vmem:[#allocation39] ss:$8 sps:$4 sm:$0xff]  }
 0xa26   :  { %14322 = vmatprep.subr.bf16.mxu1 %v17543_v34 }
 0xadb   :  { %v6309_v31 = vpop.f32.mrb[24].mxu1 }
 0xadc   :  { %v6310_v32 = vadd.f32 %v13270_v27, %v6309_v31  ;;  %v14280_v35 = vpop.f32.mrb[25].mxu1  ;;  %v15625_v27 = vld [vmem:[#allocation36 + $0x28] sm:$0xff]   ;;  %v13304_v31 = vld [vmem:[#allocation31] ss:$0 sm:$0xff] }
 0xadd   :  { %v6312_v55 = vpop.f32.mrb[26].mxu1 }
 0xade   :  { %vm6315_vm4 = vcmp.ge.f32.partialorder %v6310_v32, 0.0  ;;  %v6316_v37 = vmul.f32 0.2, %v6310_v32  ;;  %v14281_v61 = vpop.f32.mrb[27].mxu1 }
 0xae0   :  { %v6317_v33 = vsel %vm6315_vm4, %v6310_v32, %v6316_v37 }
 0xae1   :  { %v6320_v39 = vpack.c.bf16 %v6317_v33, %v6317_v33 }
 0xae3   :  { %14299 = vmatmul.mubr.bf16.vlgmr.msra.gmra.mrb[36].mxu0 %v6320_v39 }
 0xae4   :  { %14318 = vmatprep.mubr.msk.bf16.mxu0 %vm17544_vm2, %v17543_v34  ;;  %14303 = vmatpush3.bf16.msra.mxu0 %v15604_v43  ;;  %v15630_v43 = vld [vmem:[#allocation39 + $0x4] ss:$8 sps:$4 sm:$0xff]  }
 0xae5   :  { %14304 = vmatprep.subr.bf16.mxu0 %v17543_v34 }
 0xae8   :  { %14305 = vmatpush3.bf16.msra.mxu0 %v15605_v44  ;;  %v15633_v44 = vld [vmem:[#allocation39 + $0x14] ss:$8 sps:$4 sm:$0xff]  }
 0xae9   :  { %14306 = vmatprep.subr.bf16.mxu0 %v17543_v34 }
 0xaec   :  { %14307 = vmatpush3.bf16.msra.mxu0 %v15606_v45  ;;  %v15631_v45 = vld [vmem:[#allocation39 + $0x10] ss:$8 sps:$4 sm:$0xff]  }
 0xaed   :  { %14308 = vmatprep.subr.bf16.mxu0 %v17543_v34 }
 0xaf0   :  { %14309 = vmatpush3.bf16.msra.mxu0 %v15607_v46  ;;  %v15636_v46 = vld [vmem:[#allocation39 + $0x24] ss:$8 sps:$4 sm:$0xff]  }
 0xaf1   :  { %14310 = vmatprep.subr.bf16.mxu0 %v17543_v34 }
 0xaf4   :  { %14311 = vmatpush3.bf16.msra.mxu0 %v15608_v18  ;;  %v15634_v18 = vld [vmem:[#allocation39 + $0x20] ss:$8 sps:$4 sm:$0xff]  }
 0xaf5   :  { %14312 = vmatprep.subr.bf16.mxu0 %v17543_v34 }
 0xaf8   :  { %14313 = vmatpush3.bf16.msra.mxu0 %v15609_v47  ;;  %v15639_v47 = vld [vmem:[#allocation39 + $0x34] ss:$8 sps:$4 sm:$0xff]  }
 0xaf9   :  { %14314 = vmatprep.subr.bf16.mxu0 %v17543_v34 }
 0xafc   :  { %14315 = vmatpush3.bf16.msra.mxu0 %v15610_v57 }
 0xafd   :  { %14316 = vmatprep.subr.bf16.mxu0 %v17543_v34 }
 0xb00   :  { %14317 = vmatpush3.bf16.msra.mxu0 %v15611_v30 }
 0xb01   :  { %14342 = vmatprep.subr.bf16.mxu0 %v17543_v34 }
 0xbb6   :  { %v6426_v50 = vpop.f32.mrb[36].mxu0 }
 0xbb7   :  { %v6427_v51 = vadd.f32 %v13279_v49, %v6426_v50  ;;  %v14300_v52 = vpop.f32.mrb[37].mxu0  ;;  %v15637_v49 = vld [vmem:[#allocation39 + $0x30] ss:$8 sps:$4 sm:$0xff]   ;;  %v15642_v50 = vld [vmem:[#allocation39 + $0x44] ss:$8 sps:$4 sm:$0xff]  }
 0xbb8   :  { %v6429_v53 = vpop.f32.mrb[38].mxu0  ;;  %v15643_v52 = vld [vmem:[#allocation39 + $0x50] ss:$8 sps:$4 sm:$0xff]  }
 0xbb9   :  { %vm6432_vm5 = vcmp.ge.f32.partialorder %v6427_v51, 0.0  ;;  %v6433_v38 = vmul.f32 0.2, %v6427_v51  ;;  %v14301_v54 = vpop.f32.mrb[39].mxu0  ;;  %v13313_v53 = vld [vmem:[#allocation34] ss:$0 sm:$0xff] }
 0xbbb   :  { %v6434_v56 = vsel %vm6432_vm5, %v6427_v51, %v6433_v38  ;;  %v15645_v51 = vld [vmem:[#allocation39 + $0x54] ss:$8 sps:$4 sm:$0xff]  }
 0xbbc   :  { %v6437_v48 = vpack.c.bf16 %v6434_v56, %v6434_v56 }
 0xbbe   :  { %6579 = vmatmul.mubr.bf16.vlgmr.msra.gmra.mrb[28].mxu1 %v6437_v48 }
 0xbbf   :  { %14338 = vmatprep.mubr.msk.bf16.mxu1 %vm17544_vm2, %v17543_v34  ;;  %14323 = vmatpush3.bf16.msra.mxu1 %v15612_v58 }
 0xbc0   :  { %14324 = vmatprep.subr.bf16.mxu1 %v17543_v34 }
 0xbc3   :  { %14325 = vmatpush3.bf16.msra.mxu1 %v15613_v59 }
 0xbc4   :  { %14326 = vmatprep.subr.bf16.mxu1 %v17543_v34 }
 0xbc7   :  { %14327 = vmatpush3.bf16.msra.mxu1 %v15614_v60  ;;  %v15648_v60 = vld [vmem:[#allocation39 + $0x64] ss:$8 sps:$4 sm:$0xff]  }
 0xbc8   :  { %14328 = vmatprep.subr.bf16.mxu1 %v17543_v34 }
 0xbcb   :  { %14329 = vmatpush3.bf16.msra.mxu1 %v15615_v7  ;;  %v15646_v7 = vld [vmem:[#allocation39 + $0x60] ss:$8 sps:$4 sm:$0xff]  }
 0xbcc   :  { %14330 = vmatprep.subr.bf16.mxu1 %v17543_v34 }
 0xbcf   :  { %14331 = vmatpush3.bf16.msra.mxu1 %v15616_v62  ;;  %v15651_v62 = vld [vmem:[#allocation39 + $0x74] ss:$8 sps:$4 sm:$0xff]  }
 0xbd0   :  { %14332 = vmatprep.subr.bf16.mxu1 %v17543_v34 }
 0xbd3   :  { %14333 = vmatpush3.bf16.msra.mxu1 %v15617_v63  ;;  %v15649_v63 = vld [vmem:[#allocation39 + $0x70] ss:$8 sps:$4 sm:$0xff]  }
 0xbd4   :  { %14334 = vmatprep.subr.bf16.mxu1 %v17543_v34 }
 0xbd7   :  { %14335 = vmatpush3.bf16.msra.mxu1 %v15618_v20  ;;  %v15672_v20 = vld [vmem:[#allocation42 + $0x94] ss:$12 sps:$4 sm:$0xff]  }
 0xbd8   :  { %14336 = vmatprep.subr.bf16.mxu1 %v17543_v34 }
 0xbdb   :  { %14337 = vmatpush3.bf16.msra.mxu1 %v15619_v29  ;;  %v15670_v29 = vld [vmem:[#allocation42 + $0x90] ss:$12 sps:$4 sm:$0xff]  }
 0xbdc   :  { %7052 = vmatprep.subr.bf16.mxu1 %v15630_v43 }
 0xc91   :  { %v6580_v3 = vpop.f32.mrb[28].mxu1 }
 0xc92   :  { %v6581_v4 = vadd.f32 %v6580_v3, %v6459_v1  ;;  %v6582_v5 = vpop.f32.mrb[29].mxu1  ;;  %v15654_v1 = vld [vmem:[#allocation42 + $0x4] ss:$12 sps:$4 sm:$0xff]  }
 0xc93   :  { %v6583_v10 = vadd.f32 %v6582_v5, %v6463_v2  ;;  %v6584_v11 = vpop.f32.mrb[30].mxu1  ;;  %v15657_v2 = vld [vmem:[#allocation42 + $0x1c] ss:$12 sps:$4 sm:$0xff]   ;;  %v15655_v3 = vld [vmem:[#allocation42 + $0x18] ss:$12 sps:$4 sm:$0xff]  }
 0xc94   :  { %6587 = vst [vmem:[%s17749_s13] sm:$0xff] %v6581_v4  ;;  %v6585_v12 = vpop.f32.mrb[31].mxu1  ;;  %v15679_v5 = vld [vmem:[#allocation42 + $0xc8] ss:$12 sps:$4 sm:$0xff]  }
 0xc95   :  { %6588 = vst [vmem:[%s17754_s5] sm:$0xff] %v6583_v10  ;;  %v6590_v13 = vmul.f32 %v6589_v9, %v6583_v10  ;;  %v15658_v9 = vld [vmem:[#allocation42 + $0x30] ss:$12 sps:$4 sm:$0xff]   ;;  %v15663_v10 = vld [vmem:[#allocation42 + $0x4c] ss:$12 sps:$4 sm:$0xff]   ;;  %v15661_v11 = vld [vmem:[#allocation42 + $0x48] ss:$12 sps:$4 sm:$0xff]  }
 0xc96   :  { %v15666_v12 = vld [vmem:[#allocation42 + $0x64] ss:$12 sps:$4 sm:$0xff]   ;;  %s17545_s5 = smov [#allocation57]  }
 0xc97   :  { %v6591_v14 = vadd.f32 %v6590_v13, %v6581_v4  ;;  %v15660_v4 = vld [vmem:[#allocation42 + $0x34] ss:$12 sps:$4 sm:$0xff]   ;;  %s12507_s13 = sshll.u32 %s17545_s5, 4  ;;  %s12508_s13 = int_to_ptr.vmem [resolvable:$true] %s12507_s13 }
 0xc98   :  { %v15664_v13 = vld [vmem:[#allocation42 + $0x60] ss:$12 sps:$4 sm:$0xff]   ;;  %s17396_s3 = scalar_lea.vmem %s12508_s13, 768  ;;  %p17401_p7 = scmp.lt.s32.totalorder %s12508_s13, %s12508_s13 }
 0xc99   :  { %v6592_v19 = vpack.c.bf16 %v6591_v14, %v6591_v14  ;;  %v15669_v14 = vld [vmem:[#allocation42 + $0x7c] ss:$12 sps:$4 sm:$0xff]   ;;  %p17397_p6 = scmp.ne.s32.totalorder %s12508_s13, %s17396_s3  ;;  %p17402_p8 = scmp.lt.s32.totalorder %s17396_s3, %s17396_s3 }
 0xc9b   :  { %14319 = vmatmul.mubr.bf16.vlgmr.msra.gmra.mrb[40].mxu0 %v6592_v19  ;;  %v15667_v19 = vld [vmem:[#allocation42 + $0x78] ss:$12 sps:$4 sm:$0xff]   ;;  %p17403_p9 = por %p17402_p8, %p17401_p7 }
 0xc9c   :  { %14358 = vmatprep.mubr.msk.bf16.mxu0 %vm17544_vm2, %v17543_v34  ;;  %14343 = vmatpush3.bf16.msra.mxu0 %v15620_v21  ;;  %v15675_v21 = vld [vmem:[#allocation42 + $0xac] ss:$12 sps:$4 sm:$0xff]  }
 0xc9d   :  { %14344 = vmatprep.subr.bf16.mxu0 %v17543_v34  ;;  %p17404_p10 = pnand %p17403_p9, %p17397_p6 }
 0xca0   :  { %14345 = vmatpush3.bf16.msra.mxu0 %v15621_v22  ;;  %v15673_v22 = vld [vmem:[#allocation42 + $0xa8] ss:$12 sps:$4 sm:$0xff]  }
 0xca1   :  { %14346 = vmatprep.subr.bf16.mxu0 %v17543_v34 }
 0xca4   :  { %14347 = vmatpush3.bf16.msra.mxu0 %v15622_v23  ;;  %v15678_v23 = vld [vmem:[#allocation42 + $0xc4] ss:$12 sps:$4 sm:$0xff]  }
 0xca5   :  { %14348 = vmatprep.subr.bf16.mxu0 %v17543_v34 }
 0xca8   :  { %14349 = vmatpush3.bf16.msra.mxu0 %v15623_v25  ;;  %v15676_v25 = vld [vmem:[#allocation42 + $0xc0] ss:$12 sps:$4 sm:$0xff]  }
 0xca9   :  { %14350 = vmatprep.subr.bf16.mxu0 %v17543_v34 }
 0xcac   :  { %14351 = vmatpush3.bf16.msra.mxu0 %v15624_v26  ;;  %v15683_v26 = vld [vmem:[#allocation42 + $0xdc] ss:$12 sps:$4 sm:$0xff]  }
 0xcad   :  { %14352 = vmatprep.subr.bf16.mxu0 %v17543_v34 }
 0xcb0   :  { %14353 = vmatpush3.bf16.msra.mxu0 %v15625_v27  ;;  %v15681_v27 = vld [vmem:[#allocation42 + $0xd8] ss:$12 sps:$4 sm:$0xff]  }
 0xcb1   :  { %14354 = vmatprep.subr.bf16.mxu0 %v17543_v34 }
 0xcb4   :  { %14355 = vmatpush3.bf16.msra.mxu0 %v15626_v41 }
 0xcb5   :  { %14356 = vmatprep.subr.bf16.mxu0 %v17543_v34  ;;  %v15640_v34 = vld [vmem:[#allocation39 + $0x40] ss:$8 sps:$4 sm:$0xff]  }
 0xcb8   :  { %14357 = vmatpush3.bf16.msra.mxu0 %v15627_v8 }
 0xcb9   :  { %7442 = vmatprep.subr.bf16.mxu0 %v15654_v1  ;;  %v15721_v1 = vld [vmem:[#allocation45 + $0xc] ss:$16 sps:$4 sm:$0xff]  }
 0xd6e   :  { %v6698_v32 = vpop.f32.mrb[40].mxu0 }
 0xd6f   :  { %v6699_v35 = vadd.f32 %v13304_v31, %v6698_v32  ;;  %v14320_v55 = vpop.f32.mrb[41].mxu0  ;;  %v15688_v31 = vld [vmem:[#allocation42 + $0xf4] ss:$12 sps:$4 sm:$0xff]   ;;  %v15686_v32 = vld [vmem:[#allocation42 + $0xf0] ss:$12 sps:$4 sm:$0xff]  }
 0xd70   :  { %v6701_v37 = vpop.f32.mrb[42].mxu0  ;;  %v15691_v55 = vld [vmem:[#allocation42 + $0x108] ss:$12 sps:$4 sm:$0xff]  }
 0xd71   :  { %vm6704_vm6 = vcmp.ge.f32.partialorder %v6699_v35, 0.0  ;;  %v6705_v61 = vmul.f32 0.2, %v6699_v35  ;;  %v14321_v33 = vpop.f32.mrb[43].mxu0  ;;  %v15698_v37 = vld [vmem:[#allocation42 + $0x124] ss:$12 sps:$4 sm:$0xff]  }
 0xd72   :  { %v15703_v33 = vld [vmem:[#allocation42 + $0x13c] ss:$12 sps:$4 sm:$0xff]  }
 0xd73   :  { %v6706_v39 = vsel %vm6704_vm6, %v6699_v35, %v6705_v61  ;;  %v15693_v35 = vld [vmem:[#allocation42 + $0x10c] ss:$12 sps:$4 sm:$0xff]  }
 0xd74   :  { %v6709_v40 = vpack.c.bf16 %v6706_v39, %v6706_v39  ;;  %v15696_v61 = vld [vmem:[#allocation42 + $0x120] ss:$12 sps:$4 sm:$0xff]   ;;  %v15701_v39 = vld [vmem:[#allocation42 + $0x138] ss:$12 sps:$4 sm:$0xff]  }
 0xd76   :  { %14339 = vmatmul.mubr.bf16.vlgmr.msra.gmra.mrb[32].mxu1 %v6709_v40  ;;  %v13322_v40 = vld [vmem:[#allocation37] ss:$0 sm:$0xff] }
 0xd77   :  { %7084 = vmatprep.mubr.bf16.mxu1 %v17542_v6  ;;  %7053 = vmatpush1.bf16.msra.mxu1 %v15628_v42 }
 0xd78   :  { %7054 = vmatprep.subr.bf16.mxu1 %v15633_v44 }
 0xd7b   :  { %7055 = vmatpush1.bf16.msra.mxu1 %v15631_v45 }
 0xd7c   :  { %7056 = vmatprep.subr.bf16.mxu1 %v15636_v46 }
 0xd7f   :  { %7057 = vmatpush1.bf16.msra.mxu1 %v15634_v18  ;;  %v15680_v18 = vld [vmem:[#allocation42 + $0x8] ss:$12 sps:$4 sm:$0xff]  }
 0xd80   :  { %7058 = vmatprep.subr.bf16.mxu1 %v15639_v47 }
 0xd83   :  { %7059 = vmatpush1.bf16.msra.mxu1 %v15637_v49  ;;  %v15684_v49 = vld [vmem:[#allocation42 + $0xe0] ss:$12 sps:$4 sm:$0xff]  }
 0xd84   :  { %7060 = vmatprep.subr.bf16.mxu1 %v15642_v50  ;;  %v15685_v50 = vld [vmem:[#allocation42 + $0x20] ss:$12 sps:$4 sm:$0xff]  }
 0xd87   :  { %7061 = vmatpush1.bf16.msra.mxu1 %v15640_v34  ;;  %v15689_v34 = vld [vmem:[#allocation42 + $0xf8] ss:$12 sps:$4 sm:$0xff]  }
 0xd88   :  { %7062 = vmatprep.subr.bf16.mxu1 %v15645_v51  ;;  %v15690_v51 = vld [vmem:[#allocation42 + $0x38] ss:$12 sps:$4 sm:$0xff]  }
 0xd8b   :  { %7063 = vmatpush1.bf16.msra.mxu1 %v15643_v52  ;;  %v15694_v52 = vld [vmem:[#allocation42 + $0x110] ss:$12 sps:$4 sm:$0xff]  }
 0xd8c   :  { %7064 = vmatprep.subr.bf16.mxu1 %v15648_v60  ;;  %v15713_v60 = vld [vmem:[#allocation42 + $0x16c] ss:$12 sps:$4 sm:$0xff]  }
 0xd8f   :  { %7065 = vmatpush1.bf16.msra.mxu1 %v15646_v7  ;;  %v15714_v7 = vld [vmem:[#allocation42 + $0x170] ss:$12 sps:$4 sm:$0xff]  }
 0xd90   :  { %7066 = vmatprep.subr.bf16.mxu1 %v15651_v62  ;;  %v15711_v62 = vld [vmem:[#allocation42 + $0x168] ss:$12 sps:$4 sm:$0xff]  }
 0xd93   :  { %7067 = vmatpush1.bf16.msra.mxu1 %v15649_v63  ;;  %v15715_v63 = vld [vmem:[#allocation42 + $0xb0] ss:$12 sps:$4 sm:$0xff]  }
 0xd94   :  { %14196 = vmatprep.subr.bf16.mxu1 %v15679_v5 }
 0xe49   :  { %v6815_v38 = vpop.f32.mrb[32].mxu1 }
 0xe4a   :  { %v6816_v54 = vadd.f32 %v13313_v53, %v6815_v38  ;;  %v14340_v56 = vpop.f32.mrb[33].mxu1  ;;  %v15695_v53 = vld [vmem:[#allocation42 + $0x50] ss:$12 sps:$4 sm:$0xff]   ;;  %v15699_v38 = vld [vmem:[#allocation42 + $0x128] ss:$12 sps:$4 sm:$0xff]  }
 0xe4b   :  { %v6818_v48 = vpop.f32.mrb[34].mxu1  ;;  %v15704_v56 = vld [vmem:[#allocation42 + $0x140] ss:$12 sps:$4 sm:$0xff]  }
 0xe4c   :  { %vm6821_vm7 = vcmp.ge.f32.partialorder %v6816_v54, 0.0  ;;  %v6822_v57 = vmul.f32 0.2, %v6816_v54  ;;  %v14341_v30 = vpop.f32.mrb[35].mxu1  ;;  %v15705_v48 = vld [vmem:[#allocation42 + $0x80] ss:$12 sps:$4 sm:$0xff]  }
 0xe4d   :  { %v15709_v30 = vld [vmem:[#allocation42 + $0x158] ss:$12 sps:$4 sm:$0xff]  }
 0xe4e   :  { %v6823_v58 = vsel %vm6821_vm7, %v6816_v54, %v6822_v57  ;;  %v15700_v54 = vld [vmem:[#allocation42 + $0x68] ss:$12 sps:$4 sm:$0xff]  }
 0xe4f   :  { %v6826_v59 = vpack.c.bf16 %v6823_v58, %v6823_v58  ;;  %v15708_v57 = vld [vmem:[#allocation42 + $0x154] ss:$12 sps:$4 sm:$0xff]   ;;  %v15706_v58 = vld [vmem:[#allocation42 + $0x150] ss:$12 sps:$4 sm:$0xff]  }
 0xe51   :  { %14359 = vmatmul.mubr.bf16.vlgmr.msra.gmra.mrb[44].mxu0 %v6826_v59  ;;  %v15710_v59 = vld [vmem:[#allocation42 + $0x98] ss:$12 sps:$4 sm:$0xff]  }
 0xe52   :  { %7443 = vmatpush1.bf16.msra.mxu0 %v15652_v0  ;;  %v15718_v0 = vld [vmem:[#allocation45 + $0x4] ss:$16 sps:$4 sm:$0xff]  }
 0xe53   :  { %7444 = vmatprep.subr.bf16.mxu0 %v15657_v2  ;;  %v6960_v2 = vld [vmem:[#allocation40] sm:$0x3] }
 0xe56   :  { %7445 = vmatpush1.bf16.msra.mxu0 %v15655_v3  ;;  %v6965_v3 = vrot.slane %v6960_v2, %v18025_v16 }
 0xe57   :  { %7446 = vmatprep.subr.bf16.mxu0 %v15660_v4  ;;  %v6969_v4 = vrot.slane %v6960_v2, %v18028_v17  ;;  %v15784_v2 = vld [vmem:[#allocation45 + $0x164] ss:$16 sps:$4 sm:$0xff]  }
 0xe5a   :  { %7447 = vmatpush1.bf16.msra.mxu0 %v15658_v9 }
 0xe5b   :  { %7448 = vmatprep.subr.bf16.mxu0 %v15663_v10 }
 0xe5e   :  { %7449 = vmatpush1.bf16.msra.mxu0 %v15661_v11 }
 0xe5f   :  { %7450 = vmatprep.subr.bf16.mxu0 %v15666_v12 }
 0xe62   :  { %7451 = vmatpush1.bf16.msra.mxu0 %v15664_v13 }
 0xe63   :  { %7452 = vmatprep.subr.bf16.mxu0 %v15669_v14 }
 0xe66   :  { %7453 = vmatpush1.bf16.msra.mxu0 %v15667_v19 }
 0xe67   :  { %7454 = vmatprep.subr.bf16.mxu0 %v15672_v20 }
 0xe6a   :  { %7455 = vmatpush1.bf16.msra.mxu0 %v15670_v29 }
 0xe6b   :  { %7456 = vmatprep.subr.bf16.mxu0 %v15675_v21 }
 0xe6e   :  { %7457 = vmatpush1.bf16.msra.mxu0 %v15673_v22  ;;  %v15716_v22 = vld [vmem:[#allocation45] ss:$16 sps:$4 sm:$0xff]  }
 0xe6f   :  { %7458 = vmatprep.subr.bf16.mxu0 %v15678_v23  ;;  %v15719_v23 = vld [vmem:[#allocation45 + $0x8] ss:$16 sps:$4 sm:$0xff]  }
 0xe72   :  { %7459 = vmatpush1.bf16.msra.mxu0 %v15676_v25 }
 0xe73   :  { %7460 = vmatprep.subr.bf16.mxu0 %v15683_v26  ;;  %v15724_v26 = vld [vmem:[#allocation45 + $0x24] ss:$16 sps:$4 sm:$0xff]  }
 0xe76   :  { %7461 = vmatpush1.bf16.msra.mxu0 %v15681_v27  ;;  %v15727_v27 = vld [vmem:[#allocation45 + $0x2c] ss:$16 sps:$4 sm:$0xff]  }
 0xe77   :  { %7462 = vmatprep.subr.bf16.mxu0 %v15688_v31  ;;  %v15722_v31 = vld [vmem:[#allocation45 + $0x20] ss:$16 sps:$4 sm:$0xff]  }
 0xe7a   :  { %7463 = vmatpush1.bf16.msra.mxu0 %v15686_v32  ;;  %v15725_v32 = vld [vmem:[#allocation45 + $0x28] ss:$16 sps:$4 sm:$0xff]  }
 0xe7b   :  { %7464 = vmatprep.subr.bf16.mxu0 %v15693_v35  ;;  %v15730_v35 = vld [vmem:[#allocation45 + $0x44] ss:$16 sps:$4 sm:$0xff]  }
 0xe7e   :  { %7465 = vmatpush1.bf16.msra.mxu0 %v15691_v55  ;;  %v15733_v55 = vld [vmem:[#allocation45 + $0x4c] ss:$16 sps:$4 sm:$0xff]  }
 0xe7f   :  { %7466 = vmatprep.subr.bf16.mxu0 %v15698_v37  ;;  %v15728_v37 = vld [vmem:[#allocation45 + $0x40] ss:$16 sps:$4 sm:$0xff]  }
 0xe82   :  { %7467 = vmatpush1.bf16.msra.mxu0 %v15696_v61  ;;  %v15731_v61 = vld [vmem:[#allocation45 + $0x48] ss:$16 sps:$4 sm:$0xff]  }
 0xe83   :  { %7468 = vmatprep.subr.bf16.mxu0 %v15703_v33  ;;  %v15736_v33 = vld [vmem:[#allocation45 + $0x64] ss:$16 sps:$4 sm:$0xff]  }
 0xe86   :  { %7469 = vmatpush1.bf16.msra.mxu0 %v15701_v39  ;;  %v15739_v39 = vld [vmem:[#allocation45 + $0x6c] ss:$16 sps:$4 sm:$0xff]  }
 0xe87   :  { %7470 = vmatprep.subr.bf16.mxu0 %v15708_v57  ;;  %v15764_v57 = vld [vmem:[#allocation45 + $0x100] ss:$16 sps:$4 sm:$0xff]  }
 0xe8a   :  { %7471 = vmatpush1.bf16.msra.mxu0 %v15706_v58  ;;  %v15772_v58 = vld [vmem:[#allocation45 + $0x124] ss:$16 sps:$4 sm:$0xff]  }
 0xe8b   :  { %7472 = vmatprep.subr.bf16.mxu0 %v15713_v60  ;;  %v15770_v60 = vld [vmem:[#allocation45 + $0x120] ss:$16 sps:$4 sm:$0xff]  }
 0xe8e   :  { %7473 = vmatpush1.bf16.msra.mxu0 %v15711_v62  ;;  %v15778_v62 = vld [vmem:[#allocation45 + $0x144] ss:$16 sps:$4 sm:$0xff]  }
 0xe8f   :  { %8221 = vmatprep.subr.bf16.mxu0 %v15721_v1  ;;  %v15779_v1 = vld [vmem:[#allocation45 + $0x148] ss:$16 sps:$4 sm:$0xff]  }
 0xf24   :  { %v6932_v41 = vpop.f32.mrb[44].mxu0 }
 0xf25   :  { %v6933_v8 = vadd.f32 %v13322_v40, %v6932_v41  ;;  %v14360_v42 = vpop.f32.mrb[45].mxu0  ;;  %v15734_v40 = vld [vmem:[#allocation45 + $0x60] ss:$16 sps:$4 sm:$0xff]   ;;  %v15737_v41 = vld [vmem:[#allocation45 + $0x68] ss:$16 sps:$4 sm:$0xff]  }
 0xf26   :  { %v6935_v43 = vpop.f32.mrb[46].mxu0  ;;  %v15745_v42 = vld [vmem:[#allocation45 + $0x8c] ss:$16 sps:$4 sm:$0xff]  }
 0xf27   :  { %vm6938_vm8 = vcmp.ge.f32.partialorder %v6933_v8, 0.0  ;;  %v6939_v44 = vmul.f32 0.2, %v6933_v8  ;;  %v14361_v45 = vpop.f32.mrb[47].mxu0  ;;  %v15740_v43 = vld [vmem:[#allocation45 + $0x80] ss:$16 sps:$4 sm:$0xff]  }
 0xf28   :  { %v15748_v45 = vld [vmem:[#allocation45 + $0xa4] ss:$16 sps:$4 sm:$0xff]  }
 0xf29   :  { %v6940_v46 = vsel %vm6938_vm8, %v6933_v8, %v6939_v44  ;;  %v15742_v8 = vld [vmem:[#allocation45 + $0x84] ss:$16 sps:$4 sm:$0xff]   ;;  %v15743_v44 = vld [vmem:[#allocation45 + $0x88] ss:$16 sps:$4 sm:$0xff]  }
 0xf2a   :  { %v6943_v47 = vpack.c.bf16 %v6940_v46, %v6940_v46  ;;  %v15751_v46 = vld [vmem:[#allocation45 + $0xac] ss:$16 sps:$4 sm:$0xff]  }
 0xf2c   :  { %7085 = vmatmul.mubr.bf16.vlgmr.msra.gmra.mrb[36].mxu1 %v6943_v47  ;;  %v15749_v47 = vld [vmem:[#allocation45 + $0xa8] ss:$16 sps:$4 sm:$0xff]  }
 0xf2d   :  { %14197 = vmatpush3.bf16.msra.mxu1 %v15680_v18  ;;  %v15746_v18 = vld [vmem:[#allocation45 + $0xa0] ss:$16 sps:$4 sm:$0xff]  }
 0xf2e   :  { %14198 = vmatprep.subr.bf16.mxu1 %v15684_v49  ;;  %v15754_v49 = vld [vmem:[#allocation45 + $0xc4] ss:$16 sps:$4 sm:$0xff]  }
 0xf31   :  { %14199 = vmatpush3.bf16.msra.mxu1 %v15685_v50  ;;  %v15757_v50 = vld [vmem:[#allocation45 + $0xcc] ss:$16 sps:$4 sm:$0xff]  }
 0xf32   :  { %14200 = vmatprep.subr.bf16.mxu1 %v15689_v34  ;;  %v15752_v34 = vld [vmem:[#allocation45 + $0xc0] ss:$16 sps:$4 sm:$0xff]  }
 0xf35   :  { %14201 = vmatpush3.bf16.msra.mxu1 %v15690_v51  ;;  %v15755_v51 = vld [vmem:[#allocation45 + $0xc8] ss:$16 sps:$4 sm:$0xff]  }
 0xf36   :  { %14202 = vmatprep.subr.bf16.mxu1 %v15694_v52  ;;  %v15760_v52 = vld [vmem:[#allocation45 + $0xe4] ss:$16 sps:$4 sm:$0xff]  }
 0xf39   :  { %14203 = vmatpush3.bf16.msra.mxu1 %v15695_v53  ;;  %v15763_v53 = vld [vmem:[#allocation45 + $0xec] ss:$16 sps:$4 sm:$0xff]  }
 0xf3a   :  { %14204 = vmatprep.subr.bf16.mxu1 %v15699_v38  ;;  %v15758_v38 = vld [vmem:[#allocation45 + $0xe0] ss:$16 sps:$4 sm:$0xff]  }
 0xf3d   :  { %14205 = vmatpush3.bf16.msra.mxu1 %v15700_v54  ;;  %v15761_v54 = vld [vmem:[#allocation45 + $0xe8] ss:$16 sps:$4 sm:$0xff]  }
 0xf3e   :  { %14206 = vmatprep.subr.bf16.mxu1 %v15704_v56  ;;  %v15766_v56 = vld [vmem:[#allocation45 + $0x104] ss:$16 sps:$4 sm:$0xff]  }
 0xf41   :  { %14207 = vmatpush3.bf16.msra.mxu1 %v15705_v48  ;;  %v15769_v48 = vld [vmem:[#allocation45 + $0x10c] ss:$16 sps:$4 sm:$0xff]  }
 0xf42   :  { %14208 = vmatprep.subr.bf16.mxu1 %v15709_v30  ;;  %v15767_v30 = vld [vmem:[#allocation45 + $0x108] ss:$16 sps:$4 sm:$0xff]  }
 0xf45   :  { %14209 = vmatpush3.bf16.msra.mxu1 %v15710_v59  ;;  %v15775_v59 = vld [vmem:[#allocation45 + $0x12c] ss:$16 sps:$4 sm:$0xff]  }
 0xf46   :  { %14210 = vmatprep.subr.bf16.mxu1 %v15714_v7  ;;  %v15773_v7 = vld [vmem:[#allocation45 + $0x128] ss:$16 sps:$4 sm:$0xff]  }
 0xf49   :  { %14211 = vmatpush3.bf16.msra.mxu1 %v15715_v63  ;;  %v15781_v63 = vld [vmem:[#allocation45 + $0x14c] ss:$16 sps:$4 sm:$0xff]  }
 0xf4a   :  { %8139 = vmatprep.subr.bf16.mxu1 %v15718_v0  ;;  %v15776_v0 = vld [vmem:[#allocation45 + $0x140] ss:$16 sps:$4 sm:$0xff]  }
 0xfff   :  { %v7086_v5 = vpop.f32.mrb[36].mxu1 }
0x1000   :  { %v7087_v9 = vadd.f32 %v7086_v5, %v6965_v3  ;;  %v7088_v10 = vpop.f32.mrb[37].mxu1  ;;  %v15787_v3 = vld [vmem:[#allocation45 + $0x16c] ss:$16 sps:$4 sm:$0xff]   ;;  %v15785_v5 = vld [vmem:[#allocation45 + $0x168] ss:$16 sps:$4 sm:$0xff]  }
0x1001   :  { %v7089_v11 = vadd.f32 %v7088_v10, %v6969_v4  ;;  %v7090_v12 = vpop.f32.mrb[38].mxu1  ;;  %v15782_v4 = vld [vmem:[#allocation45 + $0x160] ss:$16 sps:$4 sm:$0xff]   ;;  %v15793_v10 = vld [vmem:[#allocation45 + $0x18c] ss:$16 sps:$4 sm:$0xff]  }
0x1002   :  { %vm7093_vm9 = vcmp.ge.f32.partialorder %v7087_v9, 0.0  ;;  %v7095_v13 = vmul.f32 0.2, %v7087_v9  ;;  %v7091_v14 = vpop.f32.mrb[39].mxu1  ;;  %v15791_v12 = vld [vmem:[#allocation45 + $0x188] ss:$16 sps:$4 sm:$0xff]  }
0x1003   :  { %vm7094_vm10 = vcmp.ge.f32.partialorder %v7089_v11, 0.0  ;;  %v7096_v19 = vmul.f32 0.2, %v7089_v11  ;;  %v15799_v14 = vld [vmem:[#allocation45 + $0x1ac] ss:$16 sps:$4 sm:$0xff]  }
0x1004   :  { %v7097_v20 = vsel %vm7093_vm9, %v7087_v9, %v7095_v13  ;;  %v15790_v9 = vld [vmem:[#allocation45 + $0x184] ss:$16 sps:$4 sm:$0xff]  }
0x1005   :  { %v7098_v29 = vsel %vm7094_vm10, %v7089_v11, %v7096_v19  ;;  %v7103_v25 = vpack.c.bf16 %v7097_v20, %v7097_v20  ;;  %v15788_v11 = vld [vmem:[#allocation45 + $0x180] ss:$16 sps:$4 sm:$0xff]   ;;  %v15796_v13 = vld [vmem:[#allocation45 + $0x1a4] ss:$16 sps:$4 sm:$0xff]   ;;  %v15797_v20 = vld [vmem:[#allocation45 + $0x1a8] ss:$16 sps:$4 sm:$0xff]  }
0x1006   :  { %v7104_v21 = vpack.c.bf16 %v7098_v29, %v7098_v29  ;;  %v15794_v19 = vld [vmem:[#allocation45 + $0x1a0] ss:$16 sps:$4 sm:$0xff]   ;;  %v15802_v29 = vld [vmem:[#allocation45 + $0x1c4] ss:$16 sps:$4 sm:$0xff]  }
0x1008   :  { %7474 = vmatprep.mubr.bf16.mxu0 %v7104_v21  ;;  %7515 = vmatprep.mubr.bf16.mxu1 %v7104_v21  ;;  %v15805_v21 = vld [vmem:[#allocation45 + $0x1cc] ss:$16 sps:$4 sm:$0xff]  }
0x1009   :  { %7475 = vmatmul.mubr.bf16.vlgmr.msra.gmra.mrb[48].mxu0 %v7103_v25  ;;  %7516 = vmatmul.mubr.bf16.vlgmr.msra.gmra.mrb[40].mxu1 %v7103_v25  ;;  %v15808_v25 = vld [vmem:[#allocation45 + $0x1e4] ss:$16 sps:$4 sm:$0xff]  }
0x100a   :  { %8140 = vmatpush1.bf16.msra.mxu1 %v15716_v22  ;;  %8222 = vmatpush1.bf16.msra.mxu0 %v15719_v23  ;;  %v15800_v22 = vld [vmem:[#allocation45 + $0x1c0] ss:$16 sps:$4 sm:$0xff]   ;;  %v15803_v23 = vld [vmem:[#allocation45 + $0x1c8] ss:$16 sps:$4 sm:$0xff]  }
0x100b   :  { %8141 = vmatprep.subr.bf16.mxu1 %v15724_v26  ;;  %8223 = vmatprep.subr.bf16.mxu0 %v15727_v27  ;;  %v15811_v26 = vld [vmem:[#allocation45 + $0x1ec] ss:$16 sps:$4 sm:$0xff]   ;;  %v15806_v27 = vld [vmem:[#allocation45 + $0x1e0] ss:$16 sps:$4 sm:$0xff]  }
0x100e   :  { %8142 = vmatpush1.bf16.msra.mxu1 %v15722_v31  ;;  %8224 = vmatpush1.bf16.msra.mxu0 %v15725_v32  ;;  %v15809_v31 = vld [vmem:[#allocation45 + $0x1e8] ss:$16 sps:$4 sm:$0xff]   ;;  %v15814_v32 = vld [vmem:[#allocation45 + $0x204] ss:$16 sps:$4 sm:$0xff]  }
0x100f   :  { %8143 = vmatprep.subr.bf16.mxu1 %v15730_v35  ;;  %8225 = vmatprep.subr.bf16.mxu0 %v15733_v55  ;;  %v15817_v35 = vld [vmem:[#allocation45 + $0x20c] ss:$16 sps:$4 sm:$0xff]  }
0x1010   :  { %v18166_v55 = vld [vmem:[#allocation43] sm:$0x7] }
0x1012   :  { %8144 = vmatpush1.bf16.msra.mxu1 %v15728_v37  ;;  %8226 = vmatpush1.bf16.msra.mxu0 %v15731_v61  ;;  %v7174_v37 = vrot.slane %v18166_v55, %v18025_v16  ;;  %v7178_v61 = vrot.slane %v18166_v55, %v18028_v17 }
0x1013   :  { %8145 = vmatprep.subr.bf16.mxu1 %v15736_v33  ;;  %8227 = vmatprep.subr.bf16.mxu0 %v15739_v39 }
0x1016   :  { %8146 = vmatpush1.bf16.msra.mxu1 %v15734_v40  ;;  %8228 = vmatpush1.bf16.msra.mxu0 %v15737_v41 }
0x1017   :  { %8147 = vmatprep.subr.bf16.mxu1 %v15742_v8  ;;  %8229 = vmatprep.subr.bf16.mxu0 %v15745_v42 }
0x101a   :  { %8148 = vmatpush1.bf16.msra.mxu1 %v15740_v43  ;;  %8230 = vmatpush1.bf16.msra.mxu0 %v15743_v44 }
0x101b   :  { %8149 = vmatprep.subr.bf16.mxu1 %v15748_v45  ;;  %8231 = vmatprep.subr.bf16.mxu0 %v15751_v46 }
0x101e   :  { %8150 = vmatpush1.bf16.msra.mxu1 %v15746_v18  ;;  %8232 = vmatpush1.bf16.msra.mxu0 %v15749_v47 }
0x101f   :  { %8151 = vmatprep.subr.bf16.mxu1 %v15754_v49  ;;  %8233 = vmatprep.subr.bf16.mxu0 %v15757_v50 }
0x1022   :  { %8152 = vmatpush1.bf16.msra.mxu1 %v15752_v34  ;;  %8234 = vmatpush1.bf16.msra.mxu0 %v15755_v51 }
0x1023   :  { %8153 = vmatprep.subr.bf16.mxu1 %v15760_v52  ;;  %8235 = vmatprep.subr.bf16.mxu0 %v15763_v53  ;;  %v15812_v52 = vld [vmem:[#allocation45 + $0x200] ss:$16 sps:$4 sm:$0xff]   ;;  %v15815_v53 = vld [vmem:[#allocation45 + $0x208] ss:$16 sps:$4 sm:$0xff]  }
0x1026   :  { %8154 = vmatpush1.bf16.msra.mxu1 %v15758_v38  ;;  %8236 = vmatpush1.bf16.msra.mxu0 %v15761_v54  ;;  %v15820_v54 = vld [vmem:[#allocation45 + $0x224] ss:$16 sps:$4 sm:$0xff]  }
0x1027   :  { %8155 = vmatprep.subr.bf16.mxu1 %v15766_v56  ;;  %8237 = vmatprep.subr.bf16.mxu0 %v15769_v48  ;;  %v15823_v56 = vld [vmem:[#allocation45 + $0x22c] ss:$16 sps:$4 sm:$0xff]   ;;  %v15818_v48 = vld [vmem:[#allocation45 + $0x220] ss:$16 sps:$4 sm:$0xff]  }
0x102a   :  { %8156 = vmatpush1.bf16.msra.mxu1 %v15764_v57  ;;  %8238 = vmatpush1.bf16.msra.mxu0 %v15767_v30  ;;  %v15821_v57 = vld [vmem:[#allocation45 + $0x228] ss:$16 sps:$4 sm:$0xff]   ;;  %v15826_v30 = vld [vmem:[#allocation45 + $0x244] ss:$16 sps:$4 sm:$0xff]  }
0x102b   :  { %8157 = vmatprep.subr.bf16.mxu1 %v15772_v58  ;;  %8239 = vmatprep.subr.bf16.mxu0 %v15775_v59  ;;  %v15829_v58 = vld [vmem:[#allocation45 + $0x24c] ss:$16 sps:$4 sm:$0xff]   ;;  %v15824_v59 = vld [vmem:[#allocation45 + $0x240] ss:$16 sps:$4 sm:$0xff]  }
0x102e   :  { %8158 = vmatpush1.bf16.msra.mxu1 %v15770_v60  ;;  %8240 = vmatpush1.bf16.msra.mxu0 %v15773_v7  ;;  %v15827_v60 = vld [vmem:[#allocation45 + $0x248] ss:$16 sps:$4 sm:$0xff]   ;;  %v15832_v7 = vld [vmem:[#allocation45 + $0x264] ss:$16 sps:$4 sm:$0xff]  }
0x102f   :  { %8159 = vmatprep.subr.bf16.mxu1 %v15778_v62  ;;  %8241 = vmatprep.subr.bf16.mxu0 %v15781_v63  ;;  %v15835_v62 = vld [vmem:[#allocation45 + $0x26c] ss:$16 sps:$4 sm:$0xff]   ;;  %v15830_v63 = vld [vmem:[#allocation45 + $0x260] ss:$16 sps:$4 sm:$0xff]  }
0x1032   :  { %8160 = vmatpush1.bf16.msra.mxu1 %v15776_v0  ;;  %8242 = vmatpush1.bf16.msra.mxu0 %v15779_v1  ;;  %v15833_v0 = vld [vmem:[#allocation45 + $0x268] ss:$16 sps:$4 sm:$0xff]   ;;  %v15838_v1 = vld [vmem:[#allocation45 + $0x284] ss:$16 sps:$4 sm:$0xff]  }
0x1033   :  { %8161 = vmatprep.subr.bf16.mxu1 %v15784_v2  ;;  %8243 = vmatprep.subr.bf16.mxu0 %v15787_v3  ;;  %v15841_v2 = vld [vmem:[#allocation45 + $0x28c] ss:$16 sps:$4 sm:$0xff]   ;;  %v15836_v3 = vld [vmem:[#allocation45 + $0x280] ss:$16 sps:$4 sm:$0xff]  }
0x1036   :  { %8162 = vmatpush1.bf16.msra.mxu1 %v15782_v4  ;;  %8244 = vmatpush1.bf16.msra.mxu0 %v15785_v5  ;;  %v15839_v4 = vld [vmem:[#allocation45 + $0x288] ss:$16 sps:$4 sm:$0xff]   ;;  %v15844_v5 = vld [vmem:[#allocation45 + $0x2a4] ss:$16 sps:$4 sm:$0xff]  }
0x1037   :  { %8163 = vmatprep.subr.bf16.mxu1 %v15790_v9  ;;  %8245 = vmatprep.subr.bf16.mxu0 %v15793_v10  ;;  %v15847_v9 = vld [vmem:[#allocation45 + $0x2ac] ss:$16 sps:$4 sm:$0xff]   ;;  %v7182_v10 = vrot.slane %v18166_v55, %v18039_v28 }
0x1038   :  { %v15863_v55 = vld [vmem:[#allocation48 + $0x8] ss:$16 sps:$4 sm:$0xff]  }
0x103a   :  { %8164 = vmatpush1.bf16.msra.mxu1 %v15788_v11  ;;  %8246 = vmatpush1.bf16.msra.mxu0 %v15791_v12  ;;  %v15842_v11 = vld [vmem:[#allocation45 + $0x2a0] ss:$16 sps:$4 sm:$0xff]   ;;  %v15845_v12 = vld [vmem:[#allocation45 + $0x2a8] ss:$16 sps:$4 sm:$0xff]  }
0x103b   :  { %8165 = vmatprep.subr.bf16.mxu1 %v15796_v13  ;;  %8247 = vmatprep.subr.bf16.mxu0 %v15799_v14  ;;  %v15850_v13 = vld [vmem:[#allocation45 + $0x2c4] ss:$16 sps:$4 sm:$0xff]   ;;  %v15853_v14 = vld [vmem:[#allocation45 + $0x2cc] ss:$16 sps:$4 sm:$0xff]  }
0x103e   :  { %8166 = vmatpush1.bf16.msra.mxu1 %v15794_v19  ;;  %8248 = vmatpush1.bf16.msra.mxu0 %v15797_v20  ;;  %v15848_v20 = vld [vmem:[#allocation45 + $0x2c0] ss:$16 sps:$4 sm:$0xff]  }
0x103f   :  { %8167 = vmatprep.subr.bf16.mxu1 %v15802_v29  ;;  %8249 = vmatprep.subr.bf16.mxu0 %v15805_v21  ;;  %v15851_v29 = vld [vmem:[#allocation45 + $0x2c8] ss:$16 sps:$4 sm:$0xff]   ;;  %v15856_v21 = vld [vmem:[#allocation45 + $0x2e4] ss:$16 sps:$4 sm:$0xff]  }
0x1042   :  { %8168 = vmatpush1.bf16.msra.mxu1 %v15800_v22  ;;  %8250 = vmatpush1.bf16.msra.mxu0 %v15803_v23  ;;  %v15859_v22 = vld [vmem:[#allocation45 + $0x2ec] ss:$16 sps:$4 sm:$0xff]  }
0x1043   :  { %8169 = vmatprep.subr.bf16.mxu1 %v15808_v25  ;;  %8251 = vmatprep.subr.bf16.mxu0 %v15811_v26  ;;  %v15854_v25 = vld [vmem:[#allocation45 + $0x2e0] ss:$16 sps:$4 sm:$0xff]   ;;  %v15857_v26 = vld [vmem:[#allocation45 + $0x2e8] ss:$16 sps:$4 sm:$0xff]  }
0x1046   :  { %8170 = vmatpush1.bf16.msra.mxu1 %v15806_v27  ;;  %8252 = vmatpush1.bf16.msra.mxu0 %v15809_v31  ;;  %v15862_v27 = vld [vmem:[#allocation48 + $0x4] ss:$16 sps:$4 sm:$0xff]   ;;  %v15865_v31 = vld [vmem:[#allocation48 + $0xc] ss:$16 sps:$4 sm:$0xff]  }
0x1047   :  { %8180 = vmatprep.subr.bf16.mxu1 %v15814_v32  ;;  %8262 = vmatprep.subr.bf16.mxu0 %v15817_v35  ;;  %v15860_v35 = vld [vmem:[#allocation48] ss:$16 sps:$4 sm:$0xff]  }
0x10dc   :  { %v7476_v33 = vpop.f32.mrb[48].mxu0  ;;  %v14212_v39 = vpop.f32.mrb[40].mxu1 }
0x10dd   :  { %v7477_v40 = vadd.f32 %v7476_v33, %v7174_v37  ;;  %v7478_v41 = vpop.f32.mrb[49].mxu0  ;;  %v14213_v8 = vpop.f32.mrb[41].mxu1  ;;  %v15871_v33 = vld [vmem:[#allocation48 + $0x2c] ss:$16 sps:$4 sm:$0xff]  }
0x10de   :  { %v7479_v42 = vadd.f32 %v7478_v41, %v7178_v61  ;;  %v18172_v43 = vadd.f32 %v14213_v8, %v14212_v39  ;;  %v7480_v44 = vpop.f32.mrb[50].mxu0  ;;  %v14215_v45 = vpop.f32.mrb[42].mxu1  ;;  %v15868_v61 = vld [vmem:[#allocation48 + $0x24] ss:$16 sps:$4 sm:$0xff]   ;;  %v15866_v39 = vld [vmem:[#allocation48 + $0x20] ss:$16 sps:$4 sm:$0xff]  }
0x10df   :  { %vm7523_vm11 = vcmp.ge.f32.partialorder %v7477_v40, 0.0  ;;  %v7526_v46 = vmul.f32 0.2, %v7477_v40  ;;  %v7481_v18 = vpop.f32.mrb[51].mxu0  ;;  %v14216_v47 = vpop.f32.mrb[43].mxu1 }
0x10e0   :  { %vm7524_vm12 = vcmp.ge.f32.partialorder %v7479_v42, 0.0  ;;  %v7527_v49 = vmul.f32 0.2, %v7479_v42  ;;  %v7518_v19 = vadd.f32 %v18172_v43, %v7182_v10  ;;  %v15874_v41 = vld [vmem:[#allocation48 + $0x44] ss:$16 sps:$4 sm:$0xff]  }
0x10e1   :  { %v7529_v50 = vsel %vm7523_vm11, %v7477_v40, %v7526_v46  ;;  %v15869_v40 = vld [vmem:[#allocation48 + $0x28] ss:$16 sps:$4 sm:$0xff]   ;;  %v15877_v8 = vld [vmem:[#allocation48 + $0x4c] ss:$16 sps:$4 sm:$0xff]   ;;  %v15880_v44 = vld [vmem:[#allocation48 + $0x64] ss:$16 sps:$4 sm:$0xff]  }
0x10e2   :  { %v7530_v34 = vsel %vm7524_vm12, %v7479_v42, %v7527_v49  ;;  %v7538_v38 = vpack.c.bf16 %v7529_v50, %v7529_v50  ;;  %v7528_v23 = vmul.f32 0.2, %v7518_v19  ;;  %vm7525_vm13 = vcmp.ge.f32.partialorder %v7518_v19, 0.0  ;;  %v15872_v42 = vld [vmem:[#allocation48 + $0x40] ss:$16 sps:$4 sm:$0xff]  }
0x10e3   :  { %v7539_v51 = vpack.c.bf16 %v7530_v34, %v7530_v34  ;;  %v15875_v43 = vld [vmem:[#allocation48 + $0x48] ss:$16 sps:$4 sm:$0xff]   ;;  %v15883_v45 = vld [vmem:[#allocation48 + $0x6c] ss:$16 sps:$4 sm:$0xff]   ;;  %v15878_v46 = vld [vmem:[#allocation48 + $0x60] ss:$16 sps:$4 sm:$0xff]  }
0x10e4   :  { %v7531_v32 = vsel %vm7525_vm13, %v7518_v19, %v7528_v23  ;;  %v15881_v18 = vld [vmem:[#allocation48 + $0x68] ss:$16 sps:$4 sm:$0xff]   ;;  %v15886_v47 = vld [vmem:[#allocation48 + $0x84] ss:$16 sps:$4 sm:$0xff]   ;;  %v15889_v49 = vld [vmem:[#allocation48 + $0x8c] ss:$16 sps:$4 sm:$0xff]  }
0x10e5   :  { %8171 = vmatprep.mubr.bf16.mxu1 %v7539_v51  ;;  %8253 = vmatprep.mubr.bf16.mxu0 %v7539_v51  ;;  %v7540_v37 = vpack.c.bf16 %v7531_v32, %v7531_v32  ;;  %v15884_v50 = vld [vmem:[#allocation48 + $0x80] ss:$16 sps:$4 sm:$0xff]   ;;  %v15887_v34 = vld [vmem:[#allocation48 + $0x88] ss:$16 sps:$4 sm:$0xff]   ;;  %v15892_v51 = vld [vmem:[#allocation48 + $0xa4] ss:$16 sps:$4 sm:$0xff]  }
0x10e6   :  { %8172 = vmatmul.mubr.bf16.vlgmr.msra.gmra.mrb[44].mxu1 %v7538_v38  ;;  %8254 = vmatmul.mubr.bf16.vlgmr.msra.gmra.mrb[52].mxu0 %v7538_v38  ;;  %v15893_v38 = vld [vmem:[#allocation48 + $0xa8] ss:$16 sps:$4 sm:$0xff]   ;;  %v15920_v10 = vld [vmem:[#allocation48 + $0x140] ss:$16 sps:$4 sm:$0xff]   ;;  %v15940_v23 = vld [vmem:[#allocation48 + $0x1a4] ss:$16 sps:$4 sm:$0xff]  }
0x10e7   :  { %8181 = vmatpush1.bf16.msra.mxu1 %v15812_v52  ;;  %8263 = vmatpush1.bf16.msra.mxu0 %v15815_v53  ;;  %v15895_v52 = vld [vmem:[#allocation48 + $0xac] ss:$16 sps:$4 sm:$0xff]   ;;  %v15890_v53 = vld [vmem:[#allocation48 + $0xa0] ss:$16 sps:$4 sm:$0xff]   ;;  %v15929_v19 = vld [vmem:[#allocation48 + $0x168] ss:$16 sps:$4 sm:$0xff]  }
0x10e8   :  { %8182 = vmatprep.subr.bf16.mxu1 %v15820_v54  ;;  %8264 = vmatprep.subr.bf16.mxu0 %v15823_v56  ;;  %v15898_v54 = vld [vmem:[#allocation48 + $0xc4] ss:$16 sps:$4 sm:$0xff]   ;;  %v15901_v56 = vld [vmem:[#allocation48 + $0xcc] ss:$16 sps:$4 sm:$0xff]  }
0x10e9   :  { %8212 = vmatprep.mubr.bf16.mxu1 %v17542_v6  ;;  %8294 = vmatprep.mubr.bf16.mxu0 %v17542_v6  ;;  %v15949_v32 = vld [vmem:[#allocation48 + $0x1cc] ss:$16 sps:$4 sm:$0xff]  }
0x10eb   :  { %8183 = vmatpush1.bf16.msra.mxu1 %v15818_v48  ;;  %8265 = vmatpush1.bf16.msra.mxu0 %v15821_v57  ;;  %v15896_v48 = vld [vmem:[#allocation48 + $0xc0] ss:$16 sps:$4 sm:$0xff]   ;;  %v15899_v57 = vld [vmem:[#allocation48 + $0xc8] ss:$16 sps:$4 sm:$0xff]  }
0x10ec   :  { %8184 = vmatprep.subr.bf16.mxu1 %v15826_v30  ;;  %8266 = vmatprep.subr.bf16.mxu0 %v15829_v58  ;;  %v15904_v30 = vld [vmem:[#allocation48 + $0xe4] ss:$16 sps:$4 sm:$0xff]   ;;  %v15907_v58 = vld [vmem:[#allocation48 + $0xec] ss:$16 sps:$4 sm:$0xff]  }
0x10ef   :  { %8185 = vmatpush1.bf16.msra.mxu1 %v15824_v59  ;;  %8267 = vmatpush1.bf16.msra.mxu0 %v15827_v60  ;;  %v15902_v59 = vld [vmem:[#allocation48 + $0xe0] ss:$16 sps:$4 sm:$0xff]   ;;  %v15905_v60 = vld [vmem:[#allocation48 + $0xe8] ss:$16 sps:$4 sm:$0xff]  }
0x10f0   :  { %8186 = vmatprep.subr.bf16.mxu1 %v15832_v7  ;;  %8268 = vmatprep.subr.bf16.mxu0 %v15835_v62  ;;  %v15910_v7 = vld [vmem:[#allocation48 + $0x104] ss:$16 sps:$4 sm:$0xff]   ;;  %v15913_v62 = vld [vmem:[#allocation48 + $0x10c] ss:$16 sps:$4 sm:$0xff]  }
0x10f3   :  { %8187 = vmatpush1.bf16.msra.mxu1 %v15830_v63  ;;  %8269 = vmatpush1.bf16.msra.mxu0 %v15833_v0  ;;  %v15908_v63 = vld [vmem:[#allocation48 + $0x100] ss:$16 sps:$4 sm:$0xff]   ;;  %v15911_v0 = vld [vmem:[#allocation48 + $0x108] ss:$16 sps:$4 sm:$0xff]  }
0x10f4   :  { %8188 = vmatprep.subr.bf16.mxu1 %v15838_v1  ;;  %8270 = vmatprep.subr.bf16.mxu0 %v15841_v2  ;;  %v15916_v1 = vld [vmem:[#allocation48 + $0x124] ss:$16 sps:$4 sm:$0xff]   ;;  %v15919_v2 = vld [vmem:[#allocation48 + $0x12c] ss:$16 sps:$4 sm:$0xff]  }
0x10f7   :  { %8189 = vmatpush1.bf16.msra.mxu1 %v15836_v3  ;;  %8271 = vmatpush1.bf16.msra.mxu0 %v15839_v4  ;;  %v15914_v3 = vld [vmem:[#allocation48 + $0x120] ss:$16 sps:$4 sm:$0xff]   ;;  %v15917_v4 = vld [vmem:[#allocation48 + $0x128] ss:$16 sps:$4 sm:$0xff]  }
0x10f8   :  { %8190 = vmatprep.subr.bf16.mxu1 %v15844_v5  ;;  %8272 = vmatprep.subr.bf16.mxu0 %v15847_v9  ;;  %v15922_v5 = vld [vmem:[#allocation48 + $0x144] ss:$16 sps:$4 sm:$0xff]   ;;  %v15925_v9 = vld [vmem:[#allocation48 + $0x14c] ss:$16 sps:$4 sm:$0xff]  }
0x10fb   :  { %8191 = vmatpush1.bf16.msra.mxu1 %v15842_v11  ;;  %8273 = vmatpush1.bf16.msra.mxu0 %v15845_v12  ;;  %v15923_v11 = vld [vmem:[#allocation48 + $0x148] ss:$16 sps:$4 sm:$0xff]   ;;  %v15928_v12 = vld [vmem:[#allocation48 + $0x164] ss:$16 sps:$4 sm:$0xff]  }
0x10fc   :  { %8192 = vmatprep.subr.bf16.mxu1 %v15850_v13  ;;  %8274 = vmatprep.subr.bf16.mxu0 %v15853_v14  ;;  %v15931_v13 = vld [vmem:[#allocation48 + $0x16c] ss:$16 sps:$4 sm:$0xff]   ;;  %v15926_v14 = vld [vmem:[#allocation48 + $0x160] ss:$16 sps:$4 sm:$0xff]  }
0x10ff   :  { %8193 = vmatpush1.bf16.msra.mxu1 %v15848_v20  ;;  %8275 = vmatpush1.bf16.msra.mxu0 %v15851_v29  ;;  %v15934_v20 = vld [vmem:[#allocation48 + $0x184] ss:$16 sps:$4 sm:$0xff]   ;;  %v15937_v29 = vld [vmem:[#allocation48 + $0x18c] ss:$16 sps:$4 sm:$0xff]  }
0x1100   :  { %8194 = vmatprep.subr.bf16.mxu1 %v15856_v21  ;;  %8276 = vmatprep.subr.bf16.mxu0 %v15859_v22  ;;  %v15932_v21 = vld [vmem:[#allocation48 + $0x180] ss:$16 sps:$4 sm:$0xff]   ;;  %v15935_v22 = vld [vmem:[#allocation48 + $0x188] ss:$16 sps:$4 sm:$0xff]  }
0x1103   :  { %8195 = vmatpush1.bf16.msra.mxu1 %v15854_v25  ;;  %8277 = vmatpush1.bf16.msra.mxu0 %v15857_v26  ;;  %v15943_v25 = vld [vmem:[#allocation48 + $0x1ac] ss:$16 sps:$4 sm:$0xff]   ;;  %v15938_v26 = vld [vmem:[#allocation48 + $0x1a0] ss:$16 sps:$4 sm:$0xff]  }
0x1104   :  { %9117 = vmatprep.subr.bf16.mxu1 %v15862_v27  ;;  %9199 = vmatprep.subr.bf16.mxu0 %v15865_v31  ;;  %v15941_v27 = vld [vmem:[#allocation48 + $0x1a8] ss:$16 sps:$4 sm:$0xff]   ;;  %v15946_v31 = vld [vmem:[#allocation48 + $0x1c4] ss:$16 sps:$4 sm:$0xff]  }
0x1106   :  { %8213 = vmatmul.mubr.bf16.vlgmr.msra.gmra.mrb[44].mxu1 %v7540_v37  ;;  %8295 = vmatmul.mubr.bf16.vlgmr.msra.gmra.mrb[52].mxu0 %v7540_v37  ;;  %v15952_v37 = vld [vmem:[#allocation48 + $0x1e4] ss:$16 sps:$4 sm:$0xff]  }
0x1107   :  { %9118 = vmatpush1.bf16.msra.mxu1 %v15860_v35  ;;  %9200 = vmatpush1.bf16.msra.mxu0 %v15863_v55  ;;  %v15944_v35 = vld [vmem:[#allocation48 + $0x1c0] ss:$16 sps:$4 sm:$0xff]   ;;  %v15947_v55 = vld [vmem:[#allocation48 + $0x1c8] ss:$16 sps:$4 sm:$0xff]  }
0x1108   :  { %9119 = vmatprep.subr.bf16.mxu1 %v15868_v61  ;;  %9201 = vmatprep.subr.bf16.mxu0 %v15871_v33  ;;  %v15955_v61 = vld [vmem:[#allocation48 + $0x1ec] ss:$16 sps:$4 sm:$0xff]   ;;  %v15950_v33 = vld [vmem:[#allocation48 + $0x1e0] ss:$16 sps:$4 sm:$0xff]  }
0x110b   :  { %9120 = vmatpush1.bf16.msra.mxu1 %v15866_v39  ;;  %9202 = vmatpush1.bf16.msra.mxu0 %v15869_v40  ;;  %v15953_v39 = vld [vmem:[#allocation48 + $0x1e8] ss:$16 sps:$4 sm:$0xff]   ;;  %v15958_v40 = vld [vmem:[#allocation48 + $0x204] ss:$16 sps:$4 sm:$0xff]  }
0x110c   :  { %9121 = vmatprep.subr.bf16.mxu1 %v15874_v41  ;;  %9203 = vmatprep.subr.bf16.mxu0 %v15877_v8  ;;  %v15961_v41 = vld [vmem:[#allocation48 + $0x20c] ss:$16 sps:$4 sm:$0xff]  }
0x110d   :  { %v18179_v8 = vld [vmem:[#allocation46] sm:$0xf] }
0x110f   :  { %9122 = vmatpush1.bf16.msra.mxu1 %v15872_v42  ;;  %9204 = vmatpush1.bf16.msra.mxu0 %v15875_v43  ;;  %v7642_v42 = vrot.slane %v18179_v8, %v18025_v16  ;;  %v7646_v43 = vrot.slane %v18179_v8, %v18028_v17 }
0x1110   :  { %9123 = vmatprep.subr.bf16.mxu1 %v15880_v44  ;;  %9205 = vmatprep.subr.bf16.mxu0 %v15883_v45  ;;  %v7654_v44 = vrot.slane %v18179_v8, %v18042_v36 }
0x1113   :  { %9124 = vmatpush1.bf16.msra.mxu1 %v15878_v46  ;;  %9206 = vmatpush1.bf16.msra.mxu0 %v15881_v18 }
0x1114   :  { %9125 = vmatprep.subr.bf16.mxu1 %v15886_v47  ;;  %9207 = vmatprep.subr.bf16.mxu0 %v15889_v49 }
0x1117   :  { %9126 = vmatpush1.bf16.msra.mxu1 %v15884_v50  ;;  %9208 = vmatpush1.bf16.msra.mxu0 %v15887_v34 }
0x1118   :  { %9127 = vmatprep.subr.bf16.mxu1 %v15892_v51  ;;  %9209 = vmatprep.subr.bf16.mxu0 %v15895_v52 }
0x111b   :  { %9128 = vmatpush1.bf16.msra.mxu1 %v15890_v53  ;;  %9210 = vmatpush1.bf16.msra.mxu0 %v15893_v38 }
0x111c   :  { %9129 = vmatprep.subr.bf16.mxu1 %v15898_v54  ;;  %9211 = vmatprep.subr.bf16.mxu0 %v15901_v56 }
0x111f   :  { %9130 = vmatpush1.bf16.msra.mxu1 %v15896_v48  ;;  %9212 = vmatpush1.bf16.msra.mxu0 %v15899_v57 }
0x1120   :  { %9131 = vmatprep.subr.bf16.mxu1 %v15904_v30  ;;  %9213 = vmatprep.subr.bf16.mxu0 %v15907_v58 }
0x1123   :  { %9132 = vmatpush1.bf16.msra.mxu1 %v15902_v59  ;;  %9214 = vmatpush1.bf16.msra.mxu0 %v15905_v60  ;;  %v15956_v59 = vld [vmem:[#allocation48 + $0x200] ss:$16 sps:$4 sm:$0xff]   ;;  %v15959_v60 = vld [vmem:[#allocation48 + $0x208] ss:$16 sps:$4 sm:$0xff]  }
0x1124   :  { %9133 = vmatprep.subr.bf16.mxu1 %v15910_v7  ;;  %9215 = vmatprep.subr.bf16.mxu0 %v15913_v62 }
0x1127   :  { %9134 = vmatpush1.bf16.msra.mxu1 %v15908_v63  ;;  %9216 = vmatpush1.bf16.msra.mxu0 %v15911_v0  ;;  %v15964_v63 = vld [vmem:[#allocation48 + $0x224] ss:$16 sps:$4 sm:$0xff]   ;;  %v15967_v0 = vld [vmem:[#allocation48 + $0x22c] ss:$16 sps:$4 sm:$0xff]  }
0x1128   :  { %9135 = vmatprep.subr.bf16.mxu1 %v15916_v1  ;;  %9217 = vmatprep.subr.bf16.mxu0 %v15919_v2  ;;  %v15962_v2 = vld [vmem:[#allocation48 + $0x220] ss:$16 sps:$4 sm:$0xff]  }
0x112b   :  { %9136 = vmatpush1.bf16.msra.mxu1 %v15914_v3  ;;  %9218 = vmatpush1.bf16.msra.mxu0 %v15917_v4  ;;  %v15965_v3 = vld [vmem:[#allocation48 + $0x228] ss:$16 sps:$4 sm:$0xff]   ;;  %v15970_v4 = vld [vmem:[#allocation48 + $0x244] ss:$16 sps:$4 sm:$0xff]  }
0x112c   :  { %9137 = vmatprep.subr.bf16.mxu1 %v15922_v5  ;;  %9219 = vmatprep.subr.bf16.mxu0 %v15925_v9  ;;  %v15973_v5 = vld [vmem:[#allocation48 + $0x24c] ss:$16 sps:$4 sm:$0xff]   ;;  %v15968_v9 = vld [vmem:[#allocation48 + $0x240] ss:$16 sps:$4 sm:$0xff]  }
0x112f   :  { %9138 = vmatpush1.bf16.msra.mxu1 %v15920_v10  ;;  %9220 = vmatpush1.bf16.msra.mxu0 %v15923_v11  ;;  %v15971_v10 = vld [vmem:[#allocation48 + $0x248] ss:$16 sps:$4 sm:$0xff]   ;;  %v15976_v11 = vld [vmem:[#allocation48 + $0x264] ss:$16 sps:$4 sm:$0xff]  }
0x1130   :  { %9139 = vmatprep.subr.bf16.mxu1 %v15928_v12  ;;  %9221 = vmatprep.subr.bf16.mxu0 %v15931_v13  ;;  %v15979_v12 = vld [vmem:[#allocation48 + $0x26c] ss:$16 sps:$4 sm:$0xff]   ;;  %v15974_v13 = vld [vmem:[#allocation48 + $0x260] ss:$16 sps:$4 sm:$0xff]  }
0x1133   :  { %9140 = vmatpush1.bf16.msra.mxu1 %v15926_v14  ;;  %9222 = vmatpush1.bf16.msra.mxu0 %v15929_v19  ;;  %v15977_v14 = vld [vmem:[#allocation48 + $0x268] ss:$16 sps:$4 sm:$0xff]   ;;  %v15982_v19 = vld [vmem:[#allocation48 + $0x284] ss:$16 sps:$4 sm:$0xff]  }
0x1134   :  { %9141 = vmatprep.subr.bf16.mxu1 %v15934_v20  ;;  %9223 = vmatprep.subr.bf16.mxu0 %v15937_v29  ;;  %v15985_v20 = vld [vmem:[#allocation48 + $0x28c] ss:$16 sps:$4 sm:$0xff]   ;;  %v15980_v29 = vld [vmem:[#allocation48 + $0x280] ss:$16 sps:$4 sm:$0xff]  }
0x1137   :  { %9142 = vmatpush1.bf16.msra.mxu1 %v15932_v21  ;;  %9224 = vmatpush1.bf16.msra.mxu0 %v15935_v22  ;;  %v15983_v21 = vld [vmem:[#allocation48 + $0x288] ss:$16 sps:$4 sm:$0xff]   ;;  %v15988_v22 = vld [vmem:[#allocation48 + $0x2a4] ss:$16 sps:$4 sm:$0xff]  }
0x1138   :  { %9143 = vmatprep.subr.bf16.mxu1 %v15940_v23  ;;  %9225 = vmatprep.subr.bf16.mxu0 %v15943_v25  ;;  %v15991_v23 = vld [vmem:[#allocation48 + $0x2ac] ss:$16 sps:$4 sm:$0xff]   ;;  %v15986_v25 = vld [vmem:[#allocation48 + $0x2a0] ss:$16 sps:$4 sm:$0xff]  }
0x113b   :  { %9144 = vmatpush1.bf16.msra.mxu1 %v15938_v26  ;;  %9226 = vmatpush1.bf16.msra.mxu0 %v15941_v27  ;;  %v15989_v26 = vld [vmem:[#allocation48 + $0x2a8] ss:$16 sps:$4 sm:$0xff]   ;;  %v15994_v27 = vld [vmem:[#allocation48 + $0x2c4] ss:$16 sps:$4 sm:$0xff]  }
0x113c   :  { %9145 = vmatprep.subr.bf16.mxu1 %v15946_v31  ;;  %9227 = vmatprep.subr.bf16.mxu0 %v15949_v32  ;;  %v15997_v31 = vld [vmem:[#allocation48 + $0x2cc] ss:$16 sps:$4 sm:$0xff]   ;;  %v15992_v32 = vld [vmem:[#allocation48 + $0x2c0] ss:$16 sps:$4 sm:$0xff]  }
0x113f   :  { %9146 = vmatpush1.bf16.msra.mxu1 %v15944_v35  ;;  %9228 = vmatpush1.bf16.msra.mxu0 %v15947_v55  ;;  %v15995_v35 = vld [vmem:[#allocation48 + $0x2c8] ss:$16 sps:$4 sm:$0xff]   ;;  %v16000_v55 = vld [vmem:[#allocation48 + $0x2e4] ss:$16 sps:$4 sm:$0xff]  }
0x1140   :  { %9147 = vmatprep.subr.bf16.mxu1 %v15952_v37  ;;  %9229 = vmatprep.subr.bf16.mxu0 %v15955_v61  ;;  %v16003_v37 = vld [vmem:[#allocation48 + $0x2ec] ss:$16 sps:$4 sm:$0xff]   ;;  %v15998_v61 = vld [vmem:[#allocation48 + $0x2e0] ss:$16 sps:$4 sm:$0xff]  }
0x1143   :  { %9148 = vmatpush1.bf16.msra.mxu1 %v15950_v33  ;;  %9230 = vmatpush1.bf16.msra.mxu0 %v15953_v39  ;;  %v16001_v33 = vld [vmem:[#allocation48 + $0x2e8] ss:$16 sps:$4 sm:$0xff]   ;;  %v16006_v39 = vld [vmem:[#allocation48 + $0x304] ss:$16 sps:$4 sm:$0xff]  }
0x1144   :  { %9158 = vmatprep.subr.bf16.mxu1 %v15958_v40  ;;  %9240 = vmatprep.subr.bf16.mxu0 %v15961_v41  ;;  %v16009_v40 = vld [vmem:[#allocation48 + $0x30c] ss:$16 sps:$4 sm:$0xff]   ;;  %v16004_v41 = vld [vmem:[#allocation48 + $0x300] ss:$16 sps:$4 sm:$0xff]  }
0x11d9   :  { %v8214_v45 = vpop.f32.mrb[44].mxu1  ;;  %v18187_v46 = vpop.f32.mrb[52].mxu0 }
0x11da   :  { %v14380_v18 = vadd.f32 %v8214_v45, %v7642_v42  ;;  %v8216_v47 = vpop.f32.mrb[45].mxu1  ;;  %v8298_v49 = vpop.f32.mrb[53].mxu0  ;;  %v16007_v42 = vld [vmem:[#allocation48 + $0x308] ss:$16 sps:$4 sm:$0xff]   ;;  %v16010_v45 = vld [vmem:[#allocation48 + $0x320] ss:$16 sps:$4 sm:$0xff]  }
0x11db   :  { %v14381_v50 = vadd.f32 %v8216_v47, %v7646_v43  ;;  %v14383_v34 = vadd.f32 %v8298_v49, %v7654_v44  ;;  %v8218_v51 = vpop.f32.mrb[46].mxu1  ;;  %v8300_v52 = vpop.f32.mrb[54].mxu0  ;;  %v16012_v43 = vld [vmem:[#allocation48 + $0x324] ss:$16 sps:$4 sm:$0xff]   ;;  %v16015_v44 = vld [vmem:[#allocation48 + $0x32c] ss:$16 sps:$4 sm:$0xff]  }
0x11dc   :  { %vm8303_vm14 = vcmp.ge.f32.partialorder %v14380_v18, 0.0  ;;  %v8307_v53 = vmul.f32 0.2, %v14380_v18  ;;  %v8219_v48 = vpop.f32.mrb[47].mxu1  ;;  %v8301_v57 = vpop.f32.mrb[55].mxu0 }
0x11dd   :  { %vm8304_vm15 = vcmp.ge.f32.partialorder %v14381_v50, 0.0  ;;  %v8308_v38 = vmul.f32 0.2, %v14381_v50  ;;  %vm8306_vm0 = vcmp.ge.f32.partialorder %v14383_v34, 0.0  ;;  %v8310_v54 = vmul.f32 0.2, %v14383_v34 }
0x11de   :  { %v8311_v56 = vsel %vm8303_vm14, %v14380_v18, %v8307_v53  ;;  %v16013_v18 = vld [vmem:[#allocation48 + $0x328] ss:$16 sps:$4 sm:$0xff]   ;;  %v16018_v47 = vld [vmem:[#allocation48 + $0x344] ss:$16 sps:$4 sm:$0xff]   ;;  %v16021_v49 = vld [vmem:[#allocation48 + $0x34c] ss:$16 sps:$4 sm:$0xff]  }
0x11df   :  { %v8312_v30 = vsel %vm8304_vm15, %v14381_v50, %v8308_v38  ;;  %v8314_v7 = vsel %vm8306_vm0, %v14383_v34, %v8310_v54  ;;  %v8323_v62 = vpack.c.bf16 %v8311_v56, %v8311_v56  ;;  %v16016_v50 = vld [vmem:[#allocation48 + $0x340] ss:$16 sps:$4 sm:$0xff]   ;;  %v16019_v34 = vld [vmem:[#allocation48 + $0x348] ss:$16 sps:$4 sm:$0xff]   ;;  %v16024_v51 = vld [vmem:[#allocation48 + $0x364] ss:$16 sps:$4 sm:$0xff]  }
0x11e0   :  { %v8324_v58 = vpack.c.bf16 %v8312_v30, %v8312_v30  ;;  %v8326_v1 = vpack.c.bf16 %v8314_v7, %v8314_v7  ;;  %v16027_v52 = vld [vmem:[#allocation48 + $0x36c] ss:$16 sps:$4 sm:$0xff]   ;;  %v16022_v53 = vld [vmem:[#allocation48 + $0x360] ss:$16 sps:$4 sm:$0xff]   ;;  %v16025_v38 = vld [vmem:[#allocation48 + $0x368] ss:$16 sps:$4 sm:$0xff]  }
0x11e1   :  { %v16030_v54 = vld [vmem:[#allocation48 + $0x384] ss:$16 sps:$4 sm:$0xff]   ;;  %v16033_v56 = vld [vmem:[#allocation48 + $0x38c] ss:$16 sps:$4 sm:$0xff]   ;;  %v16028_v48 = vld [vmem:[#allocation48 + $0x380] ss:$16 sps:$4 sm:$0xff]  }
0x11e2   :  { %9149 = vmatprep.mubr.bf16.mxu1 %v8324_v58  ;;  %9231 = vmatprep.mubr.bf16.mxu0 %v8324_v58  ;;  %v16031_v57 = vld [vmem:[#allocation48 + $0x388] ss:$16 sps:$4 sm:$0xff]   ;;  %v16036_v30 = vld [vmem:[#allocation48 + $0x3a4] ss:$16 sps:$4 sm:$0xff]   ;;  %v16039_v58 = vld [vmem:[#allocation48 + $0x3ac] ss:$16 sps:$4 sm:$0xff]  }
0x11e3   :  { %9150 = vmatmul.mubr.bf16.vlgmr.msra.gmra.mrb[48].mxu1 %v8323_v62  ;;  %9232 = vmatmul.mubr.bf16.vlgmr.msra.gmra.mrb[56].mxu0 %v8323_v62  ;;  %v16037_v7 = vld [vmem:[#allocation48 + $0x3a8] ss:$16 sps:$4 sm:$0xff]   ;;  %v16042_v62 = vld [vmem:[#allocation48 + $0x3c4] ss:$16 sps:$4 sm:$0xff]  }
0x11e4   :  { %9159 = vmatpush1.bf16.msra.mxu1 %v15956_v59  ;;  %9241 = vmatpush1.bf16.msra.mxu0 %v15959_v60  ;;  %v7650_v59 = vrot.slane %v18179_v8, %v18039_v28  ;;  %v16034_v60 = vld [vmem:[#allocation48 + $0x3a0] ss:$16 sps:$4 sm:$0xff]  }
0x11e5   :  { %9190 = vmatprep.mubr.bf16.mxu1 %v8326_v1  ;;  %9272 = vmatprep.mubr.bf16.mxu0 %v8326_v1  ;;  %v16040_v1 = vld [vmem:[#allocation48 + $0x3c0] ss:$16 sps:$4 sm:$0xff]  }
0x11e6   :  { %9160 = vmatprep.subr.bf16.mxu1 %v15964_v63  ;;  %9242 = vmatprep.subr.bf16.mxu0 %v15967_v0  ;;  %v16045_v63 = vld [vmem:[#allocation48 + $0x3cc] ss:$16 sps:$4 sm:$0xff]   ;;  %v14382_v0 = vadd.f32 %v18187_v46, %v7650_v59  ;;  %v16046_v8 = vld [vmem:[#allocation48 + $0x3e0] ss:$16 sps:$4 sm:$0xff]   ;;  %v16052_v46 = vld [vmem:[#allocation51] ss:$20 sps:$4 sm:$0xff]  }
0x11e7   :  { %v16112_v59 = vld [vmem:[#allocation51 + $0x190] ss:$20 sps:$4 sm:$0xff]  }
0x11e8   :  { %9161 = vmatpush1.bf16.msra.mxu1 %v15962_v2  ;;  %9243 = vmatpush1.bf16.msra.mxu0 %v15965_v3  ;;  %v16043_v2 = vld [vmem:[#allocation48 + $0x3c8] ss:$16 sps:$4 sm:$0xff]   ;;  %v16048_v3 = vld [vmem:[#allocation48 + $0x3e4] ss:$16 sps:$4 sm:$0xff]   ;;  %vm8305_vm1 = vcmp.ge.f32.partialorder %v14382_v0, 0.0 }
0x11e9   :  { %9162 = vmatprep.subr.bf16.mxu1 %v15970_v4  ;;  %9244 = vmatprep.subr.bf16.mxu0 %v15973_v5  ;;  %v16051_v4 = vld [vmem:[#allocation48 + $0x3ec] ss:$16 sps:$4 sm:$0xff]   ;;  %v8309_v5 = vmul.f32 0.2, %v14382_v0 }
0x11ec   :  { %9163 = vmatpush1.bf16.msra.mxu1 %v15968_v9  ;;  %9245 = vmatpush1.bf16.msra.mxu0 %v15971_v10  ;;  %v16049_v9 = vld [vmem:[#allocation48 + $0x3e8] ss:$16 sps:$4 sm:$0xff]  }
0x11ed   :  { %9164 = vmatprep.subr.bf16.mxu1 %v15976_v11  ;;  %9246 = vmatprep.subr.bf16.mxu0 %v15979_v12  ;;  %v16054_v10 = vld [vmem:[#allocation51 + $0x4] ss:$20 sps:$4 sm:$0xff]   ;;  %v16057_v11 = vld [vmem:[#allocation51 + $0xc] ss:$20 sps:$4 sm:$0xff]   ;;  %v8313_v12 = vsel %vm8305_vm1, %v14382_v0, %v8309_v5 }
0x11ee   :  { %v16121_v0 = vld [vmem:[#allocation51 + $0x1c0] ss:$20 sps:$4 sm:$0xff]  }
0x11ef   :  { %v16132_v5 = vld [vmem:[#allocation51 + $0x20c] ss:$20 sps:$4 sm:$0xff]  }
0x11f0   :  { %9165 = vmatpush1.bf16.msra.mxu1 %v15974_v13  ;;  %9247 = vmatpush1.bf16.msra.mxu0 %v15977_v14  ;;  %v16055_v13 = vld [vmem:[#allocation51 + $0x8] ss:$20 sps:$4 sm:$0xff]   ;;  %v8325_v14 = vpack.c.bf16 %v8313_v12, %v8313_v12 }
0x11f1   :  { %9166 = vmatprep.subr.bf16.mxu1 %v15982_v19  ;;  %9248 = vmatprep.subr.bf16.mxu0 %v15985_v20  ;;  %v16060_v19 = vld [vmem:[#allocation51 + $0x2c] ss:$20 sps:$4 sm:$0xff]   ;;  %v16063_v20 = vld [vmem:[#allocation51 + $0x34] ss:$20 sps:$4 sm:$0xff]   ;;  %v16141_v12 = vld [vmem:[#allocation51 + $0x23c] ss:$20 sps:$4 sm:$0xff]  }
0x11f4   :  { %9167 = vmatpush1.bf16.msra.mxu1 %v15980_v29  ;;  %9249 = vmatpush1.bf16.msra.mxu0 %v15983_v21  ;;  %v16058_v29 = vld [vmem:[#allocation51 + $0x28] ss:$20 sps:$4 sm:$0xff]   ;;  %v16061_v21 = vld [vmem:[#allocation51 + $0x30] ss:$20 sps:$4 sm:$0xff]  }
0x11f5   :  { %9168 = vmatprep.subr.bf16.mxu1 %v15988_v22  ;;  %9250 = vmatprep.subr.bf16.mxu0 %v15991_v23  ;;  %v16066_v22 = vld [vmem:[#allocation51 + $0x54] ss:$20 sps:$4 sm:$0xff]   ;;  %v16069_v23 = vld [vmem:[#allocation51 + $0x5c] ss:$20 sps:$4 sm:$0xff]  }
0x11f8   :  { %9169 = vmatpush1.bf16.msra.mxu1 %v15986_v25  ;;  %9251 = vmatpush1.bf16.msra.mxu0 %v15989_v26  ;;  %v16064_v25 = vld [vmem:[#allocation51 + $0x50] ss:$20 sps:$4 sm:$0xff]   ;;  %v16067_v26 = vld [vmem:[#allocation51 + $0x58] ss:$20 sps:$4 sm:$0xff]  }
0x11f9   :  { %9170 = vmatprep.subr.bf16.mxu1 %v15994_v27  ;;  %9252 = vmatprep.subr.bf16.mxu0 %v15997_v31  ;;  %v16072_v27 = vld [vmem:[#allocation51 + $0x7c] ss:$20 sps:$4 sm:$0xff]   ;;  %v16075_v31 = vld [vmem:[#allocation51 + $0x84] ss:$20 sps:$4 sm:$0xff]  }
0x11fc   :  { %9171 = vmatpush1.bf16.msra.mxu1 %v15992_v32  ;;  %9253 = vmatpush1.bf16.msra.mxu0 %v15995_v35  ;;  %v16070_v32 = vld [vmem:[#allocation51 + $0x78] ss:$20 sps:$4 sm:$0xff]   ;;  %v16073_v35 = vld [vmem:[#allocation51 + $0x80] ss:$20 sps:$4 sm:$0xff]  }
0x11fd   :  { %9172 = vmatprep.subr.bf16.mxu1 %v16000_v55  ;;  %9254 = vmatprep.subr.bf16.mxu0 %v16003_v37  ;;  %v16078_v55 = vld [vmem:[#allocation51 + $0xa4] ss:$20 sps:$4 sm:$0xff]   ;;  %v16081_v37 = vld [vmem:[#allocation51 + $0xac] ss:$20 sps:$4 sm:$0xff]  }
0x1200   :  { %9173 = vmatpush1.bf16.msra.mxu1 %v15998_v61  ;;  %9255 = vmatpush1.bf16.msra.mxu0 %v16001_v33  ;;  %v16076_v61 = vld [vmem:[#allocation51 + $0xa0] ss:$20 sps:$4 sm:$0xff]   ;;  %v16079_v33 = vld [vmem:[#allocation51 + $0xa8] ss:$20 sps:$4 sm:$0xff]  }
0x1201   :  { %9174 = vmatprep.subr.bf16.mxu1 %v16006_v39  ;;  %9256 = vmatprep.subr.bf16.mxu0 %v16009_v40  ;;  %v16084_v39 = vld [vmem:[#allocation51 + $0xcc] ss:$20 sps:$4 sm:$0xff]   ;;  %v16087_v40 = vld [vmem:[#allocation51 + $0xd4] ss:$20 sps:$4 sm:$0xff]  }
0x1204   :  { %9175 = vmatpush1.bf16.msra.mxu1 %v16004_v41  ;;  %9257 = vmatpush1.bf16.msra.mxu0 %v16007_v42  ;;  %v16082_v41 = vld [vmem:[#allocation51 + $0xc8] ss:$20 sps:$4 sm:$0xff]   ;;  %v16085_v42 = vld [vmem:[#allocation51 + $0xd0] ss:$20 sps:$4 sm:$0xff]  }
0x1205   :  { %9176 = vmatprep.subr.bf16.mxu1 %v16012_v43  ;;  %9258 = vmatprep.subr.bf16.mxu0 %v16015_v44  ;;  %v16090_v43 = vld [vmem:[#allocation51 + $0xf4] ss:$20 sps:$4 sm:$0xff]   ;;  %v16093_v44 = vld [vmem:[#allocation51 + $0xfc] ss:$20 sps:$4 sm:$0xff]  }
0x1208   :  { %9177 = vmatpush1.bf16.msra.mxu1 %v16010_v45  ;;  %9259 = vmatpush1.bf16.msra.mxu0 %v16013_v18  ;;  %v16088_v45 = vld [vmem:[#allocation51 + $0xf0] ss:$20 sps:$4 sm:$0xff]   ;;  %v16091_v18 = vld [vmem:[#allocation51 + $0xf8] ss:$20 sps:$4 sm:$0xff]  }
0x1209   :  { %9178 = vmatprep.subr.bf16.mxu1 %v16018_v47  ;;  %9260 = vmatprep.subr.bf16.mxu0 %v16021_v49  ;;  %v16096_v47 = vld [vmem:[#allocation51 + $0x11c] ss:$20 sps:$4 sm:$0xff]   ;;  %v16099_v49 = vld [vmem:[#allocation51 + $0x124] ss:$20 sps:$4 sm:$0xff]  }
0x120c   :  { %9179 = vmatpush1.bf16.msra.mxu1 %v16016_v50  ;;  %9261 = vmatpush1.bf16.msra.mxu0 %v16019_v34  ;;  %v16094_v50 = vld [vmem:[#allocation51 + $0x118] ss:$20 sps:$4 sm:$0xff]   ;;  %v16097_v34 = vld [vmem:[#allocation51 + $0x120] ss:$20 sps:$4 sm:$0xff]  }
0x120d   :  { %9180 = vmatprep.subr.bf16.mxu1 %v16024_v51  ;;  %9262 = vmatprep.subr.bf16.mxu0 %v16027_v52  ;;  %v16102_v51 = vld [vmem:[#allocation51 + $0x144] ss:$20 sps:$4 sm:$0xff]   ;;  %v16105_v52 = vld [vmem:[#allocation51 + $0x14c] ss:$20 sps:$4 sm:$0xff]  }
0x1210   :  { %9181 = vmatpush1.bf16.msra.mxu1 %v16022_v53  ;;  %9263 = vmatpush1.bf16.msra.mxu0 %v16025_v38  ;;  %v16100_v53 = vld [vmem:[#allocation51 + $0x140] ss:$20 sps:$4 sm:$0xff]   ;;  %v16103_v38 = vld [vmem:[#allocation51 + $0x148] ss:$20 sps:$4 sm:$0xff]  }
0x1211   :  { %9182 = vmatprep.subr.bf16.mxu1 %v16030_v54  ;;  %9264 = vmatprep.subr.bf16.mxu0 %v16033_v56  ;;  %v16108_v54 = vld [vmem:[#allocation51 + $0x16c] ss:$20 sps:$4 sm:$0xff]   ;;  %v16111_v56 = vld [vmem:[#allocation51 + $0x174] ss:$20 sps:$4 sm:$0xff]  }
0x1214   :  { %9183 = vmatpush1.bf16.msra.mxu1 %v16028_v48  ;;  %9265 = vmatpush1.bf16.msra.mxu0 %v16031_v57  ;;  %v16106_v48 = vld [vmem:[#allocation51 + $0x168] ss:$20 sps:$4 sm:$0xff]   ;;  %v16109_v57 = vld [vmem:[#allocation51 + $0x170] ss:$20 sps:$4 sm:$0xff]  }
0x1215   :  { %9184 = vmatprep.subr.bf16.mxu1 %v16036_v30  ;;  %9266 = vmatprep.subr.bf16.mxu0 %v16039_v58  ;;  %v16114_v30 = vld [vmem:[#allocation51 + $0x194] ss:$20 sps:$4 sm:$0xff]   ;;  %v16117_v58 = vld [vmem:[#allocation51 + $0x19c] ss:$20 sps:$4 sm:$0xff]  }
0x1218   :  { %9185 = vmatpush1.bf16.msra.mxu1 %v16034_v60  ;;  %9267 = vmatpush1.bf16.msra.mxu0 %v16037_v7  ;;  %v16115_v60 = vld [vmem:[#allocation51 + $0x198] ss:$20 sps:$4 sm:$0xff]   ;;  %v16120_v7 = vld [vmem:[#allocation51 + $0x1bc] ss:$20 sps:$4 sm:$0xff]  }
0x1219   :  { %9186 = vmatprep.subr.bf16.mxu1 %v16042_v62  ;;  %9268 = vmatprep.subr.bf16.mxu0 %v16045_v63  ;;  %v16123_v62 = vld [vmem:[#allocation51 + $0x1c4] ss:$20 sps:$4 sm:$0xff]  }
0x121a   :  { %v16118_v63 = vld [vmem:[#allocation51 + $0x1b8] ss:$20 sps:$4 sm:$0xff]  }
0x121c   :  { %9187 = vmatpush1.bf16.msra.mxu1 %v16040_v1  ;;  %9269 = vmatpush1.bf16.msra.mxu0 %v16043_v2  ;;  %v16126_v1 = vld [vmem:[#allocation51 + $0x1e4] ss:$20 sps:$4 sm:$0xff]   ;;  %v16129_v2 = vld [vmem:[#allocation51 + $0x1ec] ss:$20 sps:$4 sm:$0xff]  }
0x121d   :  { %9188 = vmatprep.subr.bf16.mxu1 %v16048_v3  ;;  %9270 = vmatprep.subr.bf16.mxu0 %v16051_v4  ;;  %v16124_v3 = vld [vmem:[#allocation51 + $0x1e0] ss:$20 sps:$4 sm:$0xff]   ;;  %v16127_v4 = vld [vmem:[#allocation51 + $0x1e8] ss:$20 sps:$4 sm:$0xff]  }
0x1220   :  { %9189 = vmatpush1.bf16.msra.mxu1 %v16046_v8  ;;  %9271 = vmatpush1.bf16.msra.mxu0 %v16049_v9  ;;  %v16135_v8 = vld [vmem:[#allocation51 + $0x214] ss:$20 sps:$4 sm:$0xff]  }
0x1221   :  { %10356 = vmatprep.subr.bf16.mxu1 %v16054_v10  ;;  %10438 = vmatprep.subr.bf16.mxu0 %v16057_v11  ;;  %v16130_v9 = vld [vmem:[#allocation51 + $0x208] ss:$20 sps:$4 sm:$0xff]   ;;  %v16133_v10 = vld [vmem:[#allocation51 + $0x210] ss:$20 sps:$4 sm:$0xff]  }
0x1222   :  { %v16138_v11 = vld [vmem:[#allocation51 + $0x234] ss:$20 sps:$4 sm:$0xff]  }
0x1223   :  { %9191 = vmatmul.mubr.bf16.vlgmr.msra.gmra.mrb[48].mxu1 %v8325_v14  ;;  %9273 = vmatmul.mubr.bf16.vlgmr.msra.gmra.mrb[56].mxu0 %v8325_v14  ;;  %v16144_v14 = vld [vmem:[#allocation51 + $0x25c] ss:$20 sps:$4 sm:$0xff]  }
0x1224   :  { %10357 = vmatpush1.bf16.msra.mxu1 %v16052_v46  ;;  %10439 = vmatpush1.bf16.msra.mxu0 %v16055_v13  ;;  %v16136_v46 = vld [vmem:[#allocation51 + $0x230] ss:$20 sps:$4 sm:$0xff]   ;;  %v16139_v13 = vld [vmem:[#allocation51 + $0x238] ss:$20 sps:$4 sm:$0xff]  }
0x1225   :  { %10358 = vmatprep.subr.bf16.mxu1 %v16060_v19  ;;  %10440 = vmatprep.subr.bf16.mxu0 %v16063_v20  ;;  %v16147_v19 = vld [vmem:[#allocation51 + $0x264] ss:$20 sps:$4 sm:$0xff]  }
0x1226   :  { %v16142_v20 = vld [vmem:[#allocation51 + $0x258] ss:$20 sps:$4 sm:$0xff]  }
0x1228   :  { %10359 = vmatpush1.bf16.msra.mxu1 %v16058_v29  ;;  %10441 = vmatpush1.bf16.msra.mxu0 %v16061_v21  ;;  %v16145_v29 = vld [vmem:[#allocation51 + $0x260] ss:$20 sps:$4 sm:$0xff]   ;;  %v16150_v21 = vld [vmem:[#allocation51 + $0x284] ss:$20 sps:$4 sm:$0xff]  }
0x1229   :  { %10360 = vmatprep.subr.bf16.mxu1 %v16066_v22  ;;  %10442 = vmatprep.subr.bf16.mxu0 %v16069_v23  ;;  %v16153_v22 = vld [vmem:[#allocation51 + $0x28c] ss:$20 sps:$4 sm:$0xff]   ;;  %v18192_v23 = vld [vmem:[#allocation49] sm:$0xf] }
0x122c   :  { %10361 = vmatpush1.bf16.msra.mxu1 %v16064_v25  ;;  %10443 = vmatpush1.bf16.msra.mxu0 %v16067_v26  ;;  %v8460_v25 = vrot.slane %v18192_v23, %v18025_v16  ;;  %v8464_v26 = vrot.slane %v18192_v23, %v18028_v17 }
0x122d   :  { %10362 = vmatprep.subr.bf16.mxu1 %v16072_v27  ;;  %10444 = vmatprep.subr.bf16.mxu0 %v16075_v31  ;;  %v8472_v27 = vrot.slane %v18192_v23, %v18042_v36 }
0x1230   :  { %10363 = vmatpush1.bf16.msra.mxu1 %v16070_v32  ;;  %10445 = vmatpush1.bf16.msra.mxu0 %v16073_v35 }
0x1231   :  { %10364 = vmatprep.subr.bf16.mxu1 %v16078_v55  ;;  %10446 = vmatprep.subr.bf16.mxu0 %v16081_v37 }
0x1234   :  { %10365 = vmatpush1.bf16.msra.mxu1 %v16076_v61  ;;  %10447 = vmatpush1.bf16.msra.mxu0 %v16079_v33 }
0x1235   :  { %10366 = vmatprep.subr.bf16.mxu1 %v16084_v39  ;;  %10448 = vmatprep.subr.bf16.mxu0 %v16087_v40 }
0x1238   :  { %10367 = vmatpush1.bf16.msra.mxu1 %v16082_v41  ;;  %10449 = vmatpush1.bf16.msra.mxu0 %v16085_v42 }
0x1239   :  { %10368 = vmatprep.subr.bf16.mxu1 %v16090_v43  ;;  %10450 = vmatprep.subr.bf16.mxu0 %v16093_v44 }
0x123c   :  { %10369 = vmatpush1.bf16.msra.mxu1 %v16088_v45  ;;  %10451 = vmatpush1.bf16.msra.mxu0 %v16091_v18 }
0x123d   :  { %10370 = vmatprep.subr.bf16.mxu1 %v16096_v47  ;;  %10452 = vmatprep.subr.bf16.mxu0 %v16099_v49 }
0x1240   :  { %10371 = vmatpush1.bf16.msra.mxu1 %v16094_v50  ;;  %10453 = vmatpush1.bf16.msra.mxu0 %v16097_v34  ;;  %v16148_v50 = vld [vmem:[#allocation51 + $0x280] ss:$20 sps:$4 sm:$0xff]   ;;  %v16151_v34 = vld [vmem:[#allocation51 + $0x288] ss:$20 sps:$4 sm:$0xff]  }
0x1241   :  { %10372 = vmatprep.subr.bf16.mxu1 %v16102_v51  ;;  %10454 = vmatprep.subr.bf16.mxu0 %v16105_v52 }
0x1244   :  { %10373 = vmatpush1.bf16.msra.mxu1 %v16100_v53  ;;  %10455 = vmatpush1.bf16.msra.mxu0 %v16103_v38  ;;  %v16156_v53 = vld [vmem:[#allocation51 + $0x2ac] ss:$20 sps:$4 sm:$0xff]   ;;  %v16159_v38 = vld [vmem:[#allocation51 + $0x2b4] ss:$20 sps:$4 sm:$0xff]  }
0x1245   :  { %10374 = vmatprep.subr.bf16.mxu1 %v16108_v54  ;;  %10456 = vmatprep.subr.bf16.mxu0 %v16111_v56  ;;  %v16154_v56 = vld [vmem:[#allocation51 + $0x2a8] ss:$20 sps:$4 sm:$0xff]  }
0x1248   :  { %10375 = vmatpush1.bf16.msra.mxu1 %v16106_v48  ;;  %10457 = vmatpush1.bf16.msra.mxu0 %v16109_v57  ;;  %v16157_v48 = vld [vmem:[#allocation51 + $0x2b0] ss:$20 sps:$4 sm:$0xff]   ;;  %v16162_v57 = vld [vmem:[#allocation51 + $0x2d4] ss:$20 sps:$4 sm:$0xff]  }
0x1249   :  { %10376 = vmatprep.subr.bf16.mxu1 %v16114_v30  ;;  %10458 = vmatprep.subr.bf16.mxu0 %v16117_v58  ;;  %v16165_v30 = vld [vmem:[#allocation51 + $0x2dc] ss:$20 sps:$4 sm:$0xff]  }
0x124a   :  { %v16160_v58 = vld [vmem:[#allocation51 + $0x2d0] ss:$20 sps:$4 sm:$0xff]  }
0x124c   :  { %10377 = vmatpush1.bf16.msra.mxu1 %v16112_v59  ;;  %10459 = vmatpush1.bf16.msra.mxu0 %v16115_v60  ;;  %v16163_v59 = vld [vmem:[#allocation51 + $0x2d8] ss:$20 sps:$4 sm:$0xff]   ;;  %v16168_v60 = vld [vmem:[#allocation51 + $0x2fc] ss:$20 sps:$4 sm:$0xff]  }
0x124d   :  { %10378 = vmatprep.subr.bf16.mxu1 %v16120_v7  ;;  %10460 = vmatprep.subr.bf16.mxu0 %v16123_v62  ;;  %v16171_v7 = vld [vmem:[#allocation51 + $0x304] ss:$20 sps:$4 sm:$0xff]  }
0x124e   :  { %v16166_v62 = vld [vmem:[#allocation51 + $0x2f8] ss:$20 sps:$4 sm:$0xff]  }
0x1250   :  { %10379 = vmatpush1.bf16.msra.mxu1 %v16118_v63  ;;  %10461 = vmatpush1.bf16.msra.mxu0 %v16121_v0  ;;  %v16169_v63 = vld [vmem:[#allocation51 + $0x300] ss:$20 sps:$4 sm:$0xff]   ;;  %v16174_v0 = vld [vmem:[#allocation51 + $0x324] ss:$20 sps:$4 sm:$0xff]  }
0x1251   :  { %10380 = vmatprep.subr.bf16.mxu1 %v16126_v1  ;;  %10462 = vmatprep.subr.bf16.mxu0 %v16129_v2  ;;  %v16177_v1 = vld [vmem:[#allocation51 + $0x32c] ss:$20 sps:$4 sm:$0xff]  }
0x1252   :  { %v16172_v2 = vld [vmem:[#allocation51 + $0x320] ss:$20 sps:$4 sm:$0xff]  }
0x1254   :  { %10381 = vmatpush1.bf16.msra.mxu1 %v16124_v3  ;;  %10463 = vmatpush1.bf16.msra.mxu0 %v16127_v4  ;;  %v16175_v3 = vld [vmem:[#allocation51 + $0x328] ss:$20 sps:$4 sm:$0xff]   ;;  %v16180_v4 = vld [vmem:[#allocation51 + $0x34c] ss:$20 sps:$4 sm:$0xff]  }
0x1255   :  { %10382 = vmatprep.subr.bf16.mxu1 %v16132_v5  ;;  %10464 = vmatprep.subr.bf16.mxu0 %v16135_v8  ;;  %v16183_v5 = vld [vmem:[#allocation51 + $0x354] ss:$20 sps:$4 sm:$0xff]  }
0x1256   :  { %v16178_v8 = vld [vmem:[#allocation51 + $0x348] ss:$20 sps:$4 sm:$0xff]  }
0x1258   :  { %10383 = vmatpush1.bf16.msra.mxu1 %v16130_v9  ;;  %10465 = vmatpush1.bf16.msra.mxu0 %v16133_v10  ;;  %v16181_v9 = vld [vmem:[#allocation51 + $0x350] ss:$20 sps:$4 sm:$0xff]   ;;  %v16186_v10 = vld [vmem:[#allocation51 + $0x374] ss:$20 sps:$4 sm:$0xff]  }
0x1259   :  { %10384 = vmatprep.subr.bf16.mxu1 %v16138_v11  ;;  %10466 = vmatprep.subr.bf16.mxu0 %v16141_v12  ;;  %v16189_v11 = vld [vmem:[#allocation51 + $0x37c] ss:$20 sps:$4 sm:$0xff]  }
0x125a   :  { %v16184_v12 = vld [vmem:[#allocation51 + $0x370] ss:$20 sps:$4 sm:$0xff]  }
0x125c   :  { %10385 = vmatpush1.bf16.msra.mxu1 %v16136_v46  ;;  %10467 = vmatpush1.bf16.msra.mxu0 %v16139_v13  ;;  %v16187_v46 = vld [vmem:[#allocation51 + $0x378] ss:$20 sps:$4 sm:$0xff]   ;;  %v16192_v13 = vld [vmem:[#allocation51 + $0x39c] ss:$20 sps:$4 sm:$0xff]  }
0x125d   :  { %10386 = vmatprep.subr.bf16.mxu1 %v16144_v14  ;;  %10468 = vmatprep.subr.bf16.mxu0 %v16147_v19  ;;  %v16195_v14 = vld [vmem:[#allocation51 + $0x3a4] ss:$20 sps:$4 sm:$0xff]  }
0x125e   :  { %v16190_v19 = vld [vmem:[#allocation51 + $0x398] ss:$20 sps:$4 sm:$0xff]  }
0x1260   :  { %10387 = vmatpush1.bf16.msra.mxu1 %v16142_v20  ;;  %10469 = vmatpush1.bf16.msra.mxu0 %v16145_v29  ;;  %v16193_v20 = vld [vmem:[#allocation51 + $0x3a0] ss:$20 sps:$4 sm:$0xff]   ;;  %v16198_v29 = vld [vmem:[#allocation51 + $0x3c4] ss:$20 sps:$4 sm:$0xff]  }
0x1261   :  { %10397 = vmatprep.subr.bf16.mxu1 %v16150_v21  ;;  %10479 = vmatprep.subr.bf16.mxu0 %v16153_v22  ;;  %v16201_v21 = vld [vmem:[#allocation51 + $0x3cc] ss:$20 sps:$4 sm:$0xff]  }
0x1262   :  { %v16196_v22 = vld [vmem:[#allocation51 + $0x3c0] ss:$20 sps:$4 sm:$0xff]  }
0x12f6   :  { %v9192_v31 = vpop.f32.mrb[48].mxu1  ;;  %v18200_v32 = vpop.f32.mrb[56].mxu0 }
0x12f7   :  { %v14384_v35 = vadd.f32 %v9192_v31, %v8460_v25  ;;  %v9194_v55 = vpop.f32.mrb[49].mxu1  ;;  %v9276_v37 = vpop.f32.mrb[57].mxu0  ;;  %v16199_v25 = vld [vmem:[#allocation51 + $0x3c8] ss:$20 sps:$4 sm:$0xff]  }
0x12f8   :  { %v14385_v61 = vadd.f32 %v9194_v55, %v8464_v26  ;;  %v14387_v33 = vadd.f32 %v9276_v37, %v8472_v27  ;;  %v9196_v39 = vpop.f32.mrb[50].mxu1  ;;  %v9278_v40 = vpop.f32.mrb[58].mxu0  ;;  %v16204_v26 = vld [vmem:[#allocation51 + $0x3ec] ss:$20 sps:$4 sm:$0xff]   ;;  %v16207_v27 = vld [vmem:[#allocation51 + $0x3f4] ss:$20 sps:$4 sm:$0xff]  }
0x12f9   :  { %vm9281_vm2 = vcmp.ge.f32.partialorder %v14384_v35, 0.0  ;;  %v9285_v41 = vmul.f32 0.2, %v14384_v35  ;;  %v9197_v45 = vpop.f32.mrb[51].mxu1  ;;  %v9279_v18 = vpop.f32.mrb[59].mxu0 }
0x12fa   :  { %vm9282_vm3 = vcmp.ge.f32.partialorder %v14385_v61, 0.0  ;;  %v9286_v42 = vmul.f32 0.2, %v14385_v61  ;;  %vm9284_vm4 = vcmp.ge.f32.partialorder %v14387_v33, 0.0  ;;  %v9288_v43 = vmul.f32 0.2, %v14387_v33 }
0x12fb   :  { %v9289_v44 = vsel %vm9281_vm2, %v14384_v35, %v9285_v41  ;;  %v16202_v31 = vld [vmem:[#allocation51 + $0x3e8] ss:$20 sps:$4 sm:$0xff]   ;;  %v16205_v35 = vld [vmem:[#allocation51 + $0x3f0] ss:$20 sps:$4 sm:$0xff]   ;;  %v16214_v41 = vld [vmem:[#allocation51 + $0x438] ss:$20 sps:$4 sm:$0xff]  }
0x12fc   :  { %v9290_v47 = vsel %vm9282_vm3, %v14385_v61, %v9286_v42  ;;  %v9292_v51 = vsel %vm9284_vm4, %v14387_v33, %v9288_v43  ;;  %v18204_v52 = vpack.c.bf16 %v9289_v44, %v9289_v44  ;;  %v16210_v55 = vld [vmem:[#allocation51 + $0x414] ss:$20 sps:$4 sm:$0xff]   ;;  %v16213_v37 = vld [vmem:[#allocation51 + $0x41c] ss:$20 sps:$4 sm:$0xff]   ;;  %v16211_v33 = vld [vmem:[#allocation51 + $0x418] ss:$20 sps:$4 sm:$0xff]  }
0x12fd   :  { %v18202_v49 = vpack.c.bf16 %v9290_v47, %v9290_v47  ;;  %v18210_v54 = vpack.c.bf16 %v9292_v51, %v9292_v51  ;;  %v16208_v61 = vld [vmem:[#allocation51 + $0x410] ss:$20 sps:$4 sm:$0xff]   ;;  %v16217_v42 = vld [vmem:[#allocation51 + $0x440] ss:$20 sps:$4 sm:$0xff]   ;;  %v16223_v18 = vld [vmem:[#allocation51 + $0x468] ss:$20 sps:$4 sm:$0xff]  }
0x12fe   :  { %v16216_v39 = vld [vmem:[#allocation51 + $0x43c] ss:$20 sps:$4 sm:$0xff]   ;;  %v16219_v40 = vld [vmem:[#allocation51 + $0x444] ss:$20 sps:$4 sm:$0xff]   ;;  %v16225_v44 = vld [vmem:[#allocation51 + $0x46c] ss:$20 sps:$4 sm:$0xff]  }
0x12ff   :  { %10388 = vmatprep.mubr.bf16.mxu1 %v18202_v49  ;;  %10470 = vmatprep.mubr.bf16.mxu0 %v18202_v49  ;;  %v16222_v43 = vld [vmem:[#allocation51 + $0x464] ss:$20 sps:$4 sm:$0xff]   ;;  %v16220_v45 = vld [vmem:[#allocation51 + $0x460] ss:$20 sps:$4 sm:$0xff]   ;;  %v16226_v51 = vld [vmem:[#allocation51 + $0x488] ss:$20 sps:$4 sm:$0xff]  }
0x1300   :  { %10389 = vmatmul.mubr.bf16.vlgmr.msra.gmra.mrb[52].mxu1 %v18204_v52  ;;  %10471 = vmatmul.mubr.bf16.vlgmr.msra.gmra.mrb[60].mxu0 %v18204_v52  ;;  %v16228_v47 = vld [vmem:[#allocation51 + $0x48c] ss:$20 sps:$4 sm:$0xff]  }
0x1301   :  { %10398 = vmatpush1.bf16.msra.mxu1 %v16148_v50  ;;  %10480 = vmatpush1.bf16.msra.mxu0 %v16151_v34  ;;  %v16231_v50 = vld [vmem:[#allocation51 + $0x494] ss:$20 sps:$4 sm:$0xff]   ;;  %v8468_v34 = vrot.slane %v18192_v23, %v18039_v28  ;;  %v16238_v23 = vld [vmem:[#allocation51 + $0x4d8] ss:$20 sps:$4 sm:$0xff]  }
0x1302   :  { %10429 = vmatprep.mubr.bf16.mxu1 %v18210_v54  ;;  %10511 = vmatprep.mubr.bf16.mxu0 %v18210_v54 }
0x1303   :  { %10399 = vmatprep.subr.bf16.mxu1 %v16156_v53  ;;  %10481 = vmatprep.subr.bf16.mxu0 %v16159_v38  ;;  %v16229_v53 = vld [vmem:[#allocation51 + $0x490] ss:$20 sps:$4 sm:$0xff]   ;;  %v16234_v38 = vld [vmem:[#allocation51 + $0x4b4] ss:$20 sps:$4 sm:$0xff]  }
0x1305   :  { %10400 = vmatpush1.bf16.msra.mxu1 %v16154_v56  ;;  %10482 = vmatpush1.bf16.msra.mxu0 %v16157_v48  ;;  %v16237_v56 = vld [vmem:[#allocation51 + $0x4bc] ss:$20 sps:$4 sm:$0xff]   ;;  %v14386_v48 = vadd.f32 %v18200_v32, %v8468_v34 }
0x1306   :  { %10401 = vmatprep.subr.bf16.mxu1 %v16162_v57  ;;  %10483 = vmatprep.subr.bf16.mxu0 %v16165_v30  ;;  %v16232_v57 = vld [vmem:[#allocation51 + $0x4b0] ss:$20 sps:$4 sm:$0xff]   ;;  %v16235_v30 = vld [vmem:[#allocation51 + $0x4b8] ss:$20 sps:$4 sm:$0xff]  }
0x1307   :  { %vm9283_vm5 = vcmp.ge.f32.partialorder %v14386_v48, 0.0  ;;  %v16246_v32 = vld [vmem:[#allocation51 + $0x10] ss:$20 sps:$4 sm:$0xff]  }
0x1308   :  { %v16293_v34 = vld [vmem:[#allocation54 + $0x6c] ss:$24 sps:$4 sm:$0xff]  }
0x1309   :  { %10402 = vmatpush1.bf16.msra.mxu1 %v16160_v58  ;;  %10484 = vmatpush1.bf16.msra.mxu0 %v16163_v59  ;;  %v16240_v58 = vld [vmem:[#allocation51 + $0x4dc] ss:$20 sps:$4 sm:$0xff]   ;;  %v16243_v59 = vld [vmem:[#allocation51 + $0x4e4] ss:$20 sps:$4 sm:$0xff]  }
0x130a   :  { %10403 = vmatprep.subr.bf16.mxu1 %v16168_v60  ;;  %10485 = vmatprep.subr.bf16.mxu0 %v16171_v7  ;;  %v9287_v60 = vmul.f32 0.2, %v14386_v48  ;;  %v16241_v7 = vld [vmem:[#allocation51 + $0x4e0] ss:$20 sps:$4 sm:$0xff]  }
0x130d   :  { %10404 = vmatpush1.bf16.msra.mxu1 %v16166_v62  ;;  %10486 = vmatpush1.bf16.msra.mxu0 %v16169_v63  ;;  %v16244_v62 = vld [vmem:[#allocation51 + $0x150] ss:$20 sps:$4 sm:$0xff]  }
0x130e   :  { %10405 = vmatprep.subr.bf16.mxu1 %v16174_v0  ;;  %10487 = vmatprep.subr.bf16.mxu0 %v16177_v1  ;;  %v16245_v63 = vld [vmem:[#allocation51 + $0x3d0] ss:$20 sps:$4 sm:$0xff]   ;;  %v9291_v0 = vsel %vm9283_vm5, %v14386_v48, %v9287_v60  ;;  %v16297_v48 = vld [vmem:[#allocation54 + $0x98] ss:$24 sps:$4 sm:$0xff]  }
0x130f   :  { %v18217_v1 = vpack.c.bf16 %v9291_v0, %v9291_v0  ;;  %v16308_v60 = vld [vmem:[#allocation54 + $0xf4] ss:$24 sps:$4 sm:$0xff]  }
0x1310   :  { %v16317_v0 = vld [vmem:[#allocation54 + $0x12c] ss:$24 sps:$4 sm:$0xff]  }
0x1311   :  { %10406 = vmatpush1.bf16.msra.mxu1 %v16172_v2  ;;  %10488 = vmatpush1.bf16.msra.mxu0 %v16175_v3  ;;  %v16247_v2 = vld [vmem:[#allocation51 + $0x290] ss:$20 sps:$4 sm:$0xff]   ;;  %v16248_v3 = vld [vmem:[#allocation51 + $0x178] ss:$20 sps:$4 sm:$0xff]  }
0x1312   :  { %10407 = vmatprep.subr.bf16.mxu1 %v16180_v4  ;;  %10489 = vmatprep.subr.bf16.mxu0 %v16183_v5  ;;  %v16249_v4 = vld [vmem:[#allocation51 + $0x3f8] ss:$20 sps:$4 sm:$0xff]  }
0x1313   :  { %v16250_v5 = vld [vmem:[#allocation51 + $0x38] ss:$20 sps:$4 sm:$0xff]  }
0x1315   :  { %10408 = vmatpush1.bf16.msra.mxu1 %v16178_v8  ;;  %10490 = vmatpush1.bf16.msra.mxu0 %v16181_v9  ;;  %v16251_v8 = vld [vmem:[#allocation51 + $0x2b8] ss:$20 sps:$4 sm:$0xff]   ;;  %v16252_v9 = vld [vmem:[#allocation51 + $0x1a0] ss:$20 sps:$4 sm:$0xff]  }
0x1316   :  { %10409 = vmatprep.subr.bf16.mxu1 %v16186_v10  ;;  %10491 = vmatprep.subr.bf16.mxu0 %v16189_v11  ;;  %v16253_v10 = vld [vmem:[#allocation51 + $0x420] ss:$20 sps:$4 sm:$0xff]  }
0x1317   :  { %v16254_v11 = vld [vmem:[#allocation51 + $0x60] ss:$20 sps:$4 sm:$0xff]  }
0x1319   :  { %10410 = vmatpush1.bf16.msra.mxu1 %v16184_v12  ;;  %10492 = vmatpush1.bf16.msra.mxu0 %v16187_v46  ;;  %v16255_v12 = vld [vmem:[#allocation51 + $0x2e0] ss:$20 sps:$4 sm:$0xff]   ;;  %v16256_v46 = vld [vmem:[#allocation51 + $0x1c8] ss:$20 sps:$4 sm:$0xff]  }
0x131a   :  { %10411 = vmatprep.subr.bf16.mxu1 %v16192_v13  ;;  %10493 = vmatprep.subr.bf16.mxu0 %v16195_v14  ;;  %v16257_v13 = vld [vmem:[#allocation51 + $0x448] ss:$20 sps:$4 sm:$0xff]  }
0x131b   :  { %v16258_v14 = vld [vmem:[#allocation51 + $0x88] ss:$20 sps:$4 sm:$0xff]  }
0x131d   :  { %10412 = vmatpush1.bf16.msra.mxu1 %v16190_v19  ;;  %10494 = vmatpush1.bf16.msra.mxu0 %v16193_v20  ;;  %v16260_v19 = vld [vmem:[#allocation51 + $0x1f0] ss:$20 sps:$4 sm:$0xff]  }
0x131e   :  { %10413 = vmatprep.subr.bf16.mxu1 %v16198_v29  ;;  %10495 = vmatprep.subr.bf16.mxu0 %v16201_v21  ;;  %v16262_v20 = vld [vmem:[#allocation51 + $0xb0] ss:$20 sps:$4 sm:$0xff]   ;;  %v16264_v21 = vld [vmem:[#allocation51 + $0x218] ss:$20 sps:$4 sm:$0xff]  }
0x131f   :  { %v16263_v29 = vld [vmem:[#allocation51 + $0x330] ss:$20 sps:$4 sm:$0xff]  }
0x1321   :  { %10414 = vmatpush1.bf16.msra.mxu1 %v16196_v22  ;;  %10496 = vmatpush1.bf16.msra.mxu0 %v16199_v25  ;;  %v16265_v22 = vld [vmem:[#allocation51 + $0x498] ss:$20 sps:$4 sm:$0xff]  }
0x1322   :  { %10415 = vmatprep.subr.bf16.mxu1 %v16204_v26  ;;  %10497 = vmatprep.subr.bf16.mxu0 %v16207_v27  ;;  %v16266_v25 = vld [vmem:[#allocation51 + $0xd8] ss:$20 sps:$4 sm:$0xff]   ;;  %v16268_v27 = vld [vmem:[#allocation51 + $0x240] ss:$20 sps:$4 sm:$0xff]  }
0x1323   :  { %v16267_v26 = vld [vmem:[#allocation51 + $0x358] ss:$20 sps:$4 sm:$0xff]  }
0x1325   :  { %10416 = vmatpush1.bf16.msra.mxu1 %v16202_v31  ;;  %10498 = vmatpush1.bf16.msra.mxu0 %v16205_v35  ;;  %v16269_v31 = vld [vmem:[#allocation51 + $0x4c0] ss:$20 sps:$4 sm:$0xff]  }
0x1326   :  { %10417 = vmatprep.subr.bf16.mxu1 %v16210_v55  ;;  %10499 = vmatprep.subr.bf16.mxu0 %v16213_v37  ;;  %v16270_v35 = vld [vmem:[#allocation51 + $0x100] ss:$20 sps:$4 sm:$0xff]   ;;  %v16272_v37 = vld [vmem:[#allocation51 + $0x268] ss:$20 sps:$4 sm:$0xff]  }
0x1327   :  { %v16271_v55 = vld [vmem:[#allocation51 + $0x380] ss:$20 sps:$4 sm:$0xff]  }
0x1329   :  { %10418 = vmatpush1.bf16.msra.mxu1 %v16208_v61  ;;  %10500 = vmatpush1.bf16.msra.mxu0 %v16211_v33  ;;  %v16273_v61 = vld [vmem:[#allocation51 + $0x4e8] ss:$20 sps:$4 sm:$0xff]  }
0x132a   :  { %10419 = vmatprep.subr.bf16.mxu1 %v16216_v39  ;;  %10501 = vmatprep.subr.bf16.mxu0 %v16219_v40  ;;  %v16274_v33 = vld [vmem:[#allocation51 + $0x128] ss:$20 sps:$4 sm:$0xff]  }
0x132b   :  { %v16275_v39 = vld [vmem:[#allocation51 + $0x3a8] ss:$20 sps:$4 sm:$0xff]  }
0x132c   :  { %v16278_v40 = vld [vmem:[#allocation54 + $0x4] ss:$24 sps:$4 sm:$0xff]  }
0x132d   :  { %10420 = vmatpush1.bf16.msra.mxu1 %v16214_v41  ;;  %10502 = vmatpush1.bf16.msra.mxu0 %v16217_v42  ;;  %v16281_v41 = vld [vmem:[#allocation54 + $0xc] ss:$24 sps:$4 sm:$0xff]   ;;  %v16276_v42 = vld [vmem:[#allocation54] ss:$24 sps:$4 sm:$0xff]  }
0x132e   :  { %10421 = vmatprep.subr.bf16.mxu1 %v16222_v43  ;;  %10503 = vmatprep.subr.bf16.mxu0 %v16225_v44  ;;  %v16279_v43 = vld [vmem:[#allocation54 + $0x8] ss:$24 sps:$4 sm:$0xff]   ;;  %v16284_v44 = vld [vmem:[#allocation54 + $0x34] ss:$24 sps:$4 sm:$0xff]  }
0x1331   :  { %10422 = vmatpush1.bf16.msra.mxu1 %v16220_v45  ;;  %10504 = vmatpush1.bf16.msra.mxu0 %v16223_v18  ;;  %v16287_v45 = vld [vmem:[#allocation54 + $0x3c] ss:$24 sps:$4 sm:$0xff]   ;;  %v16282_v18 = vld [vmem:[#allocation54 + $0x30] ss:$24 sps:$4 sm:$0xff]  }
0x1332   :  { %10423 = vmatprep.subr.bf16.mxu1 %v16228_v47  ;;  %10505 = vmatprep.subr.bf16.mxu0 %v16231_v50  ;;  %v16285_v47 = vld [vmem:[#allocation54 + $0x38] ss:$24 sps:$4 sm:$0xff]   ;;  %v16290_v50 = vld [vmem:[#allocation54 + $0x64] ss:$24 sps:$4 sm:$0xff]  }
0x1335   :  { %10424 = vmatpush1.bf16.msra.mxu1 %v16226_v51  ;;  %10506 = vmatpush1.bf16.msra.mxu0 %v16229_v53  ;;  %v16288_v51 = vld [vmem:[#allocation54 + $0x60] ss:$24 sps:$4 sm:$0xff]  }
0x1336   :  { %10425 = vmatprep.subr.bf16.mxu1 %v16234_v38  ;;  %10507 = vmatprep.subr.bf16.mxu0 %v16237_v56  ;;  %v16291_v53 = vld [vmem:[#allocation54 + $0x68] ss:$24 sps:$4 sm:$0xff]   ;;  %v16296_v38 = vld [vmem:[#allocation54 + $0x94] ss:$24 sps:$4 sm:$0xff]  }
0x1337   :  { %v16299_v56 = vld [vmem:[#allocation54 + $0x9c] ss:$24 sps:$4 sm:$0xff]  }
0x1339   :  { %10426 = vmatpush1.bf16.msra.mxu1 %v16232_v57  ;;  %10508 = vmatpush1.bf16.msra.mxu0 %v16235_v30  ;;  %v16302_v57 = vld [vmem:[#allocation54 + $0xc4] ss:$24 sps:$4 sm:$0xff]  }
0x133a   :  { %10427 = vmatprep.subr.bf16.mxu1 %v16240_v58  ;;  %10509 = vmatprep.subr.bf16.mxu0 %v16243_v59  ;;  %v16305_v30 = vld [vmem:[#allocation54 + $0xcc] ss:$24 sps:$4 sm:$0xff]   ;;  %v16300_v58 = vld [vmem:[#allocation54 + $0xc0] ss:$24 sps:$4 sm:$0xff]  }
0x133b   :  { %v16303_v59 = vld [vmem:[#allocation54 + $0xc8] ss:$24 sps:$4 sm:$0xff]  }
0x133d   :  { %10428 = vmatpush1.bf16.msra.mxu1 %v16238_v23  ;;  %10510 = vmatpush1.bf16.msra.mxu0 %v16241_v7  ;;  %v16311_v23 = vld [vmem:[#allocation54 + $0xfc] ss:$24 sps:$4 sm:$0xff]   ;;  %v16306_v7 = vld [vmem:[#allocation54 + $0xf0] ss:$24 sps:$4 sm:$0xff]  }
0x133e   :  { %14218 = vmatprep.subr.bf16.mxu1 %v16244_v62  ;;  %14240 = vmatprep.subr.bf16.mxu0 %v16245_v63  ;;  %v16309_v62 = vld [vmem:[#allocation54 + $0xf8] ss:$24 sps:$4 sm:$0xff]   ;;  %v16314_v63 = vld [vmem:[#allocation54 + $0x124] ss:$24 sps:$4 sm:$0xff]  }
0x1340   :  { %10430 = vmatmul.mubr.bf16.vlgmr.msra.gmra.mrb[52].mxu1 %v18217_v1  ;;  %10512 = vmatmul.mubr.bf16.vlgmr.msra.gmra.mrb[60].mxu0 %v18217_v1 }
0x1341   :  { %14219 = vmatpush3.bf16.msra.mxu1 %v16246_v32  ;;  %10552 = vmatprep.mubr.bf16.mxu1 %v18202_v49  ;;  %v16259_v49 = vld [vmem:[#allocation51 + $0x308] ss:$20 sps:$4 sm:$0xff]  }
0x1342   :  { %14241 = vmatpush3.bf16.msra.mxu0 %v16247_v2  ;;  %10592 = vmatprep.mubr.bf16.mxu0 %v18210_v54  ;;  %v16261_v54 = vld [vmem:[#allocation51 + $0x470] ss:$20 sps:$4 sm:$0xff]  }
0x1343   :  { %14220 = vmatprep.subr.bf16.mxu1 %v16248_v3  ;;  %14242 = vmatprep.subr.bf16.mxu0 %v16249_v4  ;;  %v16312_v32 = vld [vmem:[#allocation54 + $0x120] ss:$24 sps:$4 sm:$0xff]   ;;  %v16320_v2 = vld [vmem:[#allocation54 + $0x154] ss:$24 sps:$4 sm:$0xff]   ;;  %v16318_v4 = vld [vmem:[#allocation54 + $0x150] ss:$24 sps:$4 sm:$0xff]  }
0x1344   :  { %v16323_v3 = vld [vmem:[#allocation54 + $0x15c] ss:$24 sps:$4 sm:$0xff]  }
0x1345   :  { %14221 = vmatpush3.bf16.msra.mxu1 %v16250_v5  ;;  %v16321_v5 = vld [vmem:[#allocation54 + $0x158] ss:$24 sps:$4 sm:$0xff]  }
0x1346   :  { %14243 = vmatpush3.bf16.msra.mxu0 %v16251_v8  ;;  %14222 = vmatprep.subr.bf16.mxu1 %v16252_v9  ;;  %v16326_v8 = vld [vmem:[#allocation54 + $0x184] ss:$24 sps:$4 sm:$0xff]  }
0x1347   :  { %14244 = vmatprep.subr.bf16.mxu0 %v16253_v10  ;;  %v16329_v9 = vld [vmem:[#allocation54 + $0x18c] ss:$24 sps:$4 sm:$0xff]   ;;  %v16324_v10 = vld [vmem:[#allocation54 + $0x180] ss:$24 sps:$4 sm:$0xff]  }
0x1349   :  { %14223 = vmatpush3.bf16.msra.mxu1 %v16254_v11  ;;  %v16327_v11 = vld [vmem:[#allocation54 + $0x188] ss:$24 sps:$4 sm:$0xff]  }
0x134a   :  { %14245 = vmatpush3.bf16.msra.mxu0 %v16255_v12  ;;  %14224 = vmatprep.subr.bf16.mxu1 %v16256_v46  ;;  %v16332_v12 = vld [vmem:[#allocation54 + $0x1b4] ss:$24 sps:$4 sm:$0xff]  }
0x134b   :  { %14246 = vmatprep.subr.bf16.mxu0 %v16257_v13  ;;  %v16335_v46 = vld [vmem:[#allocation54 + $0x1bc] ss:$24 sps:$4 sm:$0xff]   ;;  %v16330_v13 = vld [vmem:[#allocation54 + $0x1b0] ss:$24 sps:$4 sm:$0xff]  }
0x134d   :  { %14225 = vmatpush3.bf16.msra.mxu1 %v16258_v14  ;;  %v16333_v14 = vld [vmem:[#allocation54 + $0x1b8] ss:$24 sps:$4 sm:$0xff]  }
0x134e   :  { %14247 = vmatpush3.bf16.msra.mxu0 %v16259_v49  ;;  %14226 = vmatprep.subr.bf16.mxu1 %v16260_v19  ;;  %v16338_v49 = vld [vmem:[#allocation54 + $0x1e4] ss:$24 sps:$4 sm:$0xff]  }
0x134f   :  { %14248 = vmatprep.subr.bf16.mxu0 %v16261_v54  ;;  %v16341_v19 = vld [vmem:[#allocation54 + $0x1ec] ss:$24 sps:$4 sm:$0xff]   ;;  %v16336_v54 = vld [vmem:[#allocation54 + $0x1e0] ss:$24 sps:$4 sm:$0xff]  }
0x1351   :  { %14227 = vmatpush3.bf16.msra.mxu1 %v16262_v20  ;;  %v16339_v20 = vld [vmem:[#allocation54 + $0x1e8] ss:$24 sps:$4 sm:$0xff]  }
0x1352   :  { %14249 = vmatpush3.bf16.msra.mxu0 %v16263_v29  ;;  %14228 = vmatprep.subr.bf16.mxu1 %v16264_v21  ;;  %v16344_v29 = vld [vmem:[#allocation54 + $0x214] ss:$24 sps:$4 sm:$0xff]  }
0x1353   :  { %14250 = vmatprep.subr.bf16.mxu0 %v16265_v22  ;;  %v16347_v21 = vld [vmem:[#allocation54 + $0x21c] ss:$24 sps:$4 sm:$0xff]   ;;  %v16342_v22 = vld [vmem:[#allocation54 + $0x210] ss:$24 sps:$4 sm:$0xff]  }
0x1355   :  { %14229 = vmatpush3.bf16.msra.mxu1 %v16266_v25  ;;  %v16345_v25 = vld [vmem:[#allocation54 + $0x218] ss:$24 sps:$4 sm:$0xff]  }
0x1356   :  { %14251 = vmatpush3.bf16.msra.mxu0 %v16267_v26  ;;  %14230 = vmatprep.subr.bf16.mxu1 %v16268_v27  ;;  %v16350_v26 = vld [vmem:[#allocation54 + $0x244] ss:$24 sps:$4 sm:$0xff]  }
0x1357   :  { %14252 = vmatprep.subr.bf16.mxu0 %v16269_v31  ;;  %v16353_v27 = vld [vmem:[#allocation54 + $0x24c] ss:$24 sps:$4 sm:$0xff]   ;;  %v16348_v31 = vld [vmem:[#allocation54 + $0x240] ss:$24 sps:$4 sm:$0xff]  }
0x1359   :  { %14231 = vmatpush3.bf16.msra.mxu1 %v16270_v35  ;;  %v16351_v35 = vld [vmem:[#allocation54 + $0x248] ss:$24 sps:$4 sm:$0xff]  }
0x135a   :  { %14253 = vmatpush3.bf16.msra.mxu0 %v16271_v55  ;;  %14232 = vmatprep.subr.bf16.mxu1 %v16272_v37  ;;  %v16356_v55 = vld [vmem:[#allocation54 + $0x274] ss:$24 sps:$4 sm:$0xff]  }
0x135b   :  { %14254 = vmatprep.subr.bf16.mxu0 %v16273_v61  ;;  %v16359_v37 = vld [vmem:[#allocation54 + $0x27c] ss:$24 sps:$4 sm:$0xff]   ;;  %v16354_v61 = vld [vmem:[#allocation54 + $0x270] ss:$24 sps:$4 sm:$0xff]  }
0x135d   :  { %14233 = vmatpush3.bf16.msra.mxu1 %v16274_v33  ;;  %v16357_v33 = vld [vmem:[#allocation54 + $0x278] ss:$24 sps:$4 sm:$0xff]  }
0x135e   :  { %14255 = vmatpush3.bf16.msra.mxu0 %v16275_v39  ;;  %12102 = vmatprep.subr.bf16.mxu1 %v16278_v40  ;;  %v16362_v39 = vld [vmem:[#allocation54 + $0x2a4] ss:$24 sps:$4 sm:$0xff]  }
0x135f   :  { %12225 = vmatprep.subr.bf16.mxu0 %v16281_v41  ;;  %v16365_v40 = vld [vmem:[#allocation54 + $0x2ac] ss:$24 sps:$4 sm:$0xff]   ;;  %v16360_v41 = vld [vmem:[#allocation54 + $0x2a0] ss:$24 sps:$4 sm:$0xff]  }
0x1360   :  { %10553 = vmatmul.mubr.bf16.vlgmr.msra.gmra.mrb[56].mxu1 %v18204_v52  ;;  %v16294_v52 = vld [vmem:[#allocation54 + $0x90] ss:$24 sps:$4 sm:$0xff]  }
0x1361   :  { %10593 = vmatmul.mubr.bf16.vlgmr.msra.gmra.mrb[64].mxu0 %v18217_v1  ;;  %12103 = vmatpush1.bf16.msra.mxu1 %v16276_v42  ;;  %v16315_v1 = vld [vmem:[#allocation54 + $0x128] ss:$24 sps:$4 sm:$0xff]  }
0x1362   :  { %12226 = vmatpush1.bf16.msra.mxu0 %v16279_v43  ;;  %12104 = vmatprep.subr.bf16.mxu1 %v16284_v44  ;;  %v16363_v42 = vld [vmem:[#allocation54 + $0x2a8] ss:$24 sps:$4 sm:$0xff]   ;;  %v16368_v43 = vld [vmem:[#allocation54 + $0x2d4] ss:$24 sps:$4 sm:$0xff]  }
0x1363   :  { %12227 = vmatprep.subr.bf16.mxu0 %v16287_v45  ;;  %v16371_v44 = vld [vmem:[#allocation54 + $0x2dc] ss:$24 sps:$4 sm:$0xff]   ;;  %v16366_v45 = vld [vmem:[#allocation54 + $0x2d0] ss:$24 sps:$4 sm:$0xff]  }
0x1365   :  { %12105 = vmatpush1.bf16.msra.mxu1 %v16282_v18  ;;  %v16369_v18 = vld [vmem:[#allocation54 + $0x2d8] ss:$24 sps:$4 sm:$0xff]  }
0x1366   :  { %12228 = vmatpush1.bf16.msra.mxu0 %v16285_v47  ;;  %12106 = vmatprep.subr.bf16.mxu1 %v16290_v50  ;;  %v16374_v47 = vld [vmem:[#allocation54 + $0x304] ss:$24 sps:$4 sm:$0xff]  }
0x1367   :  { %12229 = vmatprep.subr.bf16.mxu0 %v16293_v34  ;;  %v16377_v50 = vld [vmem:[#allocation54 + $0x30c] ss:$24 sps:$4 sm:$0xff]   ;;  %v18225_v34 = vld [vmem:[#allocation52] sm:$0x1f] }
0x1369   :  { %12107 = vmatpush1.bf16.msra.mxu1 %v16288_v51  ;;  %v9502_v51 = vrot.slane %v18225_v34, %v18025_v16 }
0x136a   :  { %12230 = vmatpush1.bf16.msra.mxu0 %v16291_v53  ;;  %12108 = vmatprep.subr.bf16.mxu1 %v16296_v38  ;;  %v9506_v53 = vrot.slane %v18225_v34, %v18028_v17  ;;  %v9514_v38 = vrot.slane %v18225_v34, %v18042_v36 }
0x136b   :  { %12231 = vmatprep.subr.bf16.mxu0 %v16299_v56 }
0x136d   :  { %12109 = vmatpush1.bf16.msra.mxu1 %v16294_v52 }
0x136e   :  { %12232 = vmatpush1.bf16.msra.mxu0 %v16297_v48  ;;  %12110 = vmatprep.subr.bf16.mxu1 %v16302_v57 }
0x136f   :  { %12233 = vmatprep.subr.bf16.mxu0 %v16305_v30 }
0x1371   :  { %12111 = vmatpush1.bf16.msra.mxu1 %v16300_v58 }
0x1372   :  { %12234 = vmatpush1.bf16.msra.mxu0 %v16303_v59  ;;  %12112 = vmatprep.subr.bf16.mxu1 %v16308_v60 }
0x1373   :  { %12235 = vmatprep.subr.bf16.mxu0 %v16311_v23 }
0x1375   :  { %12113 = vmatpush1.bf16.msra.mxu1 %v16306_v7 }
0x1376   :  { %12236 = vmatpush1.bf16.msra.mxu0 %v16309_v62  ;;  %12114 = vmatprep.subr.bf16.mxu1 %v16314_v63 }
0x1377   :  { %12237 = vmatprep.subr.bf16.mxu0 %v16317_v0 }
0x1379   :  { %12115 = vmatpush1.bf16.msra.mxu1 %v16312_v32 }
0x137a   :  { %12238 = vmatpush1.bf16.msra.mxu0 %v16315_v1  ;;  %12116 = vmatprep.subr.bf16.mxu1 %v16320_v2 }
0x137b   :  { %12239 = vmatprep.subr.bf16.mxu0 %v16323_v3 }
0x137d   :  { %12117 = vmatpush1.bf16.msra.mxu1 %v16318_v4  ;;  %v16372_v4 = vld [vmem:[#allocation54 + $0x300] ss:$24 sps:$4 sm:$0xff]  }
0x137e   :  { %12240 = vmatpush1.bf16.msra.mxu0 %v16321_v5  ;;  %12118 = vmatprep.subr.bf16.mxu1 %v16326_v8  ;;  %v16375_v5 = vld [vmem:[#allocation54 + $0x308] ss:$24 sps:$4 sm:$0xff]  }
0x137f   :  { %12241 = vmatprep.subr.bf16.mxu0 %v16329_v9 }
0x1381   :  { %12119 = vmatpush1.bf16.msra.mxu1 %v16324_v10  ;;  %v16380_v10 = vld [vmem:[#allocation54 + $0x334] ss:$24 sps:$4 sm:$0xff]  }
0x1382   :  { %12242 = vmatpush1.bf16.msra.mxu0 %v16327_v11  ;;  %12120 = vmatprep.subr.bf16.mxu1 %v16332_v12  ;;  %v16383_v11 = vld [vmem:[#allocation54 + $0x33c] ss:$24 sps:$4 sm:$0xff]  }
0x1383   :  { %12243 = vmatprep.subr.bf16.mxu0 %v16335_v46  ;;  %v16378_v46 = vld [vmem:[#allocation54 + $0x330] ss:$24 sps:$4 sm:$0xff]  }
0x1385   :  { %12121 = vmatpush1.bf16.msra.mxu1 %v16330_v13  ;;  %v16381_v13 = vld [vmem:[#allocation54 + $0x338] ss:$24 sps:$4 sm:$0xff]  }
0x1386   :  { %12244 = vmatpush1.bf16.msra.mxu0 %v16333_v14  ;;  %12122 = vmatprep.subr.bf16.mxu1 %v16338_v49  ;;  %v16386_v14 = vld [vmem:[#allocation54 + $0x364] ss:$24 sps:$4 sm:$0xff]  }
0x1387   :  { %12245 = vmatprep.subr.bf16.mxu0 %v16341_v19  ;;  %v16389_v49 = vld [vmem:[#allocation54 + $0x36c] ss:$24 sps:$4 sm:$0xff]   ;;  %v16384_v19 = vld [vmem:[#allocation54 + $0x360] ss:$24 sps:$4 sm:$0xff]  }
0x1389   :  { %12123 = vmatpush1.bf16.msra.mxu1 %v16336_v54  ;;  %v16387_v54 = vld [vmem:[#allocation54 + $0x368] ss:$24 sps:$4 sm:$0xff]  }
0x138a   :  { %12246 = vmatpush1.bf16.msra.mxu0 %v16339_v20  ;;  %12124 = vmatprep.subr.bf16.mxu1 %v16344_v29  ;;  %v16392_v20 = vld [vmem:[#allocation54 + $0x394] ss:$24 sps:$4 sm:$0xff]  }
0x138b   :  { %12247 = vmatprep.subr.bf16.mxu0 %v16347_v21  ;;  %v16395_v29 = vld [vmem:[#allocation54 + $0x39c] ss:$24 sps:$4 sm:$0xff]   ;;  %v16390_v21 = vld [vmem:[#allocation54 + $0x390] ss:$24 sps:$4 sm:$0xff]  }
0x138d   :  { %12125 = vmatpush1.bf16.msra.mxu1 %v16342_v22  ;;  %v16393_v22 = vld [vmem:[#allocation54 + $0x398] ss:$24 sps:$4 sm:$0xff]  }
0x138e   :  { %12248 = vmatpush1.bf16.msra.mxu0 %v16345_v25  ;;  %12126 = vmatprep.subr.bf16.mxu1 %v16350_v26  ;;  %v16398_v25 = vld [vmem:[#allocation54 + $0x3c4] ss:$24 sps:$4 sm:$0xff]  }
0x138f   :  { %12249 = vmatprep.subr.bf16.mxu0 %v16353_v27  ;;  %v16401_v26 = vld [vmem:[#allocation54 + $0x3cc] ss:$24 sps:$4 sm:$0xff]   ;;  %v16396_v27 = vld [vmem:[#allocation54 + $0x3c0] ss:$24 sps:$4 sm:$0xff]  }
0x1391   :  { %12127 = vmatpush1.bf16.msra.mxu1 %v16348_v31  ;;  %v16399_v31 = vld [vmem:[#allocation54 + $0x3c8] ss:$24 sps:$4 sm:$0xff]  }
0x1392   :  { %12250 = vmatpush1.bf16.msra.mxu0 %v16351_v35  ;;  %12128 = vmatprep.subr.bf16.mxu1 %v16356_v55  ;;  %v16404_v35 = vld [vmem:[#allocation54 + $0x3f4] ss:$24 sps:$4 sm:$0xff]  }
0x1393   :  { %12251 = vmatprep.subr.bf16.mxu0 %v16359_v37  ;;  %v16407_v55 = vld [vmem:[#allocation54 + $0x3fc] ss:$24 sps:$4 sm:$0xff]   ;;  %v16402_v37 = vld [vmem:[#allocation54 + $0x3f0] ss:$24 sps:$4 sm:$0xff]  }
0x1395   :  { %12129 = vmatpush1.bf16.msra.mxu1 %v16354_v61  ;;  %v16405_v61 = vld [vmem:[#allocation54 + $0x3f8] ss:$24 sps:$4 sm:$0xff]  }
0x1396   :  { %12252 = vmatpush1.bf16.msra.mxu0 %v16357_v33  ;;  %12130 = vmatprep.subr.bf16.mxu1 %v16362_v39  ;;  %v16410_v33 = vld [vmem:[#allocation54 + $0x424] ss:$24 sps:$4 sm:$0xff]  }
0x1397   :  { %12253 = vmatprep.subr.bf16.mxu0 %v16365_v40  ;;  %v16413_v39 = vld [vmem:[#allocation54 + $0x42c] ss:$24 sps:$4 sm:$0xff]   ;;  %v16408_v40 = vld [vmem:[#allocation54 + $0x420] ss:$24 sps:$4 sm:$0xff]  }
0x1399   :  { %12131 = vmatpush1.bf16.msra.mxu1 %v16360_v41  ;;  %v16411_v41 = vld [vmem:[#allocation54 + $0x428] ss:$24 sps:$4 sm:$0xff]  }
0x139a   :  { %12254 = vmatpush1.bf16.msra.mxu0 %v16363_v42  ;;  %12132 = vmatprep.subr.bf16.mxu1 %v16368_v43  ;;  %v9518_v43 = vrot.slane %v18225_v34, %v18053_v24 }
0x139b   :  { %12255 = vmatprep.subr.bf16.mxu0 %v16371_v44  ;;  %v16416_v44 = vld [vmem:[#allocation54 + $0x454] ss:$24 sps:$4 sm:$0xff]  }
0x139d   :  { %12133 = vmatpush1.bf16.msra.mxu1 %v16366_v45  ;;  %v16419_v45 = vld [vmem:[#allocation54 + $0x45c] ss:$24 sps:$4 sm:$0xff]  }
0x139e   :  { %12256 = vmatpush1.bf16.msra.mxu0 %v16369_v18  ;;  %12143 = vmatprep.subr.bf16.mxu1 %v16374_v47 }
0x139f   :  { %12266 = vmatprep.subr.bf16.mxu0 %v16377_v50 }
0x1413   :  { %v10431_v56 = vpop.f32.mrb[52].mxu1  ;;  %v18233_v52 = vpop.f32.mrb[60].mxu0 }
0x1414   :  { %v14388_v48 = vadd.f32 %v10431_v56, %v9502_v51  ;;  %v10433_v57 = vpop.f32.mrb[53].mxu1  ;;  %v10515_v30 = vpop.f32.mrb[61].mxu0 }
0x1415   :  { %v14389_v58 = vadd.f32 %v10433_v57, %v9506_v53  ;;  %v14391_v59 = vadd.f32 %v10515_v30, %v9514_v38  ;;  %v10435_v60 = vpop.f32.mrb[54].mxu1  ;;  %v10517_v23 = vpop.f32.mrb[62].mxu0  ;;  %v16414_v57 = vld [vmem:[#allocation54 + $0x450] ss:$24 sps:$4 sm:$0xff]  }
0x1416   :  { %vm10600_vm6 = vcmp.ge.f32.partialorder %v14388_v48, 0.0  ;;  %v10605_v7 = vmul.f32 0.2, %v14388_v48  ;;  %v10436_v32 = vpop.f32.mrb[55].mxu1  ;;  %v10518_v1 = vpop.f32.mrb[63].mxu0 }
0x1417   :  { %vm10601_vm7 = vcmp.ge.f32.partialorder %v14389_v58, 0.0  ;;  %v10606_v62 = vmul.f32 0.2, %v14389_v58  ;;  %vm10603_vm8 = vcmp.ge.f32.partialorder %v14391_v59, 0.0  ;;  %v10608_v63 = vmul.f32 0.2, %v14391_v59 }
0x1418   :  { %v10610_v0 = vsel %vm10600_vm6, %v14388_v48, %v10605_v7  ;;  %v16417_v30 = vld [vmem:[#allocation54 + $0x458] ss:$24 sps:$4 sm:$0xff]   ;;  %v16422_v60 = vld [vmem:[#allocation54 + $0x484] ss:$24 sps:$4 sm:$0xff]  }
0x1419   :  { %v10611_v2 = vsel %vm10601_vm7, %v14389_v58, %v10606_v62  ;;  %v10613_v8 = vsel %vm10603_vm8, %v14391_v59, %v10608_v63  ;;  %v18237_v9 = vpack.c.bf16 %v10610_v0, %v10610_v0  ;;  %v16425_v23 = vld [vmem:[#allocation54 + $0x48c] ss:$24 sps:$4 sm:$0xff]   ;;  %v16420_v62 = vld [vmem:[#allocation54 + $0x480] ss:$24 sps:$4 sm:$0xff]   ;;  %v16431_v32 = vld [vmem:[#allocation54 + $0x4bc] ss:$24 sps:$4 sm:$0xff]  }
0x141a   :  { %v18235_v3 = vpack.c.bf16 %v10611_v2, %v10611_v2  ;;  %v18243_v12 = vpack.c.bf16 %v10613_v8, %v10613_v8  ;;  %v16423_v63 = vld [vmem:[#allocation54 + $0x488] ss:$24 sps:$4 sm:$0xff]   ;;  %v16428_v0 = vld [vmem:[#allocation54 + $0x4b4] ss:$24 sps:$4 sm:$0xff]   ;;  %v16429_v2 = vld [vmem:[#allocation54 + $0x4b8] ss:$24 sps:$4 sm:$0xff]  }
0x141b   :  { %v16426_v1 = vld [vmem:[#allocation54 + $0x4b0] ss:$24 sps:$4 sm:$0xff]   ;;  %v16432_v8 = vld [vmem:[#allocation54 + $0x4e0] ss:$24 sps:$4 sm:$0xff]  }
0x141c   :  { %12134 = vmatprep.mubr.bf16.mxu1 %v18235_v3  ;;  %12257 = vmatprep.mubr.bf16.mxu0 %v18235_v3 }
0x141d   :  { %12135 = vmatmul.mubr.bf16.vlgmr.msra.gmra.mrb[60].mxu1 %v18237_v9  ;;  %12258 = vmatmul.mubr.bf16.vlgmr.msra.gmra.mrb[68].mxu0 %v18237_v9 }
0x141e   :  { %12144 = vmatpush1.bf16.msra.mxu1 %v16372_v4  ;;  %12267 = vmatpush1.bf16.msra.mxu0 %v16375_v5  ;;  %v16434_v4 = vld [vmem:[#allocation54 + $0x4e4] ss:$24 sps:$4 sm:$0xff]  }
0x141f   :  { %12175 = vmatprep.mubr.bf16.mxu1 %v18243_v12  ;;  %12298 = vmatprep.mubr.bf16.mxu0 %v18243_v12  ;;  %v16437_v5 = vld [vmem:[#allocation54 + $0x4ec] ss:$24 sps:$4 sm:$0xff]  }
0x1420   :  { %12145 = vmatprep.subr.bf16.mxu1 %v16380_v10  ;;  %12268 = vmatprep.subr.bf16.mxu0 %v16383_v11  ;;  %v16435_v10 = vld [vmem:[#allocation54 + $0x4e8] ss:$24 sps:$4 sm:$0xff]   ;;  %v16440_v11 = vld [vmem:[#allocation54 + $0x514] ss:$24 sps:$4 sm:$0xff]  }
0x1422   :  { %12146 = vmatpush1.bf16.msra.mxu1 %v16378_v46  ;;  %12269 = vmatpush1.bf16.msra.mxu0 %v16381_v13  ;;  %v16443_v46 = vld [vmem:[#allocation54 + $0x51c] ss:$24 sps:$4 sm:$0xff]   ;;  %v16438_v13 = vld [vmem:[#allocation54 + $0x510] ss:$24 sps:$4 sm:$0xff]  }
0x1423   :  { %12147 = vmatprep.subr.bf16.mxu1 %v16386_v14  ;;  %12270 = vmatprep.subr.bf16.mxu0 %v16389_v49  ;;  %v16441_v14 = vld [vmem:[#allocation54 + $0x518] ss:$24 sps:$4 sm:$0xff]   ;;  %v16446_v49 = vld [vmem:[#allocation54 + $0x544] ss:$24 sps:$4 sm:$0xff]  }
0x1426   :  { %12148 = vmatpush1.bf16.msra.mxu1 %v16384_v19  ;;  %12271 = vmatpush1.bf16.msra.mxu0 %v16387_v54  ;;  %v16449_v19 = vld [vmem:[#allocation54 + $0x54c] ss:$24 sps:$4 sm:$0xff]   ;;  %v16444_v54 = vld [vmem:[#allocation54 + $0x540] ss:$24 sps:$4 sm:$0xff]  }
0x1427   :  { %12149 = vmatprep.subr.bf16.mxu1 %v16392_v20  ;;  %12272 = vmatprep.subr.bf16.mxu0 %v16395_v29  ;;  %v16447_v20 = vld [vmem:[#allocation54 + $0x548] ss:$24 sps:$4 sm:$0xff]   ;;  %v16452_v29 = vld [vmem:[#allocation54 + $0x574] ss:$24 sps:$4 sm:$0xff]  }
0x142a   :  { %12150 = vmatpush1.bf16.msra.mxu1 %v16390_v21  ;;  %12273 = vmatpush1.bf16.msra.mxu0 %v16393_v22  ;;  %v16455_v21 = vld [vmem:[#allocation54 + $0x57c] ss:$24 sps:$4 sm:$0xff]   ;;  %v9510_v22 = vrot.slane %v18225_v34, %v18039_v28  ;;  %v16462_v34 = vld [vmem:[#allocation54 + $0x5d0] ss:$24 sps:$4 sm:$0xff]  }
0x142b   :  { %12151 = vmatprep.subr.bf16.mxu1 %v16398_v25  ;;  %12274 = vmatprep.subr.bf16.mxu0 %v16401_v26  ;;  %v16450_v25 = vld [vmem:[#allocation54 + $0x570] ss:$24 sps:$4 sm:$0xff]  }
0x142c   :  { %v16453_v26 = vld [vmem:[#allocation54 + $0x578] ss:$24 sps:$4 sm:$0xff]  }
0x142e   :  { %12152 = vmatpush1.bf16.msra.mxu1 %v16396_v27  ;;  %12275 = vmatpush1.bf16.msra.mxu0 %v16399_v31  ;;  %v16458_v27 = vld [vmem:[#allocation54 + $0x5a4] ss:$24 sps:$4 sm:$0xff]  }
0x142f   :  { %12153 = vmatprep.subr.bf16.mxu1 %v16404_v35  ;;  %12276 = vmatprep.subr.bf16.mxu0 %v16407_v55  ;;  %v16461_v31 = vld [vmem:[#allocation54 + $0x5ac] ss:$24 sps:$4 sm:$0xff]   ;;  %v14390_v35 = vadd.f32 %v18233_v52, %v9510_v22  ;;  %v16456_v55 = vld [vmem:[#allocation54 + $0x5a0] ss:$24 sps:$4 sm:$0xff]  }
0x1430   :  { %v16468_v52 = vld [vmem:[#allocation54 + $0x600] ss:$24 sps:$4 sm:$0xff]  }
0x1431   :  { %vm10602_vm9 = vcmp.ge.f32.partialorder %v14390_v35, 0.0  ;;  %v16519_v22 = vld [vmem:[#allocation54 + $0x40] ss:$24 sps:$4 sm:$0xff]  }
0x1432   :  { %12154 = vmatpush1.bf16.msra.mxu1 %v16402_v37  ;;  %12277 = vmatpush1.bf16.msra.mxu0 %v16405_v61  ;;  %v16459_v37 = vld [vmem:[#allocation54 + $0x5a8] ss:$24 sps:$4 sm:$0xff]   ;;  %v16464_v61 = vld [vmem:[#allocation54 + $0x5d4] ss:$24 sps:$4 sm:$0xff]  }
0x1433   :  { %v14234_v42 = vpop.f32.mrb[56].mxu1  ;;  %12155 = vmatprep.subr.bf16.mxu1 %v16410_v33  ;;  %12278 = vmatprep.subr.bf16.mxu0 %v16413_v39  ;;  %v16467_v33 = vld [vmem:[#allocation54 + $0x5dc] ss:$24 sps:$4 sm:$0xff]   ;;  %v10607_v39 = vmul.f32 0.2, %v14390_v35 }
0x1434   :  { %v14256_v18 = vpop.f32.mrb[64].mxu0  ;;  %v14235_v47 = vpop.f32.mrb[57].mxu1 }
0x1435   :  { %v14236_v50 = vadd.f32 %v14235_v47, %v14234_v42  ;;  %v14257_v51 = vpop.f32.mrb[65].mxu0  ;;  %v14237_v53 = vpop.f32.mrb[58].mxu1  ;;  %v16473_v42 = vld [vmem:[#allocation54 + $0x60c] ss:$24 sps:$4 sm:$0xff]   ;;  %v16479_v47 = vld [vmem:[#allocation54 + $0x63c] ss:$24 sps:$4 sm:$0xff]  }
0x1436   :  { %v14258_v38 = vadd.f32 %v14257_v51, %v14256_v18  ;;  %v14259_v56 = vpop.f32.mrb[66].mxu0  ;;  %12156 = vmatpush1.bf16.msra.mxu1 %v16408_v40  ;;  %12279 = vmatpush1.bf16.msra.mxu0 %v16411_v41  ;;  %v14238_v48 = vpop.f32.mrb[59].mxu1  ;;  %v16465_v40 = vld [vmem:[#allocation54 + $0x5d8] ss:$24 sps:$4 sm:$0xff]   ;;  %v16470_v41 = vld [vmem:[#allocation54 + $0x604] ss:$24 sps:$4 sm:$0xff]  }
0x1437   :  { %v10555_v58 = vadd.f32 %v14236_v50, %v9518_v43  ;;  %v14260_v59 = vpop.f32.mrb[67].mxu0  ;;  %12157 = vmatprep.subr.bf16.mxu1 %v16416_v44  ;;  %12280 = vmatprep.subr.bf16.mxu0 %v16419_v45  ;;  %v10612_v43 = vsel %vm10602_vm9, %v14390_v35, %v10607_v39  ;;  %v16471_v44 = vld [vmem:[#allocation54 + $0x608] ss:$24 sps:$4 sm:$0xff]   ;;  %v16476_v18 = vld [vmem:[#allocation54 + $0x634] ss:$24 sps:$4 sm:$0xff]  }
0x1438   :  { %v18254_v45 = vpack.c.bf16 %v10612_v43, %v10612_v43  ;;  %v16474_v50 = vld [vmem:[#allocation54 + $0x630] ss:$24 sps:$4 sm:$0xff]   ;;  %v16482_v53 = vld [vmem:[#allocation54 + $0x664] ss:$24 sps:$4 sm:$0xff]   ;;  %v16480_v56 = vld [vmem:[#allocation54 + $0x660] ss:$24 sps:$4 sm:$0xff]  }
0x1439   :  { %v18249_v7 = vadd.f32 %v14258_v38, %v10555_v58  ;;  %v16477_v51 = vld [vmem:[#allocation54 + $0x638] ss:$24 sps:$4 sm:$0xff]   ;;  %v16485_v38 = vld [vmem:[#allocation54 + $0x66c] ss:$24 sps:$4 sm:$0xff]   ;;  %v16483_v48 = vld [vmem:[#allocation54 + $0x668] ss:$24 sps:$4 sm:$0xff]  }
0x143a   :  { %12158 = vmatpush1.bf16.msra.mxu1 %v16414_v57  ;;  %12281 = vmatpush1.bf16.msra.mxu0 %v16417_v30  ;;  %v16488_v57 = vld [vmem:[#allocation54 + $0x694] ss:$24 sps:$4 sm:$0xff]   ;;  %v16486_v58 = vld [vmem:[#allocation54 + $0x690] ss:$24 sps:$4 sm:$0xff]   ;;  %v16537_v39 = vld [vmem:[#allocation54 + $0x160] ss:$24 sps:$4 sm:$0xff]  }
0x143b   :  { %12159 = vmatprep.subr.bf16.mxu1 %v16422_v60  ;;  %12282 = vmatprep.subr.bf16.mxu0 %v16425_v23  ;;  %v16491_v30 = vld [vmem:[#allocation54 + $0x69c] ss:$24 sps:$4 sm:$0xff]   ;;  %v16489_v59 = vld [vmem:[#allocation54 + $0x698] ss:$24 sps:$4 sm:$0xff]   ;;  %v16497_v23 = vld [vmem:[#allocation54 + $0x6cc] ss:$24 sps:$4 sm:$0xff]  }
0x143c   :  { %v16494_v60 = vld [vmem:[#allocation54 + $0x6c4] ss:$24 sps:$4 sm:$0xff]   ;;  %vm10604_vm10 = vcmp.ge.f32.partialorder %v18249_v7, 0.0  ;;  %v16528_v35 = vld [vmem:[#allocation54 + $0xd0] ss:$24 sps:$4 sm:$0xff]  }
0x143d   :  { %v16548_v43 = vld [vmem:[#allocation54 + $0x1f4] ss:$24 sps:$4 sm:$0xff]  }
0x143e   :  { %12160 = vmatpush1.bf16.msra.mxu1 %v16420_v62  ;;  %12283 = vmatpush1.bf16.msra.mxu0 %v16423_v63  ;;  %v16492_v62 = vld [vmem:[#allocation54 + $0x6c0] ss:$24 sps:$4 sm:$0xff]  }
0x143f   :  { %12161 = vmatprep.subr.bf16.mxu1 %v16428_v0  ;;  %12284 = vmatprep.subr.bf16.mxu0 %v16431_v32  ;;  %v16495_v63 = vld [vmem:[#allocation54 + $0x6c8] ss:$24 sps:$4 sm:$0xff]   ;;  %v16500_v0 = vld [vmem:[#allocation54 + $0x6f4] ss:$24 sps:$4 sm:$0xff]  }
0x1440   :  { %v16503_v32 = vld [vmem:[#allocation54 + $0x6fc] ss:$24 sps:$4 sm:$0xff]  }
0x1442   :  { %12162 = vmatpush1.bf16.msra.mxu1 %v16426_v1  ;;  %12285 = vmatpush1.bf16.msra.mxu0 %v16429_v2  ;;  %v16498_v1 = vld [vmem:[#allocation54 + $0x6f0] ss:$24 sps:$4 sm:$0xff]  }
0x1443   :  { %12163 = vmatprep.subr.bf16.mxu1 %v16434_v4  ;;  %12286 = vmatprep.subr.bf16.mxu0 %v16437_v5  ;;  %v16501_v2 = vld [vmem:[#allocation54 + $0x6f8] ss:$24 sps:$4 sm:$0xff]   ;;  %v16506_v4 = vld [vmem:[#allocation54 + $0x724] ss:$24 sps:$4 sm:$0xff]  }
0x1444   :  { %v16509_v5 = vld [vmem:[#allocation54 + $0x72c] ss:$24 sps:$4 sm:$0xff]  }
0x1446   :  { %12164 = vmatpush1.bf16.msra.mxu1 %v16432_v8  ;;  %12287 = vmatpush1.bf16.msra.mxu0 %v16435_v10  ;;  %v16504_v8 = vld [vmem:[#allocation54 + $0x720] ss:$24 sps:$4 sm:$0xff]  }
0x1447   :  { %12165 = vmatprep.subr.bf16.mxu1 %v16440_v11  ;;  %12288 = vmatprep.subr.bf16.mxu0 %v16443_v46  ;;  %v16507_v10 = vld [vmem:[#allocation54 + $0x728] ss:$24 sps:$4 sm:$0xff]   ;;  %v16512_v11 = vld [vmem:[#allocation54 + $0x754] ss:$24 sps:$4 sm:$0xff]  }
0x1448   :  { %v16515_v46 = vld [vmem:[#allocation54 + $0x75c] ss:$24 sps:$4 sm:$0xff]  }
0x144a   :  { %12166 = vmatpush1.bf16.msra.mxu1 %v16438_v13  ;;  %12289 = vmatpush1.bf16.msra.mxu0 %v16441_v14  ;;  %v10609_v13 = vmul.f32 0.2, %v18249_v7  ;;  %v16510_v14 = vld [vmem:[#allocation54 + $0x750] ss:$24 sps:$4 sm:$0xff]  }
0x144b   :  { %12167 = vmatprep.subr.bf16.mxu1 %v16446_v49  ;;  %12290 = vmatprep.subr.bf16.mxu0 %v16449_v19  ;;  %v16513_v49 = vld [vmem:[#allocation54 + $0x758] ss:$24 sps:$4 sm:$0xff]   ;;  %v16518_v19 = vld [vmem:[#allocation54 + $0x14] ss:$24 sps:$4 sm:$0xff]  }
0x144e   :  { %12168 = vmatpush1.bf16.msra.mxu1 %v16444_v54  ;;  %12291 = vmatpush1.bf16.msra.mxu0 %v16447_v20  ;;  %v10614_v54 = vsel %vm10604_vm10, %v18249_v7, %v10609_v13  ;;  %v16516_v20 = vld [vmem:[#allocation54 + $0x10] ss:$24 sps:$4 sm:$0xff]   ;;  %v16527_v7 = vld [vmem:[#allocation54 + $0xa4] ss:$24 sps:$4 sm:$0xff]   ;;  %v16591_v13 = vld [vmem:[#allocation54 + $0x4c0] ss:$24 sps:$4 sm:$0xff]  }
0x144f   :  { %12169 = vmatprep.subr.bf16.mxu1 %v16452_v29  ;;  %12292 = vmatprep.subr.bf16.mxu0 %v16455_v21  ;;  %v18263_v29 = vpack.c.bf16 %v10614_v54, %v10614_v54  ;;  %v16521_v21 = vld [vmem:[#allocation54 + $0x44] ss:$24 sps:$4 sm:$0xff]   ;;  %v16597_v54 = vld [vmem:[#allocation54 + $0x520] ss:$24 sps:$4 sm:$0xff]  }
0x1452   :  { %12170 = vmatpush1.bf16.msra.mxu1 %v16450_v25  ;;  %12293 = vmatpush1.bf16.msra.mxu0 %v16453_v26  ;;  %v16524_v25 = vld [vmem:[#allocation54 + $0x74] ss:$24 sps:$4 sm:$0xff]   ;;  %v16522_v26 = vld [vmem:[#allocation54 + $0x70] ss:$24 sps:$4 sm:$0xff]  }
0x1453   :  { %12171 = vmatprep.subr.bf16.mxu1 %v16458_v27  ;;  %12294 = vmatprep.subr.bf16.mxu0 %v16461_v31  ;;  %v16525_v27 = vld [vmem:[#allocation54 + $0xa0] ss:$24 sps:$4 sm:$0xff]   ;;  %v16530_v31 = vld [vmem:[#allocation54 + $0xd4] ss:$24 sps:$4 sm:$0xff]  }
0x1456   :  { %12172 = vmatpush1.bf16.msra.mxu1 %v16456_v55  ;;  %12295 = vmatpush1.bf16.msra.mxu0 %v16459_v37  ;;  %v16533_v55 = vld [vmem:[#allocation54 + $0x104] ss:$24 sps:$4 sm:$0xff]   ;;  %v16531_v37 = vld [vmem:[#allocation54 + $0x100] ss:$24 sps:$4 sm:$0xff]  }
0x1457   :  { %12173 = vmatprep.subr.bf16.mxu1 %v16464_v61  ;;  %12296 = vmatprep.subr.bf16.mxu0 %v16467_v33  ;;  %v16536_v61 = vld [vmem:[#allocation54 + $0x134] ss:$24 sps:$4 sm:$0xff]   ;;  %v16539_v33 = vld [vmem:[#allocation54 + $0x164] ss:$24 sps:$4 sm:$0xff]  }
0x145a   :  { %12174 = vmatpush1.bf16.msra.mxu1 %v16462_v34  ;;  %12297 = vmatpush1.bf16.msra.mxu0 %v16465_v40  ;;  %v16542_v34 = vld [vmem:[#allocation54 + $0x194] ss:$24 sps:$4 sm:$0xff]   ;;  %v16540_v40 = vld [vmem:[#allocation54 + $0x190] ss:$24 sps:$4 sm:$0xff]  }
0x145b   :  { %12184 = vmatprep.subr.bf16.mxu1 %v16470_v41  ;;  %12307 = vmatprep.subr.bf16.mxu0 %v16473_v42  ;;  %v16545_v41 = vld [vmem:[#allocation54 + $0x1c4] ss:$24 sps:$4 sm:$0xff]   ;;  %v16543_v42 = vld [vmem:[#allocation54 + $0x1c0] ss:$24 sps:$4 sm:$0xff]  }
0x145d   :  { %12176 = vmatmul.mubr.bf16.vlgmr.msra.gmra.mrb[60].mxu1 %v18254_v45  ;;  %12299 = vmatmul.mubr.bf16.vlgmr.msra.gmra.mrb[68].mxu0 %v18254_v45 }
0x145e   :  { %12185 = vmatpush1.bf16.msra.mxu1 %v16468_v52  ;;  %12308 = vmatpush1.bf16.msra.mxu0 %v16471_v44  ;;  %v16546_v52 = vld [vmem:[#allocation54 + $0x1f0] ss:$24 sps:$4 sm:$0xff]   ;;  %v16551_v44 = vld [vmem:[#allocation54 + $0x224] ss:$24 sps:$4 sm:$0xff]  }
0x145f   :  { %12186 = vmatprep.subr.bf16.mxu1 %v16476_v18  ;;  %12309 = vmatprep.subr.bf16.mxu0 %v16479_v47  ;;  %v16549_v18 = vld [vmem:[#allocation54 + $0x220] ss:$24 sps:$4 sm:$0xff]   ;;  %v16554_v47 = vld [vmem:[#allocation54 + $0x254] ss:$24 sps:$4 sm:$0xff]  }
0x1460   :  { %12216 = vmatprep.mubr.bf16.mxu1 %v17542_v6  ;;  %12339 = vmatprep.mubr.bf16.mxu0 %v17542_v6 }
0x1462   :  { %12187 = vmatpush1.bf16.msra.mxu1 %v16474_v50  ;;  %12310 = vmatpush1.bf16.msra.mxu0 %v16477_v51  ;;  %v16552_v50 = vld [vmem:[#allocation54 + $0x250] ss:$24 sps:$4 sm:$0xff]   ;;  %v16557_v51 = vld [vmem:[#allocation54 + $0x284] ss:$24 sps:$4 sm:$0xff]  }
0x1463   :  { %12188 = vmatprep.subr.bf16.mxu1 %v16482_v53  ;;  %12311 = vmatprep.subr.bf16.mxu0 %v16485_v38  ;;  %v16555_v53 = vld [vmem:[#allocation54 + $0x280] ss:$24 sps:$4 sm:$0xff]   ;;  %v16560_v38 = vld [vmem:[#allocation54 + $0x2b4] ss:$24 sps:$4 sm:$0xff]  }
0x1466   :  { %12189 = vmatpush1.bf16.msra.mxu1 %v16480_v56  ;;  %12312 = vmatpush1.bf16.msra.mxu0 %v16483_v48  ;;  %v16558_v56 = vld [vmem:[#allocation54 + $0x2b0] ss:$24 sps:$4 sm:$0xff]   ;;  %v16563_v48 = vld [vmem:[#allocation54 + $0x2e4] ss:$24 sps:$4 sm:$0xff]  }
0x1467   :  { %12190 = vmatprep.subr.bf16.mxu1 %v16488_v57  ;;  %12313 = vmatprep.subr.bf16.mxu0 %v16491_v30  ;;  %v16561_v57 = vld [vmem:[#allocation54 + $0x2e0] ss:$24 sps:$4 sm:$0xff]   ;;  %v16566_v30 = vld [vmem:[#allocation54 + $0x314] ss:$24 sps:$4 sm:$0xff]  }
0x146a   :  { %12191 = vmatpush1.bf16.msra.mxu1 %v16486_v58  ;;  %12314 = vmatpush1.bf16.msra.mxu0 %v16489_v59  ;;  %v16564_v58 = vld [vmem:[#allocation54 + $0x310] ss:$24 sps:$4 sm:$0xff]   ;;  %v16569_v59 = vld [vmem:[#allocation54 + $0x344] ss:$24 sps:$4 sm:$0xff]  }
0x146b   :  { %12192 = vmatprep.subr.bf16.mxu1 %v16494_v60  ;;  %12315 = vmatprep.subr.bf16.mxu0 %v16497_v23  ;;  %v16567_v60 = vld [vmem:[#allocation54 + $0x340] ss:$24 sps:$4 sm:$0xff]   ;;  %v16572_v23 = vld [vmem:[#allocation54 + $0x374] ss:$24 sps:$4 sm:$0xff]  }
0x146e   :  { %12193 = vmatpush1.bf16.msra.mxu1 %v16492_v62  ;;  %12316 = vmatpush1.bf16.msra.mxu0 %v16495_v63  ;;  %v16570_v62 = vld [vmem:[#allocation54 + $0x370] ss:$24 sps:$4 sm:$0xff]   ;;  %v16575_v63 = vld [vmem:[#allocation54 + $0x3a4] ss:$24 sps:$4 sm:$0xff]  }
0x146f   :  { %12194 = vmatprep.subr.bf16.mxu1 %v16500_v0  ;;  %12317 = vmatprep.subr.bf16.mxu0 %v16503_v32  ;;  %v16573_v0 = vld [vmem:[#allocation54 + $0x3a0] ss:$24 sps:$4 sm:$0xff]   ;;  %v16578_v32 = vld [vmem:[#allocation54 + $0x3d4] ss:$24 sps:$4 sm:$0xff]  }
0x1472   :  { %12195 = vmatpush1.bf16.msra.mxu1 %v16498_v1  ;;  %12318 = vmatpush1.bf16.msra.mxu0 %v16501_v2  ;;  %v16576_v1 = vld [vmem:[#allocation54 + $0x3d0] ss:$24 sps:$4 sm:$0xff]   ;;  %v16581_v2 = vld [vmem:[#allocation54 + $0x404] ss:$24 sps:$4 sm:$0xff]  }
0x1473   :  { %12196 = vmatprep.subr.bf16.mxu1 %v16506_v4  ;;  %12319 = vmatprep.subr.bf16.mxu0 %v16509_v5  ;;  %v16584_v4 = vld [vmem:[#allocation54 + $0x434] ss:$24 sps:$4 sm:$0xff]   ;;  %v16587_v5 = vld [vmem:[#allocation54 + $0x464] ss:$24 sps:$4 sm:$0xff]  }
0x1476   :  { %12197 = vmatpush1.bf16.msra.mxu1 %v16504_v8  ;;  %12320 = vmatpush1.bf16.msra.mxu0 %v16507_v10  ;;  %v16585_v8 = vld [vmem:[#allocation54 + $0x460] ss:$24 sps:$4 sm:$0xff]   ;;  %v16590_v10 = vld [vmem:[#allocation54 + $0x494] ss:$24 sps:$4 sm:$0xff]  }
0x1477   :  { %12198 = vmatprep.subr.bf16.mxu1 %v16512_v11  ;;  %12321 = vmatprep.subr.bf16.mxu0 %v16515_v46  ;;  %v16588_v11 = vld [vmem:[#allocation54 + $0x490] ss:$24 sps:$4 sm:$0xff]   ;;  %v16593_v46 = vld [vmem:[#allocation54 + $0x4c4] ss:$24 sps:$4 sm:$0xff]  }
0x147a   :  { %12199 = vmatpush1.bf16.msra.mxu1 %v16510_v14  ;;  %12322 = vmatpush1.bf16.msra.mxu0 %v16513_v49  ;;  %v16596_v14 = vld [vmem:[#allocation54 + $0x4f4] ss:$24 sps:$4 sm:$0xff]   ;;  %v16594_v49 = vld [vmem:[#allocation54 + $0x4f0] ss:$24 sps:$4 sm:$0xff]  }
0x147b   :  { %12348 = vmatprep.subr.bf16.mxu1 %v16518_v19  ;;  %v16599_v19 = vld [vmem:[#allocation54 + $0x524] ss:$24 sps:$4 sm:$0xff]  }
0x147d   :  { %12217 = vmatmul.mubr.bf16.vlgmr.msra.gmra.mrb[60].mxu1 %v18263_v29  ;;  %12340 = vmatmul.mubr.bf16.vlgmr.msra.gmra.mrb[68].mxu0 %v18263_v29 }
0x147e   :  { %12349 = vmatpush1.bf16.msra.mxu1 %v16516_v20  ;;  %12380 = vmatprep.mubr.bf16.mxu1 %v18235_v3  ;;  %v16534_v3 = vld [vmem:[#allocation54 + $0x130] ss:$24 sps:$4 sm:$0xff]   ;;  %v16602_v20 = vld [vmem:[#allocation54 + $0x554] ss:$24 sps:$4 sm:$0xff]  }
0x147f   :  { %12350 = vmatprep.subr.bf16.mxu1 %v16521_v21  ;;  %v16600_v21 = vld [vmem:[#allocation54 + $0x550] ss:$24 sps:$4 sm:$0xff]  }
0x1482   :  { %12351 = vmatpush1.bf16.msra.mxu1 %v16519_v22  ;;  %v16605_v22 = vld [vmem:[#allocation54 + $0x584] ss:$24 sps:$4 sm:$0xff]  }
0x1483   :  { %12352 = vmatprep.subr.bf16.mxu1 %v16524_v25  ;;  %v16603_v25 = vld [vmem:[#allocation54 + $0x580] ss:$24 sps:$4 sm:$0xff]  }
0x1486   :  { %12353 = vmatpush1.bf16.msra.mxu1 %v16522_v26  ;;  %v16608_v26 = vld [vmem:[#allocation54 + $0x5b4] ss:$24 sps:$4 sm:$0xff]  }
0x1487   :  { %12354 = vmatprep.subr.bf16.mxu1 %v16527_v7  ;;  %v16606_v7 = vld [vmem:[#allocation54 + $0x5b0] ss:$24 sps:$4 sm:$0xff]  }
0x148a   :  { %12355 = vmatpush1.bf16.msra.mxu1 %v16525_v27  ;;  %v16611_v27 = vld [vmem:[#allocation54 + $0x5e4] ss:$24 sps:$4 sm:$0xff]  }
0x148b   :  { %12356 = vmatprep.subr.bf16.mxu1 %v16530_v31  ;;  %v16609_v31 = vld [vmem:[#allocation54 + $0x5e0] ss:$24 sps:$4 sm:$0xff]  }
0x148e   :  { %12357 = vmatpush1.bf16.msra.mxu1 %v16528_v35  ;;  %v16614_v35 = vld [vmem:[#allocation54 + $0x614] ss:$24 sps:$4 sm:$0xff]  }
0x148f   :  { %12358 = vmatprep.subr.bf16.mxu1 %v16533_v55  ;;  %v16612_v55 = vld [vmem:[#allocation54 + $0x610] ss:$24 sps:$4 sm:$0xff]  }
0x1492   :  { %12359 = vmatpush1.bf16.msra.mxu1 %v16531_v37  ;;  %v16617_v37 = vld [vmem:[#allocation54 + $0x644] ss:$24 sps:$4 sm:$0xff]  }
0x1493   :  { %12360 = vmatprep.subr.bf16.mxu1 %v16536_v61  ;;  %v16615_v61 = vld [vmem:[#allocation54 + $0x640] ss:$24 sps:$4 sm:$0xff]  }
0x1496   :  { %12361 = vmatpush1.bf16.msra.mxu1 %v16534_v3  ;;  %v16620_v3 = vld [vmem:[#allocation54 + $0x674] ss:$24 sps:$4 sm:$0xff]  }
0x1497   :  { %12362 = vmatprep.subr.bf16.mxu1 %v16539_v33  ;;  %v16618_v33 = vld [vmem:[#allocation54 + $0x670] ss:$24 sps:$4 sm:$0xff]  }
0x149a   :  { %12363 = vmatpush1.bf16.msra.mxu1 %v16537_v39  ;;  %v16623_v39 = vld [vmem:[#allocation54 + $0x6a4] ss:$24 sps:$4 sm:$0xff]  }
0x149b   :  { %12364 = vmatprep.subr.bf16.mxu1 %v16542_v34  ;;  %v16621_v34 = vld [vmem:[#allocation54 + $0x6a0] ss:$24 sps:$4 sm:$0xff]  }
0x149e   :  { %12365 = vmatpush1.bf16.msra.mxu1 %v16540_v40  ;;  %v16626_v40 = vld [vmem:[#allocation54 + $0x6d4] ss:$24 sps:$4 sm:$0xff]  }
0x149f   :  { %12366 = vmatprep.subr.bf16.mxu1 %v16545_v41  ;;  %v16624_v41 = vld [vmem:[#allocation54 + $0x6d0] ss:$24 sps:$4 sm:$0xff]  }
0x14a2   :  { %12367 = vmatpush1.bf16.msra.mxu1 %v16543_v42  ;;  %v16629_v42 = vld [vmem:[#allocation54 + $0x704] ss:$24 sps:$4 sm:$0xff]  }
0x14a3   :  { %12368 = vmatprep.subr.bf16.mxu1 %v16548_v43  ;;  %v16632_v43 = vld [vmem:[#allocation54 + $0x734] ss:$24 sps:$4 sm:$0xff]  }
0x14a6   :  { %12369 = vmatpush1.bf16.msra.mxu1 %v16546_v52  ;;  %v16635_v52 = vld [vmem:[#allocation54 + $0x764] ss:$24 sps:$4 sm:$0xff]  }
0x14a7   :  { %12370 = vmatprep.subr.bf16.mxu1 %v16551_v44  ;;  %v16633_v44 = vld [vmem:[#allocation54 + $0x760] ss:$24 sps:$4 sm:$0xff]  }
0x14aa   :  { %12371 = vmatpush1.bf16.msra.mxu1 %v16549_v18  ;;  %v10870_v18 = vld [vmem:[#allocation55] sm:$0x3f] }
0x14ab   :  { %12372 = vmatprep.subr.bf16.mxu1 %v16554_v47  ;;  %v10875_v47 = vrot.slane %v10870_v18, %v18025_v16 }
0x14ae   :  { %12373 = vmatpush1.bf16.msra.mxu1 %v16552_v50  ;;  %v10883_v50 = vrot.slane %v10870_v18, %v18039_v28 }
0x14af   :  { %12374 = vmatprep.subr.bf16.mxu1 %v16557_v51  ;;  %v10879_v51 = vrot.slane %v10870_v18, %v18028_v17 }
0x14b2   :  { %12375 = vmatpush1.bf16.msra.mxu1 %v16555_v53  ;;  %v10887_v53 = vrot.slane %v10870_v18, %v18042_v36 }
0x14b3   :  { %12376 = vmatprep.subr.bf16.mxu1 %v16560_v38 }
0x14b6   :  { %12377 = vmatpush1.bf16.msra.mxu1 %v16558_v56 }
0x14b7   :  { %12378 = vmatprep.subr.bf16.mxu1 %v16563_v48 }
0x14ba   :  { %12379 = vmatpush1.bf16.msra.mxu1 %v16561_v57 }
0x14bb   :  { %12389 = vmatprep.subr.bf16.mxu1 %v16566_v30 }
0x14bd   :  { %12381 = vmatmul.mubr.bf16.vlgmr.msra.gmra.mrb[64].mxu1 %v18237_v9  ;;  %v16579_v9 = vld [vmem:[#allocation54 + $0x400] ss:$24 sps:$4 sm:$0xff]  }
0x14be   :  { %12390 = vmatpush1.bf16.msra.mxu1 %v16564_v58  ;;  %12421 = vmatprep.mubr.bf16.mxu1 %v18243_v12  ;;  %v16582_v12 = vld [vmem:[#allocation54 + $0x430] ss:$24 sps:$4 sm:$0xff]  }
0x14bf   :  { %12391 = vmatprep.subr.bf16.mxu1 %v16569_v59 }
0x14c2   :  { %12392 = vmatpush1.bf16.msra.mxu1 %v16567_v60 }
0x14c3   :  { %12393 = vmatprep.subr.bf16.mxu1 %v16572_v23 }
0x14c6   :  { %12394 = vmatpush1.bf16.msra.mxu1 %v16570_v62 }
0x14c7   :  { %12395 = vmatprep.subr.bf16.mxu1 %v16575_v63 }
0x14ca   :  { %12396 = vmatpush1.bf16.msra.mxu1 %v16573_v0 }
0x14cb   :  { %12397 = vmatprep.subr.bf16.mxu1 %v16578_v32 }
0x14ce   :  { %12398 = vmatpush1.bf16.msra.mxu1 %v16576_v1 }
0x14cf   :  { %12399 = vmatprep.subr.bf16.mxu1 %v16581_v2 }
0x14d2   :  { %12400 = vmatpush1.bf16.msra.mxu1 %v16579_v9 }
0x14d3   :  { %12401 = vmatprep.subr.bf16.mxu1 %v16584_v4 }
0x14d6   :  { %12402 = vmatpush1.bf16.msra.mxu1 %v16582_v12 }
0x14d7   :  { %12403 = vmatprep.subr.bf16.mxu1 %v16587_v5 }
0x14da   :  { %12404 = vmatpush1.bf16.msra.mxu1 %v16585_v8 }
0x14db   :  { %12405 = vmatprep.subr.bf16.mxu1 %v16590_v10 }
0x14de   :  { %12406 = vmatpush1.bf16.msra.mxu1 %v16588_v11 }
0x14df   :  { %12407 = vmatprep.subr.bf16.mxu1 %v16593_v46 }
0x14e2   :  { %12408 = vmatpush1.bf16.msra.mxu1 %v16591_v13  ;;  %v10894_v13 = vsub.s32 5, %v18022_v15 }
0x14e3   :  { %12409 = vmatprep.subr.bf16.mxu1 %v16596_v14  ;;  %v10891_v14 = vrot.slane %v10870_v18, %v18053_v24 }
0x14e6   :  { %12410 = vmatpush1.bf16.msra.mxu1 %v16594_v49  ;;  %v10895_v49 = vrot.slane %v10870_v18, %v10894_v13 }
0x14e7   :  { %12411 = vmatprep.subr.bf16.mxu1 %v16599_v19 }
0x14ea   :  { %12412 = vmatpush1.bf16.msra.mxu1 %v16597_v54 }
0x14eb   :  { %12413 = vmatprep.subr.bf16.mxu1 %v16602_v20 }
0x14ee   :  { %12414 = vmatpush1.bf16.msra.mxu1 %v16600_v21 }
0x14ef   :  { %12415 = vmatprep.subr.bf16.mxu1 %v16605_v22 }
0x14f2   :  { %12416 = vmatpush1.bf16.msra.mxu1 %v16603_v25 }
0x14f3   :  { %12417 = vmatprep.subr.bf16.mxu1 %v16608_v26 }
0x14f6   :  { %12418 = vmatpush1.bf16.msra.mxu1 %v16606_v7 }
0x14f7   :  { %12419 = vmatprep.subr.bf16.mxu1 %v16611_v27 }
0x14fa   :  { %12420 = vmatpush1.bf16.msra.mxu1 %v16609_v31 }
0x14fb   :  { %12430 = vmatprep.subr.bf16.mxu1 %v16614_v35 }
0x14fd   :  { %12422 = vmatmul.mubr.bf16.vlgmr.msra.gmra.mrb[64].mxu1 %v18254_v45  ;;  %v16627_v45 = vld [vmem:[#allocation54 + $0x700] ss:$24 sps:$4 sm:$0xff]  }
0x14fe   :  { %12431 = vmatpush1.bf16.msra.mxu1 %v16612_v55  ;;  %12462 = vmatprep.mubr.bf16.mxu1 %v17542_v6  ;;  %v16630_v6 = vld [vmem:[#allocation54 + $0x730] ss:$24 sps:$4 sm:$0xff]  }
0x14ff   :  { %12432 = vmatprep.subr.bf16.mxu1 %v16617_v37 }
0x1502   :  { %12433 = vmatpush1.bf16.msra.mxu1 %v16615_v61 }
0x1503   :  { %12434 = vmatprep.subr.bf16.mxu1 %v16620_v3 }
0x1506   :  { %12435 = vmatpush1.bf16.msra.mxu1 %v16618_v33 }
0x1507   :  { %12436 = vmatprep.subr.bf16.mxu1 %v16623_v39 }
0x150a   :  { %12437 = vmatpush1.bf16.msra.mxu1 %v16621_v34 }
0x150b   :  { %12438 = vmatprep.subr.bf16.mxu1 %v16626_v40 }
0x150e   :  { %12439 = vmatpush1.bf16.msra.mxu1 %v16624_v41 }
0x150f   :  { %12440 = vmatprep.subr.bf16.mxu1 %v16629_v42 }
0x1512   :  { %12441 = vmatpush1.bf16.msra.mxu1 %v16627_v45 }
0x1513   :  { %12442 = vmatprep.subr.bf16.mxu1 %v16632_v43 }
0x1516   :  { %12443 = vmatpush1.bf16.msra.mxu1 %v16630_v6 }
0x1517   :  { %12444 = vmatprep.subr.bf16.mxu1 %v16635_v52 }
0x151a   :  { %12445 = vmatpush1.bf16.msra.mxu1 %v16633_v44 }
0x151d   :  { %12463 = vmatmul.mubr.bf16.vlgmr.msra.gmra.mrb[64].mxu1 %v18263_v29 }
0x1550   :  { %v12218_v38 = vpop.f32.mrb[60].mxu1  ;;  %v12341_v56 = vpop.f32.mrb[68].mxu0 }
0x1551   :  { %v14392_v48 = vadd.f32 %v12218_v38, %v10875_v47  ;;  %v14394_v57 = vadd.f32 %v12341_v56, %v10883_v50  ;;  %v12220_v30 = vpop.f32.mrb[61].mxu1  ;;  %v12343_v58 = vpop.f32.mrb[69].mxu0 }
0x1552   :  { %v14393_v59 = vadd.f32 %v12220_v30, %v10879_v51  ;;  %v14395_v60 = vadd.f32 %v12343_v58, %v10887_v53  ;;  %v12222_v23 = vpop.f32.mrb[62].mxu1  ;;  %v12345_v62 = vpop.f32.mrb[70].mxu0 }
0x1553   :  { %v12471_v29 = vmul.f32 0.5, %v14392_v48  ;;  %v12473_v63 = vmul.f32 0.5, %v14394_v57  ;;  %v12223_v0 = vpop.f32.mrb[63].mxu1  ;;  %v12346_v16 = vpop.f32.mrb[71].mxu0 }
0x1554   :  { %v12472_v32 = vmul.f32 0.5, %v14393_v59  ;;  %v12474_v28 = vmul.f32 0.5, %v14395_v60 }
0x1555   :  { %16636 = vtanh.f32 %v12471_v29 }
0x1556   :  { %16638 = vtanh.f32 %v12473_v63 }
0x1557   :  { %16640 = vtanh.f32 %v12472_v32 }
0x1558   :  { %16642 = vtanh.f32 %v12474_v28 }
0x155f   :  { %v16637_v17 = vpop.eup %16636 }
0x1560   :  { %v16639_v36 = vpop.eup %16638  ;;  %v12483_v1 = vadd.f32 1.0, %v16637_v17 }
0x1561   :  { %v16641_v2 = vpop.eup %16640  ;;  %v12485_v9 = vadd.f32 1.0, %v16639_v36 }
0x1562   :  { %v16643_v4 = vpop.eup %16642  ;;  %v12489_v12 = vmul.f32 0.5, %v12483_v1  ;;  %v12484_v5 = vadd.f32 1.0, %v16641_v2 }
0x1563   :  { %v12491_v8 = vmul.f32 0.5, %v12485_v9  ;;  %v12486_v10 = vadd.f32 1.0, %v16643_v4 }
0x1564   :  { %12495 = vst [vmem:[#allocation57] sm:$0xff] %v12489_v12  ;;  %v12490_v11 = vmul.f32 0.5, %v12484_v5 }
0x1565   :  { %12497 = vst [vmem:[#allocation57 + $0x10] sm:$0xff] %v12491_v8  ;;  %v12492_v46 = vmul.f32 0.5, %v12486_v10 }
0x1566   :  { %12496 = vst [vmem:[#allocation57 + $0x8] sm:$0xff] %v12490_v11 }
0x1567   :  { %12498 = vst [vmem:[#allocation57 + $0x18] sm:$0xff] %v12492_v46 }
0x15f0   :  { %v12464_v19 = vpop.f32.mrb[64].mxu1 }
0x15f1   :  { %v14396_v54 = vadd.f32 %v12464_v19, %v10891_v14  ;;  %v12466_v20 = vpop.f32.mrb[65].mxu1 }
0x15f2   :  { %v14397_v21 = vadd.f32 %v12466_v20, %v10895_v49  ;;  %v12468_v22 = vpop.f32.mrb[66].mxu1 }
0x15f3   :  { %v12475_v25 = vmul.f32 0.5, %v14396_v54  ;;  %v12469_v26 = vpop.f32.mrb[67].mxu1 }
0x15f4   :  { %v12476_v7 = vmul.f32 0.5, %v14397_v21 }
0x15f5   :  { %16644 = vtanh.f32 %v12475_v25 }
0x15f6   :  { %16646 = vtanh.f32 %v12476_v7 }
0x15ff   :  { %v16645_v27 = vpop.eup %16644 }
0x1600   :  { %v16647_v31 = vpop.eup %16646  ;;  %v12487_v35 = vadd.f32 1.0, %v16645_v27 }
0x1601   :  { %v12488_v55 = vadd.f32 1.0, %v16647_v31 }
0x1602   :  { %v12493_v15 = vmul.f32 0.5, %v12487_v35 }
0x1603   :  { %v12494_v37 = vmul.f32 0.5, %v12488_v55 }
0x1604   :  { %12499 = vst [vmem:[#allocation57 + $0x20] sm:$0xff] %v12493_v15 }
0x1605   :  { %12500 = vst [vmem:[#allocation57 + $0x28] sm:$0xff] %v12494_v37 }
0x1606   :  { %17407 = shalt.err (!%p17404_p10)
}
0x1607   :  { %s17408_s27 = scalar_lea.hbm %s17744_s20, 768 }
0x1608   :  { %p17409_p11 = scmp.ne.s32.totalorder %s17744_s20, %s17408_s27  ;;  %p17412_p12 = scmp.lt.u32.totalorder %s17408_s27, %s17744_s20 }
0x160a   :  { %p17414_p13 = pnand %p17412_p12, %p17409_p11 }
0x160c   :  { %17417 = shalt.err (!%p17414_p13)
}
0x160d   :  { %12510 = dma.vmem_to_hbm [thread:$0]  %s12508_s13, 768, %s17744_s20, [#allocation6]  }
0x160e   :  { %17454 = dma.done.wait [#allocation6], 768  }
0x160f   :  { %17455 = vsyncadd [#allocation6], 4294966528 }
0x1610   :  { %12522 = vsyncpa [#allocation5], 1 }
0x1611   :  { %12523 = vsyncpa [#allocation8], 1 }
0x1612   :  { %12524 = vsyncpa [#allocation11], 1 }
0x1613   :  { %12525 = vsyncpa [#allocation14], 1 }
0x1614   :  { %12526 = vsyncpa [#allocation17], 1 }
0x1615   :  { %12527 = vsyncpa [#allocation20], 1 }
0x1616   :  { %12528 = vsyncpa [#allocation23], 1 }
0x1617   :  { %12529 = vsyncpa [#allocation26], 1 }
0x1618   :  { %12530 = vsyncpa [#allocation29], 1 }
0x1619   :  { %12531 = vsyncpa [#allocation32], 1 }
0x161a   :  { %12532 = vsyncpa [#allocation35], 1 }
0x161b   :  { %12533 = vsyncpa [#allocation38], 1 }
0x161c   :  { %12534 = vsyncpa [#allocation41], 1 }
0x161d   :  { %12535 = vsyncpa [#allocation44], 1 }
0x161e   :  { %12536 = vsyncpa [#allocation47], 1 }
0x161f   :  { %12537 = vsyncpa [#allocation50], 1 }
0x1620   :  { %12538 = vsyncpa [#allocation53], 1 }
0x1621   :  { %12539 = vsyncpa [#allocation56], 1 }
0x1622   :  { %12540 = vsyncpa [#allocation6], 1 }

</bundles_post_ra>
